<compile_context>
chip_gen: v6e
topology: v6e:2x2x1
jax: 0.10.0
libtpu: 0.0.40
codegen_flags: <defaults>
</compile_context>

<pallas_src>
import functools
import numpy as np
import jax
import jax.numpy as jnp
from jax import lax
from jax.experimental import pallas as pl
from jax.experimental.pallas import tpu as pltpu

EMBEDDING_DIM = 32
NUM_EMBEDDINGS = 512


# ---------------------------------------------------------------------------
# Generic matmul + bias + activation kernel (bf16 MXU inputs, f32 accumulate)
# ---------------------------------------------------------------------------
def _mm_bias_act_kernel(a_ref, b_ref, bias_ref, o_ref, *, act):
    x = jnp.dot(a_ref[...], b_ref[...], preferred_element_type=jnp.float32)
    x = x + bias_ref[...]
    if act == "relu":
        x = jnp.maximum(x, 0.0)
    o_ref[...] = x


def pallas_matmul_bias_act(a, b, bias, act="none"):
    """act( a @ b + bias ), a:(M,K) b:(K,N) bias:(N,) -> (M,N) float32."""
    M, K = a.shape
    _, N = b.shape
    a = a.astype(jnp.bfloat16)
    b = b.astype(jnp.bfloat16)
    bias2 = bias.astype(jnp.float32).reshape(1, N)
    kern = functools.partial(_mm_bias_act_kernel, act=act)

    if M <= 1024:
        # Tiny/medium layers: one full-array block, no grid, no row padding.
        return pl.pallas_call(
            kern,
            out_shape=jax.ShapeDtypeStruct((M, N), jnp.float32),
        )(a, b, bias2)

    tm = 512                                   # >=2 blocks -> both v7x TCs busy
    Mp = pl.cdiv(M, tm) * tm
    if Mp != M:
        a = jnp.pad(a, ((0, Mp - M), (0, 0)))
    out = pl.pallas_call(
        kern,
        out_shape=jax.ShapeDtypeStruct((Mp, N), jnp.float32),
        grid=(Mp // tm,),
        in_specs=[
            pl.BlockSpec((tm, K), lambda i: (i, 0)),
            pl.BlockSpec((K, N), lambda i: (0, 0)),
            pl.BlockSpec((1, N), lambda i: (0, 0)),
        ],
        out_specs=pl.BlockSpec((tm, N), lambda i: (i, 0)),
        compiler_params=pltpu.CompilerParams(dimension_semantics=("parallel",)),
    )(a, b, bias2)
    return out if Mp == M else out[:M]


# ---------------------------------------------------------------------------
# Fused conv4 (1x1 conv == matmul) + vector quantization (all f32)
# ---------------------------------------------------------------------------
def _conv4_vq_kernel(h_ref, w4_ref, b4_ref, e_ref, e2_ref, q_ref, idx_ref):
    z = jnp.dot(h_ref[...], w4_ref[...], preferred_element_type=jnp.float32)
    z = z + b4_ref[...]                                            # (M, D) latents
    e = e_ref[...]                                                 # (Nc, D)
    M = z.shape[0]
    Nc = e.shape[0]
    # ||z - e||^2 = ||z||^2 - 2 z.e + ||e||^2 ; ||z||^2 is per-row constant
    # so it does not change the argmin.  ||e||^2 is precomputed in the wrapper.
    ze = lax.dot_general(z, e, (((1,), (1,)), ((), ())),
                         preferred_element_type=jnp.float32)       # (M, Nc)
    scores = e2_ref[...] - 2.0 * ze                                # (M, Nc)
    minval = jnp.min(scores, axis=1, keepdims=True)                # (M, 1)
    iota = lax.broadcasted_iota(jnp.int32, (M, Nc), 1)
    idx2d = jnp.min(jnp.where(scores <= minval, iota, Nc),
                    axis=1, keepdims=True).astype(jnp.int32)       # (M, 1)
    idx_ref[...] = idx2d
    onehot = (iota == idx2d).astype(jnp.float32)                   # (M, Nc)
    q_ref[...] = lax.dot_general(onehot, e, (((1,), (0,)), ((), ())),
                                 preferred_element_type=jnp.float32)


def pallas_conv4_vq(h_flat, w4, b4, codebook):
    """h_flat:(M,128) conv3 activations -> (quantized (M,32), indices (M,))."""
    M = h_flat.shape[0]
    D = codebook.shape[1]
    w4mat = w4.reshape(w4.shape[0], w4.shape[1]).T                 # (Cin, Cout)
    e2 = jnp.sum(codebook * codebook, axis=1)[None, :]             # (1, Nc)
    q, idx = pl.pallas_call(
        _conv4_vq_kernel,
        out_shape=(jax.ShapeDtypeStruct((M, D), jnp.float32),
                   jax.ShapeDtypeStruct((M, 1), jnp.int32)),
    )(h_flat.astype(jnp.float32), w4mat.astype(jnp.float32),
      b4.astype(jnp.float32).reshape(1, -1), codebook.astype(jnp.float32),
      e2.astype(jnp.float32))
    return q, idx[:, 0]


# ---------------------------------------------------------------------------
# Fused deconv5 (3x3, s=1, p=1, 16->1) + bilinear(->28x28) + sigmoid
# ---------------------------------------------------------------------------
def _final_kernel(x_ref, g_ref, whs_ref, wwT_ref, b_ref, o_ref):
    x2d = x_ref[0]                                                 # (H, W*C)
    acc = None
    for dy in range(3):
        c_dy = jnp.dot(x2d, g_ref[dy],
                       preferred_element_type=jnp.float32)         # (H, W)
        t = jnp.dot(whs_ref[dy], c_dy,
                    preferred_element_type=jnp.float32)            # (28, W)
        acc = t if acc is None else acc + t
    out = jnp.dot(acc, wwT_ref[...],
                  preferred_element_type=jnp.float32)              # (28, 28)
    o_ref[0] = jax.nn.sigmoid(out + b_ref[...])


def _bilinear_matrix(n_out, n_in):
    """align_corners=True bilinear interpolation matrix (n_out, n_in), numpy."""
    i = np.arange(n_out, dtype=np.float64)
    s = i * (n_in - 1) / (n_out - 1) if n_out > 1 else np.zeros_like(i)
    lo = np.floor(s).astype(np.int64)
    hi = np.minimum(lo + 1, n_in - 1)
    frac = s - lo
    W = np.zeros((n_out, n_in), np.float32)
    W[np.arange(n_out), lo] += (1.0 - frac).astype(np.float32)
    W[np.arange(n_out), hi] += frac.astype(np.float32)
    return W


def decoder_final(d4, w5, b5, out_hw=28):
    """Fused ConvTranspose2d(C,1,k=3,s=1,p=1) + bilinear resize + sigmoid.

    d4:(B,H,W,C) NHWC -> (B,out_hw,out_hw).  The 3x3 conv is folded into three
    (W*C, W) matrices (one per vertical tap); the vertical tap shift is folded
    into shifted row-interpolation matrices, so the whole stage is 5 small MXU
    matmuls per batch and the 1-channel conv output never touches HBM.
    """
    B, H, W, C = d4.shape
    x2d = d4.reshape(B, H, W * C)
    # flipped kernel of the equivalent regular conv: wf[c,dy,dx] = w5[c,0,2-dy,2-dx]
    wf = jnp.flip(w5[:, 0], axis=(1, 2))                           # (C, 3, 3)
    # S[dx, w, ox] = 1 iff w == ox + dx - 1  (horizontal tap selection)
    S = np.stack([np.eye(W, k=1 - dx, dtype=np.float32) for dx in range(3)])
    g = jnp.einsum("cyk,kwo->ywco", wf, S).reshape(3, W * C, W)    # (3, W*C, W)
    wh = _bilinear_matrix(out_hw, H)                               # (28, H)
    whs = np.stack([
        np.pad(wh[:, 1:], ((0, 0), (0, 1))),                       # vertical tap dy=0
        wh,                                                        # dy=1
        np.pad(wh[:, :-1], ((0, 0), (1, 0))),                      # dy=2
    ]).astype(np.float32)                                          # (3, 28, H)
    wwT = _bilinear_matrix(out_hw, W).T.astype(np.float32)         # (W, 28)
    b_row = jnp.tile(b5.reshape(1, 1).astype(jnp.float32), (1, out_hw))

    return pl.pallas_call(
        _final_kernel,
        out_shape=jax.ShapeDtypeStruct((B, out_hw, out_hw), jnp.float32),
        grid=(B,),
        in_specs=[
            pl.BlockSpec((1, H, W * C), lambda b: (b, 0, 0)),
            pl.BlockSpec((3, W * C, W), lambda b: (0, 0, 0)),
            pl.BlockSpec((3, out_hw, H), lambda b: (0, 0, 0)),
            pl.BlockSpec((W, out_hw), lambda b: (0, 0)),
            pl.BlockSpec((1, out_hw), lambda b: (0, 0)),
        ],
        out_specs=pl.BlockSpec((1, out_hw, out_hw), lambda b: (b, 0, 0)),
        compiler_params=pltpu.CompilerParams(dimension_semantics=("parallel",)),
    )(x2d, g, jnp.asarray(whs), jnp.asarray(wwT), b_row)


# ---------------------------------------------------------------------------
# Conv / ConvTranspose wrappers (patch extraction in XLA, matmuls in Pallas)
# ---------------------------------------------------------------------------
def _im2col(x_nhwc, k, stride, padding):
    B, H, W, C = x_nhwc.shape
    Ho = (H + 2 * padding - k) // stride + 1
    Wo = (W + 2 * padding - k) // stride + 1
    xp = jnp.pad(x_nhwc, ((0, 0), (padding, padding), (padding, padding), (0, 0)))
    cols = []
    for dy in range(k):
        for dx in range(k):
            cols.append(xp[:, dy:dy + stride * (Ho - 1) + 1:stride,
                           dx:dx + stride * (Wo - 1) + 1:stride, :])
    patches = jnp.stack(cols, axis=3)                              # (B,Ho,Wo,k*k,C)
    return patches.reshape(B * Ho * Wo, k * k * C), Ho, Wo


def conv2d_nhwc(x, w, b, stride, padding, act="none"):
    """PyTorch Conv2d. x:(B,H,W,Cin) NHWC, w:(Cout,Cin,k,k), b:(Cout,)."""
    B = x.shape[0]
    Cout, Cin, kh, kw = w.shape
    patches, Ho, Wo = _im2col(x, kh, stride, padding)
    wmat = jnp.transpose(w, (2, 3, 1, 0)).reshape(kh * kw * Cin, Cout)
    out = pallas_matmul_bias_act(patches, wmat, b, act=act)
    return out.reshape(B, Ho, Wo, Cout)


def _subpixel_selector():
    """sel[tap, phase, ky, kx] for ConvTranspose2d(k=4, s=2, p=1).

    Output pixel (2*my+ry, 2*mx+rx) = sum over 3x3-window taps (ty,tx) of the
    pad-1 input times kernel entry (ky, kx) = (ry+3-2*ty, rx+3-2*tx).
    """
    sel = np.zeros((9, 4, 4, 4), np.float32)
    for ty in range(3):
        for tx in range(3):
            for ry in range(2):
                for rx in range(2):
                    ky = ry + 3 - 2 * ty
                    kx = rx + 3 - 2 * tx
                    if 0 <= ky < 4 and 0 <= kx < 4:
                        sel[ty * 3 + tx, ry * 2 + rx, ky, kx] = 1.0
    return sel


_SUBPIX_SEL = _subpixel_selector()


def conv_transpose2d_s2(x, w, b):
    """PyTorch ConvTranspose2d(kernel=4, stride=2, padding=1) via sub-pixel
    decomposition (4 phase convs fused into one matmul); no zero-dilated
    im2col is ever materialized.  x NHWC, w:(Cin,Cout,4,4), b:(Cout,)."""
    B, H, W, Cin = x.shape
    Cout = w.shape[1]
    patches, _, _ = _im2col(x, 3, 1, 1)                            # (B*H*W, 9*Cin)
    wsub = jnp.einsum("cokl,tpkl->tcpo", w, _SUBPIX_SEL).reshape(9 * Cin, 4 * Cout)
    bias4 = jnp.tile(b, 4)
    out = pallas_matmul_bias_act(patches, wsub, bias4, act="none")  # (B*H*W, 4*Cout)
    out = out.reshape(B, H, W, 2, 2, Cout).transpose(0, 1, 3, 2, 4, 5)
    return out.reshape(B, 2 * H, 2 * W, Cout)


# ---------------------------------------------------------------------------
# Parameters
# ---------------------------------------------------------------------------
def _init_conv(key, out_c, in_c, k):
    kw, kb = jax.random.split(key)
    bound = 1.0 / jnp.sqrt(in_c * k * k)
    w = jax.random.uniform(kw, (out_c, in_c, k, k), jnp.float32, -bound, bound)
    b = jax.random.uniform(kb, (out_c,), jnp.float32, -bound, bound)
    return w, b


def _init_deconv(key, in_c, out_c, k):
    kw, kb = jax.random.split(key)
    bound = 1.0 / jnp.sqrt(out_c * k * k)
    w = jax.random.uniform(kw, (in_c, out_c, k, k), jnp.float32, -bound, bound)
    b = jax.random.uniform(kb, (out_c,), jnp.float32, -bound, bound)
    return w, b


def init_params(key):
    ks = jax.random.split(key, 10)
    p = {}
    p["conv1_w"], p["conv1_b"] = _init_conv(ks[0], 28, 1, 3)
    p["conv2_w"], p["conv2_b"] = _init_conv(ks[1], 64, 28, 3)
    p["conv3_w"], p["conv3_b"] = _init_conv(ks[2], 128, 64, 3)
    p["conv4_w"], p["conv4_b"] = _init_conv(ks[3], EMBEDDING_DIM, 128, 1)
    p["deconv1_w"], p["deconv1_b"] = _init_deconv(ks[4], EMBEDDING_DIM, 128, 4)
    p["deconv2_w"], p["deconv2_b"] = _init_deconv(ks[5], 128, 64, 4)
    p["deconv3_w"], p["deconv3_b"] = _init_deconv(ks[6], 64, 32, 4)
    p["deconv4_w"], p["deconv4_b"] = _init_deconv(ks[7], 32, 16, 4)
    p["deconv5_w"], p["deconv5_b"] = _init_deconv(ks[8], 16, 1, 3)
    p["vq_emb"] = jax.random.uniform(
        ks[9], (NUM_EMBEDDINGS, EMBEDDING_DIM), jnp.float32,
        -1.0 / NUM_EMBEDDINGS, 1.0 / NUM_EMBEDDINGS)
    return p


# ---------------------------------------------------------------------------
# Full VQVAE forward
# ---------------------------------------------------------------------------
def vqvae_forward(x, p):
    # NCHW -> NHWC (rows = B*H*W, lanes = channels, matching matmul layout)
    x = jnp.transpose(x, (0, 2, 3, 1))
    B = x.shape[0]

    # ----- Encoder -----
    h = conv2d_nhwc(x, p["conv1_w"], p["conv1_b"], 2, 1, act="relu")    # (B,14,14,28)
    h = conv2d_nhwc(h, p["conv2_w"], p["conv2_b"], 2, 1, act="relu")    # (B,7,7,64)
    h = conv2d_nhwc(h, p["conv3_w"], p["conv3_b"], 2, 1, act="relu")    # (B,4,4,128)
    Hh, Ww_ = h.shape[1], h.shape[2]
    h_flat = h.reshape(B * Hh * Ww_, h.shape[3])

    # ----- conv4 (1x1) + vector quantization (fused kernel) -----
    q_flat, idx = pallas_conv4_vq(h_flat, p["conv4_w"], p["conv4_b"], p["vq_emb"])
    quantized = q_flat.reshape(B, Hh, Ww_, EMBEDDING_DIM)               # (B,4,4,32)
    indices = idx.reshape(B, Hh, Ww_)

    # ----- Decoder (sub-pixel transposed convs) -----
    d = conv_transpose2d_s2(quantized, p["deconv1_w"], p["deconv1_b"])  # (B,8,8,128)
    d = conv_transpose2d_s2(d, p["deconv2_w"], p["deconv2_b"])          # (B,16,16,64)
    d = conv_transpose2d_s2(d, p["deconv3_w"], p["deconv3_b"])          # (B,32,32,32)
    d = conv_transpose2d_s2(d, p["deconv4_w"], p["deconv4_b"])          # (B,64,64,16)

    # ----- deconv5 + bilinear(28x28, align_corners=True) + sigmoid (fused) -----
    x_recon = decoder_final(d, p["deconv5_w"], p["deconv5_b"])          # (B,28,28)
    return x_recon[:, None, :, :], indices


if __name__ == "__main__":
    key = jax.random.PRNGKey(0)
    k_in, k_params = jax.random.split(key)
    # MNIST-like input, NCHW
    x = jax.random.uniform(k_in, (2, 1, 28, 28), jnp.float32)
    params = init_params(k_params)

    fwd = jax.jit(vqvae_forward)
    x_recon, indices = fwd(x, params)
    jax.block_until_ready((x_recon, indices))

    assert x_recon.shape == (2, 1, 28, 28), x_recon.shape
    assert indices.shape == (2, 4, 4), indices.shape
    assert x_recon.dtype == jnp.float32
    assert bool(jnp.all((x_recon >= 0.0) & (x_recon <= 1.0)))
    assert bool(jnp.all((indices >= 0) & (indices < NUM_EMBEDDINGS)))
    print("KERNEL_OK")
</pallas_src>

<mosaic_0001>
module attributes {stable_mosaic.version = 11 : i64} {
  func.func @_mm_bias_act_kernel(%arg0: memref<392x9xbf16, #tpu.memory_space<vmem>>, %arg1: memref<9x28xbf16, #tpu.memory_space<vmem>>, %arg2: memref<1x28xf32, #tpu.memory_space<vmem>>, %arg3: memref<392x28xf32, #tpu.memory_space<vmem>>) attributes {dimension_semantics = [], scalar_prefetch = 0 : i64, scratch_operands = 0 : i64, tpu.core_type = #tpu.core_type<tc>} {
    %c0 = arith.constant 0 : index
    %c0_0 = arith.constant 0 : index
    %0 = vector.load %arg0[%c0, %c0_0] : memref<392x9xbf16, #tpu.memory_space<vmem>>, vector<392x9xbf16>
    %c0_1 = arith.constant 0 : index
    %c0_2 = arith.constant 0 : index
    %1 = vector.load %arg1[%c0_1, %c0_2] : memref<9x28xbf16, #tpu.memory_space<vmem>>, vector<9x28xbf16>
    %cst = arith.constant dense<0.000000e+00> : vector<392x28xf32>
    %2 = tpu.matmul %0, %1, %cst {dimension_numbers = #tpu.dot_dimension_numbers<[1], [0], [0], [1], [0, 0, 1, 1], [], []>} : vector<392x9xbf16>, vector<9x28xbf16>, vector<392x28xf32> -> vector<392x28xf32>
    %c0_3 = arith.constant 0 : index
    %c0_4 = arith.constant 0 : index
    %3 = vector.load %arg2[%c0_3, %c0_4] : memref<1x28xf32, #tpu.memory_space<vmem>>, vector<1x28xf32>
    %4 = vector.broadcast %3 : vector<1x28xf32> to vector<392x28xf32>
    %5 = arith.addf %2, %4 : vector<392x28xf32>
    %cst_5 = arith.constant 0.000000e+00 : f32
    %6 = vector.broadcast %cst_5 : f32 to vector<392x28xf32>
    %7 = arith.maximumf %5, %6 : vector<392x28xf32>
    %c0_6 = arith.constant 0 : index
    %c0_7 = arith.constant 0 : index
    %8 = vector.load %arg3[%c0_6, %c0_7] : memref<392x28xf32, #tpu.memory_space<vmem>>, vector<392x28xf32>
    tpu.vector_store %arg3[%c0_6, %c0_7], %7 {strides = array<i32>} : memref<392x28xf32, #tpu.memory_space<vmem>>, vector<392x28xf32>,
    return
  }
}

module attributes {stable_mosaic.version = 11 : i64} {
  func.func @_mm_bias_act_kernel(%arg0: memref<98x252xbf16, #tpu.memory_space<vmem>>, %arg1: memref<252x64xbf16, #tpu.memory_space<vmem>>, %arg2: memref<1x64xf32, #tpu.memory_space<vmem>>, %arg3: memref<98x64xf32, #tpu.memory_space<vmem>>) attributes {dimension_semantics = [], scalar_prefetch = 0 : i64, scratch_operands = 0 : i64, tpu.core_type = #tpu.core_type<tc>} {
    %c0 = arith.constant 0 : index
    %c0_0 = arith.constant 0 : index
    %0 = vector.load %arg0[%c0, %c0_0] : memref<98x252xbf16, #tpu.memory_space<vmem>>, vector<98x252xbf16>
    %c0_1 = arith.constant 0 : index
    %c0_2 = arith.constant 0 : index
    %1 = vector.load %arg1[%c0_1, %c0_2] : memref<252x64xbf16, #tpu.memory_space<vmem>>, vector<252x64xbf16>
    %cst = arith.constant dense<0.000000e+00> : vector<98x64xf32>
    %2 = tpu.matmul %0, %1, %cst {dimension_numbers = #tpu.dot_dimension_numbers<[1], [0], [0], [1], [0, 0, 1, 1], [], []>} : vector<98x252xbf16>, vector<252x64xbf16>, vector<98x64xf32> -> vector<98x64xf32>
    %c0_3 = arith.constant 0 : index
    %c0_4 = arith.constant 0 : index
    %3 = vector.load %arg2[%c0_3, %c0_4] : memref<1x64xf32, #tpu.memory_space<vmem>>, vector<1x64xf32>
    %4 = vector.broadcast %3 : vector<1x64xf32> to vector<98x64xf32>
    %5 = arith.addf %2, %4 : vector<98x64xf32>
    %cst_5 = arith.constant 0.000000e+00 : f32
    %6 = vector.broadcast %cst_5 : f32 to vector<98x64xf32>
    %7 = arith.maximumf %5, %6 : vector<98x64xf32>
    %c0_6 = arith.constant 0 : index
    %c0_7 = arith.constant 0 : index
    %8 = vector.load %arg3[%c0_6, %c0_7] : memref<98x64xf32, #tpu.memory_space<vmem>>, vector<98x64xf32>
    tpu.vector_store %arg3[%c0_6, %c0_7], %7 {strides = array<i32>} : memref<98x64xf32, #tpu.memory_space<vmem>>, vector<98x64xf32>,
    return
  }
}

module attributes {stable_mosaic.version = 11 : i64} {
  func.func @_mm_bias_act_kernel(%arg0: memref<32x576xbf16, #tpu.memory_space<vmem>>, %arg1: memref<576x128xbf16, #tpu.memory_space<vmem>>, %arg2: memref<1x128xf32, #tpu.memory_space<vmem>>, %arg3: memref<32x128xf32, #tpu.memory_space<vmem>>) attributes {dimension_semantics = [], scalar_prefetch = 0 : i64, scratch_operands = 0 : i64, tpu.core_type = #tpu.core_type<tc>} {
    %c0 = arith.constant 0 : index
    %c0_0 = arith.constant 0 : index
    %0 = vector.load %arg0[%c0, %c0_0] : memref<32x576xbf16, #tpu.memory_space<vmem>>, vector<32x576xbf16>
    %c0_1 = arith.constant 0 : index
    %c0_2 = arith.constant 0 : index
    %1 = vector.load %arg1[%c0_1, %c0_2] : memref<576x128xbf16, #tpu.memory_space<vmem>>, vector<576x128xbf16>
    %cst = arith.constant dense<0.000000e+00> : vector<32x128xf32>
    %2 = tpu.matmul %0, %1, %cst {dimension_numbers = #tpu.dot_dimension_numbers<[1], [0], [0], [1], [0, 0, 1, 1], [], []>} : vector<32x576xbf16>, vector<576x128xbf16>, vector<32x128xf32> -> vector<32x128xf32>
    %c0_3 = arith.constant 0 : index
    %c0_4 = arith.constant 0 : index
    %3 = vector.load %arg2[%c0_3, %c0_4] : memref<1x128xf32, #tpu.memory_space<vmem>>, vector<1x128xf32>
    %4 = vector.broadcast %3 : vector<1x128xf32> to vector<32x128xf32>
    %5 = arith.addf %2, %4 : vector<32x128xf32>
    %cst_5 = arith.constant 0.000000e+00 : f32
    %6 = vector.broadcast %cst_5 : f32 to vector<32x128xf32>
    %7 = arith.maximumf %5, %6 : vector<32x128xf32>
    %c0_6 = arith.constant 0 : index
    %c0_7 = arith.constant 0 : index
    %8 = vector.load %arg3[%c0_6, %c0_7] : memref<32x128xf32, #tpu.memory_space<vmem>>, vector<32x128xf32>
    tpu.vector_store %arg3[%c0_6, %c0_7], %7 {strides = array<i32>} : memref<32x128xf32, #tpu.memory_space<vmem>>, vector<32x128xf32>,
    return
  }
}

module attributes {stable_mosaic.version = 11 : i64} {
  func.func @_conv4_vq_kernel(%arg0: memref<32x128xf32, #tpu.memory_space<vmem>>, %arg1: memref<128x32xf32, #tpu.memory_space<vmem>>, %arg2: memref<1x32xf32, #tpu.memory_space<vmem>>, %arg3: memref<512x32xf32, #tpu.memory_space<vmem>>, %arg4: memref<1x512xf32, #tpu.memory_space<vmem>>, %arg5: memref<32x32xf32, #tpu.memory_space<vmem>>, %arg6: memref<32x1xi32, #tpu.memory_space<vmem>>) attributes {dimension_semantics = [], scalar_prefetch = 0 : i64, scratch_operands = 0 : i64, tpu.core_type = #tpu.core_type<tc>} {
    %c0 = arith.constant 0 : index
    %c0_0 = arith.constant 0 : index
    %0 = vector.load %arg0[%c0, %c0_0] : memref<32x128xf32, #tpu.memory_space<vmem>>, vector<32x128xf32>
    %c0_1 = arith.constant 0 : index
    %c0_2 = arith.constant 0 : index
    %1 = vector.load %arg1[%c0_1, %c0_2] : memref<128x32xf32, #tpu.memory_space<vmem>>, vector<128x32xf32>
    %cst = arith.constant dense<0.000000e+00> : vector<32x32xf32>
    %2 = tpu.matmul %0, %1, %cst {dimension_numbers = #tpu.dot_dimension_numbers<[1], [0], [0], [1], [0, 0, 1, 1], [], []>} : vector<32x128xf32>, vector<128x32xf32>, vector<32x32xf32> -> vector<32x32xf32>
    %c0_3 = arith.constant 0 : index
    %c0_4 = arith.constant 0 : index
    %3 = vector.load %arg2[%c0_3, %c0_4] : memref<1x32xf32, #tpu.memory_space<vmem>>, vector<1x32xf32>
    %4 = vector.broadcast %3 : vector<1x32xf32> to vector<32x32xf32>
    %5 = arith.addf %2, %4 : vector<32x32xf32>
    %c0_5 = arith.constant 0 : index
    %c0_6 = arith.constant 0 : index
    %6 = vector.load %arg3[%c0_5, %c0_6] : memref<512x32xf32, #tpu.memory_space<vmem>>, vector<512x32xf32>
    %cst_7 = arith.constant dense<0.000000e+00> : vector<32x512xf32>
    %7 = tpu.matmul %5, %6, %cst_7 {dimension_numbers = #tpu.dot_dimension_numbers<[1], [1], [0], [0], [0, 0, 1, 0], [], []>} : vector<32x32xf32>, vector<512x32xf32>, vector<32x512xf32> -> vector<32x512xf32>
    %c0_8 = arith.constant 0 : index
    %c0_9 = arith.constant 0 : index
    %8 = vector.load %arg4[%c0_8, %c0_9] : memref<1x512xf32, #tpu.memory_space<vmem>>, vector<1x512xf32>
    %cst_10 = arith.constant 2.000000e+00 : f32
    %9 = vector.broadcast %cst_10 : f32 to vector<32x512xf32>
    %10 = arith.mulf %9, %7 : vector<32x512xf32>
    %11 = vector.broadcast %8 : vector<1x512xf32> to vector<32x512xf32>
    %12 = arith.subf %11, %10 : vector<32x512xf32>
    %cst_11 = arith.constant dense<0x7F800000> : vector<32xf32>
    %13 = vector.multi_reduction <minimumf>, %12, %cst_11 [1] : vector<32x512xf32> to vector<32xf32>
    %14 = vector.shape_cast %13 : vector<32xf32> to vector<32x1xf32>
    %15 = tpu.iota {dimensions = array<i32: 1>} : vector<32x512xi32>
    %16 = vector.broadcast %14 : vector<32x1xf32> to vector<32x512xf32>
    %17 = arith.cmpf ole, %12, %16 : vector<32x512xf32>
    %c512_i32 = arith.constant 512 : i32
    %18 = vector.broadcast %c512_i32 : i32 to vector<32x512xi32>
    %19 = arith.select %17, %15, %18 : vector<32x512xi1>, vector<32x512xi32>
    %cst_12 = arith.constant dense<2147483647> : vector<32xi32>
    %20 = vector.multi_reduction <minsi>, %19, %cst_12 [1] : vector<32x512xi32> to vector<32xi32>
    %21 = vector.shape_cast %20 : vector<32xi32> to vector<32x1xi32>
    %c0_13 = arith.constant 0 : index
    %c0_14 = arith.constant 0 : index
    %22 = vector.load %arg6[%c0_13, %c0_14] : memref<32x1xi32, #tpu.memory_space<vmem>>, vector<32x1xi32>
    tpu.vector_store %arg6[%c0_13, %c0_14], %21 {strides = array<i32>} : memref<32x1xi32, #tpu.memory_space<vmem>>, vector<32x1xi32>,
    %23 = vector.broadcast %21 : vector<32x1xi32> to vector<32x512xi32>
    %24 = arith.cmpi eq, %15, %23 : vector<32x512xi32>
    %25 = arith.extui %24 : vector<32x512xi1> to vector<32x512xi32>
    %26 = arith.sitofp %25 : vector<32x512xi32> to vector<32x512xf32>
    %cst_15 = arith.constant dense<0.000000e+00> : vector<32x32xf32>
    %27 = tpu.matmul %26, %6, %cst_15 {dimension_numbers = #tpu.dot_dimension_numbers<[1], [0], [0], [1], [0, 0, 1, 1], [], []>} : vector<32x512xf32>, vector<512x32xf32>, vector<32x32xf32> -> vector<32x32xf32>
    %c0_16 = arith.constant 0 : index
    %c0_17 = arith.constant 0 : index
    %28 = vector.load %arg5[%c0_16, %c0_17] : memref<32x32xf32, #tpu.memory_space<vmem>>, vector<32x32xf32>
    tpu.vector_store %arg5[%c0_16, %c0_17], %27 {strides = array<i32>} : memref<32x32xf32, #tpu.memory_space<vmem>>, vector<32x32xf32>,
    return
  }
}

module attributes {stable_mosaic.version = 11 : i64} {
  func.func @_mm_bias_act_kernel(%arg0: memref<32x288xbf16, #tpu.memory_space<vmem>>, %arg1: memref<288x512xbf16, #tpu.memory_space<vmem>>, %arg2: memref<1x512xf32, #tpu.memory_space<vmem>>, %arg3: memref<32x512xf32, #tpu.memory_space<vmem>>) attributes {dimension_semantics = [], scalar_prefetch = 0 : i64, scratch_operands = 0 : i64, tpu.core_type = #tpu.core_type<tc>} {
    %c0 = arith.constant 0 : index
    %c0_0 = arith.constant 0 : index
    %0 = vector.load %arg0[%c0, %c0_0] : memref<32x288xbf16, #tpu.memory_space<vmem>>, vector<32x288xbf16>
    %c0_1 = arith.constant 0 : index
    %c0_2 = arith.constant 0 : index
    %1 = vector.load %arg1[%c0_1, %c0_2] : memref<288x512xbf16, #tpu.memory_space<vmem>>, vector<288x512xbf16>
    %cst = arith.constant dense<0.000000e+00> : vector<32x512xf32>
    %2 = tpu.matmul %0, %1, %cst {dimension_numbers = #tpu.dot_dimension_numbers<[1], [0], [0], [1], [0, 0, 1, 1], [], []>} : vector<32x288xbf16>, vector<288x512xbf16>, vector<32x512xf32> -> vector<32x512xf32>
    %c0_3 = arith.constant 0 : index
    %c0_4 = arith.constant 0 : index
    %3 = vector.load %arg2[%c0_3, %c0_4] : memref<1x512xf32, #tpu.memory_space<vmem>>, vector<1x512xf32>
    %4 = vector.broadcast %3 : vector<1x512xf32> to vector<32x512xf32>
    %5 = arith.addf %2, %4 : vector<32x512xf32>
    %c0_5 = arith.constant 0 : index
    %c0_6 = arith.constant 0 : index
    %6 = vector.load %arg3[%c0_5, %c0_6] : memref<32x512xf32, #tpu.memory_space<vmem>>, vector<32x512xf32>
    tpu.vector_store %arg3[%c0_5, %c0_6], %5 {strides = array<i32>} : memref<32x512xf32, #tpu.memory_space<vmem>>, vector<32x512xf32>,
    return
  }
}

module attributes {stable_mosaic.version = 11 : i64} {
  func.func @_mm_bias_act_kernel(%arg0: memref<128x1152xbf16, #tpu.memory_space<vmem>>, %arg1: memref<1152x256xbf16, #tpu.memory_space<vmem>>, %arg2: memref<1x256xf32, #tpu.memory_space<vmem>>, %arg3: memref<128x256xf32, #tpu.memory_space<vmem>>) attributes {dimension_semantics = [], scalar_prefetch = 0 : i64, scratch_operands = 0 : i64, tpu.core_type = #tpu.core_type<tc>} {
    %c0 = arith.constant 0 : index
    %c0_0 = arith.constant 0 : index
    %0 = vector.load %arg0[%c0, %c0_0] : memref<128x1152xbf16, #tpu.memory_space<vmem>>, vector<128x1152xbf16>
    %c0_1 = arith.constant 0 : index
    %c0_2 = arith.constant 0 : index
    %1 = vector.load %arg1[%c0_1, %c0_2] : memref<1152x256xbf16, #tpu.memory_space<vmem>>, vector<1152x256xbf16>
    %cst = arith.constant dense<0.000000e+00> : vector<128x256xf32>
    %2 = tpu.matmul %0, %1, %cst {dimension_numbers = #tpu.dot_dimension_numbers<[1], [0], [0], [1], [0, 0, 1, 1], [], []>} : vector<128x1152xbf16>, vector<1152x256xbf16>, vector<128x256xf32> -> vector<128x256xf32>
    %c0_3 = arith.constant 0 : index
    %c0_4 = arith.constant 0 : index
    %3 = vector.load %arg2[%c0_3, %c0_4] : memref<1x256xf32, #tpu.memory_space<vmem>>, vector<1x256xf32>
    %4 = vector.broadcast %3 : vector<1x256xf32> to vector<128x256xf32>
    %5 = arith.addf %2, %4 : vector<128x256xf32>
    %c0_5 = arith.constant 0 : index
    %c0_6 = arith.constant 0 : index
    %6 = vector.load %arg3[%c0_5, %c0_6] : memref<128x256xf32, #tpu.memory_space<vmem>>, vector<128x256xf32>
    tpu.vector_store %arg3[%c0_5, %c0_6], %5 {strides = array<i32>} : memref<128x256xf32, #tpu.memory_space<vmem>>, vector<128x256xf32>,
    return
  }
}

module attributes {stable_mosaic.version = 11 : i64} {
  func.func @_mm_bias_act_kernel(%arg0: memref<512x576xbf16, #tpu.memory_space<vmem>>, %arg1: memref<576x128xbf16, #tpu.memory_space<vmem>>, %arg2: memref<1x128xf32, #tpu.memory_space<vmem>>, %arg3: memref<512x128xf32, #tpu.memory_space<vmem>>) attributes {dimension_semantics = [], scalar_prefetch = 0 : i64, scratch_operands = 0 : i64, tpu.core_type = #tpu.core_type<tc>} {
    %c0 = arith.constant 0 : index
    %c0_0 = arith.constant 0 : index
    %0 = vector.load %arg0[%c0, %c0_0] : memref<512x576xbf16, #tpu.memory_space<vmem>>, vector<512x576xbf16>
    %c0_1 = arith.constant 0 : index
    %c0_2 = arith.constant 0 : index
    %1 = vector.load %arg1[%c0_1, %c0_2] : memref<576x128xbf16, #tpu.memory_space<vmem>>, vector<576x128xbf16>
    %cst = arith.constant dense<0.000000e+00> : vector<512x128xf32>
    %2 = tpu.matmul %0, %1, %cst {dimension_numbers = #tpu.dot_dimension_numbers<[1], [0], [0], [1], [0, 0, 1, 1], [], []>} : vector<512x576xbf16>, vector<576x128xbf16>, vector<512x128xf32> -> vector<512x128xf32>
    %c0_3 = arith.constant 0 : index
    %c0_4 = arith.constant 0 : index
    %3 = vector.load %arg2[%c0_3, %c0_4] : memref<1x128xf32, #tpu.memory_space<vmem>>, vector<1x128xf32>
    %4 = vector.broadcast %3 : vector<1x128xf32> to vector<512x128xf32>
    %5 = arith.addf %2, %4 : vector<512x128xf32>
    %c0_5 = arith.constant 0 : index
    %c0_6 = arith.constant 0 : index
    %6 = vector.load %arg3[%c0_5, %c0_6] : memref<512x128xf32, #tpu.memory_space<vmem>>, vector<512x128xf32>
    tpu.vector_store %arg3[%c0_5, %c0_6], %5 {strides = array<i32>} : memref<512x128xf32, #tpu.memory_space<vmem>>, vector<512x128xf32>,
    return
  }
}

module attributes {stable_mosaic.version = 11 : i64} {
  func.func @_mm_bias_act_kernel(%arg0: i32, %arg1: memref<512x288xbf16, #tpu.memory_space<vmem>>, %arg2: memref<288x64xbf16, #tpu.memory_space<vmem>>, %arg3: memref<1x64xf32, #tpu.memory_space<vmem>>, %arg4: memref<512x64xf32, #tpu.memory_space<vmem>>) attributes {dimension_semantics = [#tpu.dimension_semantics<parallel>], iteration_bounds = array<i64: 4>, scalar_prefetch = 0 : i64, scratch_operands = 0 : i64, tpu.core_type = #tpu.core_type<tc>, window_params = [{transform_indices = @transform_0, window_bounds = array<i64: 512, 288>}, {pipeline_mode = #tpu.pipeline_mode<synchronous>, transform_indices = @transform_1, window_bounds = array<i64: 288, 64>}, {pipeline_mode = #tpu.pipeline_mode<synchronous>, transform_indices = @transform_2, window_bounds = array<i64: 1, 64>}, {transform_indices = @transform_3, window_bounds = array<i64: 512, 64>}]} {
    %c0 = arith.constant 0 : index
    %c0_0 = arith.constant 0 : index
    %0 = vector.load %arg1[%c0, %c0_0] : memref<512x288xbf16, #tpu.memory_space<vmem>>, vector<512x288xbf16>
    %c0_1 = arith.constant 0 : index
    %c0_2 = arith.constant 0 : index
    %1 = vector.load %arg2[%c0_1, %c0_2] : memref<288x64xbf16, #tpu.memory_space<vmem>>, vector<288x64xbf16>
    %cst = arith.constant dense<0.000000e+00> : vector<512x64xf32>
    %2 = tpu.matmul %0, %1, %cst {dimension_numbers = #tpu.dot_dimension_numbers<[1], [0], [0], [1], [0, 0, 1, 1], [], []>} : vector<512x288xbf16>, vector<288x64xbf16>, vector<512x64xf32> -> vector<512x64xf32>
    %c0_3 = arith.constant 0 : index
    %c0_4 = arith.constant 0 : index
    %3 = vector.load %arg3[%c0_3, %c0_4] : memref<1x64xf32, #tpu.memory_space<vmem>>, vector<1x64xf32>
    %4 = vector.broadcast %3 : vector<1x64xf32> to vector<512x64xf32>
    %5 = arith.addf %2, %4 : vector<512x64xf32>
    %c0_5 = arith.constant 0 : index
    %c0_6 = arith.constant 0 : index
    %6 = vector.load %arg4[%c0_5, %c0_6] : memref<512x64xf32, #tpu.memory_space<vmem>>, vector<512x64xf32>
    tpu.vector_store %arg4[%c0_5, %c0_6], %5 {strides = array<i32>} : memref<512x64xf32, #tpu.memory_space<vmem>>, vector<512x64xf32>,
    return
  }
  func.func @transform_0(%arg0: i32) -> (i32, i32) {
    %c0_i32 = arith.constant 0 : i32
    %c0_i32_0 = arith.constant 0 : i32
    return %arg0, %c0_i32 : i32, i32
  }
  func.func @transform_1(%arg0: i32) -> (i32, i32) {
    %c0_i32 = arith.constant 0 : i32
    %c0_i32_0 = arith.constant 0 : i32
    %c0_i32_1 = arith.constant 0 : i32
    return %c0_i32, %c0_i32_0 : i32, i32
  }
  func.func @transform_2(%arg0: i32) -> (i32, i32) {
    %c0_i32 = arith.constant 0 : i32
    %c0_i32_0 = arith.constant 0 : i32
    %c0_i32_1 = arith.constant 0 : i32
    return %c0_i32, %c0_i32_0 : i32, i32
  }
  func.func @transform_3(%arg0: i32) -> (i32, i32) {
    %c0_i32 = arith.constant 0 : i32
    %c0_i32_0 = arith.constant 0 : i32
    return %arg0, %c0_i32 : i32, i32
  }
}

module attributes {stable_mosaic.version = 11 : i64} {
  func.func @_final_kernel(%arg0: i32, %arg1: memref<1x64x1024xf32, #tpu.memory_space<vmem>>, %arg2: memref<3x1024x64xf32, #tpu.memory_space<vmem>>, %arg3: memref<3x28x64xf32, #tpu.memory_space<vmem>>, %arg4: memref<64x28xf32, #tpu.memory_space<vmem>>, %arg5: memref<1x28xf32, #tpu.memory_space<vmem>>, %arg6: memref<1x28x28xf32, #tpu.memory_space<vmem>>) attributes {dimension_semantics = [#tpu.dimension_semantics<parallel>], iteration_bounds = array<i64: 2>, scalar_prefetch = 0 : i64, scratch_operands = 0 : i64, tpu.core_type = #tpu.core_type<tc>, window_params = [{transform_indices = @transform_0, window_bounds = array<i64: 1, 64, 1024>}, {pipeline_mode = #tpu.pipeline_mode<synchronous>, transform_indices = @transform_1, window_bounds = array<i64: 3, 1024, 64>}, {pipeline_mode = #tpu.pipeline_mode<synchronous>, transform_indices = @transform_2, window_bounds = array<i64: 3, 28, 64>}, {pipeline_mode = #tpu.pipeline_mode<synchronous>, transform_indices = @transform_3, window_bounds = array<i64: 64, 28>}, {pipeline_mode = #tpu.pipeline_mode<synchronous>, transform_indices = @transform_4, window_bounds = array<i64: 1, 28>}, {transform_indices = @transform_5, window_bounds = array<i64: 1, 28, 28>}]} {
    %c0 = arith.constant 0 : index
    %c0_0 = arith.constant 0 : index
    %c0_1 = arith.constant 0 : index
    %0 = vector.load %arg1[%c0, %c0_0, %c0_1] : memref<1x64x1024xf32, #tpu.memory_space<vmem>>, vector<1x64x1024xf32>
    %1 = vector.shape_cast %0 : vector<1x64x1024xf32> to vector<64x1024xf32>
    %c0_2 = arith.constant 0 : index
    %c0_3 = arith.constant 0 : index
    %c0_4 = arith.constant 0 : index
    %2 = vector.load %arg2[%c0_2, %c0_3, %c0_4] : memref<3x1024x64xf32, #tpu.memory_space<vmem>>, vector<1x1024x64xf32>
    %3 = vector.shape_cast %2 : vector<1x1024x64xf32> to vector<1024x64xf32>
    %cst = arith.constant dense<0.000000e+00> : vector<64x64xf32>
    %4 = tpu.matmul %1, %3, %cst {dimension_numbers = #tpu.dot_dimension_numbers<[1], [0], [0], [1], [0, 0, 1, 1], [], []>} : vector<64x1024xf32>, vector<1024x64xf32>, vector<64x64xf32> -> vector<64x64xf32>
    %c0_5 = arith.constant 0 : index
    %c0_6 = arith.constant 0 : index
    %c0_7 = arith.constant 0 : index
    %5 = vector.load %arg3[%c0_5, %c0_6, %c0_7] : memref<3x28x64xf32, #tpu.memory_space<vmem>>, vector<1x28x64xf32>
    %6 = vector.shape_cast %5 : vector<1x28x64xf32> to vector<28x64xf32>
    %cst_8 = arith.constant dense<0.000000e+00> : vector<28x64xf32>
    %7 = tpu.matmul %6, %4, %cst_8 {dimension_numbers = #tpu.dot_dimension_numbers<[1], [0], [0], [1], [0, 0, 1, 1], [], []>} : vector<28x64xf32>, vector<64x64xf32>, vector<28x64xf32> -> vector<28x64xf32>
    %c1 = arith.constant 1 : index
    %c0_9 = arith.constant 0 : index
    %c0_10 = arith.constant 0 : index
    %8 = vector.load %arg2[%c1, %c0_9, %c0_10] : memref<3x1024x64xf32, #tpu.memory_space<vmem>>, vector<1x1024x64xf32>
    %9 = vector.shape_cast %8 : vector<1x1024x64xf32> to vector<1024x64xf32>
    %cst_11 = arith.constant dense<0.000000e+00> : vector<64x64xf32>
    %10 = tpu.matmul %1, %9, %cst_11 {dimension_numbers = #tpu.dot_dimension_numbers<[1], [0], [0], [1], [0, 0, 1, 1], [], []>} : vector<64x1024xf32>, vector<1024x64xf32>, vector<64x64xf32> -> vector<64x64xf32>
    %c1_12 = arith.constant 1 : index
    %c0_13 = arith.constant 0 : index
    %c0_14 = arith.constant 0 : index
    %11 = vector.load %arg3[%c1_12, %c0_13, %c0_14] : memref<3x28x64xf32, #tpu.memory_space<vmem>>, vector<1x28x64xf32>
    %12 = vector.shape_cast %11 : vector<1x28x64xf32> to vector<28x64xf32>
    %cst_15 = arith.constant dense<0.000000e+00> : vector<28x64xf32>
    %13 = tpu.matmul %12, %10, %cst_15 {dimension_numbers = #tpu.dot_dimension_numbers<[1], [0], [0], [1], [0, 0, 1, 1], [], []>} : vector<28x64xf32>, vector<64x64xf32>, vector<28x64xf32> -> vector<28x64xf32>
    %14 = arith.addf %7, %13 : vector<28x64xf32>
    %c2 = arith.constant 2 : index
    %c0_16 = arith.constant 0 : index
    %c0_17 = arith.constant 0 : index
    %15 = vector.load %arg2[%c2, %c0_16, %c0_17] : memref<3x1024x64xf32, #tpu.memory_space<vmem>>, vector<1x1024x64xf32>
    %16 = vector.shape_cast %15 : vector<1x1024x64xf32> to vector<1024x64xf32>
    %cst_18 = arith.constant dense<0.000000e+00> : vector<64x64xf32>
    %17 = tpu.matmul %1, %16, %cst_18 {dimension_numbers = #tpu.dot_dimension_numbers<[1], [0], [0], [1], [0, 0, 1, 1], [], []>} : vector<64x1024xf32>, vector<1024x64xf32>, vector<64x64xf32> -> vector<64x64xf32>
    %c2_19 = arith.constant 2 : index
    %c0_20 = arith.constant 0 : index
    %c0_21 = arith.constant 0 : index
    %18 = vector.load %arg3[%c2_19, %c0_20, %c0_21] : memref<3x28x64xf32, #tpu.memory_space<vmem>>, vector<1x28x64xf32>
    %19 = vector.shape_cast %18 : vector<1x28x64xf32> to vector<28x64xf32>
    %cst_22 = arith.constant dense<0.000000e+00> : vector<28x64xf32>
    %20 = tpu.matmul %19, %17, %cst_22 {dimension_numbers = #tpu.dot_dimension_numbers<[1], [0], [0], [1], [0, 0, 1, 1], [], []>} : vector<28x64xf32>, vector<64x64xf32>, vector<28x64xf32> -> vector<28x64xf32>
    %21 = arith.addf %14, %20 : vector<28x64xf32>
    %c0_23 = arith.constant 0 : index
    %c0_24 = arith.constant 0 : index
    %22 = vector.load %arg4[%c0_23, %c0_24] : memref<64x28xf32, #tpu.memory_space<vmem>>, vector<64x28xf32>
    %cst_25 = arith.constant dense<0.000000e+00> : vector<28x28xf32>
    %23 = tpu.matmul %21, %22, %cst_25 {dimension_numbers = #tpu.dot_dimension_numbers<[1], [0], [0], [1], [0, 0, 1, 1], [], []>} : vector<28x64xf32>, vector<64x28xf32>, vector<28x28xf32> -> vector<28x28xf32>
    %c0_26 = arith.constant 0 : index
    %c0_27 = arith.constant 0 : index
    %24 = vector.load %arg5[%c0_26, %c0_27] : memref<1x28xf32, #tpu.memory_space<vmem>>, vector<1x28xf32>
    %25 = vector.broadcast %24 : vector<1x28xf32> to vector<28x28xf32>
    %26 = arith.addf %23, %25 : vector<28x28xf32>
    %27 = arith.negf %26 : vector<28x28xf32>
    %28 = math.exp %27 : vector<28x28xf32>
    %cst_28 = arith.constant 1.000000e+00 : f32
    %29 = vector.broadcast %cst_28 : f32 to vector<28x28xf32>
    %30 = arith.addf %29, %28 : vector<28x28xf32>
    %31 = arith.divf %29, %30 : vector<28x28xf32>
    %c0_29 = arith.constant 0 : index
    %c0_30 = arith.constant 0 : index
    %c0_31 = arith.constant 0 : index
    %32 = vector.load %arg6[%c0_29, %c0_30, %c0_31] : memref<1x28x28xf32, #tpu.memory_space<vmem>>, vector<1x28x28xf32>
    %33 = vector.shape_cast %32 : vector<1x28x28xf32> to vector<28x28xf32>
    %34 = vector.shape_cast %31 : vector<28x28xf32> to vector<1x28x28xf32>
    tpu.vector_store %arg6[%c0_29, %c0_30, %c0_31], %34 {strides = array<i32>} : memref<1x28x28xf32, #tpu.memory_space<vmem>>, vector<1x28x28xf32>,
    return
  }
  func.func @transform_0(%arg0: i32) -> (i32, i32, i32) {
    %c0_i32 = arith.constant 0 : i32
    %c0_i32_0 = arith.constant 0 : i32
    %c0_i32_1 = arith.constant 0 : i32
    return %arg0, %c0_i32, %c0_i32_0 : i32, i32, i32
  }
  func.func @transform_1(%arg0: i32) -> (i32, i32, i32) {
    %c0_i32 = arith.constant 0 : i32
    %c0_i32_0 = arith.constant 0 : i32
    %c0_i32_1 = arith.constant 0 : i32
    %c0_i32_2 = arith.constant 0 : i32
    return %c0_i32, %c0_i32_0, %c0_i32_1 : i32, i32, i32
  }
  func.func @transform_2(%arg0: i32) -> (i32, i32, i32) {
    %c0_i32 = arith.constant 0 : i32
    %c0_i32_0 = arith.constant 0 : i32
    %c0_i32_1 = arith.constant 0 : i32
    %c0_i32_2 = arith.constant 0 : i32
    return %c0_i32, %c0_i32_0, %c0_i32_1 : i32, i32, i32
  }
  func.func @transform_3(%arg0: i32) -> (i32, i32) {
    %c0_i32 = arith.constant 0 : i32
    %c0_i32_0 = arith.constant 0 : i32
    %c0_i32_1 = arith.constant 0 : i32
    return %c0_i32, %c0_i32_0 : i32, i32
  }
  func.func @transform_4(%arg0: i32) -> (i32, i32) {
    %c0_i32 = arith.constant 0 : i32
    %c0_i32_0 = arith.constant 0 : i32
    %c0_i32_1 = arith.constant 0 : i32
    return %c0_i32, %c0_i32_0 : i32, i32
  }
  func.func @transform_5(%arg0: i32) -> (i32, i32, i32) {
    %c0_i32 = arith.constant 0 : i32
    %c0_i32_0 = arith.constant 0 : i32
    %c0_i32_1 = arith.constant 0 : i32
    return %arg0, %c0_i32, %c0_i32_0 : i32, i32, i32
  }
}

</mosaic_0001>

<bundles_post_ra>
// kernel: vqvae_forward.9
= control target key start
LH: loop header
LB: loop body
LE: loop exit
PB: predicated region body
PF: predicated region fallthrough
CT: control target
= control target key end

     0   :  { %8 = vsyncpa [#allocation3], 0  ;;  %s866_s12 = smov [#allocation2]   ;;  %s1295_s0 = inlined_call_operand.vmem [shape: bf16[392,9], index: 0, kind: input, shape index: {}]   ;;  %s1296_s1 = inlined_call_operand.vmem [shape: bf16[9,28], index: 1, kind: input, shape index: {}]   ;;  %s1297_s2 = inlined_call_operand.hbm [shape: f32[1,28], index: 2, kind: input, shape index: {}]   ;;  %s1298_s3 = inlined_call_operand.vmem [shape: f32[392,28], index: 3, kind: output, shape index: {}]  }
   0x1   :  { %s19_s13 = sshll.u32 %s866_s12, 4  ;;  %s20_s13 = int_to_ptr.vmem [resolvable:$true] %s19_s13 }
   0x2   :  { %s852_s14 = scalar_lea.vmem %s20_s13, 16  ;;  %s856_s15 = scalar_lea.vmem %s20_s13, 32 }
   0x3   :  { %p853_p0 = scmp.ne.s32.totalorder %s20_s13, %s852_s14  ;;  %p857_p1 = scmp.lt.s32.totalorder %s20_s13, %s20_s13 }
   0x4   :  { %p858_p2 = scmp.lt.s32.totalorder %s856_s15, %s852_s14 }
   0x6   :  { %p859_p3 = por %p858_p2, %p857_p1 }
   0x8   :  { %p860_p4 = pnand %p859_p3, %p853_p0 }
   0xa   :  { %863 = shalt.err (!%p860_p4)
}
   0xb   :  { %22 = dma.hbm_to_vmem [thread:$0]  %s1297_s2, 16, %s20_s13, [#allocation3]  }
   0xc   :  { %864 = dma.done.wait [#allocation3], 16  }
   0xd   :  { %865 = vsyncadd [#allocation3], 4294967280  ;;  %vm289_vm0 = vcmask 1043456   ;;  %v867_v0 = vmov 0.0   ;;  %vm868_vm1 = vmmov 0   ;;  %vm290_vm2 = vcmask 1044480  }
   0xe   :  { %710 = vmatprep.subr.bf16.mxu0 %v867_v0  ;;  %812 = vmatprep.subr.bf16.mxu1 %v867_v0  ;;  %v869_v1 = vmov 65535   ;;  %v818_v4 = vld [vmem:[%s1296_s1] sm:$0x1f]   ;;  %v820_v7 = vld [vmem:[%s1295_s0 + $0x68] sm:$0xff]   ;;  %vm213_vm3 = vcmask 72704   ;;  %v822_v9 = vld [vmem:[%s1295_s0 + $0x70] sm:$0xff]  }
   0xf   :  { %712 = vmatprep.mubr.msk.bf16.mxu0 %vm868_vm1, %v867_v0  ;;  %764 = vmatprep.mubr.msk.bf16.mxu1 %vm868_vm1, %v867_v0  ;;  %v291_v2 = vsel %vm289_vm0, 4294967295, %v869_v1  ;;  %v819_v6 = vld [vmem:[%s1295_s0] sm:$0xff]   ;;  %v821_v8 = vld [vmem:[%s1295_s0 + $0x8] sm:$0xff]   ;;  %v823_v10 = vld [vmem:[%s1295_s0 + $0x10] sm:$0xff]   ;;  %vm577_vm4 = vcmask 228352  }
  0x10   :  { %v292_v3 = vsel %vm290_vm2, %v291_v2, 0  ;;  %v824_v11 = vld [vmem:[%s1295_s0 + $0x78] sm:$0xff]   ;;  %v826_v13 = vld [vmem:[%s1295_s0 + $0x80] sm:$0xff]   ;;  %v828_v15 = vld [vmem:[%s1295_s0 + $0x88] sm:$0xff]  }
  0x11   :  { %v294_v5 = vand.u32 %v818_v4, %v292_v3  ;;  %v825_v12 = vld [vmem:[%s1295_s0 + $0x18] sm:$0xff]   ;;  %v827_v14 = vld [vmem:[%s1295_s0 + $0x20] sm:$0xff]   ;;  %v829_v16 = vld [vmem:[%s1295_s0 + $0x28] sm:$0xff]  }
  0x12   :  { %v830_v17 = vld [vmem:[%s1295_s0 + $0x90] sm:$0xff]   ;;  %v832_v19 = vld [vmem:[%s1295_s0 + $0x98] sm:$0xff]   ;;  %v834_v21 = vld [vmem:[%s1295_s0 + $0xa0] sm:$0xff]  }
  0x13   :  { %711 = vmatpush3.bf16.msra.mxu0 %v294_v5  ;;  %813 = vmatpush3.bf16.msra.mxu1 %v294_v5  ;;  %v831_v18 = vld [vmem:[%s1295_s0 + $0x30] sm:$0xff]   ;;  %v833_v20 = vld [vmem:[%s1295_s0 + $0x38] sm:$0xff]   ;;  %v835_v22 = vld [vmem:[%s1295_s0 + $0x40] sm:$0xff]  }
  0x14   :  { %v836_v23 = vld [vmem:[%s1295_s0 + $0xa8] sm:$0xff]   ;;  %v838_v25 = vld [vmem:[%s1295_s0 + $0xb0] sm:$0xff]   ;;  %v840_v27 = vld [vmem:[%s1295_s0 + $0xb8] sm:$0xff]  }
  0x15   :  { %v837_v24 = vld [vmem:[%s1295_s0 + $0x48] sm:$0xff]   ;;  %v839_v26 = vld [vmem:[%s1295_s0 + $0x50] sm:$0xff]   ;;  %v841_v28 = vld [vmem:[%s1295_s0 + $0x58] sm:$0xff]  }
  0x16   :  { %713 = vmatmul.mubr.msk.bf16.vlgmr.msra.gmra.mxu0 %vm213_vm3, %v819_v6  ;;  %765 = vmatmul.mubr.msk.bf16.vlgmr.msra.gmra.mxu1 %vm213_vm3, %v820_v7  ;;  %v842_v29 = vld [vmem:[%s1295_s0 + $0xc0] ss:$0 sps:$4 sm:$0xff]  }
  0x17   :  { %716 = vmatprep.mubr.msk.bf16.mxu0 %vm868_vm1, %v867_v0  ;;  %768 = vmatprep.mubr.msk.bf16.mxu1 %vm868_vm1, %v867_v0  ;;  %v843_v30 = vld [vmem:[%s1295_s0 + $0x60] sm:$0xff]  }
  0x18   :  { %v1048_v31 = vld [vmem:[#allocation2] ss:$0 sm:$0xff] }
  0x1e   :  { %717 = vmatmul.mubr.msk.bf16.gmra.mxu0 %vm213_vm3, %v821_v8  ;;  %769 = vmatmul.mubr.msk.bf16.gmra.mxu1 %vm213_vm3, %v822_v9 }
  0x1f   :  { %720 = vmatprep.mubr.msk.bf16.mxu0 %vm868_vm1, %v867_v0  ;;  %772 = vmatprep.mubr.msk.bf16.mxu1 %vm868_vm1, %v867_v0 }
  0x26   :  { %721 = vmatmul.mubr.msk.bf16.gmra.mxu0 %vm213_vm3, %v823_v10  ;;  %773 = vmatmul.mubr.msk.bf16.gmra.mxu1 %vm213_vm3, %v824_v11 }
  0x27   :  { %724 = vmatprep.mubr.msk.bf16.mxu0 %vm868_vm1, %v867_v0  ;;  %776 = vmatprep.mubr.msk.bf16.mxu1 %vm868_vm1, %v867_v0 }
  0x2e   :  { %725 = vmatmul.mubr.msk.bf16.gmra.mxu0 %vm213_vm3, %v825_v12  ;;  %777 = vmatmul.mubr.msk.bf16.gmra.mxu1 %vm213_vm3, %v826_v13 }
  0x2f   :  { %728 = vmatprep.mubr.msk.bf16.mxu0 %vm868_vm1, %v867_v0  ;;  %780 = vmatprep.mubr.msk.bf16.mxu1 %vm868_vm1, %v867_v0 }
  0x36   :  { %729 = vmatmul.mubr.msk.bf16.gmra.mxu0 %vm213_vm3, %v827_v14  ;;  %781 = vmatmul.mubr.msk.bf16.gmra.mxu1 %vm213_vm3, %v828_v15 }
  0x37   :  { %732 = vmatprep.mubr.msk.bf16.mxu0 %vm868_vm1, %v867_v0  ;;  %784 = vmatprep.mubr.msk.bf16.mxu1 %vm868_vm1, %v867_v0 }
  0x3e   :  { %733 = vmatmul.mubr.msk.bf16.gmra.mxu0 %vm213_vm3, %v829_v16  ;;  %785 = vmatmul.mubr.msk.bf16.gmra.mxu1 %vm213_vm3, %v830_v17 }
  0x3f   :  { %736 = vmatprep.mubr.msk.bf16.mxu0 %vm868_vm1, %v867_v0  ;;  %788 = vmatprep.mubr.msk.bf16.mxu1 %vm868_vm1, %v867_v0 }
  0x46   :  { %737 = vmatmul.mubr.msk.bf16.gmra.mxu0 %vm213_vm3, %v831_v18  ;;  %789 = vmatmul.mubr.msk.bf16.gmra.mxu1 %vm213_vm3, %v832_v19 }
  0x47   :  { %740 = vmatprep.mubr.msk.bf16.mxu0 %vm868_vm1, %v867_v0  ;;  %792 = vmatprep.mubr.msk.bf16.mxu1 %vm868_vm1, %v867_v0 }
  0x4e   :  { %741 = vmatmul.mubr.msk.bf16.gmra.mxu0 %vm213_vm3, %v833_v20  ;;  %793 = vmatmul.mubr.msk.bf16.gmra.mxu1 %vm213_vm3, %v834_v21 }
  0x4f   :  { %744 = vmatprep.mubr.msk.bf16.mxu0 %vm868_vm1, %v867_v0  ;;  %796 = vmatprep.mubr.msk.bf16.mxu1 %vm868_vm1, %v867_v0 }
  0x56   :  { %745 = vmatmul.mubr.msk.bf16.gmra.mxu0 %vm213_vm3, %v835_v22  ;;  %797 = vmatmul.mubr.msk.bf16.gmra.mxu1 %vm213_vm3, %v836_v23 }
  0x57   :  { %748 = vmatprep.mubr.msk.bf16.mxu0 %vm868_vm1, %v867_v0  ;;  %800 = vmatprep.mubr.msk.bf16.mxu1 %vm868_vm1, %v867_v0 }
  0x5e   :  { %749 = vmatmul.mubr.msk.bf16.gmra.mxu0 %vm213_vm3, %v837_v24  ;;  %801 = vmatmul.mubr.msk.bf16.gmra.mxu1 %vm213_vm3, %v838_v25 }
  0x5f   :  { %752 = vmatprep.mubr.msk.bf16.mxu0 %vm868_vm1, %v867_v0  ;;  %804 = vmatprep.mubr.msk.bf16.mxu1 %vm868_vm1, %v867_v0 }
  0x66   :  { %753 = vmatmul.mubr.msk.bf16.gmra.mxu0 %vm213_vm3, %v839_v26  ;;  %805 = vmatmul.mubr.msk.bf16.gmra.mxu1 %vm213_vm3, %v840_v27 }
  0x67   :  { %756 = vmatprep.mubr.msk.bf16.mxu0 %vm868_vm1, %v867_v0  ;;  %808 = vmatprep.mubr.msk.bf16.mxu1 %vm868_vm1, %v867_v0 }
  0x6e   :  { %757 = vmatmul.mubr.msk.bf16.gmra.mxu0 %vm213_vm3, %v841_v28  ;;  %809 = vmatmul.mubr.msk.bf16.gmra.mxu1 %vm213_vm3, %v842_v29 }
  0x6f   :  { %760 = vmatprep.mubr.msk.bf16.mxu0 %vm868_vm1, %v867_v0 }
  0x76   :  { %761 = vmatmul.mubr.msk.bf16.gmra.mxu0 %vm213_vm3, %v843_v30 }
  0xd6   :  { %v330_v32 = vpop.f32.mrf.mxu0  ;;  %v434_v33 = vpop.f32.mrf.mxu1 }
  0xd7   :  { %v331_v34 = vadd.f32 %v1048_v31, %v330_v32  ;;  %v435_v35 = vadd.f32 %v1048_v31, %v434_v33 }
  0xd8   :  { %v714_v36 = vpop.f32.mrf.mxu0  ;;  %v766_v37 = vpop.f32.mrf.mxu1 }
  0xd9   :  { %v528_v38 = vmax.f32 %v331_v34, 0.0  ;;  %v554_v39 = vmax.f32 %v435_v35, 0.0 }
  0xda   :  { %v333_v40 = vpop.f32.mrf.mxu0  ;;  %v437_v41 = vpop.f32.mrf.mxu1 }
  0xdb   :  { %578 = vst.msk [vmem:[%s1298_s3] sm:$0xff] %vm577_vm4, %v528_v38  ;;  %v334_v42 = vadd.f32 %v1048_v31, %v333_v40  ;;  %604 = vst.msk [vmem:[%s1298_s3 + $0xd0] sm:$0xff] %vm577_vm4, %v554_v39  ;;  %v438_v43 = vadd.f32 %v1048_v31, %v437_v41 }
  0xdc   :  { %v715_v44 = vpop.f32.mrf.mxu0  ;;  %v767_v45 = vpop.f32.mrf.mxu1 }
  0xdd   :  { %v529_v46 = vmax.f32 %v334_v42, 0.0  ;;  %v555_v47 = vmax.f32 %v438_v43, 0.0 }
  0xde   :  { %v338_v48 = vpop.f32.mrf.mxu0  ;;  %v442_v49 = vpop.f32.mrf.mxu1 }
  0xdf   :  { %579 = vst.msk [vmem:[%s1298_s3 + $0x8] sm:$0xff] %vm577_vm4, %v529_v46  ;;  %v339_v50 = vadd.f32 %v1048_v31, %v338_v48  ;;  %605 = vst.msk [vmem:[%s1298_s3 + $0xd8] sm:$0xff] %vm577_vm4, %v555_v47  ;;  %v443_v51 = vadd.f32 %v1048_v31, %v442_v49 }
  0xe0   :  { %v718_v52 = vpop.f32.mrf.mxu0  ;;  %v770_v53 = vpop.f32.mrf.mxu1 }
  0xe1   :  { %v530_v54 = vmax.f32 %v339_v50, 0.0  ;;  %v556_v55 = vmax.f32 %v443_v51, 0.0 }
  0xe2   :  { %v341_v56 = vpop.f32.mrf.mxu0  ;;  %v445_v57 = vpop.f32.mrf.mxu1 }
  0xe3   :  { %580 = vst.msk [vmem:[%s1298_s3 + $0x10] sm:$0xff] %vm577_vm4, %v530_v54  ;;  %v342_v58 = vadd.f32 %v1048_v31, %v341_v56  ;;  %606 = vst.msk [vmem:[%s1298_s3 + $0xe0] sm:$0xff] %vm577_vm4, %v556_v55  ;;  %v446_v59 = vadd.f32 %v1048_v31, %v445_v57 }
  0xe4   :  { %v719_v60 = vpop.f32.mrf.mxu0  ;;  %v771_v61 = vpop.f32.mrf.mxu1 }
  0xe5   :  { %v531_v62 = vmax.f32 %v342_v58, 0.0  ;;  %v557_v63 = vmax.f32 %v446_v59, 0.0 }
  0xe6   :  { %v346_v0 = vpop.f32.mrf.mxu0  ;;  %v450_v1 = vpop.f32.mrf.mxu1 }
  0xe7   :  { %581 = vst.msk [vmem:[%s1298_s3 + $0x18] sm:$0xff] %vm577_vm4, %v531_v62  ;;  %v347_v2 = vadd.f32 %v1048_v31, %v346_v0  ;;  %607 = vst.msk [vmem:[%s1298_s3 + $0xe8] sm:$0xff] %vm577_vm4, %v557_v63  ;;  %v451_v3 = vadd.f32 %v1048_v31, %v450_v1 }
  0xe8   :  { %v722_v4 = vpop.f32.mrf.mxu0  ;;  %v774_v5 = vpop.f32.mrf.mxu1 }
  0xe9   :  { %v532_v6 = vmax.f32 %v347_v2, 0.0  ;;  %v558_v7 = vmax.f32 %v451_v3, 0.0 }
  0xea   :  { %v349_v8 = vpop.f32.mrf.mxu0  ;;  %v453_v9 = vpop.f32.mrf.mxu1 }
  0xeb   :  { %582 = vst.msk [vmem:[%s1298_s3 + $0x20] sm:$0xff] %vm577_vm4, %v532_v6  ;;  %v350_v10 = vadd.f32 %v1048_v31, %v349_v8  ;;  %608 = vst.msk [vmem:[%s1298_s3 + $0xf0] sm:$0xff] %vm577_vm4, %v558_v7  ;;  %v454_v11 = vadd.f32 %v1048_v31, %v453_v9 }
  0xec   :  { %v723_v12 = vpop.f32.mrf.mxu0  ;;  %v775_v13 = vpop.f32.mrf.mxu1 }
  0xed   :  { %v533_v14 = vmax.f32 %v350_v10, 0.0  ;;  %v559_v15 = vmax.f32 %v454_v11, 0.0 }
  0xee   :  { %v354_v16 = vpop.f32.mrf.mxu0  ;;  %v458_v17 = vpop.f32.mrf.mxu1 }
  0xef   :  { %583 = vst.msk [vmem:[%s1298_s3 + $0x28] sm:$0xff] %vm577_vm4, %v533_v14  ;;  %v355_v18 = vadd.f32 %v1048_v31, %v354_v16  ;;  %609 = vst.msk [vmem:[%s1298_s3 + $0xf8] sm:$0xff] %vm577_vm4, %v559_v15  ;;  %v459_v19 = vadd.f32 %v1048_v31, %v458_v17 }
  0xf0   :  { %v726_v20 = vpop.f32.mrf.mxu0  ;;  %v778_v21 = vpop.f32.mrf.mxu1 }
  0xf1   :  { %v534_v22 = vmax.f32 %v355_v18, 0.0  ;;  %v560_v23 = vmax.f32 %v459_v19, 0.0 }
  0xf2   :  { %v357_v24 = vpop.f32.mrf.mxu0  ;;  %v461_v25 = vpop.f32.mrf.mxu1 }
  0xf3   :  { %584 = vst.msk [vmem:[%s1298_s3 + $0x30] sm:$0xff] %vm577_vm4, %v534_v22  ;;  %v358_v26 = vadd.f32 %v1048_v31, %v357_v24  ;;  %610 = vst.msk [vmem:[%s1298_s3 + $0x100] sm:$0xff] %vm577_vm4, %v560_v23  ;;  %v462_v27 = vadd.f32 %v1048_v31, %v461_v25 }
  0xf4   :  { %v727_v28 = vpop.f32.mrf.mxu0  ;;  %v779_v29 = vpop.f32.mrf.mxu1 }
  0xf5   :  { %v535_v30 = vmax.f32 %v358_v26, 0.0  ;;  %v561_v32 = vmax.f32 %v462_v27, 0.0 }
  0xf6   :  { %v362_v33 = vpop.f32.mrf.mxu0  ;;  %v466_v34 = vpop.f32.mrf.mxu1 }
  0xf7   :  { %585 = vst.msk [vmem:[%s1298_s3 + $0x38] sm:$0xff] %vm577_vm4, %v535_v30  ;;  %v363_v35 = vadd.f32 %v1048_v31, %v362_v33  ;;  %611 = vst.msk [vmem:[%s1298_s3 + $0x108] sm:$0xff] %vm577_vm4, %v561_v32  ;;  %v467_v36 = vadd.f32 %v1048_v31, %v466_v34 }
  0xf8   :  { %v730_v37 = vpop.f32.mrf.mxu0  ;;  %v782_v38 = vpop.f32.mrf.mxu1 }
  0xf9   :  { %v536_v39 = vmax.f32 %v363_v35, 0.0  ;;  %v562_v40 = vmax.f32 %v467_v36, 0.0 }
  0xfa   :  { %v365_v41 = vpop.f32.mrf.mxu0  ;;  %v469_v42 = vpop.f32.mrf.mxu1 }
  0xfb   :  { %586 = vst.msk [vmem:[%s1298_s3 + $0x40] sm:$0xff] %vm577_vm4, %v536_v39  ;;  %v366_v43 = vadd.f32 %v1048_v31, %v365_v41  ;;  %612 = vst.msk [vmem:[%s1298_s3 + $0x110] sm:$0xff] %vm577_vm4, %v562_v40  ;;  %v470_v44 = vadd.f32 %v1048_v31, %v469_v42 }
  0xfc   :  { %v731_v45 = vpop.f32.mrf.mxu0  ;;  %v783_v46 = vpop.f32.mrf.mxu1 }
  0xfd   :  { %v537_v47 = vmax.f32 %v366_v43, 0.0  ;;  %v563_v48 = vmax.f32 %v470_v44, 0.0 }
  0xfe   :  { %v370_v49 = vpop.f32.mrf.mxu0  ;;  %v474_v50 = vpop.f32.mrf.mxu1 }
  0xff   :  { %587 = vst.msk [vmem:[%s1298_s3 + $0x48] sm:$0xff] %vm577_vm4, %v537_v47  ;;  %v371_v51 = vadd.f32 %v1048_v31, %v370_v49  ;;  %613 = vst.msk [vmem:[%s1298_s3 + $0x118] sm:$0xff] %vm577_vm4, %v563_v48  ;;  %v475_v52 = vadd.f32 %v1048_v31, %v474_v50 }
 0x100   :  { %v734_v53 = vpop.f32.mrf.mxu0  ;;  %v786_v54 = vpop.f32.mrf.mxu1 }
 0x101   :  { %v538_v55 = vmax.f32 %v371_v51, 0.0  ;;  %v564_v56 = vmax.f32 %v475_v52, 0.0 }
 0x102   :  { %v373_v57 = vpop.f32.mrf.mxu0  ;;  %v477_v58 = vpop.f32.mrf.mxu1 }
 0x103   :  { %588 = vst.msk [vmem:[%s1298_s3 + $0x50] sm:$0xff] %vm577_vm4, %v538_v55  ;;  %v374_v59 = vadd.f32 %v1048_v31, %v373_v57  ;;  %614 = vst.msk [vmem:[%s1298_s3 + $0x120] sm:$0xff] %vm577_vm4, %v564_v56  ;;  %v478_v60 = vadd.f32 %v1048_v31, %v477_v58 }
 0x104   :  { %v735_v61 = vpop.f32.mrf.mxu0  ;;  %v787_v62 = vpop.f32.mrf.mxu1 }
 0x105   :  { %v539_v63 = vmax.f32 %v374_v59, 0.0  ;;  %v565_v0 = vmax.f32 %v478_v60, 0.0 }
 0x106   :  { %v378_v1 = vpop.f32.mrf.mxu0  ;;  %v482_v2 = vpop.f32.mrf.mxu1 }
 0x107   :  { %589 = vst.msk [vmem:[%s1298_s3 + $0x58] sm:$0xff] %vm577_vm4, %v539_v63  ;;  %v379_v3 = vadd.f32 %v1048_v31, %v378_v1  ;;  %615 = vst.msk [vmem:[%s1298_s3 + $0x128] sm:$0xff] %vm577_vm4, %v565_v0  ;;  %v483_v4 = vadd.f32 %v1048_v31, %v482_v2 }
 0x108   :  { %v738_v5 = vpop.f32.mrf.mxu0  ;;  %v790_v6 = vpop.f32.mrf.mxu1 }
 0x109   :  { %v540_v7 = vmax.f32 %v379_v3, 0.0  ;;  %v566_v8 = vmax.f32 %v483_v4, 0.0 }
 0x10a   :  { %v381_v9 = vpop.f32.mrf.mxu0  ;;  %v485_v10 = vpop.f32.mrf.mxu1 }
 0x10b   :  { %590 = vst.msk [vmem:[%s1298_s3 + $0x60] sm:$0xff] %vm577_vm4, %v540_v7  ;;  %v382_v11 = vadd.f32 %v1048_v31, %v381_v9  ;;  %616 = vst.msk [vmem:[%s1298_s3 + $0x130] sm:$0xff] %vm577_vm4, %v566_v8  ;;  %v486_v12 = vadd.f32 %v1048_v31, %v485_v10 }
 0x10c   :  { %v739_v13 = vpop.f32.mrf.mxu0  ;;  %v791_v14 = vpop.f32.mrf.mxu1 }
 0x10d   :  { %v541_v15 = vmax.f32 %v382_v11, 0.0  ;;  %v567_v16 = vmax.f32 %v486_v12, 0.0 }
 0x10e   :  { %v386_v17 = vpop.f32.mrf.mxu0  ;;  %v490_v18 = vpop.f32.mrf.mxu1 }
 0x10f   :  { %591 = vst.msk [vmem:[%s1298_s3 + $0x68] sm:$0xff] %vm577_vm4, %v541_v15  ;;  %v387_v19 = vadd.f32 %v1048_v31, %v386_v17  ;;  %617 = vst.msk [vmem:[%s1298_s3 + $0x138] sm:$0xff] %vm577_vm4, %v567_v16  ;;  %v491_v20 = vadd.f32 %v1048_v31, %v490_v18 }
 0x110   :  { %v742_v21 = vpop.f32.mrf.mxu0  ;;  %v794_v22 = vpop.f32.mrf.mxu1 }
 0x111   :  { %v542_v23 = vmax.f32 %v387_v19, 0.0  ;;  %v568_v24 = vmax.f32 %v491_v20, 0.0 }
 0x112   :  { %v389_v25 = vpop.f32.mrf.mxu0  ;;  %v493_v26 = vpop.f32.mrf.mxu1 }
 0x113   :  { %592 = vst.msk [vmem:[%s1298_s3 + $0x70] sm:$0xff] %vm577_vm4, %v542_v23  ;;  %v390_v27 = vadd.f32 %v1048_v31, %v389_v25  ;;  %618 = vst.msk [vmem:[%s1298_s3 + $0x140] sm:$0xff] %vm577_vm4, %v568_v24  ;;  %v494_v28 = vadd.f32 %v1048_v31, %v493_v26 }
 0x114   :  { %v743_v29 = vpop.f32.mrf.mxu0  ;;  %v795_v30 = vpop.f32.mrf.mxu1 }
 0x115   :  { %v543_v32 = vmax.f32 %v390_v27, 0.0  ;;  %v569_v33 = vmax.f32 %v494_v28, 0.0 }
 0x116   :  { %v394_v34 = vpop.f32.mrf.mxu0  ;;  %v498_v35 = vpop.f32.mrf.mxu1 }
 0x117   :  { %593 = vst.msk [vmem:[%s1298_s3 + $0x78] sm:$0xff] %vm577_vm4, %v543_v32  ;;  %v395_v36 = vadd.f32 %v1048_v31, %v394_v34  ;;  %619 = vst.msk [vmem:[%s1298_s3 + $0x148] sm:$0xff] %vm577_vm4, %v569_v33  ;;  %v499_v37 = vadd.f32 %v1048_v31, %v498_v35 }
 0x118   :  { %v746_v38 = vpop.f32.mrf.mxu0  ;;  %v798_v39 = vpop.f32.mrf.mxu1 }
 0x119   :  { %v544_v40 = vmax.f32 %v395_v36, 0.0  ;;  %v570_v41 = vmax.f32 %v499_v37, 0.0 }
 0x11a   :  { %v397_v42 = vpop.f32.mrf.mxu0  ;;  %v501_v43 = vpop.f32.mrf.mxu1 }
 0x11b   :  { %594 = vst.msk [vmem:[%s1298_s3 + $0x80] sm:$0xff] %vm577_vm4, %v544_v40  ;;  %v398_v44 = vadd.f32 %v1048_v31, %v397_v42  ;;  %620 = vst.msk [vmem:[%s1298_s3 + $0x150] sm:$0xff] %vm577_vm4, %v570_v41  ;;  %v502_v45 = vadd.f32 %v1048_v31, %v501_v43 }
 0x11c   :  { %v747_v46 = vpop.f32.mrf.mxu0  ;;  %v799_v47 = vpop.f32.mrf.mxu1 }
 0x11d   :  { %v545_v48 = vmax.f32 %v398_v44, 0.0  ;;  %v571_v49 = vmax.f32 %v502_v45, 0.0 }
 0x11e   :  { %v402_v50 = vpop.f32.mrf.mxu0  ;;  %v506_v51 = vpop.f32.mrf.mxu1 }
 0x11f   :  { %595 = vst.msk [vmem:[%s1298_s3 + $0x88] sm:$0xff] %vm577_vm4, %v545_v48  ;;  %v403_v52 = vadd.f32 %v1048_v31, %v402_v50  ;;  %621 = vst.msk [vmem:[%s1298_s3 + $0x158] sm:$0xff] %vm577_vm4, %v571_v49  ;;  %v507_v53 = vadd.f32 %v1048_v31, %v506_v51 }
 0x120   :  { %v750_v54 = vpop.f32.mrf.mxu0  ;;  %v802_v55 = vpop.f32.mrf.mxu1 }
 0x121   :  { %v546_v56 = vmax.f32 %v403_v52, 0.0  ;;  %v572_v57 = vmax.f32 %v507_v53, 0.0 }
 0x122   :  { %v405_v58 = vpop.f32.mrf.mxu0  ;;  %v509_v59 = vpop.f32.mrf.mxu1 }
 0x123   :  { %596 = vst.msk [vmem:[%s1298_s3 + $0x90] sm:$0xff] %vm577_vm4, %v546_v56  ;;  %v406_v60 = vadd.f32 %v1048_v31, %v405_v58  ;;  %622 = vst.msk [vmem:[%s1298_s3 + $0x160] sm:$0xff] %vm577_vm4, %v572_v57  ;;  %v510_v61 = vadd.f32 %v1048_v31, %v509_v59 }
 0x124   :  { %v751_v62 = vpop.f32.mrf.mxu0  ;;  %v803_v63 = vpop.f32.mrf.mxu1 }
 0x125   :  { %v547_v0 = vmax.f32 %v406_v60, 0.0  ;;  %v573_v1 = vmax.f32 %v510_v61, 0.0 }
 0x126   :  { %v410_v2 = vpop.f32.mrf.mxu0  ;;  %v514_v3 = vpop.f32.mrf.mxu1 }
 0x127   :  { %597 = vst.msk [vmem:[%s1298_s3 + $0x98] sm:$0xff] %vm577_vm4, %v547_v0  ;;  %v411_v4 = vadd.f32 %v1048_v31, %v410_v2  ;;  %623 = vst.msk [vmem:[%s1298_s3 + $0x168] sm:$0xff] %vm577_vm4, %v573_v1  ;;  %v515_v5 = vadd.f32 %v1048_v31, %v514_v3 }
 0x128   :  { %v754_v6 = vpop.f32.mrf.mxu0  ;;  %v806_v7 = vpop.f32.mrf.mxu1 }
 0x129   :  { %v548_v8 = vmax.f32 %v411_v4, 0.0  ;;  %v574_v9 = vmax.f32 %v515_v5, 0.0 }
 0x12a   :  { %v413_v10 = vpop.f32.mrf.mxu0  ;;  %v517_v11 = vpop.f32.mrf.mxu1 }
 0x12b   :  { %598 = vst.msk [vmem:[%s1298_s3 + $0xa0] sm:$0xff] %vm577_vm4, %v548_v8  ;;  %v414_v12 = vadd.f32 %v1048_v31, %v413_v10  ;;  %624 = vst.msk [vmem:[%s1298_s3 + $0x170] sm:$0xff] %vm577_vm4, %v574_v9  ;;  %v518_v13 = vadd.f32 %v1048_v31, %v517_v11 }
 0x12c   :  { %v755_v14 = vpop.f32.mrf.mxu0  ;;  %v807_v15 = vpop.f32.mrf.mxu1 }
 0x12d   :  { %v549_v16 = vmax.f32 %v414_v12, 0.0  ;;  %v575_v17 = vmax.f32 %v518_v13, 0.0 }
 0x12e   :  { %v418_v18 = vpop.f32.mrf.mxu0  ;;  %v522_v19 = vpop.f32.mrf.mxu1 }
 0x12f   :  { %599 = vst.msk [vmem:[%s1298_s3 + $0xa8] sm:$0xff] %vm577_vm4, %v549_v16  ;;  %v419_v20 = vadd.f32 %v1048_v31, %v418_v18  ;;  %625 = vst.msk [vmem:[%s1298_s3 + $0x178] sm:$0xff] %vm577_vm4, %v575_v17  ;;  %v523_v21 = vadd.f32 %v1048_v31, %v522_v19 }
 0x130   :  { %v758_v22 = vpop.f32.mrf.mxu0  ;;  %v810_v23 = vpop.f32.mrf.mxu1 }
 0x131   :  { %v550_v24 = vmax.f32 %v419_v20, 0.0  ;;  %v576_v25 = vmax.f32 %v523_v21, 0.0 }
 0x132   :  { %v421_v26 = vpop.f32.mrf.mxu0  ;;  %v525_v27 = vpop.f32.mrf.mxu1 }
 0x133   :  { %600 = vst.msk [vmem:[%s1298_s3 + $0xb0] sm:$0xff] %vm577_vm4, %v550_v24  ;;  %v422_v28 = vadd.f32 %v1048_v31, %v421_v26  ;;  %626 = vst.msk [vmem:[%s1298_s3 + $0x180] sm:$0xff] %vm577_vm4, %v576_v25 }
 0x134   :  { %v759_v29 = vpop.f32.mrf.mxu0  ;;  %v811_v30 = vpop.f32.mrf.mxu1 }
 0x135   :  { %v551_v32 = vmax.f32 %v422_v28, 0.0 }
 0x136   :  { %v426_v33 = vpop.f32.mrf.mxu0 }
 0x137   :  { %601 = vst.msk [vmem:[%s1298_s3 + $0xb8] sm:$0xff] %vm577_vm4, %v551_v32  ;;  %v427_v34 = vadd.f32 %v1048_v31, %v426_v33 }
 0x138   :  { %v762_v35 = vpop.f32.mrf.mxu0 }
 0x139   :  { %v552_v36 = vmax.f32 %v427_v34, 0.0 }
 0x13a   :  { %v429_v37 = vpop.f32.mrf.mxu0 }
 0x13b   :  { %602 = vst.msk [vmem:[%s1298_s3 + $0xc0] sm:$0xff] %vm577_vm4, %v552_v36  ;;  %v430_v38 = vadd.f32 %v1048_v31, %v429_v37 }
 0x13c   :  { %v763_v39 = vpop.f32.mrf.mxu0 }
 0x13d   :  { %v553_v40 = vmax.f32 %v430_v38, 0.0 }
 0x13f   :  { %603 = vst.msk [vmem:[%s1298_s3 + $0xc8] sm:$0xff] %vm577_vm4, %v553_v40 }
 0x140   :  { %631 = vsyncpa [#allocation3], 1 }

// kernel: vqvae_forward.10
= control target key start
LH: loop header
LB: loop body
LE: loop exit
PB: predicated region body
PF: predicated region fallthrough
CT: control target
= control target key end

     0   :  { %vm244_vm0 = vcmask 1045504   ;;  %vm222_vm1 = vcmask 1014784   ;;  %vm349_vm2 = vcmask 523264   ;;  %vm362_vm3 = vcmask 517120   ;;  %s701_s1 = inlined_call_operand.vmem [shape: bf16[252,64], index: 1, kind: input, shape index: {}]   ;;  %s702_s0 = inlined_call_operand.vmem [shape: bf16[98,252], index: 0, kind: input, shape index: {}]   ;;  %s703_s2 = inlined_call_operand.vmem [shape: f32[1,64], index: 2, kind: input, shape index: {}]   ;;  %s704_s3 = inlined_call_operand.vmem [shape: f32[98,64], index: 3, kind: output, shape index: {}]  }
   0x1   :  { %v482_v0 = vld [vmem:[%s701_s1 + $0x78] sm:$0x3f]   ;;  %v484_v2 = vld [vmem:[%s701_s1 + $0x70] sm:$0xff]   ;;  %v486_v4 = vld [vmem:[%s701_s1 + $0x68] sm:$0xff]  }
   0x2   :  { %v483_v1 = vld [vmem:[%s701_s1 + $0x38] sm:$0xff]   ;;  %480 = vmatprep.subr.msk.bf16.mxu0 %vm244_vm0, %v482_v0  ;;  %481 = vmatprep.subr.msk.bf16.mxu1 %vm244_vm0, %v482_v0  ;;  %v485_v3 = vld [vmem:[%s701_s1 + $0x30] sm:$0xff]   ;;  %v487_v5 = vld [vmem:[%s701_s1 + $0x28] sm:$0xff]  }
   0x3   :  { %407 = vmatpush3.bf16.msra.mxu0 %v483_v1  ;;  %472 = vmatpush3.bf16.msra.mxu1 %v483_v1  ;;  %v488_v6 = vld [vmem:[%s701_s1 + $0x60] sm:$0xff]   ;;  %v490_v8 = vld [vmem:[%s701_s1 + $0x58] sm:$0xff]   ;;  %v492_v10 = vld [vmem:[%s701_s1 + $0x50] sm:$0xff]  }
   0x4   :  { %408 = vmatprep.subr.bf16.mxu0 %v484_v2  ;;  %465 = vmatprep.subr.bf16.mxu1 %v484_v2  ;;  %v489_v7 = vld [vmem:[%s701_s1 + $0x20] sm:$0xff]   ;;  %v491_v9 = vld [vmem:[%s701_s1 + $0x18] sm:$0xff]   ;;  %v493_v13 = vld [vmem:[%s701_s1 + $0x10] sm:$0xff]  }
   0x5   :  { %v500_v11 = vld [vmem:[%s702_s0 + $0x4] ss:$8 sps:$4 sm:$0xff]   ;;  %v498_v18 = vld [vmem:[%s702_s0] ss:$8 sps:$4 sm:$0xff]   ;;  %v504_v20 = vld [vmem:[%s702_s0 + $0x14] ss:$8 sps:$4 sm:$0xff]  }
   0x6   :  { %v503_v12 = vld [vmem:[%s702_s0 + $0x44] ss:$8 sps:$4 sm:$0xff]   ;;  %399 = vmatprep.mubr.msk.bf16.mxu0 %vm222_vm1, %v500_v11  ;;  %v501_v19 = vld [vmem:[%s702_s0 + $0x40] ss:$8 sps:$4 sm:$0xff]   ;;  %v507_v21 = vld [vmem:[%s702_s0 + $0x54] ss:$8 sps:$4 sm:$0xff]  }
   0x7   :  { %409 = vmatpush3.bf16.msra.mxu0 %v485_v3  ;;  %473 = vmatpush3.bf16.msra.mxu1 %v485_v3  ;;  %v494_v14 = vld [vmem:[%s701_s1 + $0x48] sm:$0xff]   ;;  %v496_v16 = vld [vmem:[%s701_s1 + $0x40] sm:$0xff]   ;;  %v506_v23 = vld [vmem:[%s702_s0 + $0x10] ss:$8 sps:$4 sm:$0xff]  }
   0x8   :  { %410 = vmatprep.subr.bf16.mxu0 %v486_v4  ;;  %466 = vmatprep.subr.bf16.mxu1 %v486_v4  ;;  %v495_v15 = vld [vmem:[%s701_s1 + $0x8] sm:$0xff]   ;;  %v497_v17 = vld [vmem:[%s701_s1] sm:$0xff]   ;;  %v509_v24 = vld [vmem:[%s702_s0 + $0x50] ss:$8 sps:$4 sm:$0xff]  }
   0x9   :  { %403 = vmatprep.mubr.msk.bf16.mxu1 %vm222_vm1, %v503_v12  ;;  %v27_v22 = vld [vmem:[%s702_s0 + $0x60] sm:$0x11]  ;;  %v515_v29 = vld [vmem:[%s702_s0 + $0x34] ss:$8 sps:$4 sm:$0xff]   ;;  %v517_v30 = vld [vmem:[%s702_s0 + $0x30] ss:$8 sps:$4 sm:$0xff]  }
   0xa   :  { %v510_v25 = vld [vmem:[%s702_s0 + $0x24] ss:$8 sps:$4 sm:$0xff]   ;;  %v382_v26 = vcombine.high %v27_v22, %v27_v22  ;;  %v512_v27 = vld [vmem:[%s702_s0 + $0x20] ss:$8 sps:$4 sm:$0xff]   ;;  %v381_v28 = vcombine.low %v27_v22, %v27_v22 }
   0xb   :  { %411 = vmatpush3.bf16.msra.mxu0 %v487_v5  ;;  %474 = vmatpush3.bf16.msra.mxu1 %v487_v5  ;;  %v635_v33 = vld [vmem:[%s703_s2] ss:$0 sm:$0xff] }
   0xc   :  { %412 = vmatprep.subr.bf16.mxu0 %v488_v6  ;;  %467 = vmatprep.subr.bf16.mxu1 %v488_v6 }
   0xf   :  { %413 = vmatpush3.bf16.msra.mxu0 %v489_v7  ;;  %475 = vmatpush3.bf16.msra.mxu1 %v489_v7 }
  0x10   :  { %414 = vmatprep.subr.bf16.mxu0 %v490_v8  ;;  %468 = vmatprep.subr.bf16.mxu1 %v490_v8 }
  0x13   :  { %415 = vmatpush3.bf16.msra.mxu0 %v491_v9  ;;  %476 = vmatpush3.bf16.msra.mxu1 %v491_v9 }
  0x14   :  { %416 = vmatprep.subr.bf16.mxu0 %v492_v10  ;;  %469 = vmatprep.subr.bf16.mxu1 %v492_v10 }
  0x17   :  { %417 = vmatpush3.bf16.msra.mxu0 %v493_v13  ;;  %477 = vmatpush3.bf16.msra.mxu1 %v493_v13 }
  0x18   :  { %418 = vmatprep.subr.bf16.mxu0 %v494_v14  ;;  %470 = vmatprep.subr.bf16.mxu1 %v494_v14 }
  0x1b   :  { %419 = vmatpush3.bf16.msra.mxu0 %v495_v15  ;;  %478 = vmatpush3.bf16.msra.mxu1 %v495_v15 }
  0x1c   :  { %420 = vmatprep.subr.bf16.mxu0 %v496_v16  ;;  %471 = vmatprep.subr.bf16.mxu1 %v496_v16 }
  0x1f   :  { %421 = vmatpush3.bf16.msra.mxu0 %v497_v17  ;;  %479 = vmatpush3.bf16.msra.mxu1 %v497_v17 }
  0x22   :  { %281 = vmatmul.mubr.bf16.vlgmr.msra.gmra.mxu0 %v498_v18  ;;  %313 = vmatmul.mubr.bf16.vlgmr.msra.gmra.mxu1 %v501_v19 }
  0x23   :  { %400 = vmatprep.mubr.msk.bf16.mxu0 %vm222_vm1, %v504_v20  ;;  %404 = vmatprep.mubr.msk.bf16.mxu1 %vm222_vm1, %v507_v21 }
  0x2a   :  { %289 = vmatmul.mubr.bf16.gmra.mxu0 %v506_v23  ;;  %321 = vmatmul.mubr.bf16.gmra.mxu1 %v509_v24 }
  0x2b   :  { %401 = vmatprep.mubr.msk.bf16.mxu0 %vm222_vm1, %v510_v25  ;;  %405 = vmatprep.mubr.msk.bf16.mxu1 %vm222_vm1, %v382_v26 }
  0x32   :  { %297 = vmatmul.mubr.bf16.gmra.mxu0 %v512_v27  ;;  %329 = vmatmul.mubr.bf16.gmra.mxu1 %v381_v28 }
  0x33   :  { %402 = vmatprep.mubr.msk.bf16.mxu0 %vm222_vm1, %v515_v29 }
  0x3a   :  { %305 = vmatmul.mubr.bf16.gmra.mxu0 %v517_v30 }
  0xe2   :  { %v422_v31 = vpop.f32.mrf.mxu0  ;;  %v446_v32 = vpop.f32.mrf.mxu1 }
  0xe4   :  { %v423_v34 = vpop.f32.mrf.mxu0  ;;  %v447_v35 = vpop.f32.mrf.mxu1 }
  0xe5   :  { %v424_v36 = vadd.f32 %v423_v34, %v422_v31  ;;  %v448_v37 = vadd.f32 %v447_v35, %v446_v32 }
  0xe6   :  { %v425_v38 = vpop.f32.mrf.mxu0  ;;  %v449_v39 = vpop.f32.mrf.mxu1 }
  0xe7   :  { %v283_v40 = vadd.f32 %v424_v36, %v635_v33  ;;  %v315_v41 = vadd.f32 %v448_v37, %v635_v33 }
  0xe8   :  { %v426_v42 = vpop.f32.mrf.mxu0  ;;  %v450_v43 = vpop.f32.mrf.mxu1 }
  0xe9   :  { %v336_v44 = vmax.f32 %v283_v40, 0.0  ;;  %v427_v45 = vadd.f32 %v426_v42, %v425_v38  ;;  %v344_v46 = vmax.f32 %v315_v41, 0.0  ;;  %v451_v47 = vadd.f32 %v450_v43, %v449_v39 }
  0xea   :  { %v428_v48 = vpop.f32.mrf.mxu0  ;;  %v452_v49 = vpop.f32.mrf.mxu1 }
  0xeb   :  { %350 = vst.msk [vmem:[%s704_s3] sm:$0xff] %vm349_vm2, %v336_v44  ;;  %v286_v50 = vadd.f32 %v427_v45, %v635_v33  ;;  %358 = vst.msk [vmem:[%s704_s3 + $0x40] sm:$0xff] %vm349_vm2, %v344_v46  ;;  %v318_v51 = vadd.f32 %v451_v47, %v635_v33 }
  0xec   :  { %v429_v52 = vpop.f32.mrf.mxu0  ;;  %v453_v53 = vpop.f32.mrf.mxu1 }
  0xed   :  { %v337_v54 = vmax.f32 %v286_v50, 0.0  ;;  %v430_v55 = vadd.f32 %v429_v52, %v428_v48  ;;  %v345_v56 = vmax.f32 %v318_v51, 0.0  ;;  %v454_v57 = vadd.f32 %v453_v53, %v452_v49 }
  0xee   :  { %v431_v58 = vpop.f32.mrf.mxu0  ;;  %v455_v59 = vpop.f32.mrf.mxu1 }
  0xef   :  { %351 = vst.msk [vmem:[%s704_s3 + $0x8] sm:$0xff] %vm349_vm2, %v337_v54  ;;  %v291_v60 = vadd.f32 %v430_v55, %v635_v33  ;;  %359 = vst.msk [vmem:[%s704_s3 + $0x48] sm:$0xff] %vm349_vm2, %v345_v56  ;;  %v323_v61 = vadd.f32 %v454_v57, %v635_v33 }
  0xf0   :  { %v432_v62 = vpop.f32.mrf.mxu0  ;;  %v456_v63 = vpop.f32.mrf.mxu1 }
  0xf1   :  { %v338_v0 = vmax.f32 %v291_v60, 0.0  ;;  %v433_v1 = vadd.f32 %v432_v62, %v431_v58  ;;  %v346_v2 = vmax.f32 %v323_v61, 0.0  ;;  %v457_v3 = vadd.f32 %v456_v63, %v455_v59 }
  0xf2   :  { %v434_v4 = vpop.f32.mrf.mxu0  ;;  %v458_v5 = vpop.f32.mrf.mxu1 }
  0xf3   :  { %352 = vst.msk [vmem:[%s704_s3 + $0x10] sm:$0xff] %vm349_vm2, %v338_v0  ;;  %v294_v6 = vadd.f32 %v433_v1, %v635_v33  ;;  %360 = vst.msk [vmem:[%s704_s3 + $0x50] sm:$0xff] %vm349_vm2, %v346_v2  ;;  %v326_v7 = vadd.f32 %v457_v3, %v635_v33 }
  0xf4   :  { %v435_v8 = vpop.f32.mrf.mxu0  ;;  %v459_v9 = vpop.f32.mrf.mxu1 }
  0xf5   :  { %v339_v10 = vmax.f32 %v294_v6, 0.0  ;;  %v436_v11 = vadd.f32 %v435_v8, %v434_v4  ;;  %v347_v12 = vmax.f32 %v326_v7, 0.0  ;;  %v460_v13 = vadd.f32 %v459_v9, %v458_v5 }
  0xf6   :  { %v437_v14 = vpop.f32.mrf.mxu0  ;;  %v461_v15 = vpop.f32.mrf.mxu1 }
  0xf7   :  { %353 = vst.msk [vmem:[%s704_s3 + $0x18] sm:$0xff] %vm349_vm2, %v339_v10  ;;  %v299_v16 = vadd.f32 %v436_v11, %v635_v33  ;;  %361 = vst.msk [vmem:[%s704_s3 + $0x58] sm:$0xff] %vm349_vm2, %v347_v12  ;;  %v331_v17 = vadd.f32 %v460_v13, %v635_v33 }
  0xf8   :  { %v438_v18 = vpop.f32.mrf.mxu0  ;;  %v462_v19 = vpop.f32.mrf.mxu1 }
  0xf9   :  { %v340_v20 = vmax.f32 %v299_v16, 0.0  ;;  %v439_v21 = vadd.f32 %v438_v18, %v437_v14  ;;  %v348_v22 = vmax.f32 %v331_v17, 0.0 }
  0xfa   :  { %v440_v23 = vpop.f32.mrf.mxu0 }
  0xfb   :  { %354 = vst.msk [vmem:[%s704_s3 + $0x20] sm:$0xff] %vm349_vm2, %v340_v20  ;;  %v302_v24 = vadd.f32 %v439_v21, %v635_v33 }
  0xfc   :  { %363 = vst.msk [vmem:[%s704_s3 + $0x60] sm:$0x3] %vm362_vm3, %v348_v22  ;;  %v441_v25 = vpop.f32.mrf.mxu0 }
  0xfd   :  { %v341_v26 = vmax.f32 %v302_v24, 0.0  ;;  %v442_v27 = vadd.f32 %v441_v25, %v440_v23 }
  0xfe   :  { %v443_v28 = vpop.f32.mrf.mxu0 }
  0xff   :  { %355 = vst.msk [vmem:[%s704_s3 + $0x28] sm:$0xff] %vm349_vm2, %v341_v26  ;;  %v307_v29 = vadd.f32 %v442_v27, %v635_v33 }
 0x100   :  { %v444_v30 = vpop.f32.mrf.mxu0 }
 0x101   :  { %v342_v31 = vmax.f32 %v307_v29, 0.0  ;;  %v445_v32 = vadd.f32 %v444_v30, %v443_v28 }
 0x103   :  { %356 = vst.msk [vmem:[%s704_s3 + $0x30] sm:$0xff] %vm349_vm2, %v342_v31  ;;  %v310_v34 = vadd.f32 %v445_v32, %v635_v33 }
 0x105   :  { %v343_v35 = vmax.f32 %v310_v34, 0.0 }
 0x107   :  { %357 = vst.msk [vmem:[%s704_s3 + $0x38] sm:$0xff] %vm349_vm2, %v343_v35 }

// kernel: vqvae_forward.11
= control target key start
LH: loop header
LB: loop body
LE: loop exit
PB: predicated region body
PF: predicated region fallthrough
CT: control target
= control target key end

     0   :  { %vm372_vm0 = vcmask 523264   ;;  %s884_s1 = inlined_call_operand.vmem [shape: bf16[576,128], index: 1, kind: input, shape index: {}]   ;;  %s885_s0 = inlined_call_operand.vmem [shape: bf16[32,576], index: 0, kind: input, shape index: {}]   ;;  %s886_s2 = inlined_call_operand.vmem [shape: f32[1,128], index: 2, kind: input, shape index: {}]   ;;  %s887_s3 = inlined_call_operand.vmem [shape: f32[32,128], index: 3, kind: output, shape index: {}]  }
   0x1   :  { %v661_v0 = vld [vmem:[%s884_s1 + $0x78] sm:$0xff]   ;;  %v665_v4 = vld [vmem:[%s884_s1 + $0x70] sm:$0xff]   ;;  %v669_v8 = vld [vmem:[%s884_s1 + $0x68] sm:$0xff]  }
   0x2   :  { %v662_v1 = vld [vmem:[%s884_s1 + $0xf8] sm:$0xff]   ;;  %587 = vmatprep.subr.bf16.mxu0 %v661_v0  ;;  %v666_v5 = vld [vmem:[%s884_s1 + $0xf0] sm:$0xff]   ;;  %v670_v9 = vld [vmem:[%s884_s1 + $0xe8] sm:$0xff]  }
   0x3   :  { %v663_v2 = vld [vmem:[%s884_s1 + $0x38] sm:$0xff]   ;;  %615 = vmatprep.subr.bf16.mxu1 %v662_v1  ;;  %v667_v6 = vld [vmem:[%s884_s1 + $0x30] sm:$0xff]   ;;  %v671_v10 = vld [vmem:[%s884_s1 + $0x28] sm:$0xff]  }
   0x4   :  { %v664_v3 = vld [vmem:[%s884_s1 + $0xb8] sm:$0xff]   ;;  %588 = vmatpush3.bf16.msra.mxu0 %v663_v2  ;;  %v668_v7 = vld [vmem:[%s884_s1 + $0xb0] sm:$0xff]   ;;  %v672_v11 = vld [vmem:[%s884_s1 + $0xa8] sm:$0xff]  }
   0x5   :  { %616 = vmatpush3.bf16.msra.mxu1 %v664_v3  ;;  %589 = vmatprep.subr.bf16.mxu0 %v665_v4  ;;  %v673_v12 = vld [vmem:[%s884_s1 + $0x60] sm:$0xff]   ;;  %v677_v16 = vld [vmem:[%s884_s1 + $0x58] sm:$0xff]   ;;  %v681_v20 = vld [vmem:[%s884_s1 + $0x50] sm:$0xff]  }
   0x6   :  { %617 = vmatprep.subr.bf16.mxu1 %v666_v5  ;;  %v674_v13 = vld [vmem:[%s884_s1 + $0xe0] sm:$0xff]   ;;  %v678_v17 = vld [vmem:[%s884_s1 + $0xd8] sm:$0xff]   ;;  %v682_v21 = vld [vmem:[%s884_s1 + $0xd0] sm:$0xff]  }
   0x7   :  { %v675_v14 = vld [vmem:[%s884_s1 + $0x20] sm:$0xff]   ;;  %v679_v18 = vld [vmem:[%s884_s1 + $0x18] sm:$0xff]   ;;  %v683_v22 = vld [vmem:[%s884_s1 + $0x10] sm:$0xff]  }
   0x8   :  { %590 = vmatpush3.bf16.msra.mxu0 %v667_v6  ;;  %v676_v15 = vld [vmem:[%s884_s1 + $0xa0] sm:$0xff]   ;;  %v680_v19 = vld [vmem:[%s884_s1 + $0x98] sm:$0xff]   ;;  %v684_v23 = vld [vmem:[%s884_s1 + $0x90] sm:$0xff]  }
   0x9   :  { %618 = vmatpush3.bf16.msra.mxu1 %v668_v7  ;;  %591 = vmatprep.subr.bf16.mxu0 %v669_v8  ;;  %v685_v24 = vld [vmem:[%s884_s1 + $0x48] sm:$0xff]   ;;  %v689_v28 = vld [vmem:[%s884_s1 + $0x40] sm:$0xff]   ;;  %v699_v36 = vld [vmem:[%s884_s1 + $0x118] sm:$0xff]  }
   0xa   :  { %619 = vmatprep.subr.bf16.mxu1 %v670_v9  ;;  %v686_v25 = vld [vmem:[%s884_s1 + $0xc8] sm:$0xff]   ;;  %v690_v29 = vld [vmem:[%s884_s1 + $0xc0] sm:$0xff]   ;;  %v700_v37 = vld [vmem:[%s884_s1 + $0x110] sm:$0xff]  }
   0xb   :  { %v687_v26 = vld [vmem:[%s884_s1 + $0x8] sm:$0xff]   ;;  %v691_v30 = vld [vmem:[%s884_s1] sm:$0xff]  }
   0xc   :  { %592 = vmatpush3.bf16.msra.mxu0 %v671_v10  ;;  %v688_v27 = vld [vmem:[%s884_s1 + $0x88] sm:$0xff]   ;;  %v692_v31 = vld [vmem:[%s884_s1 + $0x80] sm:$0xff]  }
   0xd   :  { %620 = vmatpush3.bf16.msra.mxu1 %v672_v11  ;;  %593 = vmatprep.subr.bf16.mxu0 %v673_v12  ;;  %v693_v32 = vld [vmem:[%s885_s0] ss:$20 sps:$4 sm:$0xff]   ;;  %v695_v33 = vld [vmem:[%s885_s0 + $0x4] ss:$20 sps:$4 sm:$0xff]   ;;  %v696_v34 = vld [vmem:[%s885_s0 + $0x8] ss:$20 sps:$4 sm:$0xff]  }
   0xe   :  { %621 = vmatprep.subr.bf16.mxu1 %v674_v13  ;;  %v698_v35 = vld [vmem:[%s885_s0 + $0xc] ss:$20 sps:$4 sm:$0xff]   ;;  %411 = vmatprep.mubr.bf16.mxu0 %v695_v33  ;;  %v703_v39 = vld [vmem:[%s885_s0 + $0x34] ss:$20 sps:$4 sm:$0xff]   ;;  %v706_v42 = vld [vmem:[%s885_s0 + $0x30] ss:$20 sps:$4 sm:$0xff]  }
   0xf   :  { %460 = vmatprep.mubr.bf16.mxu1 %v698_v35  ;;  %v701_v38 = vld [vmem:[%s885_s0 + $0x2c] ss:$20 sps:$4 sm:$0xff]   ;;  %v705_v40 = vld [vmem:[%s885_s0 + $0x28] ss:$20 sps:$4 sm:$0xff]   ;;  %v709_v43 = vld [vmem:[%s885_s0 + $0x10] ss:$20 sps:$4 sm:$0xff]  }
  0x10   :  { %594 = vmatpush3.bf16.msra.mxu0 %v675_v14  ;;  %v707_v41 = vld [vmem:[%s884_s1 + $0x108] sm:$0xff]   ;;  %v708_v44 = vld [vmem:[%s884_s1 + $0x100] sm:$0xff]  }
  0x11   :  { %622 = vmatpush3.bf16.msra.mxu1 %v676_v15  ;;  %595 = vmatprep.subr.bf16.mxu0 %v677_v16  ;;  %v710_v45 = vld [vmem:[%s885_s0 + $0x38] ss:$20 sps:$4 sm:$0xff]   ;;  %v538_v58 = vld [vmem:[%s886_s2] ss:$0 sm:$0xff] }
  0x12   :  { %623 = vmatprep.subr.bf16.mxu1 %v678_v17 }
  0x14   :  { %596 = vmatpush3.bf16.msra.mxu0 %v679_v18 }
  0x15   :  { %624 = vmatpush3.bf16.msra.mxu1 %v680_v19  ;;  %597 = vmatprep.subr.bf16.mxu0 %v681_v20 }
  0x16   :  { %625 = vmatprep.subr.bf16.mxu1 %v682_v21 }
  0x18   :  { %598 = vmatpush3.bf16.msra.mxu0 %v683_v22 }
  0x19   :  { %626 = vmatpush3.bf16.msra.mxu1 %v684_v23  ;;  %599 = vmatprep.subr.bf16.mxu0 %v685_v24 }
  0x1a   :  { %627 = vmatprep.subr.bf16.mxu1 %v686_v25 }
  0x1c   :  { %600 = vmatpush3.bf16.msra.mxu0 %v687_v26 }
  0x1d   :  { %628 = vmatpush3.bf16.msra.mxu1 %v688_v27  ;;  %601 = vmatprep.subr.bf16.mxu0 %v689_v28 }
  0x1e   :  { %629 = vmatprep.subr.bf16.mxu1 %v690_v29 }
  0x20   :  { %602 = vmatpush3.bf16.msra.mxu0 %v691_v30 }
  0x21   :  { %630 = vmatpush3.bf16.msra.mxu1 %v692_v31  ;;  %649 = vmatprep.subr.bf16.mxu0 %v699_v36 }
  0x23   :  { %412 = vmatmul.mubr.bf16.vlgmr.msra.gmra.mxu0 %v693_v32 }
  0x24   :  { %461 = vmatmul.mubr.bf16.vlgmr.msra.gmra.mxu1 %v696_v34  ;;  %650 = vmatpush3.bf16.msra.mxu0 %v699_v36 }
  0x25   :  { %651 = vmatprep.subr.bf16.mxu0 %v700_v37  ;;  %419 = vmatprep.mubr.bf16.mxu0 %v701_v38 }
  0x26   :  { %468 = vmatprep.mubr.bf16.mxu1 %v703_v39 }
  0x28   :  { %652 = vmatpush3.bf16.msra.mxu0 %v700_v37 }
  0x29   :  { %653 = vmatprep.subr.bf16.mxu0 %v707_v41 }
  0x2b   :  { %420 = vmatmul.mubr.bf16.gmra.mxu0 %v705_v40 }
  0x2c   :  { %469 = vmatmul.mubr.bf16.gmra.mxu1 %v706_v42  ;;  %657 = vmatprep.mubr.msk.bf16.mxu0 %vm372_vm0, %v709_v43 }
  0x2d   :  { %654 = vmatpush3.bf16.msra.mxu0 %v707_v41 }
  0x2e   :  { %655 = vmatprep.subr.bf16.mxu0 %v708_v44 }
  0x31   :  { %656 = vmatpush3.bf16.msra.mxu0 %v708_v44 }
  0x34   :  { %658 = vmatmul.mubr.msk.bf16.vlgmr.msra.gmra.mxu0 %vm372_vm0, %v710_v45 }
  0xe3   :  { %v603_v46 = vpop.f32.mrf.mxu0 }
  0xe4   :  { %v631_v47 = vpop.f32.mrf.mxu1 }
  0xe5   :  { %v604_v48 = vpop.f32.mrf.mxu0 }
  0xe6   :  { %v632_v49 = vpop.f32.mrf.mxu1  ;;  %v605_v56 = vadd.f32 %v604_v48, %v603_v46 }
  0xe7   :  { %v606_v50 = vpop.f32.mrf.mxu0  ;;  %v633_v2 = vadd.f32 %v632_v49, %v631_v47 }
  0xe8   :  { %v634_v51 = vpop.f32.mrf.mxu1  ;;  %v414_v1 = vadd.f32 %v605_v56, %v538_v58 }
  0xe9   :  { %v607_v52 = vpop.f32.mrf.mxu0 }
  0xea   :  { %v635_v53 = vpop.f32.mrf.mxu1  ;;  %v608_v3 = vadd.f32 %v607_v52, %v606_v50  ;;  %v463_v13 = vadd.f32 %v633_v2, %v414_v1 }
  0xeb   :  { %v609_v54 = vpop.f32.mrf.mxu0  ;;  %v636_v16 = vadd.f32 %v635_v53, %v634_v51 }
  0xec   :  { %v637_v55 = vpop.f32.mrf.mxu1  ;;  %v417_v11 = vadd.f32 %v608_v3, %v538_v58 }
  0xed   :  { %v610_v57 = vpop.f32.mrf.mxu0 }
  0xee   :  { %v611_v59 = vadd.f32 %v610_v57, %v609_v54  ;;  %v638_v60 = vpop.f32.mrf.mxu1  ;;  %v466_v22 = vadd.f32 %v636_v16, %v417_v11 }
  0xef   :  { %v639_v61 = vadd.f32 %v638_v60, %v637_v55  ;;  %v612_v62 = vpop.f32.mrf.mxu0 }
  0xf0   :  { %v422_v63 = vadd.f32 %v611_v59, %v538_v58  ;;  %v640_v0 = vpop.f32.mrf.mxu1 }
  0xf1   :  { %v613_v4 = vpop.f32.mrf.mxu0 }
  0xf2   :  { %v614_v5 = vadd.f32 %v613_v4, %v612_v62  ;;  %v641_v6 = vpop.f32.mrf.mxu1  ;;  %v471_v7 = vadd.f32 %v639_v61, %v422_v63 }
  0xf3   :  { %v642_v9 = vadd.f32 %v641_v6, %v640_v0 }
  0xf4   :  { %v425_v8 = vadd.f32 %v614_v5, %v538_v58  ;;  %v659_v10 = vpop.f32.mrf.mxu0 }
  0xf5   :  { %v520_v12 = vadd.f32 %v659_v10, %v471_v7 }
  0xf6   :  { %v511_v14 = vpop.f32.mrf.mxu0  ;;  %v474_v15 = vadd.f32 %v642_v9, %v425_v8 }
  0xf7   :  { %v528_v17 = vmax.f32 %v520_v12, 0.0  ;;  %v512_v18 = vadd.f32 %v511_v14, %v463_v13 }
  0xf8   :  { %v660_v19 = vpop.f32.mrf.mxu0 }
  0xf9   :  { %532 = vst [vmem:[%s887_s3 + $0x10] sm:$0xff] %v528_v17  ;;  %v526_v20 = vmax.f32 %v512_v18, 0.0  ;;  %v523_v21 = vadd.f32 %v660_v19, %v474_v15 }
  0xfa   :  { %v514_v23 = vpop.f32.mrf.mxu0 }
  0xfb   :  { %530 = vst [vmem:[%s887_s3] sm:$0xff] %v526_v20  ;;  %v529_v24 = vmax.f32 %v523_v21, 0.0  ;;  %v515_v25 = vadd.f32 %v514_v23, %v466_v22 }
  0xfd   :  { %533 = vst [vmem:[%s887_s3 + $0x18] sm:$0xff] %v529_v24  ;;  %v527_v26 = vmax.f32 %v515_v25, 0.0 }
  0xff   :  { %531 = vst [vmem:[%s887_s3 + $0x8] sm:$0xff] %v527_v26 }

// kernel: vqvae_forward.12
= control target key start
LH: loop header
LB: loop body
LE: loop exit
PB: predicated region body
PF: predicated region fallthrough
CT: control target
= control target key end

     0   :  { %vm198_vm0 = vcmask 261120   ;;  %s2162_s1 = inlined_call_operand.vmem [shape: f32[128,32], index: 1, kind: input, shape index: {}]   ;;  %s2163_s0 = inlined_call_operand.vmem [shape: f32[32,128], index: 0, kind: input, shape index: {}]   ;;  %s2164_s3 = inlined_call_operand.vmem [shape: f32[512,32], index: 3, kind: input, shape index: {}]   ;;  %s2165_s2 = inlined_call_operand.vmem [shape: f32[1,32], index: 2, kind: input, shape index: {}]   ;;  %s2166_s4 = inlined_call_operand.vmem [shape: f32[1,512], index: 4, kind: input, shape index: {}]   ;;  %s2167_s6 = inlined_call_operand.vmem [shape: s32[32,1], index: 6, kind: output, shape index: {1}]   ;;  %s2168_s5 = inlined_call_operand.vmem [shape: f32[32,32], index: 5, kind: output, shape index: {0}]  }
   0x1   :  { %v41_v0 = vld [vmem:[%s2162_s1 + $0x78] sm:$0xff]  ;;  %v40_v1 = vld [vmem:[%s2162_s1 + $0x70] sm:$0xff]  ;;  %v39_v2 = vld [vmem:[%s2162_s1 + $0x68] sm:$0xff] }
   0x2   :  { %1300 = vmatprep.subr.mxu0 %v41_v0  ;;  %v38_v3 = vld [vmem:[%s2162_s1 + $0x60] sm:$0xff]  ;;  %v37_v5 = vld [vmem:[%s2162_s1 + $0x58] sm:$0xff]  ;;  %v36_v8 = vld [vmem:[%s2162_s1 + $0x50] sm:$0xff] }
   0x3   :  { %1301 = vmatpush3.msra.mxu0 %v41_v0  ;;  %v22_v4 = vld [vmem:[%s2163_s0] sm:$0xff]  ;;  %v1428_v6 = vld [vmem:[%s2164_s3 + $0xf8] sm:$0xff]  ;;  %v1445_v9 = vld [vmem:[%s2164_s3 + $0xf0] sm:$0xff] }
   0x4   :  { %1302 = vmatprep.subr.mxu0 %v40_v1  ;;  %1332 = vmatprep.mubr.f32.mxu0 %v22_v4  ;;  %v1435_v7 = vld [vmem:[%s2164_s3 + $0x78] sm:$0xff]  ;;  %v1452_v10 = vld [vmem:[%s2164_s3 + $0x70] sm:$0xff]  ;;  %v35_v11 = vld [vmem:[%s2162_s1 + $0x48] sm:$0xff] }
   0x5   :  { %1303 = vmatpush3.msra.mxu0 %v40_v1  ;;  %1132 = vmatprep.subr.msk.mxu1 %vm198_vm0, %v1428_v6  ;;  %v1460_v12 = vld [vmem:[%s2164_s3 + $0xe8] sm:$0xff]  ;;  %v34_v13 = vld [vmem:[%s2162_s1 + $0x40] sm:$0xff]  ;;  %v33_v15 = vld [vmem:[%s2162_s1 + $0x38] sm:$0xff] }
   0x6   :  { %1304 = vmatprep.subr.mxu0 %v39_v2  ;;  %1133 = vmatpush3.xpose.msk.msra.mxu1 %vm198_vm0, %v1435_v7  ;;  %v1472_v14 = vld [vmem:[%s2164_s3 + $0x68] sm:$0xff]  ;;  %v1480_v16 = vld [vmem:[%s2164_s3 + $0xe0] sm:$0xff]  ;;  %v32_v17 = vld [vmem:[%s2162_s1 + $0x30] sm:$0xff] }
   0x7   :  { %1305 = vmatpush3.msra.mxu0 %v39_v2  ;;  %1134 = vmatprep.subr.msk.mxu1 %vm198_vm0, %v1445_v9  ;;  %v1492_v18 = vld [vmem:[%s2164_s3 + $0x60] sm:$0xff]  ;;  %v31_v19 = vld [vmem:[%s2162_s1 + $0x28] sm:$0xff]  ;;  %v1500_v20 = vld [vmem:[%s2164_s3 + $0xd8] sm:$0xff] }
   0x8   :  { %1306 = vmatprep.subr.mxu0 %v38_v3  ;;  %v30_v21 = vld [vmem:[%s2162_s1 + $0x20] sm:$0xff]  ;;  %v1512_v22 = vld [vmem:[%s2164_s3 + $0x58] sm:$0xff]  ;;  %v1520_v24 = vld [vmem:[%s2164_s3 + $0xd0] sm:$0xff] }
   0x9   :  { %1307 = vmatpush3.msra.mxu0 %v38_v3  ;;  %v29_v23 = vld [vmem:[%s2162_s1 + $0x18] sm:$0xff]  ;;  %v28_v25 = vld [vmem:[%s2162_s1 + $0x10] sm:$0xff]  ;;  %v27_v27 = vld [vmem:[%s2162_s1 + $0x8] sm:$0xff] }
   0xa   :  { %1308 = vmatprep.subr.mxu0 %v37_v5  ;;  %1135 = vmatpush3.xpose.msk.msra.mxu1 %vm198_vm0, %v1452_v10  ;;  %v1532_v26 = vld [vmem:[%s2164_s3 + $0x50] sm:$0xff]  ;;  %v1540_v28 = vld [vmem:[%s2164_s3 + $0xc8] sm:$0xff]  ;;  %v26_v29 = vld [vmem:[%s2162_s1] sm:$0xff] }
   0xb   :  { %1309 = vmatpush3.msra.mxu0 %v37_v5  ;;  %1136 = vmatprep.subr.msk.mxu1 %vm198_vm0, %v1460_v12  ;;  %v1552_v30 = vld [vmem:[%s2164_s3 + $0x48] sm:$0xff]  ;;  %v1560_v32 = vld [vmem:[%s2164_s3 + $0x1f8] sm:$0xff]  ;;  %v24_v33 = vld [vmem:[%s2163_s0 + $0x10] sm:$0xff] }
   0xc   :  { %1310 = vmatprep.subr.mxu0 %v36_v8  ;;  %v23_v31 = vld [vmem:[%s2163_s0 + $0x8] sm:$0xff]  ;;  %2181 = vst [vmem:[#allocation2_spill] sm:$0xff] %v1560_v32  ;;  %v1568_v34 = vld [vmem:[%s2164_s3 + $0x178] sm:$0xff]  ;;  %v1573_v35 = vld [vmem:[%s2164_s3 + $0x1f0] sm:$0xff] }
   0xd   :  { %1311 = vmatpush3.msra.mxu0 %v36_v8  ;;  %v1580_v36 = vld [vmem:[%s2164_s3 + $0xc0] sm:$0xff]  ;;  %v25_v38 = vld [vmem:[%s2163_s0 + $0x18] sm:$0xff]  ;;  %v1604_v40 = vld [vmem:[%s2164_s3 + $0x170] sm:$0xff] }
   0xe   :  { %1312 = vmatprep.subr.mxu0 %v35_v11  ;;  %1137 = vmatpush3.xpose.msk.msra.mxu1 %vm198_vm0, %v1472_v14  ;;  %v1587_v37 = vld [vmem:[%s2164_s3 + $0x40] sm:$0xff]  ;;  %v1597_v39 = vld [vmem:[%s2164_s3 + $0xb8] sm:$0xff]  ;;  %v1611_v41 = vld [vmem:[%s2164_s3 + $0x1e8] sm:$0xff] }
   0xf   :  { %1313 = vmatpush3.msra.mxu0 %v35_v11  ;;  %1138 = vmatprep.subr.msk.mxu1 %vm198_vm0, %v1480_v16  ;;  %v1620_v42 = vld [vmem:[%s2164_s3 + $0x38] sm:$0xff]  ;;  %v1627_v43 = vld [vmem:[%s2164_s3 + $0xb0] sm:$0xff]  ;;  %v1634_v44 = vld [vmem:[%s2164_s3 + $0x168] sm:$0xff] }
  0x10   :  { %1314 = vmatprep.subr.mxu0 %v34_v13  ;;  %v1639_v45 = vld [vmem:[%s2164_s3 + $0x1e0] sm:$0xff]  ;;  %v1648_v46 = vld [vmem:[%s2164_s3 + $0x30] sm:$0xff]  ;;  %v1655_v47 = vld [vmem:[%s2164_s3 + $0xa8] sm:$0xff] }
  0x11   :  { %1315 = vmatpush3.msra.mxu0 %v34_v13  ;;  %v1662_v48 = vld [vmem:[%s2164_s3 + $0x160] sm:$0xff]  ;;  %v1667_v49 = vld [vmem:[%s2164_s3 + $0x1d8] sm:$0xff]  ;;  %v1676_v50 = vld [vmem:[%s2164_s3 + $0x28] sm:$0xff] }
  0x12   :  { %1316 = vmatprep.subr.mxu0 %v33_v15  ;;  %1139 = vmatpush3.xpose.msk.msra.mxu1 %vm198_vm0, %v1492_v18  ;;  %v1683_v51 = vld [vmem:[%s2164_s3 + $0xa0] sm:$0xff]  ;;  %v1690_v52 = vld [vmem:[%s2164_s3 + $0x158] sm:$0xff]  ;;  %v1695_v53 = vld [vmem:[%s2164_s3 + $0x1d0] sm:$0xff] }
  0x13   :  { %1317 = vmatpush3.msra.mxu0 %v33_v15  ;;  %1140 = vmatprep.subr.msk.mxu1 %vm198_vm0, %v1500_v20  ;;  %v1704_v54 = vld [vmem:[%s2164_s3 + $0x20] sm:$0xff]  ;;  %v1711_v55 = vld [vmem:[%s2164_s3 + $0x98] sm:$0xff]  ;;  %v1718_v56 = vld [vmem:[%s2164_s3 + $0x150] sm:$0xff] }
  0x14   :  { %1318 = vmatprep.subr.mxu0 %v32_v17  ;;  %v1723_v57 = vld [vmem:[%s2164_s3 + $0x1c8] sm:$0xff]  ;;  %v1732_v58 = vld [vmem:[%s2164_s3 + $0x18] sm:$0xff]  ;;  %v1739_v59 = vld [vmem:[%s2164_s3 + $0x90] sm:$0xff] }
  0x15   :  { %1319 = vmatpush3.msra.mxu0 %v32_v17  ;;  %v1746_v60 = vld [vmem:[%s2164_s3 + $0x148] sm:$0xff]  ;;  %v1751_v61 = vld [vmem:[%s2164_s3 + $0x1c0] sm:$0xff]  ;;  %v1760_v62 = vld [vmem:[%s2164_s3 + $0x10] sm:$0xff] }
  0x16   :  { %1320 = vmatprep.subr.mxu0 %v31_v19  ;;  %1141 = vmatpush3.xpose.msk.msra.mxu1 %vm198_vm0, %v1512_v22  ;;  %v1767_v63 = vld [vmem:[%s2164_s3 + $0x88] sm:$0xff]  ;;  %v1774_v0 = vld [vmem:[%s2164_s3 + $0x140] sm:$0xff]  ;;  %v1779_v1 = vld [vmem:[%s2164_s3 + $0x1b8] sm:$0xff] }
  0x17   :  { %1321 = vmatpush3.msra.mxu0 %v31_v19  ;;  %1142 = vmatprep.subr.msk.mxu1 %vm198_vm0, %v1520_v24  ;;  %2182 = vst [vmem:[#allocation3_spill] sm:$0xff] %v1767_v63  ;;  %v1788_v2 = vld [vmem:[%s2164_s3 + $0x8] sm:$0xff]  ;;  %v1797_v3 = vld [vmem:[%s2164_s3 + $0x138] sm:$0xff]  ;;  %v1802_v4 = vld [vmem:[%s2164_s3 + $0x1b0] sm:$0xff] }
  0x18   :  { %1322 = vmatprep.subr.mxu0 %v30_v21  ;;  %2183 = vst [vmem:[#allocation4_spill] sm:$0xff] %v1788_v2  ;;  %v1813_v5 = vld [vmem:[%s2164_s3 + $0x130] sm:$0xff]  ;;  %v1818_v8 = vld [vmem:[%s2164_s3 + $0x1a8] sm:$0xff]  ;;  %v1832_v13 = vld [vmem:[%s2164_s3 + $0x1a0] sm:$0xff] }
  0x19   :  { %1323 = vmatpush3.msra.mxu0 %v30_v21  ;;  %v1827_v11 = vld [vmem:[%s2164_s3 + $0x128] sm:$0xff]  ;;  %v1841_v15 = vld [vmem:[%s2164_s3 + $0x120] sm:$0xff]  ;;  %v1846_v17 = vld [vmem:[%s2164_s3 + $0x198] sm:$0xff] }
  0x1a   :  { %1324 = vmatprep.subr.mxu0 %v29_v23  ;;  %1143 = vmatpush3.xpose.msk.msra.mxu1 %vm198_vm0, %v1532_v26  ;;  %v1855_v19 = vld [vmem:[%s2164_s3 + $0x118] sm:$0xff]  ;;  %v1860_v21 = vld [vmem:[%s2164_s3 + $0x190] sm:$0xff] }
  0x1b   :  { %1325 = vmatpush3.msra.mxu0 %v29_v23  ;;  %1144 = vmatprep.subr.msk.mxu1 %vm198_vm0, %v1540_v28  ;;  %v1869_v23 = vld [vmem:[%s2164_s3 + $0x110] sm:$0xff] }
  0x1c   :  { %1326 = vmatprep.subr.mxu0 %v28_v25 }
  0x1d   :  { %1327 = vmatpush3.msra.mxu0 %v28_v25  ;;  %v1874_v25 = vld [vmem:[%s2164_s3 + $0x188] sm:$0xff] }
  0x1e   :  { %1328 = vmatprep.subr.mxu0 %v27_v27  ;;  %1145 = vmatpush3.xpose.msk.msra.mxu1 %vm198_vm0, %v1552_v30  ;;  %2184 = vst [vmem:[#allocation5_spill] sm:$0xff] %v1874_v25 }
  0x1f   :  { %1329 = vmatpush3.msra.mxu0 %v27_v27  ;;  %1146 = vmatprep.subr.msk.mxu1 %vm198_vm0, %v1580_v36  ;;  %v1883_v27 = vld [vmem:[%s2164_s3 + $0x108] sm:$0xff] }
  0x20   :  { %1330 = vmatprep.subr.mxu0 %v26_v29  ;;  %2185 = vst [vmem:[#allocation6_spill] sm:$0xff] %v1883_v27 }
  0x21   :  { %1331 = vmatpush3.msra.mxu0 %v26_v29  ;;  %v1890_v29 = vld [vmem:[%s2164_s3 + $0x80] sm:$0xff] }
  0x22   :  { %1333 = vmatmul.mubr.f32.vlgmr.msra.gmra.mxu0 %v23_v31  ;;  %1172 = vmatprep.subr.msk.mxu0 %vm198_vm0, %v1560_v32  ;;  %2186 = vst [vmem:[#allocation7_spill] sm:$0xff] %v1890_v29  ;;  %v1895_v31 = vld [vmem:[%s2164_s3 + $0x180] sm:$0xff] }
  0x23   :  { %1335 = vmatprep.mubr.f32.mxu0 %v24_v33  ;;  %1173 = vmatpush3.xpose.msk.msra.mxu0 %vm198_vm0, %v1568_v34  ;;  %2187 = vst [vmem:[#allocation8_spill] sm:$0xff] %v1895_v31  ;;  %v1904_v33 = vld [vmem:[%s2164_s3] sm:$0xff] }
  0x24   :  { %1174 = vmatprep.subr.msk.mxu0 %vm198_vm0, %v1573_v35  ;;  %1147 = vmatpush3.xpose.msk.msra.mxu1 %vm198_vm0, %v1587_v37 }
  0x25   :  { %1148 = vmatprep.subr.msk.mxu1 %vm198_vm0, %v1597_v39 }
  0x26   :  { %1336 = vmatmul.mubr.f32.gmra.mxu0 %v25_v38  ;;  %v1909_v38 = vld [vmem:[%s2164_s3 + $0x100] sm:$0xff] }
  0x27   :  { %1175 = vmatpush3.xpose.msk.msra.mxu0 %vm198_vm0, %v1604_v40  ;;  %2188 = vst [vmem:[#allocation9_spill] sm:$0xff] %v1909_v38 }
  0x28   :  { %1176 = vmatprep.subr.msk.mxu0 %vm198_vm0, %v1611_v41  ;;  %1149 = vmatpush3.xpose.msk.msra.mxu1 %vm198_vm0, %v1620_v42 }
  0x29   :  { %1150 = vmatprep.subr.msk.mxu1 %vm198_vm0, %v1627_v43 }
  0x2b   :  { %1177 = vmatpush3.xpose.msk.msra.mxu0 %vm198_vm0, %v1634_v44 }
  0x2c   :  { %1178 = vmatprep.subr.msk.mxu0 %vm198_vm0, %v1639_v45  ;;  %1151 = vmatpush3.xpose.msk.msra.mxu1 %vm198_vm0, %v1648_v46 }
  0x2d   :  { %1152 = vmatprep.subr.msk.mxu1 %vm198_vm0, %v1655_v47 }
  0x2f   :  { %1179 = vmatpush3.xpose.msk.msra.mxu0 %vm198_vm0, %v1662_v48 }
  0x30   :  { %1180 = vmatprep.subr.msk.mxu0 %vm198_vm0, %v1667_v49  ;;  %1153 = vmatpush3.xpose.msk.msra.mxu1 %vm198_vm0, %v1676_v50 }
  0x31   :  { %1154 = vmatprep.subr.msk.mxu1 %vm198_vm0, %v1683_v51 }
  0x33   :  { %1181 = vmatpush3.xpose.msk.msra.mxu0 %vm198_vm0, %v1690_v52 }
  0x34   :  { %1182 = vmatprep.subr.msk.mxu0 %vm198_vm0, %v1695_v53  ;;  %1155 = vmatpush3.xpose.msk.msra.mxu1 %vm198_vm0, %v1704_v54 }
  0x35   :  { %1156 = vmatprep.subr.msk.mxu1 %vm198_vm0, %v1711_v55 }
  0x37   :  { %1183 = vmatpush3.xpose.msk.msra.mxu0 %vm198_vm0, %v1718_v56 }
  0x38   :  { %1184 = vmatprep.subr.msk.mxu0 %vm198_vm0, %v1723_v57  ;;  %1157 = vmatpush3.xpose.msk.msra.mxu1 %vm198_vm0, %v1732_v58 }
  0x39   :  { %1158 = vmatprep.subr.msk.mxu1 %vm198_vm0, %v1739_v59 }
  0x3b   :  { %1185 = vmatpush3.xpose.msk.msra.mxu0 %vm198_vm0, %v1746_v60 }
  0x3c   :  { %1186 = vmatprep.subr.msk.mxu0 %vm198_vm0, %v1751_v61  ;;  %1159 = vmatpush3.xpose.msk.msra.mxu1 %vm198_vm0, %v1760_v62 }
  0x3d   :  { %1160 = vmatprep.subr.msk.mxu1 %vm198_vm0, %v1767_v63 }
  0x3f   :  { %1187 = vmatpush3.xpose.msk.msra.mxu0 %vm198_vm0, %v1774_v0 }
  0x40   :  { %1188 = vmatprep.subr.msk.mxu0 %vm198_vm0, %v1779_v1  ;;  %1161 = vmatpush3.xpose.msk.msra.mxu1 %vm198_vm0, %v1788_v2 }
  0x41   :  { %1162 = vmatprep.subr.msk.mxu1 %vm198_vm0, %v1890_v29  ;;  %v1007_v29 = vld [vmem:[%s2165_s2] ss:$0 sm:$0xff] }
  0x43   :  { %1189 = vmatpush3.xpose.msk.msra.mxu0 %vm198_vm0, %v1797_v3 }
  0x44   :  { %1190 = vmatprep.subr.msk.mxu0 %vm198_vm0, %v1802_v4  ;;  %1163 = vmatpush3.xpose.msk.msra.mxu1 %vm198_vm0, %v1904_v33 }
  0x45   :  { %1212 = vmatprep.subr.mxu1 %v1428_v6 }
  0x47   :  { %1191 = vmatpush3.xpose.msk.msra.mxu0 %vm198_vm0, %v1813_v5 }
  0x48   :  { %1192 = vmatprep.subr.msk.mxu0 %vm198_vm0, %v1818_v8 }
  0x4b   :  { %1193 = vmatpush3.xpose.msk.msra.mxu0 %vm198_vm0, %v1827_v11 }
  0x4c   :  { %1194 = vmatprep.subr.msk.mxu0 %vm198_vm0, %v1832_v13 }
  0x4f   :  { %1195 = vmatpush3.xpose.msk.msra.mxu0 %vm198_vm0, %v1841_v15 }
  0x50   :  { %1196 = vmatprep.subr.msk.mxu0 %vm198_vm0, %v1846_v17 }
  0x53   :  { %1197 = vmatpush3.xpose.msk.msra.mxu0 %vm198_vm0, %v1855_v19 }
  0x54   :  { %1198 = vmatprep.subr.msk.mxu0 %vm198_vm0, %v1860_v21 }
  0x57   :  { %1199 = vmatpush3.xpose.msk.msra.mxu0 %vm198_vm0, %v1869_v23 }
  0x58   :  { %1200 = vmatprep.subr.msk.mxu0 %vm198_vm0, %v1874_v25 }
  0x5b   :  { %1201 = vmatpush3.xpose.msk.msra.mxu0 %vm198_vm0, %v1883_v27 }
  0x5c   :  { %1202 = vmatprep.subr.msk.mxu0 %vm198_vm0, %v1895_v31 }
  0x5f   :  { %1203 = vmatpush3.xpose.msk.msra.mxu0 %vm198_vm0, %v1909_v38 }
  0x60   :  { %1256 = vmatprep.subr.mxu0 %v1560_v32 }
  0xe2   :  { %v1334_v31 = vpop.f32.mrf.mxu0 }
  0xe3   :  { %v121_v63 = vadd.f32 %v1334_v31, %v1007_v29 }
  0xe4   :  { %v115_v27 = vpop.f32.mrf.mxu0 }
  0xe5   :  { %v116_v2 = vadd.f32 %v1007_v29, %v115_v27 }
  0xe6   :  { %v1337_v25 = vpop.f32.mrf.mxu0 }
  0xe7   :  { %1164 = vmatprep.mubr.msk.f32.mxu1 %vm198_vm0, %v116_v2  ;;  %1204 = vmatprep.mubr.msk.f32.mxu0 %vm198_vm0, %v116_v2  ;;  %v131_v27 = vadd.f32 %v1337_v25, %v1007_v29 }
  0xe8   :  { %1165 = vmatmul.mubr.msk.f32.vlgmr.msra.gmra.mxu1 %vm198_vm0, %v116_v2  ;;  %1205 = vmatmul.mubr.msk.f32.vlgmr.msra.gmra.mxu0 %vm198_vm0, %v116_v2  ;;  %v125_v6 = vpop.f32.mrf.mxu0 }
  0xe9   :  { %1166 = vmatprep.mubr.msk.f32.mxu1 %vm198_vm0, %v121_v63  ;;  %1206 = vmatprep.mubr.msk.f32.mxu0 %vm198_vm0, %v121_v63  ;;  %v126_v32 = vadd.f32 %v1007_v29, %v125_v6 }
  0xea   :  { %1213 = vmatpush3.msra.mxu1 %v1435_v7  ;;  %1257 = vmatpush3.msra.mxu0 %v1568_v34  ;;  %v2189_v7 = vld [vmem:[#allocation3_spill] sm:$0xff] }
  0xeb   :  { %1214 = vmatprep.subr.mxu1 %v1445_v9  ;;  %1258 = vmatprep.subr.mxu0 %v1573_v35  ;;  %v2190_v9 = vld [vmem:[#allocation5_spill] sm:$0xff] }
  0xec   :  { %1167 = vmatmul.mubr.msk.f32.gmra.mxu1 %vm198_vm0, %v121_v63  ;;  %1207 = vmatmul.mubr.msk.f32.gmra.mxu0 %vm198_vm0, %v121_v63 }
  0xed   :  { %1168 = vmatprep.mubr.msk.f32.mxu1 %vm198_vm0, %v126_v32  ;;  %1208 = vmatprep.mubr.msk.f32.mxu0 %vm198_vm0, %v126_v32 }
  0xee   :  { %1215 = vmatpush3.msra.mxu1 %v1452_v10  ;;  %1259 = vmatpush3.msra.mxu0 %v1604_v40  ;;  %v2191_v10 = vld [vmem:[#allocation4_spill] sm:$0xff] }
  0xef   :  { %1216 = vmatprep.subr.mxu1 %v1460_v12  ;;  %1260 = vmatprep.subr.mxu0 %v1611_v41  ;;  %v2192_v12 = vld [vmem:[#allocation6_spill] sm:$0xff] }
  0xf0   :  { %1169 = vmatmul.mubr.msk.f32.gmra.mxu1 %vm198_vm0, %v126_v32  ;;  %1209 = vmatmul.mubr.msk.f32.gmra.mxu0 %vm198_vm0, %v126_v32 }
  0xf1   :  { %1170 = vmatprep.mubr.msk.f32.mxu1 %vm198_vm0, %v131_v27  ;;  %1210 = vmatprep.mubr.msk.f32.mxu0 %vm198_vm0, %v131_v27 }
  0xf2   :  { %1217 = vmatpush3.msra.mxu1 %v1472_v14  ;;  %1261 = vmatpush3.msra.mxu0 %v1634_v44  ;;  %v2193_v14 = vld [vmem:[#allocation7_spill] sm:$0xff] }
  0xf3   :  { %1218 = vmatprep.subr.mxu1 %v1480_v16  ;;  %1262 = vmatprep.subr.mxu0 %v1639_v45  ;;  %v2194_v16 = vld [vmem:[#allocation8_spill] sm:$0xff] }
  0xf4   :  { %1171 = vmatmul.mubr.msk.f32.gmra.mxu1 %vm198_vm0, %v131_v27  ;;  %1211 = vmatmul.mubr.msk.f32.gmra.mxu0 %vm198_vm0, %v131_v27 }
  0xf5   :  { %1219 = vmatpush3.msra.mxu1 %v1492_v18  ;;  %1263 = vmatpush3.msra.mxu0 %v1662_v48  ;;  %v2195_v18 = vld [vmem:[#allocation2_spill] sm:$0xff] }
  0xf6   :  { %1220 = vmatprep.subr.mxu1 %v1500_v20  ;;  %1264 = vmatprep.subr.mxu0 %v1667_v49  ;;  %v2179_v20 = vlaneseq }
  0xf7   :  { %1221 = vmatpush3.msra.mxu1 %v1512_v22  ;;  %1265 = vmatpush3.msra.mxu0 %v1690_v52 }
  0xf8   :  { %1222 = vmatprep.subr.mxu1 %v1520_v24  ;;  %1266 = vmatprep.subr.mxu0 %v1695_v53  ;;  %v600_v22 = vshrl.u32 %v2179_v20, 7 }
  0xf9   :  { %1223 = vmatpush3.msra.mxu1 %v1532_v26  ;;  %1267 = vmatpush3.msra.mxu0 %v1718_v56 }
  0xfa   :  { %1224 = vmatprep.subr.mxu1 %v1540_v28  ;;  %1268 = vmatprep.subr.mxu0 %v1723_v57  ;;  %v605_v24 = vsub.s32 1, %v600_v22  ;;  %v601_v26 = vsub.s32 0, %v600_v22  ;;  %v581_v28 = vld [vmem:[%s2166_s4] sm:$0xf] }
  0xfb   :  { %1225 = vmatpush3.msra.mxu1 %v1552_v30  ;;  %1269 = vmatpush3.msra.mxu0 %v1746_v60 }
  0xfc   :  { %1226 = vmatprep.subr.mxu1 %v1580_v36  ;;  %1270 = vmatprep.subr.mxu0 %v1751_v61  ;;  %v609_v36 = vsub.s32 2, %v600_v22 }
  0xfd   :  { %1227 = vmatpush3.msra.mxu1 %v1587_v37  ;;  %1271 = vmatpush3.msra.mxu0 %v1774_v0  ;;  %v606_v37 = vrot.slane %v581_v28, %v605_v24 }
  0xfe   :  { %1228 = vmatprep.subr.mxu1 %v1597_v39  ;;  %1272 = vmatprep.subr.mxu0 %v1779_v1 }
  0xff   :  { %1229 = vmatpush3.msra.mxu1 %v1620_v42  ;;  %1273 = vmatpush3.msra.mxu0 %v1797_v3  ;;  %v602_v42 = vrot.slane %v581_v28, %v601_v26 }
 0x100   :  { %1230 = vmatprep.subr.mxu1 %v1627_v43  ;;  %1274 = vmatprep.subr.mxu0 %v1802_v4 }
 0x101   :  { %1231 = vmatpush3.msra.mxu1 %v1648_v46  ;;  %1275 = vmatpush3.msra.mxu0 %v1813_v5 }
 0x102   :  { %1232 = vmatprep.subr.mxu1 %v1655_v47  ;;  %1276 = vmatprep.subr.mxu0 %v1818_v8  ;;  %v613_v47 = vsub.s32 3, %v600_v22 }
 0x103   :  { %1233 = vmatpush3.msra.mxu1 %v1676_v50  ;;  %1277 = vmatpush3.msra.mxu0 %v1827_v11 }
 0x104   :  { %1234 = vmatprep.subr.mxu1 %v1683_v51  ;;  %1278 = vmatprep.subr.mxu0 %v1832_v13  ;;  %v614_v31 = vrot.slane %v581_v28, %v613_v47 }
 0x105   :  { %1235 = vmatpush3.msra.mxu1 %v1704_v54  ;;  %1279 = vmatpush3.msra.mxu0 %v1841_v15  ;;  %v610_v54 = vrot.slane %v581_v28, %v609_v36 }
 0x106   :  { %1236 = vmatprep.subr.mxu1 %v1711_v55  ;;  %1280 = vmatprep.subr.mxu0 %v1846_v17 }
 0x107   :  { %1237 = vmatpush3.msra.mxu1 %v1732_v58  ;;  %1281 = vmatpush3.msra.mxu0 %v1855_v19 }
 0x108   :  { %1238 = vmatprep.subr.mxu1 %v1739_v59  ;;  %1282 = vmatprep.subr.mxu0 %v1860_v21 }
 0x109   :  { %1239 = vmatpush3.msra.mxu1 %v1760_v62  ;;  %1283 = vmatpush3.msra.mxu0 %v1869_v23 }
 0x10a   :  { %1240 = vmatprep.subr.mxu1 %v2189_v7  ;;  %1284 = vmatprep.subr.mxu0 %v2190_v9 }
 0x10b   :  { %1241 = vmatpush3.msra.mxu1 %v2191_v10  ;;  %1285 = vmatpush3.msra.mxu0 %v2192_v12 }
 0x10c   :  { %1242 = vmatprep.subr.mxu1 %v2193_v14  ;;  %1286 = vmatprep.subr.mxu0 %v2194_v16 }
 0x10d   :  { %1243 = vmatpush3.msra.mxu1 %v1904_v33  ;;  %1287 = vmatpush3.msra.mxu0 %v1909_v38 }
 0x10e   :  { %1338 = vmatprep.subr.mxu1 %v2195_v18 }
 0x1a8   :  { %v469_v30 = vpop.f32.mrf.mxu1  ;;  %v558_v32 = vpop.f32.mrf.mxu0 }
 0x1a9   :  { %v582_v39 = vmul.f32 2.0, %v469_v30  ;;  %v584_v51 = vmul.f32 2.0, %v558_v32 }
 0x1aa   :  { %v471_v43 = vpop.f32.mrf.mxu1  ;;  %v560_v46 = vpop.f32.mrf.mxu0 }
 0x1ab   :  { %v583_v50 = vmul.f32 2.0, %v471_v43  ;;  %v619_v63 = vsub.f32 %v602_v42, %v582_v39  ;;  %v585_v2 = vmul.f32 2.0, %v560_v46  ;;  %v621_v27 = vsub.f32 %v610_v54, %v584_v51 }
 0x1ac   :  { %v475_v55 = vpop.f32.mrf.mxu1  ;;  %v564_v58 = vpop.f32.mrf.mxu0 }
 0x1ad   :  { %v2003_v59 = vsub.f32 %v606_v37, %v583_v50  ;;  %v586_v62 = vmul.f32 2.0, %v475_v55  ;;  %v588_v33 = vmul.f32 2.0, %v564_v58  ;;  %v622_v36 = vsub.f32 %v614_v31, %v585_v2 }
 0x1ae   :  { %v477_v25 = vpop.f32.mrf.mxu1  ;;  %v566_v29 = vpop.f32.mrf.mxu0 }
 0x1af   :  { %v587_v6 = vmul.f32 2.0, %v477_v25  ;;  %v589_v7 = vmul.f32 2.0, %v566_v29  ;;  %v635_v18 = vmin.f32 %v619_v63, %v2003_v59  ;;  %v623_v22 = vsub.f32 %v602_v42, %v586_v62 }
 0x1b0   :  { %v481_v10 = vpop.f32.mrf.mxu1  ;;  %v570_v14 = vpop.f32.mrf.mxu0  ;;  %v2006_v46 = vsub.f32 %v610_v54, %v588_v33 }
 0x1b1   :  { %v624_v24 = vsub.f32 %v606_v37, %v587_v6  ;;  %v590_v26 = vmul.f32 2.0, %v481_v10  ;;  %v592_v32 = vmul.f32 2.0, %v570_v14  ;;  %v636_v43 = vmin.f32 %v635_v18, %v621_v27 }
 0x1b2   :  { %v483_v30 = vpop.f32.mrf.mxu1  ;;  %v572_v39 = vpop.f32.mrf.mxu0  ;;  %v2008_v47 = vsub.f32 %v614_v31, %v589_v7 }
 0x1b3   :  { %v640_v50 = vmin.f32 %v623_v22, %v624_v24  ;;  %v591_v28 = vmul.f32 2.0, %v483_v30  ;;  %v2010_v51 = vsub.f32 %v602_v42, %v590_v26  ;;  %v637_v58 = vmin.f32 %v636_v43, %v622_v36 }
 0x1b4   :  { %v487_v55 = vpop.f32.mrf.mxu1  ;;  %v593_v25 = vmul.f32 2.0, %v572_v39  ;;  %v576_v29 = vpop.f32.mrf.mxu0  ;;  %v2013_v2 = vsub.f32 %v610_v54, %v592_v32 }
 0x1b5   :  { %v628_v62 = vsub.f32 %v606_v37, %v591_v28  ;;  %v594_v6 = vmul.f32 2.0, %v487_v55  ;;  %v596_v10 = vmul.f32 2.0, %v576_v29  ;;  %v641_v14 = vmin.f32 %v640_v50, %v2006_v46  ;;  %638 = vmin.xlane.f32.xlu0 %v637_v58 }
 0x1b6   :  { %v489_v33 = vpop.f32.mrf.mxu1  ;;  %v578_v18 = vpop.f32.mrf.mxu0  ;;  %v2018_v38 = vsub.f32 %v614_v31, %v593_v25  ;;  %v2196_v29 = vlaneseq }
 0x1b7   :  { %v2015_v20 = vsub.f32 %v602_v42, %v594_v6  ;;  %v595_v7 = vmul.f32 2.0, %v489_v33  ;;  %v642_v26 = vmin.f32 %v641_v14, %v2008_v47  ;;  %v597_v30 = vmul.f32 2.0, %v578_v18 }
 0x1b8   :  { %v645_v43 = vmin.f32 %v2010_v51, %v628_v62  ;;  %v2021_v28 = vsub.f32 %v610_v54, %v596_v10  ;;  %v2031_v6 = vand.u32 127, %v2196_v29 }
 0x1b9   :  { %v632_v39 = vsub.f32 %v606_v37, %v595_v7  ;;  %643 = vmin.xlane.f32.xlu0 %v642_v26  ;;  %v2025_v55 = vsub.f32 %v614_v31, %v597_v30 }
 0x1ba   :  { %v646_v32 = vmin.f32 %v645_v43, %v2013_v2  ;;  %v2034_v37 = vadd.s32 128, %v2031_v6  ;;  %v2037_v10 = vadd.s32 256, %v2031_v6  ;;  %v2043_v33 = vadd.s32 384, %v2031_v6 }
 0x1bb   :  { %v650_v50 = vmin.f32 %v2015_v20, %v632_v39 }
 0x1bc   :  { %v647_v42 = vmin.f32 %v646_v32, %v2018_v38 }
 0x1bd   :  { %v651_v58 = vmin.f32 %v650_v50, %v2021_v28 }
 0x1be   :  { %648 = vmin.xlane.f32.xlu1 %v647_v42 }
 0x1bf   :  { %v652_v25 = vmin.f32 %v651_v58, %v2025_v55 }
 0x1c2   :  { %653 = vmin.xlane.f32.xlu1 %v652_v25 }
 0x23e   :  { %v639_v54 = vpop.xlane.xlu0 %638 }
 0x23f   :  { %vm660_vm1 = vcmp.le.f32.partialorder %v619_v63, %v639_v54  ;;  %vm661_vm2 = vcmp.le.f32.partialorder %v2003_v59, %v639_v54  ;;  %vm662_vm3 = vcmp.le.f32.partialorder %v621_v27, %v639_v54  ;;  %vm663_vm5 = vcmp.le.f32.partialorder %v622_v36, %v639_v54 }
 0x240   :  { %v676_v31 = vsel %vm660_vm1, %v2031_v6, 512  ;;  %v677_v14 = vsel %vm661_vm2, %v2034_v37, 512  ;;  %v678_v26 = vsel %vm662_vm3, %v2037_v10, 512  ;;  %v679_v27 = vsel %vm663_vm5, %v2043_v33, 512 }
 0x241   :  { %vm692_vm4 = vcmp.lt.s32.totalorder %v676_v31, %v677_v14 }
 0x242   :  { %v644_v18 = vpop.xlane.xlu0 %643  ;;  %v693_v7 = vsel %vm692_vm4, %v676_v31, %v677_v14 }
 0x243   :  { %vm664_vm6 = vcmp.le.f32.partialorder %v623_v22, %v644_v18  ;;  %vm665_vm7 = vcmp.le.f32.partialorder %v624_v24, %v644_v18  ;;  %vm666_vm8 = vcmp.le.f32.partialorder %v2006_v46, %v644_v18  ;;  %vm694_vm9 = vcmp.lt.s32.totalorder %v693_v7, %v678_v26 }
 0x244   :  { %v680_v59 = vsel %vm664_vm6, %v2031_v6, 512  ;;  %v681_v63 = vsel %vm665_vm7, %v2034_v37, 512  ;;  %v695_v30 = vsel %vm694_vm9, %v693_v7, %v678_v26  ;;  %vm667_vm12 = vcmp.le.f32.partialorder %v2008_v47, %v644_v18 }
 0x245   :  { %vm712_vm10 = vcmp.lt.s32.totalorder %v680_v59, %v681_v63  ;;  %vm696_vm11 = vcmp.lt.s32.totalorder %v695_v30, %v679_v27  ;;  %v682_v32 = vsel %vm666_vm8, %v2037_v10, 512  ;;  %v683_v47 = vsel %vm667_vm12, %v2043_v33, 512 }
 0x246   :  { %v713_v36 = vsel %vm712_vm10, %v680_v59, %v681_v63  ;;  %v697_v46 = vsel %vm696_vm11, %v695_v30, %v679_v27 }
 0x247   :  { %v649_v43 = vpop.xlane.xlu1 %648  ;;  %v699_v50 = vshra.s32 %v697_v46, 16  ;;  %vm714_vm3 = vcmp.lt.s32.totalorder %v713_v36, %v682_v32 }
 0x248   :  { %vm668_vm13 = vcmp.le.f32.partialorder %v2010_v51, %v649_v43  ;;  %vm669_vm14 = vcmp.le.f32.partialorder %v628_v62, %v649_v43  ;;  %vm670_vm15 = vcmp.le.f32.partialorder %v2013_v2, %v649_v43  ;;  %vm671_vm1 = vcmp.le.f32.partialorder %v2018_v38, %v649_v43 }
 0x249   :  { %v684_v22 = vsel %vm668_vm13, %v2031_v6, 512  ;;  %v685_v24 = vsel %vm669_vm14, %v2034_v37, 512  ;;  %v715_v58 = vsel %vm714_vm3, %v713_v36, %v682_v32  ;;  %v686_v51 = vsel %vm670_vm15, %v2037_v10, 512 }
 0x24a   :  { %vm732_vm2 = vcmp.lt.s32.totalorder %v684_v22, %v685_v24  ;;  %v701_v38 = vcvt.s32.f32 %v699_v50  ;;  %v687_v29 = vsel %vm671_vm1, %v2043_v33, 512  ;;  %vm716_vm9 = vcmp.lt.s32.totalorder %v715_v58, %v683_v47 }
 0x24b   :  { %v654_v42 = vpop.xlane.xlu1 %653  ;;  %v733_v25 = vsel %vm732_vm2, %v684_v22, %v685_v24  ;;  %v717_v31 = vsel %vm716_vm9, %v715_v58, %v683_v47  ;;  %v698_v43 = vand.u32 65535, %v697_v46  ;;  %vm772_vm3 = vcmask 7168  }
 0x24c   :  { %vm672_vm4 = vcmp.le.f32.partialorder %v2015_v20, %v654_v42  ;;  %vm673_vm5 = vcmp.le.f32.partialorder %v632_v39, %v654_v42  ;;  %vm674_vm6 = vcmp.le.f32.partialorder %v2021_v28, %v654_v42  ;;  %vm675_vm7 = vcmp.le.f32.partialorder %v2025_v55, %v654_v42  ;;  %702 = vmin.xlane.f32.xlu0 %v701_v38 }
 0x24d   :  { %v688_v62 = vsel %vm672_vm4, %v2031_v6, 512  ;;  %v689_v2 = vsel %vm673_vm5, %v2034_v37, 512  ;;  %vm734_vm10 = vcmp.lt.s32.totalorder %v733_v25, %v686_v51  ;;  %v690_v54 = vsel %vm674_vm6, %v2037_v10, 512 }
 0x24e   :  { %vm752_vm8 = vcmp.lt.s32.totalorder %v688_v62, %v689_v2  ;;  %v735_v20 = vsel %vm734_vm10, %v733_v25, %v686_v51  ;;  %v719_v14 = vshra.s32 %v717_v31, 16  ;;  %v691_v18 = vsel %vm675_vm7, %v2043_v33, 512 }
 0x24f   :  { %v753_v39 = vsel %vm752_vm8, %v688_v62, %v689_v2  ;;  %vm736_vm11 = vcmp.lt.s32.totalorder %v735_v20, %v687_v29  ;;  %v700_v32 = vcvt.s32.f32 %v698_v43  ;;  %v718_v22 = vand.u32 65535, %v717_v31 }
 0x250   :  { %vm754_vm12 = vcmp.lt.s32.totalorder %v753_v39, %v690_v54  ;;  %v737_v28 = vsel %vm736_vm11, %v735_v20, %v687_v29  ;;  %v721_v26 = vcvt.s32.f32 %v719_v14 }
 0x251   :  { %v755_v7 = vsel %vm754_vm12, %v753_v39, %v690_v54  ;;  %v739_v59 = vshra.s32 %v737_v28, 16  ;;  %v738_v50 = vand.u32 65535, %v737_v28  ;;  %v720_v47 = vcvt.s32.f32 %v718_v22 }
 0x252   :  { %vm756_vm13 = vcmp.lt.s32.totalorder %v755_v7, %v691_v18  ;;  %722 = vmin.xlane.f32.xlu1 %v721_v26 }
 0x253   :  { %v757_v55 = vsel %vm756_vm13, %v755_v7, %v691_v18  ;;  %v741_v63 = vcvt.s32.f32 %v739_v59  ;;  %v740_v62 = vcvt.s32.f32 %v738_v50 }
 0x254   :  { %v759_v27 = vshra.s32 %v757_v55, 16  ;;  %v758_v58 = vand.u32 65535, %v757_v55  ;;  %v1371_v55 = vmov 1.0  }
 0x255   :  { %742 = vmin.xlane.f32.xlu0 %v741_v63 }
 0x256   :  { %v761_v30 = vcvt.s32.f32 %v759_v27  ;;  %v760_v54 = vcvt.s32.f32 %v758_v58 }
 0x258   :  { %762 = vmin.xlane.f32.xlu1 %v761_v30 }
 0x2d5   :  { %v703_v36 = vpop.xlane.xlu0 %702 }
 0x2d6   :  { %vm704_vm14 = vcmp.eq.f32.partialorder %v701_v38, %v703_v36  ;;  %v709_v38 = vcvt.f32.s32 %v703_v36 }
 0x2d7   :  { %v705_v24 = vsel %vm704_vm14, %v700_v32, inf }
 0x2d8   :  { %706 = vmin.xlane.f32.xlu0 %v705_v24  ;;  %v710_v20 = vshll.u32 %v709_v38, 16 }
 0x2db   :  { %v723_v42 = vpop.xlane.xlu1 %722 }
 0x2dc   :  { %vm724_vm15 = vcmp.eq.f32.partialorder %v721_v26, %v723_v42  ;;  %v729_v14 = vcvt.f32.s32 %v723_v42 }
 0x2dd   :  { %v725_v25 = vsel %vm724_vm15, %v720_v47, inf }
 0x2de   :  { %v743_v51 = vpop.xlane.xlu0 %742  ;;  %726 = vmin.xlane.f32.xlu1 %v725_v25  ;;  %v730_v26 = vshll.u32 %v729_v14, 16 }
 0x2df   :  { %vm744_vm1 = vcmp.eq.f32.partialorder %v741_v63, %v743_v51  ;;  %v749_v18 = vcvt.f32.s32 %v743_v51 }
 0x2e0   :  { %v745_v2 = vsel %vm744_vm1, %v740_v62, inf }
 0x2e1   :  { %v763_v29 = vpop.xlane.xlu1 %762  ;;  %746 = vmin.xlane.f32.xlu0 %v745_v2 }
 0x2e2   :  { %vm764_vm2 = vcmp.eq.f32.partialorder %v761_v30, %v763_v29  ;;  %v769_v63 = vcvt.f32.s32 %v763_v29  ;;  %v750_v30 = vshll.u32 %v749_v18, 16 }
 0x2e3   :  { %v765_v46 = vsel %vm764_vm2, %v760_v54, inf }
 0x2e4   :  { %766 = vmin.xlane.f32.xlu1 %v765_v46  ;;  %v770_v24 = vshll.u32 %v769_v63, 16 }
 0x361   :  { %v707_v31 = vpop.xlane.xlu0 %706 }
 0x362   :  { %v708_v39 = vcvt.f32.s32 %v707_v31 }
 0x364   :  { %v711_v28 = vadd.s32 %v710_v20, %v708_v39 }
 0x366   :  { %773 = vst.msk [vmem:[%s2167_s6] sm:$0xff] %vm772_vm3, %v711_v28  ;;  %vm778_vm4 = vcmp.eq.s32.totalorder %v2034_v37, %v711_v28  ;;  %vm780_vm5 = vcmp.eq.s32.totalorder %v2043_v33, %v711_v28  ;;  %vm777_vm6 = vcmp.eq.s32.totalorder %v2031_v6, %v711_v28  ;;  %vm779_vm7 = vcmp.eq.s32.totalorder %v2037_v10, %v711_v28 }
 0x367   :  { %v727_v7 = vpop.xlane.xlu1 %726  ;;  %1096 = vmatprep.mubr.msk.f32.mxu1 %vm778_vm4, %v1371_v55  ;;  %1104 = vmatprep.mubr.msk.f32.mxu0 %vm780_vm5, %v1371_v55 }
 0x368   :  { %v728_v59 = vcvt.f32.s32 %v727_v7  ;;  %1097 = vmatmul.mubr.msk.f32.vlgmr.msra.gmra.mxu1 %vm777_vm6, %v1371_v55  ;;  %1105 = vmatmul.mubr.msk.f32.vlgmr.msra.gmra.mxu0 %vm779_vm7, %v1371_v55 }
 0x369   :  { %1354 = vmatpush3.msra.mxu1 %v1568_v34 }
 0x36a   :  { %v747_v27 = vpop.xlane.xlu0 %746  ;;  %v731_v43 = vadd.s32 %v730_v26, %v728_v59  ;;  %1339 = vmatprep.subr.mxu1 %v1573_v35 }
 0x36b   :  { %v748_v36 = vcvt.f32.s32 %v747_v27  ;;  %1355 = vmatpush3.msra.mxu1 %v1604_v40  ;;  %v2197_v40 = vld [vmem:[#allocation9_spill] sm:$0xff] }
 0x36c   :  { %774 = vst.msk [vmem:[%s2167_s6 + $0x8] sm:$0xff] %vm772_vm3, %v731_v43  ;;  %vm782_vm8 = vcmp.eq.s32.totalorder %v2034_v37, %v731_v43  ;;  %vm784_vm9 = vcmp.eq.s32.totalorder %v2043_v33, %v731_v43  ;;  %vm781_vm10 = vcmp.eq.s32.totalorder %v2031_v6, %v731_v43  ;;  %1340 = vmatprep.subr.mxu1 %v1611_v41 }
 0x36d   :  { %v767_v32 = vpop.xlane.xlu1 %766  ;;  %v751_v22 = vadd.s32 %v750_v30, %v748_v36  ;;  %1098 = vmatprep.mubr.msk.f32.mxu1 %vm782_vm8, %v1371_v55  ;;  %vm783_vm11 = vcmp.eq.s32.totalorder %v2037_v10, %v731_v43  ;;  %1106 = vmatprep.mubr.msk.f32.mxu0 %vm784_vm9, %v1371_v55 }
 0x36e   :  { %v768_v34 = vcvt.f32.s32 %v767_v32  ;;  %1099 = vmatmul.mubr.msk.f32.gmra.mxu1 %vm781_vm10, %v1371_v55  ;;  %1107 = vmatmul.mubr.msk.f32.gmra.mxu0 %vm783_vm11, %v1371_v55 }
 0x36f   :  { %775 = vst.msk [vmem:[%s2167_s6 + $0x10] sm:$0xff] %vm772_vm3, %v751_v22  ;;  %vm786_vm12 = vcmp.eq.s32.totalorder %v2034_v37, %v751_v22  ;;  %1356 = vmatpush3.msra.mxu1 %v1634_v44  ;;  %vm785_vm13 = vcmp.eq.s32.totalorder %v2031_v6, %v751_v22  ;;  %vm788_vm1 = vcmp.eq.s32.totalorder %v2043_v33, %v751_v22 }
 0x370   :  { %v771_v35 = vadd.s32 %v770_v24, %v768_v34  ;;  %1341 = vmatprep.subr.mxu1 %v1639_v45  ;;  %1100 = vmatprep.mubr.msk.f32.mxu1 %vm786_vm12, %v1371_v55  ;;  %vm787_vm2 = vcmp.eq.s32.totalorder %v2037_v10, %v751_v22 }
 0x371   :  { %1357 = vmatpush3.msra.mxu1 %v1662_v48 }
 0x372   :  { %776 = vst.msk [vmem:[%s2167_s6 + $0x18] sm:$0xff] %vm772_vm3, %v771_v35  ;;  %vm790_vm14 = vcmp.eq.s32.totalorder %v2034_v37, %v771_v35  ;;  %1342 = vmatprep.subr.mxu1 %v1667_v49  ;;  %1101 = vmatmul.mubr.msk.f32.gmra.mxu1 %vm785_vm13, %v1371_v55  ;;  %vm789_vm15 = vcmp.eq.s32.totalorder %v2031_v6, %v771_v35 }
 0x373   :  { %1358 = vmatpush3.msra.mxu1 %v1690_v52  ;;  %1102 = vmatprep.mubr.msk.f32.mxu1 %vm790_vm14, %v1371_v55  ;;  %vm792_vm3 = vcmp.eq.s32.totalorder %v2043_v33, %v771_v35  ;;  %vm791_vm4 = vcmp.eq.s32.totalorder %v2037_v10, %v771_v35 }
 0x374   :  { %1343 = vmatprep.subr.mxu1 %v1695_v53 }
 0x375   :  { %1359 = vmatpush3.msra.mxu1 %v1718_v56 }
 0x376   :  { %1344 = vmatprep.subr.mxu1 %v1723_v57  ;;  %1103 = vmatmul.mubr.msk.f32.gmra.mxu1 %vm789_vm15, %v1371_v55 }
 0x377   :  { %1360 = vmatpush3.msra.mxu1 %v1746_v60  ;;  %1108 = vmatprep.mubr.msk.f32.mxu1 %vm788_vm1, %v1371_v55 }
 0x378   :  { %1345 = vmatprep.subr.mxu1 %v1751_v61 }
 0x379   :  { %1361 = vmatpush3.msra.mxu1 %v1774_v0 }
 0x37a   :  { %1346 = vmatprep.subr.mxu1 %v1779_v1 }
 0x37b   :  { %1362 = vmatpush3.msra.mxu1 %v1797_v3 }
 0x37c   :  { %1347 = vmatprep.subr.mxu1 %v1802_v4 }
 0x37d   :  { %1363 = vmatpush3.msra.mxu1 %v1813_v5 }
 0x37e   :  { %1348 = vmatprep.subr.mxu1 %v1818_v8 }
 0x37f   :  { %1364 = vmatpush3.msra.mxu1 %v1827_v11 }
 0x380   :  { %1349 = vmatprep.subr.mxu1 %v1832_v13 }
 0x381   :  { %1365 = vmatpush3.msra.mxu1 %v1841_v15 }
 0x382   :  { %1350 = vmatprep.subr.mxu1 %v1846_v17 }
 0x383   :  { %1366 = vmatpush3.msra.mxu1 %v1855_v19 }
 0x384   :  { %1351 = vmatprep.subr.mxu1 %v1860_v21 }
 0x385   :  { %1367 = vmatpush3.msra.mxu1 %v1869_v23 }
 0x386   :  { %1352 = vmatprep.subr.mxu1 %v2190_v9 }
 0x387   :  { %1368 = vmatpush3.msra.mxu1 %v2192_v12 }
 0x388   :  { %1353 = vmatprep.subr.mxu1 %v2194_v16 }
 0x389   :  { %1369 = vmatpush3.msra.mxu1 %v2197_v40 }
 0x38a   :  { %1109 = vmatmul.mubr.msk.f32.vlgmr.msra.gmra.mxu1 %vm787_vm2, %v1371_v55 }
 0x38b   :  { %1110 = vmatprep.mubr.msk.f32.mxu1 %vm792_vm3, %v1371_v55 }
 0x38e   :  { %1111 = vmatmul.mubr.msk.f32.gmra.mxu1 %vm791_vm4, %v1371_v55 }
 0x428   :  { %v1244_v41 = vpop.f32.mrf.mxu1  ;;  %v1288_v44 = vpop.f32.mrf.mxu0 }
 0x42a   :  { %v1245_v45 = vpop.f32.mrf.mxu1  ;;  %v1289_v48 = vpop.f32.mrf.mxu0 }
 0x42b   :  { %v1246_v49 = vadd.f32 %v1245_v45, %v1244_v41  ;;  %v1290_v52 = vadd.f32 %v1289_v48, %v1288_v44 }
 0x42d   :  { %v977_v53 = vadd.f32 %v1290_v52, %v1246_v49 }
 0x42e   :  { %v1247_v56 = vpop.f32.mrf.mxu1  ;;  %v1291_v57 = vpop.f32.mrf.mxu0 }
 0x42f   :  { %995 = vst.msk [vmem:[%s2168_s5] sm:$0xff] %vm198_vm0, %v977_v53 }
 0x430   :  { %v1248_v60 = vpop.f32.mrf.mxu1  ;;  %v1292_v0 = vpop.f32.mrf.mxu0 }
 0x431   :  { %v1249_v61 = vadd.f32 %v1248_v60, %v1247_v56  ;;  %v1293_v1 = vadd.f32 %v1292_v0, %v1291_v57 }
 0x432   :  { %v1250_v4 = vpop.f32.mrf.mxu1 }
 0x433   :  { %v982_v3 = vadd.f32 %v1293_v1, %v1249_v61 }
 0x434   :  { %v1251_v5 = vpop.f32.mrf.mxu1 }
 0x435   :  { %996 = vst.msk [vmem:[%s2168_s5 + $0x8] sm:$0xff] %vm198_vm0, %v982_v3  ;;  %v1252_v17 = vadd.f32 %v1251_v5, %v1250_v4 }
 0x436   :  { %v1253_v8 = vpop.f32.mrf.mxu1 }
 0x438   :  { %v1254_v11 = vpop.f32.mrf.mxu1 }
 0x439   :  { %v1255_v12 = vadd.f32 %v1254_v11, %v1253_v8 }
 0x44a   :  { %v1294_v13 = vpop.f32.mrf.mxu1 }
 0x44c   :  { %v1295_v15 = vpop.f32.mrf.mxu1 }
 0x44d   :  { %v1296_v19 = vadd.f32 %v1295_v15, %v1294_v13 }
 0x44e   :  { %v1297_v21 = vpop.f32.mrf.mxu1 }
 0x44f   :  { %v987_v23 = vadd.f32 %v1296_v19, %v1252_v17 }
 0x450   :  { %v1298_v9 = vpop.f32.mrf.mxu1 }
 0x451   :  { %997 = vst.msk [vmem:[%s2168_s5 + $0x10] sm:$0xff] %vm198_vm0, %v987_v23  ;;  %v1299_v16 = vadd.f32 %v1298_v9, %v1297_v21 }
 0x453   :  { %v992_v6 = vadd.f32 %v1299_v16, %v1255_v12 }
 0x455   :  { %998 = vst.msk [vmem:[%s2168_s5 + $0x18] sm:$0xff] %vm198_vm0, %v992_v6 }

// kernel: tile.27
= control target key start
LH: loop header
LB: loop body
LE: loop exit
PB: predicated region body
PF: predicated region fallthrough
CT: control target
= control target key end

     0   :  { %s22_s0 = inlined_call_operand.vmem [shape: f32[128], index: 0, kind: input, shape index: {}]   ;;  %s23_s1 = inlined_call_operand.vmem [shape: f32[4,128], index: 1, kind: output, shape index: {}]  }
   0x1   :  { %v4_v0 = vld [vmem:[%s22_s0] ss:$0 sm:$0xff] }
   0x2   :  { %5 = vst [vmem:[%s23_s1] sm:$0xf] %v4_v0 }

// kernel: vqvae_forward.13
= control target key start
LH: loop header
LB: loop body
LE: loop exit
PB: predicated region body
PF: predicated region fallthrough
CT: control target
= control target key end

     0   :  { %v945_v1 = vmov 0   ;;  %vm507_vm0 = vcmask 261120   ;;  %s1263_s1 = inlined_call_operand.vmem [shape: bf16[288,512], index: 1, kind: input, shape index: {}]   ;;  %s1264_s0 = inlined_call_operand.vmem [shape: bf16[32,288], index: 0, kind: input, shape index: {}]   ;;  %s1265_s2 = inlined_call_operand.vmem [shape: f32[1,512], index: 2, kind: input, shape index: {}]   ;;  %s1266_s3 = inlined_call_operand.vmem [shape: f32[32,512], index: 3, kind: output, shape index: {}]  }
   0x1   :  { %v829_v0 = vld [vmem:[%s1263_s1 + $0xe4] ss:$16 sps:$4 sm:$0xff]   ;;  %599 = vmatprep.mubr.bf16.mxu1 %v945_v1  ;;  %v831_v2 = vld [vmem:[%s1263_s1 + $0xe0] ss:$16 sps:$4 sm:$0xff]   ;;  %v844_v11 = vld [vmem:[%s1263_s1 + $0xe8] ss:$16 sps:$4 sm:$0xff]  }
   0x2   :  { %514 = vmatprep.subr.bf16.mxu0 %v829_v0  ;;  %v832_v3 = vld [vmem:[%s1263_s1 + $0x224] ss:$16 sps:$4 sm:$0xff]   ;;  %v834_v4 = vld [vmem:[%s1263_s1 + $0x220] ss:$16 sps:$4 sm:$0xff]   ;;  %v846_v12 = vld [vmem:[%s1263_s1 + $0xec] ss:$16 sps:$4 sm:$0xff]  }
   0x3   :  { %515 = vmatpush1.bf16.msra.mxu0 %v831_v2  ;;  %v835_v5 = vld [vmem:[%s1263_s1 + $0xc4] ss:$16 sps:$4 sm:$0xff]   ;;  %v837_v6 = vld [vmem:[%s1263_s1 + $0xc0] ss:$16 sps:$4 sm:$0xff]   ;;  %579 = vmatprep.subr.bf16.mxu1 %v832_v3  ;;  %v853_v16 = vld [vmem:[%s1263_s1 + $0xcc] ss:$16 sps:$4 sm:$0xff]  }
   0x4   :  { %v838_v7 = vld [vmem:[%s1263_s1 + $0x204] ss:$16 sps:$4 sm:$0xff]   ;;  %580 = vmatpush1.bf16.msra.mxu1 %v834_v4  ;;  %516 = vmatprep.subr.bf16.mxu0 %v835_v5  ;;  %v840_v8 = vld [vmem:[%s1263_s1 + $0x200] ss:$16 sps:$4 sm:$0xff]   ;;  %v851_v18 = vld [vmem:[%s1263_s1 + $0xc8] ss:$16 sps:$4 sm:$0xff]  }
   0x5   :  { %581 = vmatprep.subr.bf16.mxu1 %v838_v7  ;;  %v841_v9 = vld [vmem:[%s1263_s1 + $0xa4] ss:$16 sps:$4 sm:$0xff]   ;;  %v843_v10 = vld [vmem:[%s1263_s1 + $0xa0] ss:$16 sps:$4 sm:$0xff]   ;;  %v859_v19 = vld [vmem:[%s1263_s1 + $0xac] ss:$16 sps:$4 sm:$0xff]  }
   0x6   :  { %v1006_v13 = vld [vmem:[%s1264_s0 + $0x8] ss:$12 sps:$4 sm:$0xff]   ;;  %v850_v15 = vld [vmem:[%s1263_s1 + $0x80] ss:$16 sps:$4 sm:$0xff]   ;;  %v865_v23 = vld [vmem:[%s1263_s1 + $0x8c] ss:$16 sps:$4 sm:$0xff]  }
   0x7   :  { %517 = vmatpush1.bf16.msra.mxu0 %v837_v6  ;;  %v848_v14 = vld [vmem:[%s1263_s1 + $0x84] ss:$16 sps:$4 sm:$0xff]   ;;  %v856_v20 = vld [vmem:[%s1263_s1 + $0x60] ss:$16 sps:$4 sm:$0xff]   ;;  %v857_v22 = vld [vmem:[%s1263_s1 + $0xa8] ss:$16 sps:$4 sm:$0xff]  }
   0x8   :  { %518 = vmatprep.subr.bf16.mxu0 %v841_v9  ;;  %582 = vmatpush1.bf16.msra.mxu1 %v840_v8  ;;  %v854_v17 = vld [vmem:[%s1263_s1 + $0x64] ss:$16 sps:$4 sm:$0xff]   ;;  %v862_v24 = vld [vmem:[%s1263_s1 + $0x40] ss:$16 sps:$4 sm:$0xff]   ;;  %v863_v26 = vld [vmem:[%s1263_s1 + $0x88] ss:$16 sps:$4 sm:$0xff]  }
   0x9   :  { %620 = vmatprep.subr.bf16.mxu1 %v846_v12  ;;  %v860_v21 = vld [vmem:[%s1263_s1 + $0x44] ss:$16 sps:$4 sm:$0xff]   ;;  %v871_v27 = vld [vmem:[%s1263_s1 + $0x6c] ss:$16 sps:$4 sm:$0xff]   ;;  %v868_v28 = vld [vmem:[%s1263_s1 + $0x20] ss:$16 sps:$4 sm:$0xff]  }
   0xa   :  { %v866_v25 = vld [vmem:[%s1263_s1 + $0x24] ss:$16 sps:$4 sm:$0xff]   ;;  %v869_v30 = vld [vmem:[%s1263_s1 + $0x68] ss:$16 sps:$4 sm:$0xff]   ;;  %v877_v31 = vld [vmem:[%s1263_s1 + $0x4c] ss:$16 sps:$4 sm:$0xff]  }
   0xb   :  { %519 = vmatpush1.bf16.msra.mxu0 %v843_v10  ;;  %824 = vmatmul.mubr.msk.bf16.vlgmr.msra.gmra.mxu1 %vm507_vm0, %v1006_v13  ;;  %v872_v29 = vld [vmem:[%s1263_s1 + $0x4] ss:$16 sps:$4 sm:$0xff]   ;;  %v874_v32 = vld [vmem:[%s1263_s1] ss:$16 sps:$4 sm:$0xff]   ;;  %v875_v34 = vld [vmem:[%s1263_s1 + $0x48] ss:$16 sps:$4 sm:$0xff]  }
   0xc   :  { %520 = vmatprep.subr.bf16.mxu0 %v848_v14  ;;  %621 = vmatpush1.bf16.msra.mxu1 %v844_v11  ;;  %v878_v33 = vld [vmem:[%s1263_s1 + $0x1e4] ss:$16 sps:$4 sm:$0xff]   ;;  %v883_v35 = vld [vmem:[%s1263_s1 + $0x2c] ss:$16 sps:$4 sm:$0xff]   ;;  %v880_v36 = vld [vmem:[%s1263_s1 + $0x1e0] ss:$16 sps:$4 sm:$0xff]  }
   0xd   :  { %609 = vmatprep.mubr.bf16.mxu1 %v945_v1  ;;  %622 = vmatprep.subr.bf16.mxu1 %v853_v16  ;;  %v884_v37 = vld [vmem:[%s1263_s1 + $0x1c4] ss:$16 sps:$4 sm:$0xff]   ;;  %v881_v38 = vld [vmem:[%s1263_s1 + $0x28] ss:$16 sps:$4 sm:$0xff]   ;;  %v889_v39 = vld [vmem:[%s1263_s1 + $0xc] ss:$16 sps:$4 sm:$0xff]  }
   0xe   :  { %v886_v40 = vld [vmem:[%s1263_s1 + $0x1c0] ss:$16 sps:$4 sm:$0xff]   ;;  %v890_v41 = vld [vmem:[%s1263_s1 + $0x1a4] ss:$16 sps:$4 sm:$0xff]   ;;  %v887_v42 = vld [vmem:[%s1263_s1 + $0x8] ss:$16 sps:$4 sm:$0xff]  }
   0xf   :  { %521 = vmatpush1.bf16.msra.mxu0 %v850_v15  ;;  %v895_v43 = vld [vmem:[%s1263_s1 + $0x1ec] ss:$16 sps:$4 sm:$0xff]   ;;  %v892_v44 = vld [vmem:[%s1263_s1 + $0x1a0] ss:$16 sps:$4 sm:$0xff]   ;;  %v896_v45 = vld [vmem:[%s1263_s1 + $0x184] ss:$16 sps:$4 sm:$0xff]  }
  0x10   :  { %522 = vmatprep.subr.bf16.mxu0 %v854_v17  ;;  %623 = vmatpush1.bf16.msra.mxu1 %v851_v18  ;;  %v893_v46 = vld [vmem:[%s1263_s1 + $0x1e8] ss:$16 sps:$4 sm:$0xff]   ;;  %v901_v47 = vld [vmem:[%s1263_s1 + $0x1cc] ss:$16 sps:$4 sm:$0xff]   ;;  %v898_v48 = vld [vmem:[%s1263_s1 + $0x180] ss:$16 sps:$4 sm:$0xff]  }
  0x11   :  { %624 = vmatprep.subr.bf16.mxu1 %v859_v19  ;;  %v899_v49 = vld [vmem:[%s1263_s1 + $0x1c8] ss:$16 sps:$4 sm:$0xff]   ;;  %v902_v50 = vld [vmem:[%s1263_s1 + $0x164] ss:$16 sps:$4 sm:$0xff]   ;;  %v904_v52 = vld [vmem:[%s1263_s1 + $0x160] ss:$16 sps:$4 sm:$0xff]   ;;  %v97_v19 = vlaneseq }
  0x12   :  { %v928_v51 = vld [vmem:[%s1264_s0 + $0x4] ss:$12 sps:$4 sm:$0xff]   ;;  %v907_v53 = vld [vmem:[%s1263_s1 + $0x1ac] ss:$16 sps:$4 sm:$0xff]   ;;  %v905_v56 = vld [vmem:[%s1263_s1 + $0x1a8] ss:$16 sps:$4 sm:$0xff]  }
  0x13   :  { %523 = vmatpush1.bf16.msra.mxu0 %v856_v20  ;;  %546 = vmatprep.mubr.bf16.mxu0 %v928_v51  ;;  %v932_v54 = vld [vmem:[%s1264_s0 + $0x20] ss:$12 sps:$4 sm:$0xff]   ;;  %v908_v55 = vld [vmem:[%s1263_s1 + $0x144] ss:$16 sps:$4 sm:$0xff]   ;;  %v911_v60 = vld [vmem:[%s1263_s1 + $0x188] ss:$16 sps:$4 sm:$0xff]  }
  0x14   :  { %524 = vmatprep.subr.bf16.mxu0 %v860_v21  ;;  %625 = vmatpush1.bf16.msra.mxu1 %v857_v22  ;;  %v913_v57 = vld [vmem:[%s1263_s1 + $0x18c] ss:$16 sps:$4 sm:$0xff]   ;;  %v910_v58 = vld [vmem:[%s1263_s1 + $0x140] ss:$16 sps:$4 sm:$0xff]   ;;  %v914_v59 = vld [vmem:[%s1263_s1 + $0x124] ss:$16 sps:$4 sm:$0xff]  }
  0x15   :  { %626 = vmatprep.subr.bf16.mxu1 %v865_v23  ;;  %825 = vmatmul.mubr.msk.bf16.gmra.mxu1 %vm507_vm0, %v932_v54  ;;  %v919_v61 = vld [vmem:[%s1263_s1 + $0x16c] ss:$16 sps:$4 sm:$0xff]   ;;  %v916_v62 = vld [vmem:[%s1263_s1 + $0x120] ss:$16 sps:$4 sm:$0xff]   ;;  %v920_v63 = vld [vmem:[%s1263_s1 + $0x104] ss:$16 sps:$4 sm:$0xff]  }
  0x16   :  { %652 = vmatprep.mubr.bf16.mxu1 %v928_v51  ;;  %v917_v0 = vld [vmem:[%s1263_s1 + $0x168] ss:$16 sps:$4 sm:$0xff]   ;;  %v925_v2 = vld [vmem:[%s1263_s1 + $0x14c] ss:$16 sps:$4 sm:$0xff]   ;;  %v922_v3 = vld [vmem:[%s1263_s1 + $0x100] ss:$16 sps:$4 sm:$0xff]  }
  0x17   :  { %525 = vmatpush1.bf16.msra.mxu0 %v862_v24  ;;  %v931_v4 = vld [vmem:[%s1263_s1 + $0x22c] ss:$16 sps:$4 sm:$0xff]   ;;  %v923_v5 = vld [vmem:[%s1263_s1 + $0x148] ss:$16 sps:$4 sm:$0xff]   ;;  %v98_v21 = vshrl.u32 %v97_v19, 7 }
  0x18   :  { %526 = vmatprep.subr.bf16.mxu0 %v866_v25  ;;  %627 = vmatpush1.bf16.msra.mxu1 %v863_v26  ;;  %v926_v6 = vld [vmem:[%s1264_s0] ss:$12 sps:$4 sm:$0xff]   ;;  %v929_v8 = vld [vmem:[%s1263_s1 + $0x228] ss:$16 sps:$4 sm:$0xff]  }
  0x19   :  { %628 = vmatprep.subr.bf16.mxu1 %v871_v27  ;;  %v935_v7 = vld [vmem:[%s1263_s1 + $0x12c] ss:$16 sps:$4 sm:$0xff]   ;;  %v933_v11 = vld [vmem:[%s1263_s1 + $0x128] ss:$16 sps:$4 sm:$0xff]   ;;  %v99_v23 = vsub.s32 0, %v98_v21  ;;  %v103_v26 = vsub.s32 1, %v98_v21 }
  0x1a   :  { %v939_v9 = vld [vmem:[%s1264_s0 + $0x1c] ss:$12 sps:$4 sm:$0xff]   ;;  %v941_v16 = vld [vmem:[%s1264_s0 + $0x18] ss:$12 sps:$4 sm:$0xff]   ;;  %v95_v24 = vld [vmem:[%s1265_s2] sm:$0xf] }
  0x1b   :  { %527 = vmatpush1.bf16.msra.mxu0 %v868_v28  ;;  %v944_v10 = vld [vmem:[%s1263_s1 + $0x20c] ss:$16 sps:$4 sm:$0xff]   ;;  %v942_v14 = vld [vmem:[%s1263_s1 + $0x208] ss:$16 sps:$4 sm:$0xff]   ;;  %v100_v27 = vrot.slane %v95_v24, %v99_v23  ;;  %v104_v28 = vrot.slane %v95_v24, %v103_v26 }
  0x1c   :  { %528 = vmatprep.subr.bf16.mxu0 %v872_v29  ;;  %629 = vmatpush1.bf16.msra.mxu1 %v869_v30  ;;  %v938_v12 = vld [vmem:[%s1263_s1 + $0x10c] ss:$16 sps:$4 sm:$0xff]   ;;  %v936_v15 = vld [vmem:[%s1263_s1 + $0x108] ss:$16 sps:$4 sm:$0xff]  }
  0x1d   :  { %630 = vmatprep.subr.bf16.mxu1 %v877_v31 }
  0x1f   :  { %529 = vmatpush1.bf16.msra.mxu0 %v874_v32 }
  0x20   :  { %530 = vmatprep.subr.bf16.mxu0 %v878_v33  ;;  %631 = vmatpush1.bf16.msra.mxu1 %v875_v34 }
  0x21   :  { %632 = vmatprep.subr.bf16.mxu1 %v883_v35 }
  0x23   :  { %531 = vmatpush2.bf16.msra.mxu0 %v880_v36 }
  0x24   :  { %532 = vmatprep.subr.bf16.mxu0 %v884_v37  ;;  %633 = vmatpush1.bf16.msra.mxu1 %v881_v38  ;;  %v107_v37 = vsub.s32 2, %v98_v21 }
  0x25   :  { %634 = vmatprep.subr.bf16.mxu1 %v889_v39 }
  0x27   :  { %533 = vmatpush2.bf16.msra.mxu0 %v886_v40 }
  0x28   :  { %534 = vmatprep.subr.bf16.mxu0 %v890_v41  ;;  %635 = vmatpush1.bf16.msra.mxu1 %v887_v42 }
  0x29   :  { %636 = vmatprep.subr.bf16.mxu1 %v895_v43 }
  0x2b   :  { %535 = vmatpush2.bf16.msra.mxu0 %v892_v44 }
  0x2c   :  { %536 = vmatprep.subr.bf16.mxu0 %v896_v45  ;;  %637 = vmatpush2.bf16.msra.mxu1 %v893_v46  ;;  %v108_v45 = vrot.slane %v95_v24, %v107_v37  ;;  %v111_v46 = vsub.s32 3, %v98_v21 }
  0x2d   :  { %638 = vmatprep.subr.bf16.mxu1 %v901_v47 }
  0x2f   :  { %537 = vmatpush2.bf16.msra.mxu0 %v898_v48 }
  0x30   :  { %538 = vmatprep.subr.bf16.mxu0 %v902_v50  ;;  %639 = vmatpush2.bf16.msra.mxu1 %v899_v49 }
  0x31   :  { %640 = vmatprep.subr.bf16.mxu1 %v907_v53 }
  0x33   :  { %539 = vmatpush2.bf16.msra.mxu0 %v904_v52 }
  0x34   :  { %540 = vmatprep.subr.bf16.mxu0 %v908_v55  ;;  %641 = vmatpush2.bf16.msra.mxu1 %v905_v56  ;;  %v112_v55 = vrot.slane %v95_v24, %v111_v46 }
  0x35   :  { %642 = vmatprep.subr.bf16.mxu1 %v913_v57 }
  0x37   :  { %541 = vmatpush2.bf16.msra.mxu0 %v910_v58 }
  0x38   :  { %542 = vmatprep.subr.bf16.mxu0 %v914_v59  ;;  %643 = vmatpush2.bf16.msra.mxu1 %v911_v60 }
  0x39   :  { %644 = vmatprep.subr.bf16.mxu1 %v919_v61 }
  0x3b   :  { %543 = vmatpush2.bf16.msra.mxu0 %v916_v62 }
  0x3c   :  { %544 = vmatprep.subr.bf16.mxu0 %v920_v63  ;;  %645 = vmatpush2.bf16.msra.mxu1 %v917_v0 }
  0x3d   :  { %646 = vmatprep.subr.bf16.mxu1 %v925_v2 }
  0x3f   :  { %545 = vmatpush2.bf16.msra.mxu0 %v922_v3 }
  0x40   :  { %685 = vmatprep.subr.bf16.mxu0 %v931_v4  ;;  %647 = vmatpush2.bf16.msra.mxu1 %v923_v5 }
  0x41   :  { %648 = vmatprep.subr.bf16.mxu1 %v935_v7 }
  0x42   :  { %547 = vmatmul.mubr.bf16.vlgmr.msra.gmra.mxu0 %v926_v6 }
  0x43   :  { %686 = vmatpush1.bf16.msra.mxu0 %v929_v8  ;;  %556 = vmatprep.mubr.bf16.mxu0 %v939_v9 }
  0x44   :  { %687 = vmatprep.subr.bf16.mxu0 %v944_v10  ;;  %649 = vmatpush2.bf16.msra.mxu1 %v933_v11 }
  0x45   :  { %650 = vmatprep.subr.bf16.mxu1 %v938_v12 }
  0x47   :  { %688 = vmatpush1.bf16.msra.mxu0 %v942_v14 }
  0x48   :  { %651 = vmatpush2.bf16.msra.mxu1 %v936_v15 }
  0x4a   :  { %557 = vmatmul.mubr.bf16.gmra.mxu0 %v941_v16 }
  0x4b   :  { %705 = vmatprep.mubr.bf16.mxu0 %v945_v1  ;;  %653 = vmatmul.mubr.bf16.vlgmr.msra.gmra.mxu1 %v926_v6 }
  0x4c   :  { %662 = vmatprep.mubr.bf16.mxu1 %v939_v9 }
  0x52   :  { %826 = vmatmul.mubr.msk.bf16.vlgmr.msra.gmra.mxu0 %vm507_vm0, %v1006_v13 }
  0x53   :  { %715 = vmatprep.mubr.bf16.mxu0 %v945_v1  ;;  %663 = vmatmul.mubr.bf16.gmra.mxu1 %v941_v16 }
  0x5a   :  { %827 = vmatmul.mubr.msk.bf16.gmra.mxu0 %vm507_vm0, %v932_v54 }
  0xcb   :  { %v601_v17 = vpop.f32.mrf.mxu1 }
  0xcd   :  { %v603_v18 = vpop.f32.mrf.mxu1 }
  0xcf   :  { %v605_v20 = vpop.f32.mrf.mxu1 }
  0xd1   :  { %v607_v22 = vpop.f32.mrf.mxu1 }
  0xd5   :  { %v611_v25 = vpop.f32.mrf.mxu1 }
  0xd7   :  { %v613_v13 = vpop.f32.mrf.mxu1 }
  0xd9   :  { %v615_v31 = vpop.f32.mrf.mxu1 }
  0xdb   :  { %v617_v39 = vpop.f32.mrf.mxu1 }
 0x102   :  { %v548_v1 = vpop.f32.mrf.mxu0 }
 0x103   :  { %v549_v29 = vadd.f32 %v548_v1, %v100_v27 }
 0x104   :  { %v550_v30 = vpop.f32.mrf.mxu0 }
 0x105   :  { %v602_v32 = vadd.f32 %v601_v17, %v549_v29  ;;  %v551_v33 = vadd.f32 %v550_v30, %v104_v28 }
 0x106   :  { %v552_v34 = vpop.f32.mrf.mxu0 }
 0x107   :  { %726 = vst [vmem:[%s1266_s3] sm:$0xff] %v602_v32  ;;  %v604_v35 = vadd.f32 %v603_v18, %v551_v33  ;;  %v553_v36 = vadd.f32 %v552_v34, %v100_v27 }
 0x108   :  { %v554_v38 = vpop.f32.mrf.mxu0 }
 0x109   :  { %727 = vst [vmem:[%s1266_s3 + $0x8] sm:$0xff] %v604_v35  ;;  %v606_v40 = vadd.f32 %v605_v20, %v553_v36  ;;  %v555_v41 = vadd.f32 %v554_v38, %v104_v28 }
 0x10a   :  { %v558_v42 = vpop.f32.mrf.mxu0 }
 0x10b   :  { %730 = vst [vmem:[%s1266_s3 + $0x20] sm:$0xff] %v606_v40  ;;  %v608_v43 = vadd.f32 %v607_v22, %v555_v41  ;;  %v559_v44 = vadd.f32 %v558_v42, %v100_v27  ;;  %v654_v47 = vpop.f32.mrf.mxu1 }
 0x10c   :  { %v560_v48 = vpop.f32.mrf.mxu0  ;;  %v655_v53 = vadd.f32 %v654_v47, %v108_v45 }
 0x10d   :  { %731 = vst [vmem:[%s1266_s3 + $0x28] sm:$0xff] %v608_v43  ;;  %v612_v49 = vadd.f32 %v611_v25, %v559_v44  ;;  %v561_v50 = vadd.f32 %v560_v48, %v104_v28  ;;  %v656_v51 = vpop.f32.mrf.mxu1 }
 0x10e   :  { %v562_v52 = vpop.f32.mrf.mxu0  ;;  %v657_v63 = vadd.f32 %v656_v51, %v112_v55 }
 0x10f   :  { %734 = vst [vmem:[%s1266_s3 + $0x40] sm:$0xff] %v612_v49  ;;  %v614_v54 = vadd.f32 %v613_v13, %v561_v50  ;;  %v563_v56 = vadd.f32 %v562_v52, %v100_v27  ;;  %v658_v57 = vpop.f32.mrf.mxu1 }
 0x110   :  { %v564_v58 = vpop.f32.mrf.mxu0  ;;  %v659_v5 = vadd.f32 %v658_v57, %v108_v45 }
 0x111   :  { %735 = vst [vmem:[%s1266_s3 + $0x48] sm:$0xff] %v614_v54  ;;  %v616_v59 = vadd.f32 %v615_v31, %v563_v56  ;;  %v565_v60 = vadd.f32 %v564_v58, %v104_v28  ;;  %v660_v61 = vpop.f32.mrf.mxu1 }
 0x112   :  { %v707_v62 = vpop.f32.mrf.mxu0  ;;  %v661_v9 = vadd.f32 %v660_v61, %v112_v55 }
 0x113   :  { %738 = vst [vmem:[%s1266_s3 + $0x60] sm:$0xff] %v616_v59  ;;  %v618_v0 = vadd.f32 %v617_v39, %v565_v60  ;;  %v708_v2 = vadd.f32 %v707_v62, %v655_v53  ;;  %v664_v3 = vpop.f32.mrf.mxu1 }
 0x114   :  { %v709_v4 = vpop.f32.mrf.mxu0  ;;  %v665_v10 = vadd.f32 %v664_v3, %v108_v45 }
 0x115   :  { %739 = vst [vmem:[%s1266_s3 + $0x68] sm:$0xff] %v618_v0  ;;  %728 = vst [vmem:[%s1266_s3 + $0x10] sm:$0xff] %v708_v2  ;;  %v710_v6 = vadd.f32 %v709_v4, %v657_v63  ;;  %v666_v7 = vpop.f32.mrf.mxu1 }
 0x116   :  { %v711_v8 = vpop.f32.mrf.mxu0  ;;  %v667_v17 = vadd.f32 %v666_v7, %v112_v55 }
 0x117   :  { %729 = vst [vmem:[%s1266_s3 + $0x18] sm:$0xff] %v710_v6  ;;  %v712_v11 = vadd.f32 %v711_v8, %v659_v5  ;;  %v668_v12 = vpop.f32.mrf.mxu1 }
 0x118   :  { %v713_v14 = vpop.f32.mrf.mxu0  ;;  %v669_v21 = vadd.f32 %v668_v12, %v108_v45 }
 0x119   :  { %732 = vst [vmem:[%s1266_s3 + $0x30] sm:$0xff] %v712_v11  ;;  %v714_v15 = vadd.f32 %v713_v14, %v661_v9  ;;  %v670_v19 = vpop.f32.mrf.mxu1 }
 0x11a   :  { %v717_v16 = vpop.f32.mrf.mxu0  ;;  %v671_v24 = vadd.f32 %v670_v19, %v112_v55 }
 0x11b   :  { %733 = vst [vmem:[%s1266_s3 + $0x38] sm:$0xff] %v714_v15  ;;  %v718_v18 = vadd.f32 %v717_v16, %v665_v10 }
 0x11c   :  { %v719_v20 = vpop.f32.mrf.mxu0 }
 0x11d   :  { %736 = vst [vmem:[%s1266_s3 + $0x50] sm:$0xff] %v718_v18  ;;  %v720_v22 = vadd.f32 %v719_v20, %v667_v17 }
 0x11e   :  { %v721_v23 = vpop.f32.mrf.mxu0 }
 0x11f   :  { %737 = vst [vmem:[%s1266_s3 + $0x58] sm:$0xff] %v720_v22  ;;  %v722_v25 = vadd.f32 %v721_v23, %v669_v21 }
 0x120   :  { %v723_v26 = vpop.f32.mrf.mxu0 }
 0x121   :  { %740 = vst [vmem:[%s1266_s3 + $0x70] sm:$0xff] %v722_v25  ;;  %v724_v27 = vadd.f32 %v723_v26, %v671_v24 }
 0x123   :  { %741 = vst [vmem:[%s1266_s3 + $0x78] sm:$0xff] %v724_v27 }

// kernel: tile.32
= control target key start
LH: loop header
LB: loop body
LE: loop exit
PB: predicated region body
PF: predicated region fallthrough
CT: control target
= control target key end

     0   :  { %s22_s0 = inlined_call_operand.vmem [shape: f32[64], index: 0, kind: input, shape index: {}]   ;;  %s23_s1 = inlined_call_operand.vmem [shape: f32[4,64], index: 1, kind: output, shape index: {}]  }
   0x1   :  { %v4_v0 = vld [vmem:[%s22_s0] ss:$0 sm:$0xff] }
   0x2   :  { %5 = vst [vmem:[%s23_s1] sm:$0xf] %v4_v0 }

// kernel: tile.33
= control target key start
LH: loop header
LB: loop body
LE: loop exit
PB: predicated region body
PF: predicated region fallthrough
CT: control target
= control target key end

     0   :  { %s7_s8 = smov 3  ;;  %vm9_vm0 = vcmask 523264   ;;  %s34_s9 = smov 64   ;;  %vm16_vm1 = vcmask 1048064   ;;  %s54_s0 = inlined_call_operand.vmem [shape: f32[4,64], index: 0, kind: input, shape index: {}]   ;;  %s55_s1 = inlined_call_operand.vmem [shape: f32[1,256], index: 1, kind: output, shape index: {}]  }
   0x1   :  { %v5_v0 = vld [vmem:[%s54_s0] sm:$0xf]  ;;  %s12_s0 = smov 3 }
   0x2   :  { %6 = vst [vmem:[#allocation1] sm:$0xf] %v5_v0 }
   0x9   :  { %v13_v1 = vld [vmem:[#allocation1 + $0x1] ss:$2 sm:%s12_s0]   ;;  %v8_v2 = vld [vmem:[#allocation1] ss:$2 sm:%s7_s8]  }
   0xa   :  { %14 = vrot.lane.b32.xlu0 %v13_v1, %s34_s9  ;;  %10 = vst.msk [vmem:[#allocation0] ss:$8 sm:$0x3] %vm9_vm0, %v8_v2  }
  0x7c   :  { %v15_v3 = vpop.permute.xlu0 %14  }
  0x7d   :  { %17 = vst.msk [vmem:[#allocation0] ss:$8 sm:$0x3] %vm16_vm1, %v15_v3  }
  0x84   :  { %v22_v4 = vld [vmem:[#allocation0] sm:$0x1]  ;;  %v27_v5 = vld [vmem:[#allocation0 + $0x8] sm:$0x1] }
  0x85   :  { %25 = vst [vmem:[%s55_s1] sm:$0x1] %v22_v4  ;;  %32 = vst [vmem:[%s55_s1 + $0x1] sm:$0x1] %v27_v5 }

// kernel: vqvae_forward.14
= control target key start
LH: loop header
LB: loop body
LE: loop exit
PB: predicated region body
PF: predicated region fallthrough
CT: control target
= control target key end

     0   :  { %s3543_s1 = inlined_call_operand.vmem [shape: bf16[1152,256], index: 1, kind: input, shape index: {}]   ;;  %s3544_s0 = inlined_call_operand.vmem [shape: bf16[128,1152], index: 0, kind: input, shape index: {}]   ;;  %s3545_s2 = inlined_call_operand.vmem [shape: f32[1,256], index: 2, kind: input, shape index: {}]   ;;  %s3546_s3 = inlined_call_operand.vmem [shape: f32[128,256], index: 3, kind: output, shape index: {}]  }
   0x1   :  { %v2173_v0 = vld [vmem:[%s3543_s1 + $0x74] ss:$8 sps:$4 sm:$0xff]   ;;  %v2177_v2 = vld [vmem:[%s3543_s1 + $0x70] ss:$8 sps:$4 sm:$0xff]   ;;  %v2179_v4 = vld [vmem:[%s3543_s1 + $0x64] ss:$8 sps:$4 sm:$0xff]  }
   0x2   :  { %v2175_v1 = vld [vmem:[%s3543_s1 + $0x174] ss:$8 sps:$4 sm:$0xff]   ;;  %1339 = vmatprep.subr.bf16.mxu0 %v2173_v0  ;;  %v2178_v3 = vld [vmem:[%s3543_s1 + $0x170] ss:$8 sps:$4 sm:$0xff]   ;;  %v2181_v5 = vld [vmem:[%s3543_s1 + $0x164] ss:$8 sps:$4 sm:$0xff]  }
   0x3   :  { %1452 = vmatprep.subr.bf16.mxu1 %v2175_v1  ;;  %1340 = vmatpush1.bf16.msra.mxu0 %v2177_v2  ;;  %v2183_v6 = vld [vmem:[%s3543_s1 + $0x60] ss:$8 sps:$4 sm:$0xff]   ;;  %v2185_v8 = vld [vmem:[%s3543_s1 + $0x54] ss:$8 sps:$4 sm:$0xff]   ;;  %v2189_v10 = vld [vmem:[%s3543_s1 + $0x50] ss:$8 sps:$4 sm:$0xff]  }
   0x4   :  { %1453 = vmatpush1.bf16.msra.mxu1 %v2178_v3  ;;  %1341 = vmatprep.subr.bf16.mxu0 %v2179_v4  ;;  %v2184_v7 = vld [vmem:[%s3543_s1 + $0x160] ss:$8 sps:$4 sm:$0xff]   ;;  %v2187_v9 = vld [vmem:[%s3543_s1 + $0x154] ss:$8 sps:$4 sm:$0xff]   ;;  %v2190_v11 = vld [vmem:[%s3543_s1 + $0x150] ss:$8 sps:$4 sm:$0xff]  }
   0x5   :  { %1454 = vmatprep.subr.bf16.mxu1 %v2181_v5  ;;  %v2191_v12 = vld [vmem:[%s3543_s1 + $0x44] ss:$8 sps:$4 sm:$0xff]   ;;  %v2195_v14 = vld [vmem:[%s3543_s1 + $0x40] ss:$8 sps:$4 sm:$0xff]   ;;  %v2197_v16 = vld [vmem:[%s3543_s1 + $0x34] ss:$8 sps:$4 sm:$0xff]  }
   0x6   :  { %v2193_v13 = vld [vmem:[%s3543_s1 + $0x144] ss:$8 sps:$4 sm:$0xff]   ;;  %v2196_v15 = vld [vmem:[%s3543_s1 + $0x140] ss:$8 sps:$4 sm:$0xff]   ;;  %v2199_v17 = vld [vmem:[%s3543_s1 + $0x134] ss:$8 sps:$4 sm:$0xff]  }
   0x7   :  { %1342 = vmatpush1.bf16.msra.mxu0 %v2183_v6  ;;  %v2201_v18 = vld [vmem:[%s3543_s1 + $0x30] ss:$8 sps:$4 sm:$0xff]   ;;  %v2203_v20 = vld [vmem:[%s3543_s1 + $0x24] ss:$8 sps:$4 sm:$0xff]   ;;  %v2207_v22 = vld [vmem:[%s3543_s1 + $0x20] ss:$8 sps:$4 sm:$0xff]  }
   0x8   :  { %1455 = vmatpush1.bf16.msra.mxu1 %v2184_v7  ;;  %1343 = vmatprep.subr.bf16.mxu0 %v2185_v8  ;;  %v2202_v19 = vld [vmem:[%s3543_s1 + $0x130] ss:$8 sps:$4 sm:$0xff]   ;;  %v2205_v21 = vld [vmem:[%s3543_s1 + $0x124] ss:$8 sps:$4 sm:$0xff]   ;;  %v2208_v23 = vld [vmem:[%s3543_s1 + $0x120] ss:$8 sps:$4 sm:$0xff]  }
   0x9   :  { %1456 = vmatprep.subr.bf16.mxu1 %v2187_v9  ;;  %v2209_v24 = vld [vmem:[%s3543_s1 + $0x14] ss:$8 sps:$4 sm:$0xff]   ;;  %v2213_v26 = vld [vmem:[%s3543_s1 + $0x10] ss:$8 sps:$4 sm:$0xff]   ;;  %v2215_v28 = vld [vmem:[%s3543_s1 + $0x4] ss:$8 sps:$4 sm:$0xff]  }
   0xa   :  { %v2211_v25 = vld [vmem:[%s3543_s1 + $0x114] ss:$8 sps:$4 sm:$0xff]   ;;  %v2214_v27 = vld [vmem:[%s3543_s1 + $0x110] ss:$8 sps:$4 sm:$0xff]   ;;  %v2217_v29 = vld [vmem:[%s3543_s1 + $0x104] ss:$8 sps:$4 sm:$0xff]  }
   0xb   :  { %1344 = vmatpush1.bf16.msra.mxu0 %v2189_v10  ;;  %v2219_v30 = vld [vmem:[%s3543_s1] ss:$8 sps:$4 sm:$0xff]   ;;  %v2221_v32 = vld [vmem:[%s3543_s1 + $0xf4] ss:$8 sps:$4 sm:$0xff]   ;;  %v2225_v34 = vld [vmem:[%s3543_s1 + $0xf0] ss:$8 sps:$4 sm:$0xff]  }
   0xc   :  { %1457 = vmatpush1.bf16.msra.mxu1 %v2190_v11  ;;  %1345 = vmatprep.subr.bf16.mxu0 %v2191_v12  ;;  %v2220_v31 = vld [vmem:[%s3543_s1 + $0x100] ss:$8 sps:$4 sm:$0xff]   ;;  %v2223_v33 = vld [vmem:[%s3543_s1 + $0x1f4] ss:$8 sps:$4 sm:$0xff]   ;;  %v2226_v35 = vld [vmem:[%s3543_s1 + $0x1f0] ss:$8 sps:$4 sm:$0xff]  }
   0xd   :  { %1458 = vmatprep.subr.bf16.mxu1 %v2193_v13  ;;  %v2227_v36 = vld [vmem:[%s3543_s1 + $0xe4] ss:$8 sps:$4 sm:$0xff]   ;;  %v2231_v38 = vld [vmem:[%s3543_s1 + $0xe0] ss:$8 sps:$4 sm:$0xff]   ;;  %v2233_v40 = vld [vmem:[%s3543_s1 + $0xd4] ss:$8 sps:$4 sm:$0xff]  }
   0xe   :  { %v2229_v37 = vld [vmem:[%s3543_s1 + $0x1e4] ss:$8 sps:$4 sm:$0xff]   ;;  %v2232_v39 = vld [vmem:[%s3543_s1 + $0x1e0] ss:$8 sps:$4 sm:$0xff]   ;;  %v2235_v41 = vld [vmem:[%s3543_s1 + $0x1d4] ss:$8 sps:$4 sm:$0xff]  }
   0xf   :  { %1346 = vmatpush1.bf16.msra.mxu0 %v2195_v14  ;;  %v2237_v42 = vld [vmem:[%s3543_s1 + $0xd0] ss:$8 sps:$4 sm:$0xff]   ;;  %v2239_v44 = vld [vmem:[%s3543_s1 + $0xc4] ss:$8 sps:$4 sm:$0xff]   ;;  %v2243_v46 = vld [vmem:[%s3543_s1 + $0xc0] ss:$8 sps:$4 sm:$0xff]  }
  0x10   :  { %1459 = vmatpush1.bf16.msra.mxu1 %v2196_v15  ;;  %1347 = vmatprep.subr.bf16.mxu0 %v2197_v16  ;;  %v2238_v43 = vld [vmem:[%s3543_s1 + $0x1d0] ss:$8 sps:$4 sm:$0xff]   ;;  %v2241_v45 = vld [vmem:[%s3543_s1 + $0x1c4] ss:$8 sps:$4 sm:$0xff]   ;;  %v2244_v47 = vld [vmem:[%s3543_s1 + $0x1c0] ss:$8 sps:$4 sm:$0xff]  }
  0x11   :  { %1460 = vmatprep.subr.bf16.mxu1 %v2199_v17  ;;  %v2245_v48 = vld [vmem:[%s3543_s1 + $0xb4] ss:$8 sps:$4 sm:$0xff]   ;;  %v2271_v49 = vld [vmem:[%s3544_s0 + $0x4] ss:$36 sps:$4 sm:$0xff]   ;;  %v2274_v51 = vld [vmem:[%s3544_s0 + $0xc] ss:$36 sps:$4 sm:$0xff]  }
  0x12   :  { %v2247_v50 = vld [vmem:[%s3543_s1 + $0x1b4] ss:$8 sps:$4 sm:$0xff]   ;;  %1371 = vmatprep.mubr.bf16.mxu0 %v2271_v49  ;;  %v2249_v52 = vld [vmem:[%s3543_s1 + $0xb0] ss:$8 sps:$4 sm:$0xff]   ;;  %1484 = vmatprep.mubr.bf16.mxu1 %v2274_v51  ;;  %v2251_v54 = vld [vmem:[%s3543_s1 + $0xa4] ss:$8 sps:$4 sm:$0xff]  }
  0x13   :  { %1348 = vmatpush1.bf16.msra.mxu0 %v2201_v18  ;;  %v2250_v53 = vld [vmem:[%s3543_s1 + $0x1b0] ss:$8 sps:$4 sm:$0xff]   ;;  %v2253_v55 = vld [vmem:[%s3543_s1 + $0x1a4] ss:$8 sps:$4 sm:$0xff]   ;;  %v2255_v56 = vld [vmem:[%s3543_s1 + $0xa0] ss:$8 sps:$4 sm:$0xff]  }
  0x14   :  { %1461 = vmatpush1.bf16.msra.mxu1 %v2202_v19  ;;  %1349 = vmatprep.subr.bf16.mxu0 %v2203_v20  ;;  %v2256_v57 = vld [vmem:[%s3543_s1 + $0x1a0] ss:$8 sps:$4 sm:$0xff]   ;;  %v2257_v58 = vld [vmem:[%s3543_s1 + $0x94] ss:$8 sps:$4 sm:$0xff]   ;;  %v2261_v60 = vld [vmem:[%s3543_s1 + $0x90] ss:$8 sps:$4 sm:$0xff]  }
  0x15   :  { %1462 = vmatprep.subr.bf16.mxu1 %v2205_v21  ;;  %v2259_v59 = vld [vmem:[%s3543_s1 + $0x194] ss:$8 sps:$4 sm:$0xff]   ;;  %v2262_v61 = vld [vmem:[%s3543_s1 + $0x190] ss:$8 sps:$4 sm:$0xff]   ;;  %v2263_v62 = vld [vmem:[%s3543_s1 + $0x84] ss:$8 sps:$4 sm:$0xff]  }
  0x16   :  { %v2265_v63 = vld [vmem:[%s3543_s1 + $0x184] ss:$8 sps:$4 sm:$0xff]   ;;  %v2267_v0 = vld [vmem:[%s3543_s1 + $0x80] ss:$8 sps:$4 sm:$0xff]   ;;  %v2277_v2 = vld [vmem:[%s3543_s1 + $0x274] ss:$8 sps:$4 sm:$0xff]  }
  0x17   :  { %1350 = vmatpush1.bf16.msra.mxu0 %v2207_v22  ;;  %v2268_v1 = vld [vmem:[%s3543_s1 + $0x180] ss:$8 sps:$4 sm:$0xff]   ;;  %v2280_v3 = vld [vmem:[%s3543_s1 + $0x374] ss:$8 sps:$4 sm:$0xff]   ;;  %v2275_v6 = vld [vmem:[%s3543_s1 + $0x270] ss:$8 sps:$4 sm:$0xff]  }
  0x18   :  { %1463 = vmatpush1.bf16.msra.mxu1 %v2208_v23  ;;  %1351 = vmatprep.subr.bf16.mxu0 %v2209_v24  ;;  %v2269_v4 = vld [vmem:[%s3544_s0] ss:$36 sps:$4 sm:$0xff]   ;;  %v2272_v5 = vld [vmem:[%s3544_s0 + $0x8] ss:$36 sps:$4 sm:$0xff]   ;;  %v2278_v7 = vld [vmem:[%s3543_s1 + $0x370] ss:$8 sps:$4 sm:$0xff]  }
  0x19   :  { %1464 = vmatprep.subr.bf16.mxu1 %v2211_v25  ;;  %v2283_v8 = vld [vmem:[%s3543_s1 + $0x264] ss:$8 sps:$4 sm:$0xff]   ;;  %v2289_v11 = vld [vmem:[%s3544_s0 + $0x54] ss:$36 sps:$4 sm:$0xff]   ;;  %v2281_v12 = vld [vmem:[%s3543_s1 + $0x260] ss:$8 sps:$4 sm:$0xff]  }
  0x1a   :  { %v2286_v9 = vld [vmem:[%s3543_s1 + $0x364] ss:$8 sps:$4 sm:$0xff]   ;;  %v2284_v13 = vld [vmem:[%s3543_s1 + $0x360] ss:$8 sps:$4 sm:$0xff]   ;;  %v2295_v14 = vld [vmem:[%s3543_s1 + $0x254] ss:$8 sps:$4 sm:$0xff]  }
  0x1b   :  { %1352 = vmatpush1.bf16.msra.mxu0 %v2213_v26  ;;  %v2287_v10 = vld [vmem:[%s3544_s0 + $0x4c] ss:$36 sps:$4 sm:$0xff]   ;;  %v2298_v15 = vld [vmem:[%s3543_s1 + $0x354] ss:$8 sps:$4 sm:$0xff]   ;;  %v2299_v24 = vld [vmem:[%s3543_s1 + $0x240] ss:$8 sps:$4 sm:$0xff]  }
  0x1c   :  { %1465 = vmatpush1.bf16.msra.mxu1 %v2214_v27  ;;  %1353 = vmatprep.subr.bf16.mxu0 %v2215_v28  ;;  %v2291_v16 = vld [vmem:[%s3544_s0 + $0x48] ss:$36 sps:$4 sm:$0xff]   ;;  %v2292_v17 = vld [vmem:[%s3544_s0 + $0x50] ss:$36 sps:$4 sm:$0xff]   ;;  %v2307_v23 = vld [vmem:[%s3544_s0 + $0x9c] ss:$36 sps:$4 sm:$0xff]  }
  0x1d   :  { %1466 = vmatprep.subr.bf16.mxu1 %v2217_v29  ;;  %v2293_v18 = vld [vmem:[%s3543_s1 + $0x250] ss:$8 sps:$4 sm:$0xff]   ;;  %v2301_v20 = vld [vmem:[%s3543_s1 + $0x244] ss:$8 sps:$4 sm:$0xff]   ;;  %v2302_v25 = vld [vmem:[%s3543_s1 + $0x340] ss:$8 sps:$4 sm:$0xff]  }
  0x1e   :  { %v2296_v19 = vld [vmem:[%s3543_s1 + $0x350] ss:$8 sps:$4 sm:$0xff]   ;;  %v2304_v21 = vld [vmem:[%s3543_s1 + $0x344] ss:$8 sps:$4 sm:$0xff]   ;;  %v2313_v26 = vld [vmem:[%s3543_s1 + $0x234] ss:$8 sps:$4 sm:$0xff]  }
  0x1f   :  { %1354 = vmatpush1.bf16.msra.mxu0 %v2219_v30  ;;  %v2305_v22 = vld [vmem:[%s3544_s0 + $0x94] ss:$36 sps:$4 sm:$0xff]   ;;  %v2338_v49 = vld [vmem:[%s3543_s1 + $0x300] ss:$8 sps:$4 sm:$0xff]  }
  0x20   :  { %1467 = vmatpush1.bf16.msra.mxu1 %v2220_v31  ;;  %1355 = vmatprep.subr.bf16.mxu0 %v2221_v32  ;;  %v2316_v27 = vld [vmem:[%s3543_s1 + $0x334] ss:$8 sps:$4 sm:$0xff]   ;;  %v2311_v30 = vld [vmem:[%s3543_s1 + $0x230] ss:$8 sps:$4 sm:$0xff]   ;;  %v2319_v32 = vld [vmem:[%s3543_s1 + $0x224] ss:$8 sps:$4 sm:$0xff]  }
  0x21   :  { %1468 = vmatprep.subr.bf16.mxu1 %v2223_v33  ;;  %v2309_v28 = vld [vmem:[%s3544_s0 + $0x90] ss:$36 sps:$4 sm:$0xff]   ;;  %v2310_v29 = vld [vmem:[%s3544_s0 + $0x98] ss:$36 sps:$4 sm:$0xff]   ;;  %v2322_v33 = vld [vmem:[%s3543_s1 + $0x324] ss:$8 sps:$4 sm:$0xff]  }
  0x22   :  { %v2314_v31 = vld [vmem:[%s3543_s1 + $0x330] ss:$8 sps:$4 sm:$0xff]   ;;  %v2352_v51 = vld [vmem:[%s3543_s1 + $0x3f4] ss:$8 sps:$4 sm:$0xff]  }
  0x23   :  { %1356 = vmatpush2.bf16.msra.mxu0 %v2225_v34  ;;  %v2323_v34 = vld [vmem:[%s3544_s0 + $0xdc] ss:$36 sps:$4 sm:$0xff]  }
  0x24   :  { %1469 = vmatpush2.bf16.msra.mxu1 %v2226_v35  ;;  %1357 = vmatprep.subr.bf16.mxu0 %v2227_v36  ;;  %v2325_v35 = vld [vmem:[%s3544_s0 + $0xe4] ss:$36 sps:$4 sm:$0xff]  }
  0x25   :  { %1470 = vmatprep.subr.bf16.mxu1 %v2229_v37  ;;  %v2317_v36 = vld [vmem:[%s3543_s1 + $0x220] ss:$8 sps:$4 sm:$0xff]  }
  0x26   :  { %v2320_v37 = vld [vmem:[%s3543_s1 + $0x320] ss:$8 sps:$4 sm:$0xff]  }
  0x27   :  { %1358 = vmatpush2.bf16.msra.mxu0 %v2231_v38  ;;  %v2331_v38 = vld [vmem:[%s3543_s1 + $0x214] ss:$8 sps:$4 sm:$0xff]  }
  0x28   :  { %1471 = vmatpush2.bf16.msra.mxu1 %v2232_v39  ;;  %1359 = vmatprep.subr.bf16.mxu0 %v2233_v40  ;;  %v2334_v39 = vld [vmem:[%s3543_s1 + $0x314] ss:$8 sps:$4 sm:$0xff]  }
  0x29   :  { %1472 = vmatprep.subr.bf16.mxu1 %v2235_v41  ;;  %v2327_v40 = vld [vmem:[%s3544_s0 + $0xd8] ss:$36 sps:$4 sm:$0xff]   ;;  %v2328_v41 = vld [vmem:[%s3544_s0 + $0xe0] ss:$36 sps:$4 sm:$0xff]  }
  0x2b   :  { %1360 = vmatpush2.bf16.msra.mxu0 %v2237_v42  ;;  %v2329_v42 = vld [vmem:[%s3543_s1 + $0x210] ss:$8 sps:$4 sm:$0xff]  }
  0x2c   :  { %1473 = vmatpush2.bf16.msra.mxu1 %v2238_v43  ;;  %1361 = vmatprep.subr.bf16.mxu0 %v2239_v44  ;;  %v2332_v43 = vld [vmem:[%s3543_s1 + $0x310] ss:$8 sps:$4 sm:$0xff]   ;;  %v2337_v44 = vld [vmem:[%s3543_s1 + $0x204] ss:$8 sps:$4 sm:$0xff]  }
  0x2d   :  { %1474 = vmatprep.subr.bf16.mxu1 %v2241_v45  ;;  %v2340_v45 = vld [vmem:[%s3543_s1 + $0x304] ss:$8 sps:$4 sm:$0xff]  }
  0x2f   :  { %1362 = vmatpush2.bf16.msra.mxu0 %v2243_v46  ;;  %v2341_v46 = vld [vmem:[%s3544_s0 + $0x124] ss:$36 sps:$4 sm:$0xff]  }
  0x30   :  { %1475 = vmatpush2.bf16.msra.mxu1 %v2244_v47  ;;  %1363 = vmatprep.subr.bf16.mxu0 %v2245_v48  ;;  %v2343_v47 = vld [vmem:[%s3544_s0 + $0x12c] ss:$36 sps:$4 sm:$0xff]   ;;  %v2335_v48 = vld [vmem:[%s3543_s1 + $0x200] ss:$8 sps:$4 sm:$0xff]  }
  0x31   :  { %1476 = vmatprep.subr.bf16.mxu1 %v2247_v50  ;;  %v2349_v50 = vld [vmem:[%s3543_s1 + $0x2f4] ss:$8 sps:$4 sm:$0xff]  }
  0x33   :  { %1364 = vmatpush2.bf16.msra.mxu0 %v2249_v52  ;;  %v2345_v52 = vld [vmem:[%s3544_s0 + $0x120] ss:$36 sps:$4 sm:$0xff]  }
  0x34   :  { %1477 = vmatpush2.bf16.msra.mxu1 %v2250_v53  ;;  %1365 = vmatprep.subr.bf16.mxu0 %v2251_v54  ;;  %v2346_v53 = vld [vmem:[%s3544_s0 + $0x128] ss:$36 sps:$4 sm:$0xff]   ;;  %v2347_v54 = vld [vmem:[%s3543_s1 + $0x2f0] ss:$8 sps:$4 sm:$0xff]  }
  0x35   :  { %1478 = vmatprep.subr.bf16.mxu1 %v2253_v55  ;;  %v2350_v55 = vld [vmem:[%s3543_s1 + $0x3f0] ss:$8 sps:$4 sm:$0xff]  }
  0x37   :  { %1366 = vmatpush2.bf16.msra.mxu0 %v2255_v56  ;;  %v2355_v56 = vld [vmem:[%s3543_s1 + $0x2e4] ss:$8 sps:$4 sm:$0xff]  }
  0x38   :  { %1479 = vmatpush2.bf16.msra.mxu1 %v2256_v57  ;;  %1367 = vmatprep.subr.bf16.mxu0 %v2257_v58  ;;  %v2358_v57 = vld [vmem:[%s3543_s1 + $0x3e4] ss:$8 sps:$4 sm:$0xff]  }
  0x39   :  { %1480 = vmatprep.subr.bf16.mxu1 %v2259_v59  ;;  %v2359_v58 = vld [vmem:[%s3544_s0 + $0x16c] ss:$36 sps:$4 sm:$0xff]   ;;  %v2361_v59 = vld [vmem:[%s3544_s0 + $0x174] ss:$36 sps:$4 sm:$0xff]  }
  0x3b   :  { %1368 = vmatpush2.bf16.msra.mxu0 %v2261_v60  ;;  %v2353_v60 = vld [vmem:[%s3543_s1 + $0x2e0] ss:$8 sps:$4 sm:$0xff]  }
  0x3c   :  { %1481 = vmatpush2.bf16.msra.mxu1 %v2262_v61  ;;  %1369 = vmatprep.subr.bf16.mxu0 %v2263_v62  ;;  %v2356_v61 = vld [vmem:[%s3543_s1 + $0x3e0] ss:$8 sps:$4 sm:$0xff]   ;;  %v2367_v62 = vld [vmem:[%s3543_s1 + $0x2d4] ss:$8 sps:$4 sm:$0xff]  }
  0x3d   :  { %1482 = vmatprep.subr.bf16.mxu1 %v2265_v63  ;;  %v2370_v63 = vld [vmem:[%s3543_s1 + $0x3d4] ss:$8 sps:$4 sm:$0xff]  }
  0x3f   :  { %1370 = vmatpush2.bf16.msra.mxu0 %v2267_v0  ;;  %v2363_v0 = vld [vmem:[%s3544_s0 + $0x168] ss:$36 sps:$4 sm:$0xff]  }
  0x40   :  { %1483 = vmatpush2.bf16.msra.mxu1 %v2268_v1  ;;  %1565 = vmatprep.subr.bf16.mxu0 %v2277_v2  ;;  %v2364_v1 = vld [vmem:[%s3544_s0 + $0x170] ss:$36 sps:$4 sm:$0xff]  }
  0x41   :  { %1678 = vmatprep.subr.bf16.mxu1 %v2280_v3  ;;  %v2365_v2 = vld [vmem:[%s3543_s1 + $0x2d0] ss:$8 sps:$4 sm:$0xff]  }
  0x42   :  { %1372 = vmatmul.mubr.bf16.vlgmr.msra.gmra.mxu0 %v2269_v4  ;;  %v2368_v3 = vld [vmem:[%s3543_s1 + $0x3d0] ss:$8 sps:$4 sm:$0xff]   ;;  %v2373_v4 = vld [vmem:[%s3543_s1 + $0x2c4] ss:$8 sps:$4 sm:$0xff]  }
  0x43   :  { %1485 = vmatmul.mubr.bf16.vlgmr.msra.gmra.mxu1 %v2272_v5  ;;  %1566 = vmatpush1.bf16.msra.mxu0 %v2275_v6  ;;  %v2376_v5 = vld [vmem:[%s3543_s1 + $0x3c4] ss:$8 sps:$4 sm:$0xff]   ;;  %v2377_v6 = vld [vmem:[%s3544_s0 + $0x1b4] ss:$36 sps:$4 sm:$0xff]  }
  0x44   :  { %1679 = vmatpush1.bf16.msra.mxu1 %v2278_v7  ;;  %1567 = vmatprep.subr.bf16.mxu0 %v2283_v8  ;;  %v2379_v7 = vld [vmem:[%s3544_s0 + $0x1bc] ss:$36 sps:$4 sm:$0xff]  }
  0x45   :  { %1680 = vmatprep.subr.bf16.mxu1 %v2286_v9  ;;  %1381 = vmatprep.mubr.bf16.mxu0 %v2287_v10  ;;  %v2371_v8 = vld [vmem:[%s3543_s1 + $0x2c0] ss:$8 sps:$4 sm:$0xff]   ;;  %v2385_v10 = vld [vmem:[%s3543_s1 + $0x2b4] ss:$8 sps:$4 sm:$0xff]  }
  0x46   :  { %1494 = vmatprep.mubr.bf16.mxu1 %v2289_v11  ;;  %v2374_v9 = vld [vmem:[%s3543_s1 + $0x3c0] ss:$8 sps:$4 sm:$0xff]   ;;  %v2388_v11 = vld [vmem:[%s3543_s1 + $0x3b4] ss:$8 sps:$4 sm:$0xff]  }
  0x47   :  { %1568 = vmatpush1.bf16.msra.mxu0 %v2281_v12  ;;  %v2381_v12 = vld [vmem:[%s3544_s0 + $0x1b0] ss:$36 sps:$4 sm:$0xff]  }
  0x48   :  { %1681 = vmatpush1.bf16.msra.mxu1 %v2284_v13  ;;  %1569 = vmatprep.subr.bf16.mxu0 %v2295_v14  ;;  %v2382_v13 = vld [vmem:[%s3544_s0 + $0x1b8] ss:$36 sps:$4 sm:$0xff]  }
  0x49   :  { %1682 = vmatprep.subr.bf16.mxu1 %v2298_v15  ;;  %v2383_v14 = vld [vmem:[%s3543_s1 + $0x2b0] ss:$8 sps:$4 sm:$0xff]  }
  0x4a   :  { %1382 = vmatmul.mubr.bf16.gmra.mxu0 %v2291_v16  ;;  %v2386_v15 = vld [vmem:[%s3543_s1 + $0x3b0] ss:$8 sps:$4 sm:$0xff]   ;;  %v2391_v16 = vld [vmem:[%s3543_s1 + $0x2a4] ss:$8 sps:$4 sm:$0xff]  }
  0x4b   :  { %1495 = vmatmul.mubr.bf16.gmra.mxu1 %v2292_v17  ;;  %1570 = vmatpush1.bf16.msra.mxu0 %v2293_v18  ;;  %v2394_v17 = vld [vmem:[%s3543_s1 + $0x3a4] ss:$8 sps:$4 sm:$0xff]   ;;  %v2395_v18 = vld [vmem:[%s3544_s0 + $0x1fc] ss:$36 sps:$4 sm:$0xff]  }
  0x4c   :  { %1683 = vmatpush1.bf16.msra.mxu1 %v2296_v19  ;;  %1571 = vmatprep.subr.bf16.mxu0 %v2301_v20  ;;  %v2397_v19 = vld [vmem:[%s3544_s0 + $0x204] ss:$36 sps:$4 sm:$0xff]  }
  0x4d   :  { %1684 = vmatprep.subr.bf16.mxu1 %v2304_v21  ;;  %1391 = vmatprep.mubr.bf16.mxu0 %v2305_v22  ;;  %v2389_v20 = vld [vmem:[%s3543_s1 + $0x2a0] ss:$8 sps:$4 sm:$0xff]   ;;  %v2403_v22 = vld [vmem:[%s3543_s1 + $0x294] ss:$8 sps:$4 sm:$0xff]  }
  0x4e   :  { %1504 = vmatprep.mubr.bf16.mxu1 %v2307_v23  ;;  %v2392_v21 = vld [vmem:[%s3543_s1 + $0x3a0] ss:$8 sps:$4 sm:$0xff]   ;;  %v2406_v23 = vld [vmem:[%s3543_s1 + $0x394] ss:$8 sps:$4 sm:$0xff]  }
  0x4f   :  { %1572 = vmatpush1.bf16.msra.mxu0 %v2299_v24  ;;  %v2399_v24 = vld [vmem:[%s3544_s0 + $0x1f8] ss:$36 sps:$4 sm:$0xff]  }
  0x50   :  { %1685 = vmatpush1.bf16.msra.mxu1 %v2302_v25  ;;  %1573 = vmatprep.subr.bf16.mxu0 %v2313_v26  ;;  %v2400_v25 = vld [vmem:[%s3544_s0 + $0x200] ss:$36 sps:$4 sm:$0xff]   ;;  %v2401_v26 = vld [vmem:[%s3543_s1 + $0x290] ss:$8 sps:$4 sm:$0xff]  }
  0x51   :  { %1686 = vmatprep.subr.bf16.mxu1 %v2316_v27  ;;  %v2404_v27 = vld [vmem:[%s3543_s1 + $0x390] ss:$8 sps:$4 sm:$0xff]  }
  0x52   :  { %1392 = vmatmul.mubr.bf16.gmra.mxu0 %v2309_v28  ;;  %v2409_v28 = vld [vmem:[%s3543_s1 + $0x284] ss:$8 sps:$4 sm:$0xff]  }
  0x53   :  { %1505 = vmatmul.mubr.bf16.gmra.mxu1 %v2310_v29  ;;  %1574 = vmatpush1.bf16.msra.mxu0 %v2311_v30  ;;  %v2412_v29 = vld [vmem:[%s3543_s1 + $0x384] ss:$8 sps:$4 sm:$0xff]   ;;  %v2415_v30 = vld [vmem:[%s3544_s0 + $0x14] ss:$36 sps:$4 sm:$0xff]  }
  0x54   :  { %1687 = vmatpush1.bf16.msra.mxu1 %v2314_v31  ;;  %1575 = vmatprep.subr.bf16.mxu0 %v2319_v32  ;;  %v2418_v31 = vld [vmem:[%s3544_s0 + $0x1c] ss:$36 sps:$4 sm:$0xff]  }
  0x55   :  { %1688 = vmatprep.subr.bf16.mxu1 %v2322_v33  ;;  %1401 = vmatprep.mubr.bf16.mxu0 %v2323_v34  ;;  %v2407_v32 = vld [vmem:[%s3543_s1 + $0x280] ss:$8 sps:$4 sm:$0xff]   ;;  %v2421_v34 = vld [vmem:[%s3543_s1 + $0x474] ss:$8 sps:$4 sm:$0xff]  }
  0x56   :  { %1514 = vmatprep.mubr.bf16.mxu1 %v2325_v35  ;;  %v2410_v33 = vld [vmem:[%s3543_s1 + $0x380] ss:$8 sps:$4 sm:$0xff]   ;;  %v2413_v35 = vld [vmem:[%s3544_s0 + $0x10] ss:$36 sps:$4 sm:$0xff]  }
  0x57   :  { %1576 = vmatpush1.bf16.msra.mxu0 %v2317_v36  ;;  %v2416_v36 = vld [vmem:[%s3544_s0 + $0x18] ss:$36 sps:$4 sm:$0xff]  }
  0x58   :  { %1689 = vmatpush1.bf16.msra.mxu1 %v2320_v37  ;;  %1577 = vmatprep.subr.bf16.mxu0 %v2331_v38  ;;  %v2419_v37 = vld [vmem:[%s3543_s1 + $0x470] ss:$8 sps:$4 sm:$0xff]   ;;  %v2422_v38 = vld [vmem:[%s3544_s0 + $0x5c] ss:$36 sps:$4 sm:$0xff]  }
  0x59   :  { %1690 = vmatprep.subr.bf16.mxu1 %v2334_v39  ;;  %v2424_v39 = vld [vmem:[%s3544_s0 + $0x64] ss:$36 sps:$4 sm:$0xff]  }
  0x5a   :  { %1402 = vmatmul.mubr.bf16.gmra.mxu0 %v2327_v40  ;;  %v2430_v40 = vld [vmem:[%s3543_s1 + $0x464] ss:$8 sps:$4 sm:$0xff]  }
  0x5b   :  { %1515 = vmatmul.mubr.bf16.gmra.mxu1 %v2328_v41  ;;  %1578 = vmatpush1.bf16.msra.mxu0 %v2329_v42  ;;  %v2428_v41 = vld [vmem:[%s3543_s1 + $0x460] ss:$8 sps:$4 sm:$0xff]   ;;  %v2439_v42 = vld [vmem:[%s3543_s1 + $0x454] ss:$8 sps:$4 sm:$0xff]  }
  0x5c   :  { %1691 = vmatpush1.bf16.msra.mxu1 %v2332_v43  ;;  %1579 = vmatprep.subr.bf16.mxu0 %v2337_v44  ;;  %v2426_v43 = vld [vmem:[%s3544_s0 + $0x58] ss:$36 sps:$4 sm:$0xff]   ;;  %v2427_v44 = vld [vmem:[%s3544_s0 + $0x60] ss:$36 sps:$4 sm:$0xff]  }
  0x5d   :  { %1692 = vmatprep.subr.bf16.mxu1 %v2340_v45  ;;  %1411 = vmatprep.mubr.bf16.mxu0 %v2341_v46  ;;  %v2431_v45 = vld [vmem:[%s3544_s0 + $0xa4] ss:$36 sps:$4 sm:$0xff]   ;;  %v2433_v46 = vld [vmem:[%s3544_s0 + $0xac] ss:$36 sps:$4 sm:$0xff]  }
  0x5e   :  { %1524 = vmatprep.mubr.bf16.mxu1 %v2343_v47  ;;  %v2437_v47 = vld [vmem:[%s3543_s1 + $0x450] ss:$8 sps:$4 sm:$0xff]  }
  0x5f   :  { %1580 = vmatpush1.bf16.msra.mxu0 %v2335_v48  ;;  %v2448_v48 = vld [vmem:[%s3543_s1 + $0x444] ss:$8 sps:$4 sm:$0xff]  }
  0x60   :  { %1693 = vmatpush1.bf16.msra.mxu1 %v2338_v49  ;;  %1581 = vmatprep.subr.bf16.mxu0 %v2349_v50  ;;  %v2435_v49 = vld [vmem:[%s3544_s0 + $0xa0] ss:$36 sps:$4 sm:$0xff]   ;;  %v2436_v50 = vld [vmem:[%s3544_s0 + $0xa8] ss:$36 sps:$4 sm:$0xff]  }
  0x61   :  { %1694 = vmatprep.subr.bf16.mxu1 %v2352_v51  ;;  %v2446_v51 = vld [vmem:[%s3543_s1 + $0x440] ss:$8 sps:$4 sm:$0xff]  }
  0x62   :  { %1412 = vmatmul.mubr.bf16.gmra.mxu0 %v2345_v52  ;;  %v2457_v52 = vld [vmem:[%s3543_s1 + $0x434] ss:$8 sps:$4 sm:$0xff]  }
  0x63   :  { %1525 = vmatmul.mubr.bf16.gmra.mxu1 %v2346_v53  ;;  %1582 = vmatpush2.bf16.msra.mxu0 %v2347_v54  ;;  %v2440_v53 = vld [vmem:[%s3544_s0 + $0xec] ss:$36 sps:$4 sm:$0xff]   ;;  %v2442_v54 = vld [vmem:[%s3544_s0 + $0xf4] ss:$36 sps:$4 sm:$0xff]  }
  0x64   :  { %1695 = vmatpush2.bf16.msra.mxu1 %v2350_v55  ;;  %1583 = vmatprep.subr.bf16.mxu0 %v2355_v56  ;;  %v2455_v55 = vld [vmem:[%s3543_s1 + $0x430] ss:$8 sps:$4 sm:$0xff]   ;;  %v2466_v56 = vld [vmem:[%s3543_s1 + $0x424] ss:$8 sps:$4 sm:$0xff]  }
  0x65   :  { %1696 = vmatprep.subr.bf16.mxu1 %v2358_v57  ;;  %1421 = vmatprep.mubr.bf16.mxu0 %v2359_v58  ;;  %v2464_v57 = vld [vmem:[%s3543_s1 + $0x420] ss:$8 sps:$4 sm:$0xff]   ;;  %v2475_v58 = vld [vmem:[%s3543_s1 + $0x414] ss:$8 sps:$4 sm:$0xff]  }
  0x66   :  { %1534 = vmatprep.mubr.bf16.mxu1 %v2361_v59  ;;  %v2444_v59 = vld [vmem:[%s3544_s0 + $0xe8] ss:$36 sps:$4 sm:$0xff]  }
  0x67   :  { %1584 = vmatpush2.bf16.msra.mxu0 %v2353_v60  ;;  %v2445_v60 = vld [vmem:[%s3544_s0 + $0xf0] ss:$36 sps:$4 sm:$0xff]  }
  0x68   :  { %1697 = vmatpush2.bf16.msra.mxu1 %v2356_v61  ;;  %1585 = vmatprep.subr.bf16.mxu0 %v2367_v62  ;;  %v2449_v61 = vld [vmem:[%s3544_s0 + $0x134] ss:$36 sps:$4 sm:$0xff]   ;;  %v2451_v62 = vld [vmem:[%s3544_s0 + $0x13c] ss:$36 sps:$4 sm:$0xff]  }
  0x69   :  { %1698 = vmatprep.subr.bf16.mxu1 %v2370_v63  ;;  %v2473_v63 = vld [vmem:[%s3543_s1 + $0x410] ss:$8 sps:$4 sm:$0xff]  }
  0x6a   :  { %1422 = vmatmul.mubr.bf16.gmra.mxu0 %v2363_v0  ;;  %v2484_v0 = vld [vmem:[%s3543_s1 + $0x404] ss:$8 sps:$4 sm:$0xff]  }
  0x6b   :  { %1535 = vmatmul.mubr.bf16.gmra.mxu1 %v2364_v1  ;;  %1586 = vmatpush2.bf16.msra.mxu0 %v2365_v2  ;;  %v2482_v1 = vld [vmem:[%s3543_s1 + $0x400] ss:$8 sps:$4 sm:$0xff]   ;;  %v2453_v2 = vld [vmem:[%s3544_s0 + $0x130] ss:$36 sps:$4 sm:$0xff]  }
  0x6c   :  { %1699 = vmatpush2.bf16.msra.mxu1 %v2368_v3  ;;  %1587 = vmatprep.subr.bf16.mxu0 %v2373_v4  ;;  %v2454_v3 = vld [vmem:[%s3544_s0 + $0x138] ss:$36 sps:$4 sm:$0xff]  }
  0x6d   :  { %1700 = vmatprep.subr.bf16.mxu1 %v2376_v5  ;;  %1431 = vmatprep.mubr.bf16.mxu0 %v2377_v6  ;;  %v2458_v4 = vld [vmem:[%s3544_s0 + $0x17c] ss:$36 sps:$4 sm:$0xff]   ;;  %v2460_v5 = vld [vmem:[%s3544_s0 + $0x184] ss:$36 sps:$4 sm:$0xff]  }
  0x6e   :  { %1544 = vmatprep.mubr.bf16.mxu1 %v2379_v7  ;;  %v2462_v6 = vld [vmem:[%s3544_s0 + $0x178] ss:$36 sps:$4 sm:$0xff]   ;;  %v2463_v7 = vld [vmem:[%s3544_s0 + $0x180] ss:$36 sps:$4 sm:$0xff]  }
  0x6f   :  { %1588 = vmatpush2.bf16.msra.mxu0 %v2371_v8  ;;  %v2467_v8 = vld [vmem:[%s3544_s0 + $0x1c4] ss:$36 sps:$4 sm:$0xff]  }
  0x70   :  { %1701 = vmatpush2.bf16.msra.mxu1 %v2374_v9  ;;  %1589 = vmatprep.subr.bf16.mxu0 %v2385_v10  ;;  %v2469_v9 = vld [vmem:[%s3544_s0 + $0x1cc] ss:$36 sps:$4 sm:$0xff]   ;;  %v2471_v10 = vld [vmem:[%s3544_s0 + $0x1c0] ss:$36 sps:$4 sm:$0xff]  }
  0x71   :  { %1702 = vmatprep.subr.bf16.mxu1 %v2388_v11  ;;  %v2472_v11 = vld [vmem:[%s3544_s0 + $0x1c8] ss:$36 sps:$4 sm:$0xff]  }
  0x72   :  { %1432 = vmatmul.mubr.bf16.gmra.mxu0 %v2381_v12  ;;  %v2476_v12 = vld [vmem:[%s3544_s0 + $0x20c] ss:$36 sps:$4 sm:$0xff]  }
  0x73   :  { %1545 = vmatmul.mubr.bf16.gmra.mxu1 %v2382_v13  ;;  %1590 = vmatpush2.bf16.msra.mxu0 %v2383_v14  ;;  %v2478_v13 = vld [vmem:[%s3544_s0 + $0x214] ss:$36 sps:$4 sm:$0xff]   ;;  %v2480_v14 = vld [vmem:[%s3544_s0 + $0x208] ss:$36 sps:$4 sm:$0xff]  }
  0x74   :  { %1703 = vmatpush2.bf16.msra.mxu1 %v2386_v15  ;;  %1591 = vmatprep.subr.bf16.mxu0 %v2391_v16  ;;  %v2481_v15 = vld [vmem:[%s3544_s0 + $0x210] ss:$36 sps:$4 sm:$0xff]   ;;  %v2493_v16 = vmov 0  }
  0x75   :  { %1704 = vmatprep.subr.bf16.mxu1 %v2394_v17  ;;  %1441 = vmatprep.mubr.bf16.mxu0 %v2395_v18  ;;  %v2485_v17 = vld [vmem:[%s3544_s0 + $0x20] ss:$36 sps:$4 sm:$0xff]  }
  0x76   :  { %1554 = vmatprep.mubr.bf16.mxu1 %v2397_v19  ;;  %v2486_v18 = vld [vmem:[%s3544_s0 + $0x140] ss:$36 sps:$4 sm:$0xff]   ;;  %v2487_v19 = vld [vmem:[%s3544_s0 + $0x68] ss:$36 sps:$4 sm:$0xff]  }
  0x77   :  { %1592 = vmatpush2.bf16.msra.mxu0 %v2389_v20  ;;  %v2488_v20 = vld [vmem:[%s3544_s0 + $0x188] ss:$36 sps:$4 sm:$0xff]  }
  0x78   :  { %1705 = vmatpush2.bf16.msra.mxu1 %v2392_v21  ;;  %1593 = vmatprep.subr.bf16.mxu0 %v2403_v22  ;;  %v2489_v21 = vld [vmem:[%s3544_s0 + $0xb0] ss:$36 sps:$4 sm:$0xff]  }
  0x79   :  { %1706 = vmatprep.subr.bf16.mxu1 %v2406_v23  ;;  %v2490_v22 = vld [vmem:[%s3544_s0 + $0x1d0] ss:$36 sps:$4 sm:$0xff]   ;;  %v2491_v23 = vld [vmem:[%s3544_s0 + $0xf8] ss:$36 sps:$4 sm:$0xff]  }
  0x7a   :  { %1442 = vmatmul.mubr.bf16.gmra.mxu0 %v2399_v24  ;;  %v2492_v24 = vld [vmem:[%s3544_s0 + $0x218] ss:$36 sps:$4 sm:$0xff]  }
  0x7b   :  { %1555 = vmatmul.mubr.bf16.gmra.mxu1 %v2400_v25  ;;  %1594 = vmatpush2.bf16.msra.mxu0 %v2401_v26  ;;  %v241_v25 = vlaneseq }
  0x7c   :  { %1707 = vmatpush2.bf16.msra.mxu1 %v2404_v27  ;;  %1595 = vmatprep.subr.bf16.mxu0 %v2409_v28  ;;  %v239_v28 = vld [vmem:[%s3545_s2] sm:$0x3] }
  0x7d   :  { %1708 = vmatprep.subr.bf16.mxu1 %v2412_v29  ;;  %1597 = vmatprep.mubr.bf16.mxu0 %v2415_v30  ;;  %v242_v26 = vshrl.u32 %v241_v25, 7 }
  0x7e   :  { %1710 = vmatprep.mubr.bf16.mxu1 %v2418_v31 }
  0x7f   :  { %1596 = vmatpush2.bf16.msra.mxu0 %v2407_v32  ;;  %v243_v27 = vsub.s32 0, %v242_v26  ;;  %v247_v29 = vsub.s32 1, %v242_v26 }
  0x80   :  { %1709 = vmatpush2.bf16.msra.mxu1 %v2410_v33  ;;  %1791 = vmatprep.subr.bf16.mxu0 %v2421_v34 }
  0x81   :  { %2156 = vmatprep.subr.bf16.mxu1 %v2421_v34  ;;  %v3165_v30 = vrot.slane %v239_v28, %v243_v27  ;;  %v3167_v31 = vrot.slane %v239_v28, %v247_v29 }
  0x82   :  { %1598 = vmatmul.mubr.bf16.vlgmr.msra.gmra.mxu0 %v2413_v35 }
  0x83   :  { %1711 = vmatmul.mubr.bf16.vlgmr.msra.gmra.mxu1 %v2416_v36  ;;  %1792 = vmatpush1.bf16.msra.mxu0 %v2419_v37 }
  0x84   :  { %2164 = vmatpush1.bf16.msra.mxu1 %v2419_v37  ;;  %1607 = vmatprep.mubr.bf16.mxu0 %v2422_v38 }
  0x85   :  { %1720 = vmatprep.mubr.bf16.mxu1 %v2424_v39  ;;  %1793 = vmatprep.subr.bf16.mxu0 %v2430_v40 }
  0x86   :  { %2157 = vmatprep.subr.bf16.mxu1 %v2430_v40 }
  0x87   :  { %1794 = vmatpush1.bf16.msra.mxu0 %v2428_v41 }
  0x88   :  { %2165 = vmatpush1.bf16.msra.mxu1 %v2428_v41  ;;  %1795 = vmatprep.subr.bf16.mxu0 %v2439_v42 }
  0x89   :  { %2158 = vmatprep.subr.bf16.mxu1 %v2439_v42 }
  0x8a   :  { %1608 = vmatmul.mubr.bf16.gmra.mxu0 %v2426_v43 }
  0x8b   :  { %1721 = vmatmul.mubr.bf16.gmra.mxu1 %v2427_v44  ;;  %1617 = vmatprep.mubr.bf16.mxu0 %v2431_v45 }
  0x8c   :  { %1730 = vmatprep.mubr.bf16.mxu1 %v2433_v46  ;;  %1796 = vmatpush1.bf16.msra.mxu0 %v2437_v47 }
  0x8d   :  { %2166 = vmatpush1.bf16.msra.mxu1 %v2437_v47  ;;  %1797 = vmatprep.subr.bf16.mxu0 %v2448_v48 }
  0x8e   :  { %2159 = vmatprep.subr.bf16.mxu1 %v2448_v48 }
  0x90   :  { %1798 = vmatpush1.bf16.msra.mxu0 %v2446_v51 }
  0x91   :  { %2167 = vmatpush1.bf16.msra.mxu1 %v2446_v51  ;;  %1799 = vmatprep.subr.bf16.mxu0 %v2457_v52 }
  0x92   :  { %2160 = vmatprep.subr.bf16.mxu1 %v2457_v52  ;;  %1618 = vmatmul.mubr.bf16.gmra.mxu0 %v2435_v49 }
  0x93   :  { %1731 = vmatmul.mubr.bf16.gmra.mxu1 %v2436_v50  ;;  %1627 = vmatprep.mubr.bf16.mxu0 %v2440_v53 }
  0x94   :  { %1740 = vmatprep.mubr.bf16.mxu1 %v2442_v54  ;;  %1800 = vmatpush1.bf16.msra.mxu0 %v2455_v55 }
  0x95   :  { %2168 = vmatpush1.bf16.msra.mxu1 %v2455_v55  ;;  %1801 = vmatprep.subr.bf16.mxu0 %v2466_v56 }
  0x96   :  { %2161 = vmatprep.subr.bf16.mxu1 %v2466_v56 }
  0x98   :  { %1802 = vmatpush1.bf16.msra.mxu0 %v2464_v57 }
  0x99   :  { %2169 = vmatpush1.bf16.msra.mxu1 %v2464_v57  ;;  %1803 = vmatprep.subr.bf16.mxu0 %v2475_v58 }
  0x9a   :  { %2162 = vmatprep.subr.bf16.mxu1 %v2475_v58  ;;  %1628 = vmatmul.mubr.bf16.gmra.mxu0 %v2444_v59 }
  0x9b   :  { %1741 = vmatmul.mubr.bf16.gmra.mxu1 %v2445_v60  ;;  %1637 = vmatprep.mubr.bf16.mxu0 %v2449_v61 }
  0x9c   :  { %1750 = vmatprep.mubr.bf16.mxu1 %v2451_v62  ;;  %1804 = vmatpush1.bf16.msra.mxu0 %v2473_v63 }
  0x9d   :  { %2170 = vmatpush1.bf16.msra.mxu1 %v2473_v63  ;;  %1805 = vmatprep.subr.bf16.mxu0 %v2484_v0 }
  0x9e   :  { %2163 = vmatprep.subr.bf16.mxu1 %v2484_v0 }
  0xa0   :  { %1806 = vmatpush1.bf16.msra.mxu0 %v2482_v1 }
  0xa1   :  { %2171 = vmatpush1.bf16.msra.mxu1 %v2482_v1 }
  0xa2   :  { %1638 = vmatmul.mubr.bf16.gmra.mxu0 %v2453_v2 }
  0xa3   :  { %1751 = vmatmul.mubr.bf16.gmra.mxu1 %v2454_v3  ;;  %1647 = vmatprep.mubr.bf16.mxu0 %v2458_v4 }
  0xa4   :  { %1760 = vmatprep.mubr.bf16.mxu1 %v2460_v5 }
  0xaa   :  { %1648 = vmatmul.mubr.bf16.gmra.mxu0 %v2462_v6 }
  0xab   :  { %1761 = vmatmul.mubr.bf16.gmra.mxu1 %v2463_v7  ;;  %1657 = vmatprep.mubr.bf16.mxu0 %v2467_v8 }
  0xac   :  { %1770 = vmatprep.mubr.bf16.mxu1 %v2469_v9 }
  0xb2   :  { %1658 = vmatmul.mubr.bf16.gmra.mxu0 %v2471_v10 }
  0xb3   :  { %1771 = vmatmul.mubr.bf16.gmra.mxu1 %v2472_v11  ;;  %1667 = vmatprep.mubr.bf16.mxu0 %v2476_v12 }
  0xb4   :  { %1780 = vmatprep.mubr.bf16.mxu1 %v2478_v13 }
  0xba   :  { %1668 = vmatmul.mubr.bf16.gmra.mxu0 %v2480_v14 }
  0xbb   :  { %1781 = vmatmul.mubr.bf16.gmra.mxu1 %v2481_v15  ;;  %1823 = vmatprep.mubr.bf16.mxu0 %v2493_v16 }
  0xbc   :  { %1863 = vmatprep.mubr.bf16.mxu1 %v2493_v16 }
  0xc2   :  { %1824 = vmatmul.mubr.bf16.vlgmr.msra.gmra.mxu0 %v2485_v17 }
  0xc3   :  { %1864 = vmatmul.mubr.bf16.vlgmr.msra.gmra.mxu1 %v2486_v18  ;;  %1833 = vmatprep.mubr.bf16.mxu0 %v2493_v16 }
  0xc4   :  { %1873 = vmatprep.mubr.bf16.mxu1 %v2493_v16 }
  0xca   :  { %1834 = vmatmul.mubr.bf16.gmra.mxu0 %v2487_v19 }
  0xcb   :  { %1874 = vmatmul.mubr.bf16.gmra.mxu1 %v2488_v20  ;;  %1843 = vmatprep.mubr.bf16.mxu0 %v2493_v16 }
  0xcc   :  { %1883 = vmatprep.mubr.bf16.mxu1 %v2493_v16 }
  0xd2   :  { %1844 = vmatmul.mubr.bf16.gmra.mxu0 %v2489_v21 }
  0xd3   :  { %1884 = vmatmul.mubr.bf16.gmra.mxu1 %v2490_v22  ;;  %1853 = vmatprep.mubr.bf16.mxu0 %v2493_v16 }
  0xd4   :  { %1893 = vmatprep.mubr.bf16.mxu1 %v2493_v16 }
  0xda   :  { %1854 = vmatmul.mubr.bf16.gmra.mxu0 %v2491_v23 }
  0xdb   :  { %1894 = vmatmul.mubr.bf16.gmra.mxu1 %v2492_v24 }
 0x102   :  { %v1373_v32 = vpop.f32.mrf.mxu0 }
 0x103   :  { %v1486_v33 = vpop.f32.mrf.mxu1  ;;  %v1374_v34 = vadd.f32 %v1373_v32, %v3165_v30 }
 0x104   :  { %v1375_v35 = vpop.f32.mrf.mxu0 }
 0x105   :  { %v1488_v36 = vpop.f32.mrf.mxu1  ;;  %v3170_v37 = vadd.f32 %v1486_v33, %v1374_v34  ;;  %v1376_v38 = vadd.f32 %v1375_v35, %v3167_v31 }
 0x106   :  { %v1377_v39 = vpop.f32.mrf.mxu0 }
 0x107   :  { %v1490_v40 = vpop.f32.mrf.mxu1  ;;  %v3173_v41 = vadd.f32 %v1488_v36, %v1376_v38  ;;  %v1378_v42 = vadd.f32 %v1377_v39, %v3165_v30 }
 0x108   :  { %v1379_v43 = vpop.f32.mrf.mxu0 }
 0x109   :  { %v1492_v44 = vpop.f32.mrf.mxu1  ;;  %v3176_v45 = vadd.f32 %v1490_v40, %v1378_v42  ;;  %v1380_v46 = vadd.f32 %v1379_v43, %v3167_v31 }
 0x10a   :  { %v1383_v47 = vpop.f32.mrf.mxu0 }
 0x10b   :  { %v1496_v48 = vpop.f32.mrf.mxu1  ;;  %v3179_v49 = vadd.f32 %v1492_v44, %v1380_v46  ;;  %v1384_v50 = vadd.f32 %v1383_v47, %v3165_v30 }
 0x10c   :  { %v1385_v51 = vpop.f32.mrf.mxu0 }
 0x10d   :  { %v1498_v52 = vpop.f32.mrf.mxu1  ;;  %v3182_v53 = vadd.f32 %v1496_v48, %v1384_v50  ;;  %v1386_v54 = vadd.f32 %v1385_v51, %v3167_v31 }
 0x10e   :  { %v1387_v55 = vpop.f32.mrf.mxu0 }
 0x10f   :  { %v1500_v56 = vpop.f32.mrf.mxu1  ;;  %v3185_v57 = vadd.f32 %v1498_v52, %v1386_v54  ;;  %v1388_v58 = vadd.f32 %v1387_v55, %v3165_v30 }
 0x110   :  { %v1389_v59 = vpop.f32.mrf.mxu0 }
 0x111   :  { %v1502_v60 = vpop.f32.mrf.mxu1  ;;  %v3188_v61 = vadd.f32 %v1500_v56, %v1388_v58  ;;  %v1390_v62 = vadd.f32 %v1389_v59, %v3167_v31 }
 0x112   :  { %v1393_v63 = vpop.f32.mrf.mxu0 }
 0x113   :  { %v1506_v0 = vpop.f32.mrf.mxu1  ;;  %v3191_v1 = vadd.f32 %v1502_v60, %v1390_v62  ;;  %v1394_v2 = vadd.f32 %v1393_v63, %v3165_v30 }
 0x114   :  { %v1395_v3 = vpop.f32.mrf.mxu0 }
 0x115   :  { %v1508_v4 = vpop.f32.mrf.mxu1  ;;  %v3194_v5 = vadd.f32 %v1506_v0, %v1394_v2  ;;  %v1396_v6 = vadd.f32 %v1395_v3, %v3167_v31 }
 0x116   :  { %v1397_v7 = vpop.f32.mrf.mxu0 }
 0x117   :  { %v1510_v8 = vpop.f32.mrf.mxu1  ;;  %v3197_v9 = vadd.f32 %v1508_v4, %v1396_v6  ;;  %v1398_v10 = vadd.f32 %v1397_v7, %v3165_v30 }
 0x118   :  { %v1399_v11 = vpop.f32.mrf.mxu0 }
 0x119   :  { %v1512_v12 = vpop.f32.mrf.mxu1  ;;  %v3200_v13 = vadd.f32 %v1510_v8, %v1398_v10  ;;  %v1400_v14 = vadd.f32 %v1399_v11, %v3167_v31 }
 0x11a   :  { %v1403_v15 = vpop.f32.mrf.mxu0 }
 0x11b   :  { %3547 = vst [vmem:[#allocation2_spill] sm:$0xff] %v3200_v13  ;;  %v1516_v16 = vpop.f32.mrf.mxu1  ;;  %v3203_v17 = vadd.f32 %v1512_v12, %v1400_v14  ;;  %v1404_v18 = vadd.f32 %v1403_v15, %v3165_v30 }
 0x11c   :  { %v1405_v19 = vpop.f32.mrf.mxu0 }
 0x11d   :  { %3548 = vst [vmem:[#allocation3_spill] sm:$0xff] %v3203_v17  ;;  %v1518_v20 = vpop.f32.mrf.mxu1  ;;  %v3206_v21 = vadd.f32 %v1516_v16, %v1404_v18  ;;  %v1406_v22 = vadd.f32 %v1405_v19, %v3167_v31 }
 0x11e   :  { %v1407_v23 = vpop.f32.mrf.mxu0 }
 0x11f   :  { %3549 = vst [vmem:[#allocation4_spill] sm:$0xff] %v3206_v21  ;;  %v1520_v24 = vpop.f32.mrf.mxu1  ;;  %v3209_v25 = vadd.f32 %v1518_v20, %v1406_v22  ;;  %v1408_v26 = vadd.f32 %v1407_v23, %v3165_v30 }
 0x120   :  { %v1409_v27 = vpop.f32.mrf.mxu0 }
 0x121   :  { %3550 = vst [vmem:[#allocation5_spill] sm:$0xff] %v3209_v25  ;;  %v1522_v28 = vpop.f32.mrf.mxu1  ;;  %v3212_v29 = vadd.f32 %v1520_v24, %v1408_v26  ;;  %v1410_v32 = vadd.f32 %v1409_v27, %v3167_v31 }
 0x122   :  { %v1413_v33 = vpop.f32.mrf.mxu0 }
 0x123   :  { %3551 = vst [vmem:[#allocation6_spill] sm:$0xff] %v3212_v29  ;;  %v1526_v34 = vpop.f32.mrf.mxu1  ;;  %v3215_v35 = vadd.f32 %v1522_v28, %v1410_v32  ;;  %v1414_v36 = vadd.f32 %v1413_v33, %v3165_v30 }
 0x124   :  { %v1415_v38 = vpop.f32.mrf.mxu0 }
 0x125   :  { %3552 = vst [vmem:[#allocation7_spill] sm:$0xff] %v3215_v35  ;;  %v1528_v39 = vpop.f32.mrf.mxu1  ;;  %v3218_v40 = vadd.f32 %v1526_v34, %v1414_v36  ;;  %v1416_v42 = vadd.f32 %v1415_v38, %v3167_v31 }
 0x126   :  { %v1417_v43 = vpop.f32.mrf.mxu0 }
 0x127   :  { %v1530_v44 = vpop.f32.mrf.mxu1  ;;  %v3221_v46 = vadd.f32 %v1528_v39, %v1416_v42  ;;  %v1418_v47 = vadd.f32 %v1417_v43, %v3165_v30 }
 0x128   :  { %v1419_v48 = vpop.f32.mrf.mxu0 }
 0x129   :  { %v1532_v50 = vpop.f32.mrf.mxu1  ;;  %v3224_v51 = vadd.f32 %v1530_v44, %v1418_v47  ;;  %v1420_v52 = vadd.f32 %v1419_v48, %v3167_v31 }
 0x12a   :  { %v1423_v54 = vpop.f32.mrf.mxu0 }
 0x12b   :  { %v1536_v55 = vpop.f32.mrf.mxu1  ;;  %v3227_v56 = vadd.f32 %v1532_v50, %v1420_v52  ;;  %v1424_v58 = vadd.f32 %v1423_v54, %v3165_v30 }
 0x12c   :  { %v1425_v59 = vpop.f32.mrf.mxu0 }
 0x12d   :  { %v1538_v60 = vpop.f32.mrf.mxu1  ;;  %v3230_v62 = vadd.f32 %v1536_v55, %v1424_v58  ;;  %v1426_v63 = vadd.f32 %v1425_v59, %v3167_v31 }
 0x12e   :  { %v1427_v0 = vpop.f32.mrf.mxu0 }
 0x12f   :  { %v1540_v2 = vpop.f32.mrf.mxu1  ;;  %v3233_v3 = vadd.f32 %v1538_v60, %v1426_v63  ;;  %v1428_v4 = vadd.f32 %v1427_v0, %v3165_v30 }
 0x130   :  { %v1429_v6 = vpop.f32.mrf.mxu0 }
 0x131   :  { %v1542_v7 = vpop.f32.mrf.mxu1  ;;  %v3236_v8 = vadd.f32 %v1540_v2, %v1428_v4  ;;  %v1430_v10 = vadd.f32 %v1429_v6, %v3167_v31 }
 0x132   :  { %v1433_v11 = vpop.f32.mrf.mxu0 }
 0x133   :  { %v1546_v12 = vpop.f32.mrf.mxu1  ;;  %v3239_v14 = vadd.f32 %v1542_v7, %v1430_v10  ;;  %v1434_v15 = vadd.f32 %v1433_v11, %v3165_v30 }
 0x134   :  { %v1435_v16 = vpop.f32.mrf.mxu0 }
 0x135   :  { %v1548_v18 = vpop.f32.mrf.mxu1  ;;  %v3242_v19 = vadd.f32 %v1546_v12, %v1434_v15  ;;  %v1436_v20 = vadd.f32 %v1435_v16, %v3167_v31 }
 0x136   :  { %v1437_v22 = vpop.f32.mrf.mxu0 }
 0x137   :  { %v1550_v23 = vpop.f32.mrf.mxu1  ;;  %v3245_v24 = vadd.f32 %v1548_v18, %v1436_v20  ;;  %v1438_v26 = vadd.f32 %v1437_v22, %v3165_v30 }
 0x138   :  { %v1439_v27 = vpop.f32.mrf.mxu0 }
 0x139   :  { %3553 = vst [vmem:[#allocation8_spill] sm:$0xff] %v3245_v24  ;;  %v1552_v28 = vpop.f32.mrf.mxu1  ;;  %v3248_v32 = vadd.f32 %v1550_v23, %v1438_v26  ;;  %v1440_v33 = vadd.f32 %v1439_v27, %v3167_v31 }
 0x13a   :  { %v1443_v34 = vpop.f32.mrf.mxu0 }
 0x13b   :  { %3554 = vst [vmem:[#allocation9_spill] sm:$0xff] %v3248_v32  ;;  %v1556_v36 = vpop.f32.mrf.mxu1  ;;  %v3251_v38 = vadd.f32 %v1552_v28, %v1440_v33  ;;  %v1444_v39 = vadd.f32 %v1443_v34, %v3165_v30 }
 0x13c   :  { %v1445_v42 = vpop.f32.mrf.mxu0 }
 0x13d   :  { %3555 = vst [vmem:[#allocation10_spill] sm:$0xff] %v3251_v38  ;;  %v1558_v43 = vpop.f32.mrf.mxu1  ;;  %v3254_v44 = vadd.f32 %v1556_v36, %v1444_v39  ;;  %v1446_v47 = vadd.f32 %v1445_v42, %v3167_v31 }
 0x13e   :  { %v1447_v48 = vpop.f32.mrf.mxu0 }
 0x13f   :  { %3556 = vst [vmem:[#allocation11_spill] sm:$0xff] %v3254_v44  ;;  %v1560_v50 = vpop.f32.mrf.mxu1  ;;  %v3257_v52 = vadd.f32 %v1558_v43, %v1446_v47  ;;  %v1448_v54 = vadd.f32 %v1447_v48, %v3165_v30 }
 0x140   :  { %v1449_v55 = vpop.f32.mrf.mxu0 }
 0x141   :  { %3557 = vst [vmem:[#allocation12_spill] sm:$0xff] %v3257_v52  ;;  %v1562_v58 = vpop.f32.mrf.mxu1  ;;  %v3260_v59 = vadd.f32 %v1560_v50, %v1448_v54  ;;  %v1450_v60 = vadd.f32 %v1449_v55, %v3167_v31 }
 0x142   :  { %v1599_v63 = vpop.f32.mrf.mxu0 }
 0x143   :  { %3558 = vst [vmem:[#allocation13_spill] sm:$0xff] %v3260_v59  ;;  %v3263_v0 = vpop.f32.mrf.mxu1  ;;  %v3265_v2 = vadd.f32 %v1562_v58, %v1450_v60 }
 0x144   :  { %v1601_v4 = vpop.f32.mrf.mxu0 }
 0x145   :  { %3559 = vst [vmem:[#allocation14_spill] sm:$0xff] %v3265_v2  ;;  %v3267_v6 = vpop.f32.mrf.mxu1 }
 0x146   :  { %v1603_v7 = vpop.f32.mrf.mxu0 }
 0x147   :  { %v3269_v10 = vpop.f32.mrf.mxu1 }
 0x148   :  { %v3271_v11 = vpop.f32.mrf.mxu0 }
 0x149   :  { %v3273_v30 = vpop.f32.mrf.mxu1 }
 0x14a   :  { %v3275_v12 = vpop.f32.mrf.mxu0 }
 0x14b   :  { %v3277_v15 = vpop.f32.mrf.mxu1 }
 0x14c   :  { %v3279_v31 = vpop.f32.mrf.mxu0 }
 0x14d   :  { %v3281_v16 = vpop.f32.mrf.mxu1 }
 0x14e   :  { %v3283_v18 = vpop.f32.mrf.mxu0 }
 0x14f   :  { %v3285_v20 = vpop.f32.mrf.mxu1 }
 0x150   :  { %v3287_v22 = vpop.f32.mrf.mxu0 }
 0x151   :  { %v3289_v23 = vpop.f32.mrf.mxu1 }
 0x152   :  { %v3291_v26 = vpop.f32.mrf.mxu0 }
 0x153   :  { %v3293_v27 = vpop.f32.mrf.mxu1 }
 0x154   :  { %3560 = vst [vmem:[#allocation15_spill] sm:$0xff] %v3293_v27  ;;  %v3295_v28 = vpop.f32.mrf.mxu0 }
 0x155   :  { %v3297_v33 = vpop.f32.mrf.mxu1 }
 0x156   :  { %3561 = vst [vmem:[#allocation16_spill] sm:$0xff] %v3297_v33  ;;  %v3299_v34 = vpop.f32.mrf.mxu0 }
 0x157   :  { %3562 = vst [vmem:[#allocation17_spill] sm:$0xff] %v3299_v34  ;;  %v3301_v36 = vpop.f32.mrf.mxu1 }
 0x158   :  { %3563 = vst [vmem:[#allocation18_spill] sm:$0xff] %v3301_v36  ;;  %v3303_v39 = vpop.f32.mrf.mxu0 }
 0x159   :  { %3564 = vst [vmem:[#allocation19_spill] sm:$0xff] %v3303_v39  ;;  %v3305_v42 = vpop.f32.mrf.mxu1 }
 0x15a   :  { %3565 = vst [vmem:[#allocation20_spill] sm:$0xff] %v3305_v42  ;;  %v3307_v43 = vpop.f32.mrf.mxu0 }
 0x15b   :  { %3566 = vst [vmem:[#allocation21_spill] sm:$0xff] %v3307_v43  ;;  %v3309_v47 = vpop.f32.mrf.mxu1 }
 0x15c   :  { %3567 = vst [vmem:[#allocation22_spill] sm:$0xff] %v3309_v47  ;;  %v3311_v48 = vpop.f32.mrf.mxu0 }
 0x15d   :  { %3568 = vst [vmem:[#allocation23_spill] sm:$0xff] %v3311_v48  ;;  %v3313_v50 = vpop.f32.mrf.mxu1 }
 0x15e   :  { %3569 = vst [vmem:[#allocation24_spill] sm:$0xff] %v3313_v50  ;;  %v3315_v54 = vpop.f32.mrf.mxu0 }
 0x15f   :  { %3570 = vst [vmem:[#allocation25_spill] sm:$0xff] %v3315_v54  ;;  %v3317_v55 = vpop.f32.mrf.mxu1 }
 0x160   :  { %3571 = vst [vmem:[#allocation26_spill] sm:$0xff] %v3317_v55  ;;  %v3319_v58 = vpop.f32.mrf.mxu0 }
 0x161   :  { %3572 = vst [vmem:[#allocation27_spill] sm:$0xff] %v3319_v58  ;;  %v3321_v60 = vpop.f32.mrf.mxu1 }
 0x162   :  { %3573 = vst [vmem:[#allocation28_spill] sm:$0xff] %v3321_v60  ;;  %v1639_v2 = vpop.f32.mrf.mxu0 }
 0x163   :  { %v1752_v35 = vpop.f32.mrf.mxu1 }
 0x164   :  { %v1641_v59 = vpop.f32.mrf.mxu0 }
 0x165   :  { %v1754_v29 = vpop.f32.mrf.mxu1 }
 0x166   :  { %v1643_v52 = vpop.f32.mrf.mxu0 }
 0x167   :  { %v1756_v25 = vpop.f32.mrf.mxu1 }
 0x168   :  { %v1645_v42 = vpop.f32.mrf.mxu0 }
 0x169   :  { %v1758_v47 = vpop.f32.mrf.mxu1 }
 0x16a   :  { %v1649_v44 = vpop.f32.mrf.mxu0 }
 0x16b   :  { %v3323_v48 = vpop.f32.mrf.mxu1 }
 0x16c   :  { %v1651_v50 = vpop.f32.mrf.mxu0 }
 0x16d   :  { %v3325_v43 = vpop.f32.mrf.mxu1 }
 0x16e   :  { %v1653_v54 = vpop.f32.mrf.mxu0 }
 0x16f   :  { %v3327_v55 = vpop.f32.mrf.mxu1 }
 0x170   :  { %v3329_v58 = vpop.f32.mrf.mxu0 }
 0x171   :  { %v3331_v60 = vpop.f32.mrf.mxu1 }
 0x172   :  { %3574 = vst [vmem:[#allocation29_spill] sm:$0xff] %v3331_v60  ;;  %v3333_v21 = vpop.f32.mrf.mxu0 }
 0x173   :  { %v3335_v36 = vpop.f32.mrf.mxu1 }
 0x174   :  { %3575 = vst [vmem:[#allocation30_spill] sm:$0xff] %v3335_v36  ;;  %v3337_v38 = vpop.f32.mrf.mxu0  ;;  %v1600_v36 = vadd.f32 %v1599_v63, %v3170_v37  ;;  %v1644_v37 = vadd.f32 %v1643_v52, %v3224_v51 }
 0x175   :  { %3576 = vst [vmem:[#allocation31_spill] sm:$0xff] %v3337_v38  ;;  %v3339_v39 = vpop.f32.mrf.mxu1 }
 0x176   :  { %3577 = vst [vmem:[#allocation32_spill] sm:$0xff] %v3339_v39  ;;  %v3341_v17 = vpop.f32.mrf.mxu0  ;;  %v1640_v39 = vadd.f32 %v1639_v2, %v3218_v40  ;;  %v1757_v51 = vadd.f32 %v1756_v25, %v1644_v37 }
 0x177   :  { %3578 = vst [vmem:[#allocation33_spill] sm:$0xff] %v3341_v17  ;;  %v3343_v33 = vpop.f32.mrf.mxu1  ;;  %v1602_v17 = vadd.f32 %v1601_v4, %v3173_v41  ;;  %v1606_v41 = vadd.f32 %v3271_v11, %v3179_v49 }
 0x178   :  { %3579 = vst [vmem:[#allocation34_spill] sm:$0xff] %v3343_v33  ;;  %v3345_v32 = vpop.f32.mrf.mxu0 }
 0x179   :  { %3580 = vst [vmem:[#allocation35_spill] sm:$0xff] %v3345_v32  ;;  %v3347_v34 = vpop.f32.mrf.mxu1  ;;  %v1715_v40 = vadd.f32 %v3267_v6, %v1602_v17  ;;  %v1650_v17 = vadd.f32 %v1649_v44, %v3230_v62  ;;  %v1652_v62 = vadd.f32 %v1651_v50, %v3233_v3  ;;  %v1654_v3 = vadd.f32 %v1653_v54, %v3236_v8 }
 0x17a   :  { %3581 = vst [vmem:[#allocation36_spill] sm:$0xff] %v3347_v34  ;;  %v3349_v13 = vpop.f32.mrf.mxu0  ;;  %v1642_v34 = vadd.f32 %v1641_v59, %v3221_v46  ;;  %v1646_v46 = vadd.f32 %v1645_v42, %v3227_v56  ;;  %v1656_v8 = vadd.f32 %v3329_v58, %v3239_v14  ;;  %v1660_v14 = vadd.f32 %v3333_v21, %v3242_v19  ;;  %v3586_v58 = vld [vmem:[#allocation29_spill] sm:$0xff]  ;;  %v3587_v21 = vld [vmem:[#allocation8_spill] sm:$0xff] }
 0x17b   :  { %3582 = vst [vmem:[#allocation37_spill] sm:$0xff] %v3349_v13  ;;  %v3351_v27 = vpop.f32.mrf.mxu1  ;;  %v1604_v13 = vadd.f32 %v1603_v7, %v3176_v45 }
 0x17c   :  { %3583 = vst [vmem:[#allocation38_spill] sm:$0xff] %v3351_v27  ;;  %v3353_v24 = vpop.f32.mrf.mxu0  ;;  %v1755_v4 = vadd.f32 %v1754_v29, %v1642_v34  ;;  %v1759_v25 = vadd.f32 %v1758_v47, %v1646_v46  ;;  %v3588_v19 = vld [vmem:[#allocation31_spill] sm:$0xff] }
 0x17d   :  { %3584 = vst [vmem:[#allocation39_spill] sm:$0xff] %v3353_v24  ;;  %v3355_v60 = vpop.f32.mrf.mxu1  ;;  %v1753_v24 = vadd.f32 %v1752_v35, %v1640_v39  ;;  %v1717_v7 = vadd.f32 %v3269_v10, %v1604_v13  ;;  %v1719_v13 = vadd.f32 %v3273_v30, %v1606_v41  ;;  %v1763_v30 = vadd.f32 %v3323_v48, %v1650_v17  ;;  %v3589_v41 = vld [vmem:[#allocation15_spill] sm:$0xff]  ;;  %v3595_v17 = vld [vmem:[#allocation16_spill] sm:$0xff] }
 0x17e   :  { %3585 = vst [vmem:[#allocation40_spill] sm:$0xff] %v3355_v60  ;;  %v3360_v38 = vpop.f32.mrf.mxu0  ;;  %v1713_v60 = vadd.f32 %v3263_v0, %v1600_v36  ;;  %v1610_v0 = vadd.f32 %v3275_v12, %v3182_v53  ;;  %v1612_v53 = vadd.f32 %v3279_v31, %v3185_v57  ;;  %v1614_v57 = vadd.f32 %v3283_v18, %v3188_v61 }
 0x17f   :  { %v3362_v33 = vpop.f32.mrf.mxu1  ;;  %v1616_v61 = vadd.f32 %v3287_v22, %v3191_v1  ;;  %v1765_v39 = vadd.f32 %v3325_v43, %v1652_v62  ;;  %v1620_v1 = vadd.f32 %v3291_v26, %v3194_v5  ;;  %v1767_v48 = vadd.f32 %v3327_v55, %v1654_v3  ;;  %v3602_v3 = vld [vmem:[#allocation4_spill] sm:$0xff] }
 0x180   :  { %v3366_v32 = vpop.f32.mrf.mxu0  ;;  %v1723_v6 = vadd.f32 %v3277_v15, %v1610_v0  ;;  %v1725_v15 = vadd.f32 %v3281_v16, %v1612_v53  ;;  %v1727_v47 = vadd.f32 %v3285_v20, %v1614_v57  ;;  %v1622_v5 = vadd.f32 %v3295_v28, %v3197_v9  ;;  %v3590_v9 = vld [vmem:[#allocation2_spill] sm:$0xff]  ;;  %v3591_v28 = vld [vmem:[#allocation17_spill] sm:$0xff] }
 0x181   :  { %v3368_v27 = vpop.f32.mrf.mxu1  ;;  %v1729_v54 = vadd.f32 %v3289_v23, %v1616_v61  ;;  %v1662_v37 = vadd.f32 %v3588_v19, %v3587_v21  ;;  %v3594_v0 = vld [vmem:[#allocation33_spill] sm:$0xff]  ;;  %v3613_v19 = vld [vmem:[#allocation22_spill] sm:$0xff] }
 0x182   :  { %v1825_v63 = vpop.f32.mrf.mxu0 }
 0x183   :  { %v1865_v2 = vpop.f32.mrf.mxu1  ;;  %v1826_v45 = vadd.f32 %v1825_v63, %v1713_v60  ;;  %v1769_v60 = vadd.f32 %v3586_v58, %v1656_v8  ;;  %v1733_v63 = vadd.f32 %v3589_v41, %v1620_v1  ;;  %v3606_v8 = vld [vmem:[#allocation37_spill] sm:$0xff]  ;;  %v3607_v1 = vld [vmem:[#allocation20_spill] sm:$0xff] }
 0x184   :  { %v1866_v59 = vadd.f32 %v1865_v2, %v1753_v24  ;;  %v1827_v35 = vpop.f32.mrf.mxu0  ;;  %v1624_v2 = vadd.f32 %v3591_v28, %v3590_v9  ;;  %v3616_v28 = vld [vmem:[#allocation38_spill] sm:$0xff] }
 0x185   :  { %v1867_v36 = vpop.f32.mrf.mxu1  ;;  %1904 = vst [vmem:[%s3546_s3] sm:$0xff] %v1826_v45  ;;  %v1828_v49 = vadd.f32 %v1827_v35, %v1715_v40  ;;  %v3592_v45 = vld [vmem:[#allocation30_spill] sm:$0xff] }
 0x186   :  { %1920 = vst [vmem:[%s3546_s3 + $0x80] sm:$0xff] %v1866_v59  ;;  %v1868_v29 = vadd.f32 %v1867_v36, %v1755_v4  ;;  %v1829_v56 = vpop.f32.mrf.mxu0  ;;  %v1773_v59 = vadd.f32 %v3592_v45, %v1660_v14 }
 0x187   :  { %v1869_v24 = vpop.f32.mrf.mxu1  ;;  %1905 = vst [vmem:[%s3546_s3 + $0x8] sm:$0xff] %v1828_v49  ;;  %v1830_v44 = vadd.f32 %v1829_v56, %v1717_v7  ;;  %v3593_v7 = vld [vmem:[#allocation9_spill] sm:$0xff]  ;;  %v1735_v49 = vadd.f32 %v3595_v17, %v1622_v5 }
 0x188   :  { %1921 = vst [vmem:[%s3546_s3 + $0x88] sm:$0xff] %v1868_v29  ;;  %v1870_v52 = vadd.f32 %v1869_v24, %v1757_v51  ;;  %v1831_v10 = vpop.f32.mrf.mxu0  ;;  %v1664_v35 = vadd.f32 %v3594_v0, %v3593_v7  ;;  %v3596_v29 = vld [vmem:[#allocation3_spill] sm:$0xff]  ;;  %v3618_v7 = vld [vmem:[#allocation24_spill] sm:$0xff] }
 0x189   :  { %v1871_v11 = vpop.f32.mrf.mxu1  ;;  %1906 = vst [vmem:[%s3546_s3 + $0x10] sm:$0xff] %v1830_v44  ;;  %v1832_v12 = vadd.f32 %v1831_v10, %v1719_v13  ;;  %v3597_v13 = vld [vmem:[#allocation19_spill] sm:$0xff]  ;;  %v3599_v44 = vld [vmem:[#allocation10_spill] sm:$0xff] }
 0x18a   :  { %1922 = vst [vmem:[%s3546_s3 + $0x90] sm:$0xff] %v1870_v52  ;;  %v1872_v31 = vadd.f32 %v1871_v11, %v1759_v25  ;;  %v1835_v18 = vpop.f32.mrf.mxu0  ;;  %v1626_v53 = vadd.f32 %v3597_v13, %v3596_v29  ;;  %v3598_v25 = vld [vmem:[#allocation32_spill] sm:$0xff]  ;;  %v3600_v52 = vld [vmem:[#allocation35_spill] sm:$0xff]  ;;  %v3601_v11 = vld [vmem:[#allocation18_spill] sm:$0xff] }
 0x18b   :  { %v1875_v34 = vpop.f32.mrf.mxu1  ;;  %1907 = vst [vmem:[%s3546_s3 + $0x18] sm:$0xff] %v1832_v12  ;;  %v1836_v42 = vadd.f32 %v1835_v18, %v1723_v6  ;;  %v1775_v62 = vadd.f32 %v3598_v25, %v1662_v37  ;;  %v1666_v6 = vadd.f32 %v3600_v52, %v3599_v44  ;;  %v3603_v12 = vld [vmem:[#allocation21_spill] sm:$0xff]  ;;  %v3604_v18 = vld [vmem:[#allocation34_spill] sm:$0xff]  ;;  %v3621_v29 = vld [vmem:[#allocation40_spill] sm:$0xff] }
 0x18c   :  { %1923 = vst [vmem:[%s3546_s3 + $0x98] sm:$0xff] %v1872_v31  ;;  %v1876_v16 = vadd.f32 %v1875_v34, %v1763_v30  ;;  %v1837_v22 = vpop.f32.mrf.mxu0  ;;  %v1737_v30 = vadd.f32 %v3601_v11, %v1624_v2  ;;  %v1630_v31 = vadd.f32 %v3603_v12, %v3602_v3  ;;  %v1777_v34 = vadd.f32 %v3604_v18, %v1664_v35  ;;  %v3619_v35 = vld [vmem:[#allocation7_spill] sm:$0xff]  ;;  %v3623_v44 = vld [vmem:[#allocation26_spill] sm:$0xff] }
 0x18d   :  { %v1877_v43 = vpop.f32.mrf.mxu1  ;;  %1908 = vst [vmem:[%s3546_s3 + $0x20] sm:$0xff] %v1836_v42  ;;  %v1838_v50 = vadd.f32 %v1837_v22, %v1725_v15  ;;  %v1739_v22 = vadd.f32 %v3607_v1, %v1626_v53 }
 0x18e   :  { %1924 = vst [vmem:[%s3546_s3 + $0xa0] sm:$0xff] %v1876_v16  ;;  %v1878_v20 = vadd.f32 %v1877_v43, %v1765_v39  ;;  %v1839_v26 = vpop.f32.mrf.mxu0  ;;  %v3605_v39 = vld [vmem:[#allocation11_spill] sm:$0xff]  ;;  %v3608_v43 = vld [vmem:[#allocation5_spill] sm:$0xff]  ;;  %v1743_v37 = vadd.f32 %v3613_v19, %v1630_v31 }
 0x18f   :  { %v1879_v55 = vpop.f32.mrf.mxu1  ;;  %1909 = vst [vmem:[%s3546_s3 + $0x28] sm:$0xff] %v1838_v50  ;;  %v1840_v40 = vadd.f32 %v1839_v26, %v1727_v47  ;;  %v1670_v42 = vadd.f32 %v3606_v8, %v3605_v39  ;;  %v3611_v26 = vld [vmem:[#allocation12_spill] sm:$0xff] }
 0x190   :  { %1925 = vst [vmem:[%s3546_s3 + $0xa8] sm:$0xff] %v1878_v20  ;;  %v1880_v23 = vadd.f32 %v1879_v55, %v1767_v48  ;;  %v1841_v4 = vpop.f32.mrf.mxu0  ;;  %v3609_v48 = vld [vmem:[#allocation23_spill] sm:$0xff] }
 0x191   :  { %v1881_v46 = vpop.f32.mrf.mxu1  ;;  %1910 = vst [vmem:[%s3546_s3 + $0x30] sm:$0xff] %v1840_v40  ;;  %v1842_v36 = vadd.f32 %v1841_v4, %v1729_v54  ;;  %v1632_v14 = vadd.f32 %v3609_v48, %v3608_v43  ;;  %v3610_v54 = vld [vmem:[#allocation36_spill] sm:$0xff]  ;;  %v3612_v55 = vld [vmem:[#allocation39_spill] sm:$0xff]  ;;  %v3614_v40 = vld [vmem:[#allocation6_spill] sm:$0xff]  ;;  %v1783_v2 = vadd.f32 %v3616_v28, %v1670_v42 }
 0x192   :  { %1926 = vst [vmem:[%s3546_s3 + $0xb0] sm:$0xff] %v1880_v23  ;;  %v1882_v51 = vadd.f32 %v1881_v46, %v1769_v60  ;;  %v1845_v56 = vpop.f32.mrf.mxu0  ;;  %v1779_v5 = vadd.f32 %v3610_v54, %v1666_v6  ;;  %v1672_v58 = vadd.f32 %v3612_v55, %v3611_v26  ;;  %v3615_v23 = vld [vmem:[#allocation25_spill] sm:$0xff] }
 0x193   :  { %v1885_v24 = vpop.f32.mrf.mxu1  ;;  %1911 = vst [vmem:[%s3546_s3 + $0x38] sm:$0xff] %v1842_v36  ;;  %v1846_v57 = vadd.f32 %v1845_v56, %v1733_v63  ;;  %v1634_v41 = vadd.f32 %v3615_v23, %v3614_v40  ;;  %v3617_v4 = vld [vmem:[#allocation13_spill] sm:$0xff]  ;;  %v1745_v0 = vadd.f32 %v3618_v7, %v1632_v14  ;;  %v3620_v36 = vld [vmem:[#allocation27_spill] sm:$0xff] }
 0x194   :  { %1927 = vst [vmem:[%s3546_s3 + $0xb8] sm:$0xff] %v1882_v51  ;;  %v1886_v10 = vadd.f32 %v1885_v24, %v1773_v59  ;;  %v1847_v15 = vpop.f32.mrf.mxu0  ;;  %v1674_v46 = vadd.f32 %v3360_v38, %v3617_v4  ;;  %v1636_v51 = vadd.f32 %v3620_v36, %v3619_v35  ;;  %v1785_v13 = vadd.f32 %v3621_v29, %v1672_v58  ;;  %v3622_v38 = vld [vmem:[#allocation14_spill] sm:$0xff] }
 0x195   :  { %v1887_v61 = vpop.f32.mrf.mxu1  ;;  %1912 = vst [vmem:[%s3546_s3 + $0x40] sm:$0xff] %v1846_v57  ;;  %v1848_v16 = vadd.f32 %v1847_v15, %v1735_v49  ;;  %v1676_v53 = vadd.f32 %v3366_v32, %v3622_v38  ;;  %v1747_v52 = vadd.f32 %v3623_v44, %v1634_v41 }
 0x196   :  { %1928 = vst [vmem:[%s3546_s3 + $0xc0] sm:$0xff] %v1886_v10  ;;  %v1888_v47 = vadd.f32 %v1887_v61, %v1775_v62  ;;  %v1849_v50 = vpop.f32.mrf.mxu0  ;;  %v1787_v6 = vadd.f32 %v3362_v33, %v1674_v46 }
 0x197   :  { %v1889_v20 = vpop.f32.mrf.mxu1  ;;  %1913 = vst [vmem:[%s3546_s3 + $0x48] sm:$0xff] %v1848_v16  ;;  %v1850_v60 = vadd.f32 %v1849_v50, %v1737_v30  ;;  %v3624_v30 = vld [vmem:[#allocation28_spill] sm:$0xff]  ;;  %v1789_v12 = vadd.f32 %v3368_v27, %v1676_v53 }
 0x198   :  { %1929 = vst [vmem:[%s3546_s3 + $0xc8] sm:$0xff] %v1888_v47  ;;  %v1890_v21 = vadd.f32 %v1889_v20, %v1777_v34  ;;  %v1851_v63 = vpop.f32.mrf.mxu0  ;;  %v1749_v3 = vadd.f32 %v3624_v30, %v1636_v51 }
 0x199   :  { %v1891_v9 = vpop.f32.mrf.mxu1  ;;  %1914 = vst [vmem:[%s3546_s3 + $0x50] sm:$0xff] %v1850_v60  ;;  %v1852_v45 = vadd.f32 %v1851_v63, %v1739_v22 }
 0x19a   :  { %1930 = vst [vmem:[%s3546_s3 + $0xd0] sm:$0xff] %v1890_v21  ;;  %v1892_v59 = vadd.f32 %v1891_v9, %v1779_v5  ;;  %v1855_v17 = vpop.f32.mrf.mxu0 }
 0x19b   :  { %v1895_v49 = vpop.f32.mrf.mxu1  ;;  %1915 = vst [vmem:[%s3546_s3 + $0x58] sm:$0xff] %v1852_v45  ;;  %v1856_v56 = vadd.f32 %v1855_v17, %v1743_v37 }
 0x19c   :  { %1931 = vst [vmem:[%s3546_s3 + $0xd8] sm:$0xff] %v1892_v59  ;;  %v1896_v24 = vadd.f32 %v1895_v49, %v1783_v2  ;;  %v1857_v25 = vpop.f32.mrf.mxu0 }
 0x19d   :  { %v1897_v62 = vpop.f32.mrf.mxu1  ;;  %1916 = vst [vmem:[%s3546_s3 + $0x60] sm:$0xff] %v1856_v56  ;;  %v1858_v32 = vadd.f32 %v1857_v25, %v1745_v0 }
 0x19e   :  { %1932 = vst [vmem:[%s3546_s3 + $0xe0] sm:$0xff] %v1896_v24  ;;  %v1898_v57 = vadd.f32 %v1897_v62, %v1785_v13  ;;  %v1859_v10 = vpop.f32.mrf.mxu0 }
 0x19f   :  { %v1899_v11 = vpop.f32.mrf.mxu1  ;;  %1917 = vst [vmem:[%s3546_s3 + $0x68] sm:$0xff] %v1858_v32  ;;  %v1860_v33 = vadd.f32 %v1859_v10, %v1747_v52 }
 0x1a0   :  { %1933 = vst [vmem:[%s3546_s3 + $0xe8] sm:$0xff] %v1898_v57  ;;  %v1900_v31 = vadd.f32 %v1899_v11, %v1787_v6  ;;  %v1861_v15 = vpop.f32.mrf.mxu0 }
 0x1a1   :  { %v1901_v61 = vpop.f32.mrf.mxu1  ;;  %1918 = vst [vmem:[%s3546_s3 + $0x70] sm:$0xff] %v1860_v33  ;;  %v1862_v27 = vadd.f32 %v1861_v15, %v1749_v3 }
 0x1a2   :  { %1934 = vst [vmem:[%s3546_s3 + $0xf0] sm:$0xff] %v1900_v31  ;;  %v1902_v18 = vadd.f32 %v1901_v61, %v1789_v12 }
 0x1a3   :  { %1919 = vst [vmem:[%s3546_s3 + $0x78] sm:$0xff] %v1862_v27 }
 0x1a4   :  { %1935 = vst [vmem:[%s3546_s3 + $0xf8] sm:$0xff] %v1902_v18 }

// kernel: tile.37
= control target key start
LH: loop header
LB: loop body
LE: loop exit
PB: predicated region body
PF: predicated region fallthrough
CT: control target
= control target key end

     0   :  { %s22_s0 = inlined_call_operand.vmem [shape: f32[32], index: 0, kind: input, shape index: {}]   ;;  %s23_s1 = inlined_call_operand.vmem [shape: f32[4,32], index: 1, kind: output, shape index: {}]  }
   0x1   :  { %v4_v0 = vld [vmem:[%s22_s0] ss:$0 sm:$0xff] }
   0x2   :  { %5 = vst [vmem:[%s23_s1] sm:$0xf] %v4_v0 }

// kernel: tile.38
= control target key start
LH: loop header
LB: loop body
LE: loop exit
PB: predicated region body
PF: predicated region fallthrough
CT: control target
= control target key end

     0   :  { %vm8_vm0 = vcmask 261120   ;;  %s40_s8 = smov 32   ;;  %s41_s9 = smov 64   ;;  %vm14_vm1 = vcmask 1048320   ;;  %vm20_vm2 = vcmask 785920   ;;  %vm26_vm3 = vcmask 523520   ;;  %s58_s0 = inlined_call_operand.vmem [shape: f32[4,32], index: 0, kind: input, shape index: {}]   ;;  %s59_s1 = inlined_call_operand.vmem [shape: f32[1,128], index: 1, kind: output, shape index: {}]  }
   0x1   :  { %v5_v0 = vld [vmem:[%s58_s0] sm:$0xf]  ;;  %s39_s0 = smov 96  }
   0x2   :  { %6 = vst [vmem:[#allocation1] sm:$0xf] %v5_v0 }
   0x9   :  { %v11_v1 = vld [vmem:[#allocation1 + $0x3] sm:$0x1]   ;;  %v23_v2 = vld [vmem:[#allocation1 + $0x1] sm:$0x1]   ;;  %v7_v3 = vld [vmem:[#allocation1] sm:$0x1]  }
   0xa   :  { %12 = vrot.lane.b32.xlu0 %v11_v1, %s39_s0  ;;  %24 = vrot.lane.b32.xlu1 %v23_v2, %s40_s8  ;;  %v17_v4 = vld [vmem:[#allocation1 + $0x2] sm:$0x1]   ;;  %9 = vst.msk [vmem:[#allocation0] sm:$0x1] %vm8_vm0, %v7_v3  }
   0xe   :  { %18 = vrot.lane.b32.xlu0 %v17_v4, %s41_s9 }
  0x7c   :  { %v13_v5 = vpop.permute.xlu0 %12   ;;  %v25_v6 = vpop.permute.xlu1 %24  }
  0x7d   :  { %15 = vst.msk [vmem:[#allocation0] sm:$0x1] %vm14_vm1, %v13_v5  }
  0x80   :  { %v19_v7 = vpop.permute.xlu0 %18  }
  0x81   :  { %21 = vst.msk [vmem:[#allocation0] sm:$0x1] %vm20_vm2, %v19_v7  }
  0x82   :  { %27 = vst.msk [vmem:[#allocation0] sm:$0x1] %vm26_vm3, %v25_v6  }
  0x89   :  { %v32_v8 = vld [vmem:[#allocation0] sm:$0x1] }
  0x8a   :  { %35 = vst [vmem:[%s59_s1] sm:$0x1] %v32_v8 }

// kernel: vqvae_forward.15
= control target key start
LH: loop header
LB: loop body
LE: loop exit
PB: predicated region body
PF: predicated region fallthrough
CT: control target
= control target key end

     0   :  { %v2965_v0 = vmov 0   ;;  %vm1302_vm0 = vcmask 523264   ;;  %s4263_s1 = inlined_call_operand.vmem [shape: bf16[576,128], index: 1, kind: input, shape index: {}]   ;;  %s4264_s0 = inlined_call_operand.vmem [shape: bf16[512,576], index: 0, kind: input, shape index: {}]   ;;  %s4265_s2 = inlined_call_operand.vmem [shape: f32[1,128], index: 2, kind: input, shape index: {}]   ;;  %s4266_s3 = inlined_call_operand.vmem [shape: f32[512,128], index: 3, kind: output, shape index: {}]  }
   0x1   :  { %1399 = vmatprep.subr.bf16.mxu0 %v2965_v0  ;;  %2671 = vmatprep.subr.bf16.mxu1 %v2965_v0  ;;  %v2704_v1 = vld [vmem:[%s4263_s1 + $0x38] sm:$0xff]   ;;  %v2705_v2 = vld [vmem:[%s4263_s1 + $0x30] sm:$0xff]   ;;  %v2706_v3 = vld [vmem:[%s4263_s1 + $0x28] sm:$0xff]  }
   0x2   :  { %1400 = vmatpush1.bf16.msra.mxu0 %v2704_v1  ;;  %2687 = vmatpush1.bf16.msra.mxu1 %v2704_v1  ;;  %v2707_v4 = vld [vmem:[%s4263_s1 + $0x20] sm:$0xff]   ;;  %v2708_v5 = vld [vmem:[%s4263_s1 + $0x18] sm:$0xff]   ;;  %v2709_v7 = vld [vmem:[%s4263_s1 + $0x10] sm:$0xff]  }
   0x3   :  { %1401 = vmatprep.subr.bf16.mxu0 %v2965_v0  ;;  %2672 = vmatprep.subr.bf16.mxu1 %v2965_v0  ;;  %v2722_v6 = vld [vmem:[%s4264_s0 + $0x4] ss:$20 sps:$4 sm:$0xff]   ;;  %v2710_v9 = vld [vmem:[%s4263_s1 + $0x8] sm:$0xff]   ;;  %v2713_v12 = vld [vmem:[%s4263_s1 + $0x70] sm:$0xff]  }
   0x4   :  { %v2725_v8 = vld [vmem:[%s4264_s0 + $0x3c4] ss:$20 sps:$4 sm:$0xff]   ;;  %1431 = vmatprep.mubr.bf16.mxu0 %v2722_v6  ;;  %v2714_v13 = vld [vmem:[%s4263_s1 + $0x68] sm:$0xff]   ;;  %v2717_v16 = vld [vmem:[%s4263_s1 + $0x50] sm:$0xff]  }
   0x5   :  { %1623 = vmatprep.mubr.bf16.mxu1 %v2725_v8  ;;  %v2711_v10 = vld [vmem:[%s4263_s1] sm:$0xff]   ;;  %v2712_v11 = vld [vmem:[%s4263_s1 + $0x78] sm:$0xff]   ;;  %v2718_v17 = vld [vmem:[%s4263_s1 + $0x48] sm:$0xff]  }
   0x6   :  { %1402 = vmatpush1.bf16.msra.mxu0 %v2705_v2  ;;  %2688 = vmatpush1.bf16.msra.mxu1 %v2705_v2  ;;  %v2715_v14 = vld [vmem:[%s4263_s1 + $0x60] sm:$0xff]   ;;  %v2716_v15 = vld [vmem:[%s4263_s1 + $0x58] sm:$0xff]   ;;  %v2775_v25 = vld [vmem:[%s4263_s1 + $0x110] sm:$0xff]  }
   0x7   :  { %1403 = vmatprep.subr.bf16.mxu0 %v2965_v0  ;;  %2673 = vmatprep.subr.bf16.mxu1 %v2965_v0  ;;  %v2719_v18 = vld [vmem:[%s4263_s1 + $0x40] sm:$0xff]   ;;  %v2726_v19 = vld [vmem:[%s4263_s1 + $0x118] sm:$0xff]   ;;  %v2728_v26 = vld [vmem:[%s4263_s1 + $0xb0] sm:$0xff]  }
   0x8   :  { %v2720_v20 = vld [vmem:[%s4264_s0] ss:$20 sps:$4 sm:$0xff]   ;;  %v2727_v22 = vld [vmem:[%s4263_s1 + $0xb8] sm:$0xff]   ;;  %v2735_v29 = vld [vmem:[%s4263_s1 + $0xa8] sm:$0xff]  }
   0x9   :  { %v2723_v21 = vld [vmem:[%s4264_s0 + $0x3c0] ss:$20 sps:$4 sm:$0xff]   ;;  %v2733_v27 = vld [vmem:[%s4264_s0 + $0x28] ss:$20 sps:$4 sm:$0xff]   ;;  %v2741_v34 = vld [vmem:[%s4264_s0 + $0x50] ss:$20 sps:$4 sm:$0xff]  }
   0xa   :  { %1404 = vmatpush1.bf16.msra.mxu0 %v2706_v3  ;;  %2689 = vmatpush1.bf16.msra.mxu1 %v2706_v3  ;;  %v2729_v23 = vld [vmem:[%s4264_s0 + $0x2c] ss:$20 sps:$4 sm:$0xff]   ;;  %v2734_v28 = vld [vmem:[%s4264_s0 + $0x3e8] ss:$20 sps:$4 sm:$0xff]   ;;  %v2742_v35 = vld [vmem:[%s4264_s0 + $0x410] ss:$20 sps:$4 sm:$0xff]  }
   0xb   :  { %1405 = vmatprep.subr.bf16.mxu0 %v2965_v0  ;;  %2674 = vmatprep.subr.bf16.mxu1 %v2965_v0  ;;  %v2731_v24 = vld [vmem:[%s4264_s0 + $0x3ec] ss:$20 sps:$4 sm:$0xff]   ;;  %v2737_v31 = vld [vmem:[%s4264_s0 + $0x54] ss:$20 sps:$4 sm:$0xff]   ;;  %v2743_v36 = vld [vmem:[%s4263_s1 + $0x98] sm:$0xff]  }
   0xc   :  { %v2816_v30 = vld [vmem:[%s4263_s1 + $0x108] sm:$0xff]   ;;  %v2736_v33 = vld [vmem:[%s4263_s1 + $0xa0] sm:$0xff]   ;;  %v2745_v37 = vld [vmem:[%s4264_s0 + $0x7c] ss:$20 sps:$4 sm:$0xff]  }
   0xd   :  { %v2739_v32 = vld [vmem:[%s4264_s0 + $0x414] ss:$20 sps:$4 sm:$0xff]   ;;  %v2747_v38 = vld [vmem:[%s4264_s0 + $0x43c] ss:$20 sps:$4 sm:$0xff]   ;;  %v2749_v40 = vld [vmem:[%s4264_s0 + $0x78] ss:$20 sps:$4 sm:$0xff]  }
   0xe   :  { %1406 = vmatpush1.bf16.msra.mxu0 %v2707_v4  ;;  %2690 = vmatpush1.bf16.msra.mxu1 %v2707_v4  ;;  %v2744_v39 = vld [vmem:[%s4263_s1 + $0x90] sm:$0xff]   ;;  %v2750_v41 = vld [vmem:[%s4264_s0 + $0x438] ss:$20 sps:$4 sm:$0xff]   ;;  %v2853_v44 = vld [vmem:[%s4263_s1 + $0x100] sm:$0xff]  }
   0xf   :  { %1407 = vmatprep.subr.bf16.mxu0 %v2965_v0  ;;  %2675 = vmatprep.subr.bf16.mxu1 %v2965_v0  ;;  %v2751_v42 = vld [vmem:[%s4263_s1 + $0x88] sm:$0xff]   ;;  %v2753_v43 = vld [vmem:[%s4264_s0 + $0xa4] ss:$20 sps:$4 sm:$0xff]   ;;  %v2757_v47 = vld [vmem:[%s4264_s0 + $0xa0] ss:$20 sps:$4 sm:$0xff]  }
  0x10   :  { %v2755_v45 = vld [vmem:[%s4264_s0 + $0x464] ss:$20 sps:$4 sm:$0xff]   ;;  %v2758_v48 = vld [vmem:[%s4264_s0 + $0x460] ss:$20 sps:$4 sm:$0xff]   ;;  %v2765_v53 = vld [vmem:[%s4264_s0 + $0xc8] ss:$20 sps:$4 sm:$0xff]  }
  0x11   :  { %v2752_v46 = vld [vmem:[%s4263_s1 + $0x80] sm:$0xff]   ;;  %v2759_v49 = vld [vmem:[%s4263_s1 + $0xf8] sm:$0xff]   ;;  %v2760_v52 = vld [vmem:[%s4263_s1 + $0xf0] sm:$0xff]  }
  0x12   :  { %1408 = vmatpush1.bf16.msra.mxu0 %v2708_v5  ;;  %2691 = vmatpush1.bf16.msra.mxu1 %v2708_v5  ;;  %v2761_v50 = vld [vmem:[%s4264_s0 + $0xcc] ss:$20 sps:$4 sm:$0xff]   ;;  %v2766_v54 = vld [vmem:[%s4264_s0 + $0x488] ss:$20 sps:$4 sm:$0xff]   ;;  %v2773_v59 = vld [vmem:[%s4264_s0 + $0xf0] ss:$20 sps:$4 sm:$0xff]  }
  0x13   :  { %1409 = vmatprep.subr.bf16.mxu0 %v2965_v0  ;;  %2676 = vmatprep.subr.bf16.mxu1 %v2965_v0  ;;  %v2763_v51 = vld [vmem:[%s4264_s0 + $0x48c] ss:$20 sps:$4 sm:$0xff]   ;;  %v2769_v56 = vld [vmem:[%s4264_s0 + $0xf4] ss:$20 sps:$4 sm:$0xff]   ;;  %v2774_v60 = vld [vmem:[%s4264_s0 + $0x4b0] ss:$20 sps:$4 sm:$0xff]  }
  0x14   :  { %v2767_v55 = vld [vmem:[%s4263_s1 + $0xe8] sm:$0xff]   ;;  %v2768_v58 = vld [vmem:[%s4263_s1 + $0xe0] sm:$0xff]   ;;  %v2776_v61 = vld [vmem:[%s4263_s1 + $0xd8] sm:$0xff]  }
  0x15   :  { %v2771_v57 = vld [vmem:[%s4264_s0 + $0x4b4] ss:$20 sps:$4 sm:$0xff]   ;;  %v2778_v62 = vld [vmem:[%s4264_s0 + $0x11c] ss:$20 sps:$4 sm:$0xff]   ;;  %v2782_v2 = vld [vmem:[%s4264_s0 + $0x118] ss:$20 sps:$4 sm:$0xff]  }
  0x16   :  { %1410 = vmatpush1.bf16.msra.mxu0 %v2709_v7  ;;  %2692 = vmatpush1.bf16.msra.mxu1 %v2709_v7  ;;  %v2780_v63 = vld [vmem:[%s4264_s0 + $0x4dc] ss:$20 sps:$4 sm:$0xff]   ;;  %v2783_v3 = vld [vmem:[%s4264_s0 + $0x4d8] ss:$20 sps:$4 sm:$0xff]   ;;  %v2785_v7 = vld [vmem:[%s4263_s1 + $0xc0] sm:$0xff]  }
  0x17   :  { %1411 = vmatprep.subr.bf16.mxu0 %v2965_v0  ;;  %2677 = vmatprep.subr.bf16.mxu1 %v2965_v0  ;;  %v2777_v1 = vld [vmem:[%s4263_s1 + $0xd0] sm:$0xff]   ;;  %v2784_v4 = vld [vmem:[%s4263_s1 + $0xc8] sm:$0xff]   ;;  %v2786_v5 = vld [vmem:[%s4264_s0 + $0x144] ss:$20 sps:$4 sm:$0xff]  }
  0x18   :  { %v2790_v6 = vld [vmem:[%s4264_s0 + $0xc] ss:$20 sps:$4 sm:$0xff]   ;;  %v2788_v8 = vld [vmem:[%s4264_s0 + $0x8] ss:$20 sps:$4 sm:$0xff]  }
  0x1a   :  { %1412 = vmatpush1.bf16.msra.mxu0 %v2710_v9  ;;  %2693 = vmatpush1.bf16.msra.mxu1 %v2710_v9  ;;  %v2791_v9 = vld [vmem:[%s4264_s0 + $0x140] ss:$20 sps:$4 sm:$0xff]  }
  0x1b   :  { %1413 = vmatprep.subr.bf16.mxu0 %v2965_v0  ;;  %2678 = vmatprep.subr.bf16.mxu1 %v2965_v0 }
  0x1e   :  { %1414 = vmatpush1.bf16.msra.mxu0 %v2711_v10  ;;  %2694 = vmatpush1.bf16.msra.mxu1 %v2711_v10  ;;  %v2792_v10 = vld [vmem:[%s4264_s0 + $0x16c] ss:$20 sps:$4 sm:$0xff]  }
  0x1f   :  { %1415 = vmatprep.subr.bf16.mxu0 %v2965_v0  ;;  %2679 = vmatprep.subr.bf16.mxu1 %v2965_v0 }
  0x22   :  { %1416 = vmatpush2.bf16.msra.mxu0 %v2712_v11  ;;  %2695 = vmatpush2.bf16.msra.mxu1 %v2712_v11  ;;  %v2794_v11 = vld [vmem:[%s4264_s0 + $0x34] ss:$20 sps:$4 sm:$0xff]  }
  0x23   :  { %1417 = vmatprep.subr.bf16.mxu0 %v2965_v0  ;;  %2680 = vmatprep.subr.bf16.mxu1 %v2965_v0 }
  0x26   :  { %1418 = vmatpush2.bf16.msra.mxu0 %v2713_v12  ;;  %2696 = vmatpush2.bf16.msra.mxu1 %v2713_v12  ;;  %v2797_v12 = vld [vmem:[%s4264_s0 + $0x30] ss:$20 sps:$4 sm:$0xff]  }
  0x27   :  { %1419 = vmatprep.subr.bf16.mxu0 %v2965_v0  ;;  %2681 = vmatprep.subr.bf16.mxu1 %v2965_v0 }
  0x2a   :  { %1420 = vmatpush2.bf16.msra.mxu0 %v2714_v13  ;;  %2697 = vmatpush2.bf16.msra.mxu1 %v2714_v13  ;;  %v2798_v13 = vld [vmem:[%s4264_s0 + $0x194] ss:$20 sps:$4 sm:$0xff]  }
  0x2b   :  { %1421 = vmatprep.subr.bf16.mxu0 %v2965_v0  ;;  %2682 = vmatprep.subr.bf16.mxu1 %v2965_v0 }
  0x2e   :  { %1422 = vmatpush2.bf16.msra.mxu0 %v2715_v14  ;;  %2698 = vmatpush2.bf16.msra.mxu1 %v2715_v14  ;;  %v2800_v14 = vld [vmem:[%s4264_s0 + $0x5c] ss:$20 sps:$4 sm:$0xff]  }
  0x2f   :  { %1423 = vmatprep.subr.bf16.mxu0 %v2965_v0  ;;  %2683 = vmatprep.subr.bf16.mxu1 %v2965_v0 }
  0x32   :  { %1424 = vmatpush2.bf16.msra.mxu0 %v2716_v15  ;;  %2699 = vmatpush2.bf16.msra.mxu1 %v2716_v15  ;;  %v2802_v15 = vld [vmem:[%s4264_s0 + $0x190] ss:$20 sps:$4 sm:$0xff]  }
  0x33   :  { %1425 = vmatprep.subr.bf16.mxu0 %v2965_v0  ;;  %2684 = vmatprep.subr.bf16.mxu1 %v2965_v0 }
  0x36   :  { %1426 = vmatpush2.bf16.msra.mxu0 %v2717_v16  ;;  %2700 = vmatpush2.bf16.msra.mxu1 %v2717_v16  ;;  %v2803_v16 = vld [vmem:[%s4264_s0 + $0x58] ss:$20 sps:$4 sm:$0xff]  }
  0x37   :  { %1427 = vmatprep.subr.bf16.mxu0 %v2965_v0  ;;  %2685 = vmatprep.subr.bf16.mxu1 %v2965_v0 }
  0x3a   :  { %1428 = vmatpush2.bf16.msra.mxu0 %v2718_v17  ;;  %2701 = vmatpush2.bf16.msra.mxu1 %v2718_v17  ;;  %v2804_v17 = vld [vmem:[%s4264_s0 + $0x1bc] ss:$20 sps:$4 sm:$0xff]  }
  0x3b   :  { %1429 = vmatprep.subr.bf16.mxu0 %v2965_v0  ;;  %2686 = vmatprep.subr.bf16.mxu1 %v2965_v0 }
  0x3e   :  { %1430 = vmatpush2.bf16.msra.mxu0 %v2719_v18  ;;  %2702 = vmatpush2.bf16.msra.mxu1 %v2719_v18  ;;  %v2806_v18 = vld [vmem:[%s4264_s0 + $0x84] ss:$20 sps:$4 sm:$0xff]  }
  0x3f   :  { %1688 = vmatprep.subr.bf16.mxu1 %v2965_v0  ;;  %2599 = vmatprep.subr.bf16.mxu0 %v2726_v19 }
  0x41   :  { %1432 = vmatmul.mubr.bf16.vlgmr.msra.gmra.mxu0 %v2720_v20  ;;  %1624 = vmatmul.mubr.bf16.vlgmr.msra.gmra.mxu1 %v2723_v21  ;;  %v2809_v20 = vld [vmem:[%s4264_s0 + $0x80] ss:$20 sps:$4 sm:$0xff]   ;;  %v2810_v21 = vld [vmem:[%s4264_s0 + $0x1e4] ss:$20 sps:$4 sm:$0xff]  }
  0x42   :  { %1689 = vmatpush1.bf16.msra.mxu1 %v2727_v22  ;;  %2600 = vmatpush3.bf16.msra.mxu0 %v2726_v19  ;;  %v2808_v19 = vld [vmem:[%s4264_s0 + $0x1b8] ss:$20 sps:$4 sm:$0xff]  }
  0x43   :  { %1690 = vmatprep.subr.bf16.mxu1 %v2965_v0  ;;  %1439 = vmatprep.mubr.bf16.mxu0 %v2729_v23  ;;  %v2812_v22 = vld [vmem:[%s4264_s0 + $0xac] ss:$20 sps:$4 sm:$0xff]  }
  0x44   :  { %1631 = vmatprep.mubr.bf16.mxu1 %v2731_v24  ;;  %2601 = vmatprep.subr.bf16.mxu0 %v2775_v25  ;;  %v2814_v23 = vld [vmem:[%s4264_s0 + $0x1e0] ss:$20 sps:$4 sm:$0xff]   ;;  %v2815_v24 = vld [vmem:[%s4264_s0 + $0xa8] ss:$20 sps:$4 sm:$0xff]  }
  0x46   :  { %1691 = vmatpush1.bf16.msra.mxu1 %v2728_v26  ;;  %2602 = vmatpush3.bf16.msra.mxu0 %v2775_v25  ;;  %v2817_v25 = vld [vmem:[%s4264_s0 + $0x20c] ss:$20 sps:$4 sm:$0xff]   ;;  %v2819_v26 = vld [vmem:[%s4264_s0 + $0xd4] ss:$20 sps:$4 sm:$0xff]  }
  0x47   :  { %1692 = vmatprep.subr.bf16.mxu1 %v2965_v0  ;;  %2603 = vmatprep.subr.bf16.mxu0 %v2816_v30 }
  0x49   :  { %1440 = vmatmul.mubr.bf16.gmra.mxu0 %v2733_v27  ;;  %1632 = vmatmul.mubr.bf16.gmra.mxu1 %v2734_v28  ;;  %v2821_v27 = vld [vmem:[%s4264_s0 + $0x208] ss:$20 sps:$4 sm:$0xff]   ;;  %v2822_v28 = vld [vmem:[%s4264_s0 + $0xd0] ss:$20 sps:$4 sm:$0xff]  }
  0x4a   :  { %1693 = vmatpush1.bf16.msra.mxu1 %v2735_v29  ;;  %1447 = vmatprep.mubr.bf16.mxu0 %v2737_v31  ;;  %v2823_v29 = vld [vmem:[%s4264_s0 + $0x234] ss:$20 sps:$4 sm:$0xff]   ;;  %v2827_v31 = vld [vmem:[%s4264_s0 + $0x230] ss:$20 sps:$4 sm:$0xff]  }
  0x4b   :  { %1694 = vmatprep.subr.bf16.mxu1 %v2965_v0  ;;  %1639 = vmatprep.mubr.bf16.mxu1 %v2739_v32  ;;  %v2828_v32 = vld [vmem:[%s4264_s0 + $0xf8] ss:$20 sps:$4 sm:$0xff]  }
  0x4c   :  { %2604 = vmatpush3.bf16.msra.mxu0 %v2816_v30  ;;  %v2825_v30 = vld [vmem:[%s4264_s0 + $0xfc] ss:$20 sps:$4 sm:$0xff]  }
  0x4d   :  { %2605 = vmatprep.subr.bf16.mxu0 %v2853_v44 }
  0x4e   :  { %1695 = vmatpush1.bf16.msra.mxu1 %v2736_v33  ;;  %v2829_v33 = vld [vmem:[%s4264_s0 + $0x25c] ss:$20 sps:$4 sm:$0xff]  }
  0x4f   :  { %1696 = vmatprep.subr.bf16.mxu1 %v2965_v0 }
  0x50   :  { %2606 = vmatpush3.bf16.msra.mxu0 %v2853_v44  ;;  %v2846_v44 = vld [vmem:[%s4264_s0 + $0x170] ss:$20 sps:$4 sm:$0xff]  }
  0x51   :  { %1448 = vmatmul.mubr.bf16.gmra.mxu0 %v2741_v34  ;;  %1640 = vmatmul.mubr.bf16.gmra.mxu1 %v2742_v35  ;;  %v2831_v34 = vld [vmem:[%s4264_s0 + $0x124] ss:$20 sps:$4 sm:$0xff]  }
  0x52   :  { %1697 = vmatpush1.bf16.msra.mxu1 %v2743_v36  ;;  %1455 = vmatprep.mubr.bf16.mxu0 %v2745_v37  ;;  %v2833_v35 = vld [vmem:[%s4264_s0 + $0x258] ss:$20 sps:$4 sm:$0xff]   ;;  %v2834_v36 = vld [vmem:[%s4264_s0 + $0x120] ss:$20 sps:$4 sm:$0xff]  }
  0x53   :  { %1698 = vmatprep.subr.bf16.mxu1 %v2965_v0  ;;  %1647 = vmatprep.mubr.bf16.mxu1 %v2747_v38  ;;  %v2835_v37 = vld [vmem:[%s4264_s0 + $0x284] ss:$20 sps:$4 sm:$0xff]   ;;  %v2837_v38 = vld [vmem:[%s4264_s0 + $0x14c] ss:$20 sps:$4 sm:$0xff]  }
  0x56   :  { %1699 = vmatpush1.bf16.msra.mxu1 %v2744_v39  ;;  %v2839_v39 = vld [vmem:[%s4264_s0 + $0x280] ss:$20 sps:$4 sm:$0xff]  }
  0x57   :  { %1700 = vmatprep.subr.bf16.mxu1 %v2965_v0 }
  0x59   :  { %1456 = vmatmul.mubr.bf16.gmra.mxu0 %v2749_v40  ;;  %1648 = vmatmul.mubr.bf16.gmra.mxu1 %v2750_v41  ;;  %v2840_v40 = vld [vmem:[%s4264_s0 + $0x148] ss:$20 sps:$4 sm:$0xff]   ;;  %v2841_v41 = vld [vmem:[%s4264_s0 + $0x2ac] ss:$20 sps:$4 sm:$0xff]  }
  0x5a   :  { %1701 = vmatpush1.bf16.msra.mxu1 %v2751_v42  ;;  %1463 = vmatprep.mubr.bf16.mxu0 %v2753_v43  ;;  %v2843_v42 = vld [vmem:[%s4264_s0 + $0x174] ss:$20 sps:$4 sm:$0xff]  }
  0x5b   :  { %1702 = vmatprep.subr.bf16.mxu1 %v2965_v0  ;;  %1655 = vmatprep.mubr.bf16.mxu1 %v2755_v45  ;;  %v2845_v43 = vld [vmem:[%s4264_s0 + $0x2a8] ss:$20 sps:$4 sm:$0xff]  }
  0x5c   :  { %v2847_v45 = vld [vmem:[%s4264_s0 + $0x2d4] ss:$20 sps:$4 sm:$0xff]  }
  0x5e   :  { %1703 = vmatpush1.bf16.msra.mxu1 %v2752_v46  ;;  %v2849_v46 = vld [vmem:[%s4264_s0 + $0x19c] ss:$20 sps:$4 sm:$0xff]  }
  0x5f   :  { %1704 = vmatprep.subr.bf16.mxu1 %v2965_v0 }
  0x61   :  { %1464 = vmatmul.mubr.bf16.gmra.mxu0 %v2757_v47  ;;  %1656 = vmatmul.mubr.bf16.gmra.mxu1 %v2758_v48  ;;  %v2851_v47 = vld [vmem:[%s4264_s0 + $0x2d0] ss:$20 sps:$4 sm:$0xff]   ;;  %v2852_v48 = vld [vmem:[%s4264_s0 + $0x198] ss:$20 sps:$4 sm:$0xff]  }
  0x62   :  { %1705 = vmatpush2.bf16.msra.mxu1 %v2759_v49  ;;  %1471 = vmatprep.mubr.bf16.mxu0 %v2761_v50  ;;  %v2854_v49 = vld [vmem:[%s4264_s0 + $0x2fc] ss:$20 sps:$4 sm:$0xff]   ;;  %v2856_v50 = vld [vmem:[%s4264_s0 + $0x1c4] ss:$20 sps:$4 sm:$0xff]  }
  0x63   :  { %1706 = vmatprep.subr.bf16.mxu1 %v2965_v0  ;;  %1663 = vmatprep.mubr.bf16.mxu1 %v2763_v51  ;;  %v2858_v51 = vld [vmem:[%s4264_s0 + $0x2f8] ss:$20 sps:$4 sm:$0xff]  }
  0x66   :  { %1707 = vmatpush2.bf16.msra.mxu1 %v2760_v52  ;;  %v2859_v52 = vld [vmem:[%s4264_s0 + $0x1c0] ss:$20 sps:$4 sm:$0xff]  }
  0x67   :  { %1708 = vmatprep.subr.bf16.mxu1 %v2965_v0 }
  0x69   :  { %1472 = vmatmul.mubr.bf16.gmra.mxu0 %v2765_v53  ;;  %1664 = vmatmul.mubr.bf16.gmra.mxu1 %v2766_v54  ;;  %v2860_v53 = vld [vmem:[%s4264_s0 + $0x324] ss:$20 sps:$4 sm:$0xff]   ;;  %v2862_v54 = vld [vmem:[%s4264_s0 + $0x1ec] ss:$20 sps:$4 sm:$0xff]  }
  0x6a   :  { %1709 = vmatpush2.bf16.msra.mxu1 %v2767_v55  ;;  %1479 = vmatprep.mubr.bf16.mxu0 %v2769_v56  ;;  %v2864_v55 = vld [vmem:[%s4264_s0 + $0x320] ss:$20 sps:$4 sm:$0xff]   ;;  %v2865_v56 = vld [vmem:[%s4264_s0 + $0x1e8] ss:$20 sps:$4 sm:$0xff]  }
  0x6b   :  { %1710 = vmatprep.subr.bf16.mxu1 %v2965_v0  ;;  %1671 = vmatprep.mubr.bf16.mxu1 %v2771_v57  ;;  %v2866_v57 = vld [vmem:[%s4264_s0 + $0x34c] ss:$20 sps:$4 sm:$0xff]  }
  0x6e   :  { %1711 = vmatpush2.bf16.msra.mxu1 %v2768_v58  ;;  %v2868_v58 = vld [vmem:[%s4264_s0 + $0x214] ss:$20 sps:$4 sm:$0xff]  }
  0x6f   :  { %1712 = vmatprep.subr.bf16.mxu1 %v2965_v0 }
  0x71   :  { %1480 = vmatmul.mubr.bf16.gmra.mxu0 %v2773_v59  ;;  %1672 = vmatmul.mubr.bf16.gmra.mxu1 %v2774_v60  ;;  %v2870_v59 = vld [vmem:[%s4264_s0 + $0x348] ss:$20 sps:$4 sm:$0xff]   ;;  %v2871_v60 = vld [vmem:[%s4264_s0 + $0x210] ss:$20 sps:$4 sm:$0xff]  }
  0x72   :  { %1713 = vmatpush2.bf16.msra.mxu1 %v2776_v61  ;;  %1487 = vmatprep.mubr.bf16.mxu0 %v2778_v62  ;;  %v2872_v61 = vld [vmem:[%s4264_s0 + $0x374] ss:$20 sps:$4 sm:$0xff]   ;;  %v2874_v62 = vld [vmem:[%s4264_s0 + $0x23c] ss:$20 sps:$4 sm:$0xff]  }
  0x73   :  { %1714 = vmatprep.subr.bf16.mxu1 %v2965_v0  ;;  %1679 = vmatprep.mubr.bf16.mxu1 %v2780_v63  ;;  %v2876_v63 = vld [vmem:[%s4264_s0 + $0x370] ss:$20 sps:$4 sm:$0xff]  }
  0x76   :  { %1715 = vmatpush2.bf16.msra.mxu1 %v2777_v1  ;;  %v2877_v1 = vld [vmem:[%s4264_s0 + $0x238] ss:$20 sps:$4 sm:$0xff]  }
  0x77   :  { %1716 = vmatprep.subr.bf16.mxu1 %v2965_v0 }
  0x79   :  { %1488 = vmatmul.mubr.bf16.gmra.mxu0 %v2782_v2  ;;  %1680 = vmatmul.mubr.bf16.gmra.mxu1 %v2783_v3  ;;  %v2878_v2 = vld [vmem:[%s4264_s0 + $0x39c] ss:$20 sps:$4 sm:$0xff]   ;;  %v2880_v3 = vld [vmem:[%s4264_s0 + $0x264] ss:$20 sps:$4 sm:$0xff]  }
  0x7a   :  { %1717 = vmatpush2.bf16.msra.mxu1 %v2784_v4  ;;  %1495 = vmatprep.mubr.bf16.mxu0 %v2786_v5  ;;  %v2882_v4 = vld [vmem:[%s4264_s0 + $0x398] ss:$20 sps:$4 sm:$0xff]   ;;  %v2883_v5 = vld [vmem:[%s4264_s0 + $0x260] ss:$20 sps:$4 sm:$0xff]  }
  0x7b   :  { %1718 = vmatprep.subr.bf16.mxu1 %v2965_v0  ;;  %1720 = vmatprep.mubr.bf16.mxu1 %v2790_v6  ;;  %v2796_v0 = vld [vmem:[%s4264_s0 + $0x168] ss:$20 sps:$4 sm:$0xff]   ;;  %v2884_v6 = vld [vmem:[%s4264_s0 + $0x28c] ss:$20 sps:$4 sm:$0xff]  }
  0x7e   :  { %1719 = vmatpush2.bf16.msra.mxu1 %v2785_v7  ;;  %v2886_v7 = vld [vmem:[%s4264_s0 + $0x10] ss:$20 sps:$4 sm:$0xff]  }
  0x81   :  { %1496 = vmatmul.mubr.bf16.gmra.mxu0 %v2791_v9  ;;  %1721 = vmatmul.mubr.bf16.vlgmr.msra.gmra.mxu1 %v2788_v8  ;;  %v2887_v8 = vld [vmem:[%s4264_s0 + $0x288] ss:$20 sps:$4 sm:$0xff]   ;;  %v2888_v9 = vld [vmem:[%s4264_s0 + $0x38] ss:$20 sps:$4 sm:$0xff]  }
  0x82   :  { %1503 = vmatprep.mubr.bf16.mxu0 %v2792_v10  ;;  %1728 = vmatprep.mubr.bf16.mxu1 %v2794_v11  ;;  %v2889_v10 = vld [vmem:[%s4264_s0 + $0x2b4] ss:$20 sps:$4 sm:$0xff]  }
  0x83   :  { %v2891_v11 = vld [vmem:[%s4264_s0 + $0x60] ss:$20 sps:$4 sm:$0xff]  }
  0x89   :  { %1504 = vmatmul.mubr.bf16.gmra.mxu0 %v2796_v0  ;;  %1729 = vmatmul.mubr.bf16.gmra.mxu1 %v2797_v12 }
  0x8a   :  { %1511 = vmatprep.mubr.bf16.mxu0 %v2798_v13  ;;  %1736 = vmatprep.mubr.bf16.mxu1 %v2800_v14 }
  0x91   :  { %1512 = vmatmul.mubr.bf16.gmra.mxu0 %v2802_v15  ;;  %1737 = vmatmul.mubr.bf16.gmra.mxu1 %v2803_v16 }
  0x92   :  { %1519 = vmatprep.mubr.bf16.mxu0 %v2804_v17  ;;  %1744 = vmatprep.mubr.bf16.mxu1 %v2806_v18  ;;  %v2892_v17 = vld [vmem:[%s4264_s0 + $0x2b0] ss:$20 sps:$4 sm:$0xff]   ;;  %v2893_v18 = vld [vmem:[%s4264_s0 + $0x88] ss:$20 sps:$4 sm:$0xff]  }
  0x99   :  { %1520 = vmatmul.mubr.bf16.gmra.mxu0 %v2808_v19  ;;  %1745 = vmatmul.mubr.bf16.gmra.mxu1 %v2809_v20  ;;  %v2894_v19 = vld [vmem:[%s4264_s0 + $0x2dc] ss:$20 sps:$4 sm:$0xff]  }
  0x9a   :  { %1527 = vmatprep.mubr.bf16.mxu0 %v2810_v21  ;;  %1752 = vmatprep.mubr.bf16.mxu1 %v2812_v22  ;;  %v2896_v20 = vld [vmem:[%s4264_s0 + $0xb0] ss:$20 sps:$4 sm:$0xff]  }
  0xa1   :  { %1528 = vmatmul.mubr.bf16.gmra.mxu0 %v2814_v23  ;;  %1753 = vmatmul.mubr.bf16.gmra.mxu1 %v2815_v24 }
  0xa2   :  { %1535 = vmatprep.mubr.bf16.mxu0 %v2817_v25  ;;  %1760 = vmatprep.mubr.bf16.mxu1 %v2819_v26 }
  0xa9   :  { %1536 = vmatmul.mubr.bf16.gmra.mxu0 %v2821_v27  ;;  %1761 = vmatmul.mubr.bf16.gmra.mxu1 %v2822_v28 }
  0xaa   :  { %1543 = vmatprep.mubr.bf16.mxu0 %v2823_v29  ;;  %1768 = vmatprep.mubr.bf16.mxu1 %v2825_v30  ;;  %v2897_v29 = vld [vmem:[%s4264_s0 + $0x2d8] ss:$20 sps:$4 sm:$0xff]  }
  0xab   :  { %v2898_v30 = vld [vmem:[%s4264_s0 + $0xd8] ss:$20 sps:$4 sm:$0xff]  }
  0xb1   :  { %1544 = vmatmul.mubr.bf16.gmra.mxu0 %v2827_v31  ;;  %1769 = vmatmul.mubr.bf16.gmra.mxu1 %v2828_v32  ;;  %v2899_v31 = vld [vmem:[%s4264_s0 + $0x304] ss:$20 sps:$4 sm:$0xff]   ;;  %v2901_v32 = vld [vmem:[%s4264_s0 + $0x100] ss:$20 sps:$4 sm:$0xff]  }
  0xb2   :  { %1551 = vmatprep.mubr.bf16.mxu0 %v2829_v33  ;;  %1776 = vmatprep.mubr.bf16.mxu1 %v2831_v34 }
  0xb9   :  { %1552 = vmatmul.mubr.bf16.gmra.mxu0 %v2833_v35  ;;  %1777 = vmatmul.mubr.bf16.gmra.mxu1 %v2834_v36 }
  0xba   :  { %1559 = vmatprep.mubr.bf16.mxu0 %v2835_v37  ;;  %1784 = vmatprep.mubr.bf16.mxu1 %v2837_v38 }
  0xc1   :  { %1560 = vmatmul.mubr.bf16.gmra.mxu0 %v2839_v39  ;;  %1785 = vmatmul.mubr.bf16.gmra.mxu1 %v2840_v40 }
  0xc2   :  { %1567 = vmatprep.mubr.bf16.mxu0 %v2841_v41  ;;  %1792 = vmatprep.mubr.bf16.mxu1 %v2843_v42  ;;  %v2902_v41 = vld [vmem:[%s4264_s0 + $0x300] ss:$20 sps:$4 sm:$0xff]   ;;  %v2903_v42 = vld [vmem:[%s4264_s0 + $0x128] ss:$20 sps:$4 sm:$0xff]  }
  0xc9   :  { %1568 = vmatmul.mubr.bf16.gmra.mxu0 %v2845_v43  ;;  %1793 = vmatmul.mubr.bf16.gmra.mxu1 %v2846_v44  ;;  %v2906_v43 = vld [vmem:[%s4264_s0 + $0x32c] ss:$20 sps:$4 sm:$0xff]   ;;  %v2907_v44 = vld [vmem:[%s4264_s0 + $0x150] ss:$20 sps:$4 sm:$0xff]  }
  0xca   :  { %1575 = vmatprep.mubr.bf16.mxu0 %v2847_v45  ;;  %1800 = vmatprep.mubr.bf16.mxu1 %v2849_v46 }
  0xd1   :  { %1576 = vmatmul.mubr.bf16.gmra.mxu0 %v2851_v47  ;;  %1801 = vmatmul.mubr.bf16.gmra.mxu1 %v2852_v48 }
  0xd2   :  { %1583 = vmatprep.mubr.bf16.mxu0 %v2854_v49  ;;  %1808 = vmatprep.mubr.bf16.mxu1 %v2856_v50 }
  0xd9   :  { %1584 = vmatmul.mubr.bf16.gmra.mxu0 %v2858_v51  ;;  %1809 = vmatmul.mubr.bf16.gmra.mxu1 %v2859_v52 }
  0xda   :  { %1591 = vmatprep.mubr.bf16.mxu0 %v2860_v53  ;;  %1816 = vmatprep.mubr.bf16.mxu1 %v2862_v54  ;;  %v2904_v53 = vld [vmem:[%s4264_s0 + $0x328] ss:$20 sps:$4 sm:$0xff]   ;;  %v2908_v54 = vld [vmem:[%s4264_s0 + $0x178] ss:$20 sps:$4 sm:$0xff]  }
  0xe1   :  { %1592 = vmatmul.mubr.bf16.gmra.mxu0 %v2864_v55  ;;  %1817 = vmatmul.mubr.bf16.gmra.mxu1 %v2865_v56  ;;  %v2911_v55 = vld [vmem:[%s4264_s0 + $0x354] ss:$20 sps:$4 sm:$0xff]  }
  0xe2   :  { %1599 = vmatprep.mubr.bf16.mxu0 %v2866_v57  ;;  %1824 = vmatprep.mubr.bf16.mxu1 %v2868_v58  ;;  %v2912_v56 = vld [vmem:[%s4264_s0 + $0x1a0] ss:$20 sps:$4 sm:$0xff]  }
  0xe9   :  { %1600 = vmatmul.mubr.bf16.gmra.mxu0 %v2870_v59  ;;  %1825 = vmatmul.mubr.bf16.gmra.mxu1 %v2871_v60 }
  0xea   :  { %1607 = vmatprep.mubr.bf16.mxu0 %v2872_v61  ;;  %1832 = vmatprep.mubr.bf16.mxu1 %v2874_v62 }
  0xf1   :  { %1608 = vmatmul.mubr.bf16.gmra.mxu0 %v2876_v63  ;;  %1833 = vmatmul.mubr.bf16.gmra.mxu1 %v2877_v1 }
  0xf2   :  { %1615 = vmatprep.mubr.bf16.mxu0 %v2878_v2  ;;  %1840 = vmatprep.mubr.bf16.mxu1 %v2880_v3  ;;  %v2909_v2 = vld [vmem:[%s4264_s0 + $0x350] ss:$20 sps:$4 sm:$0xff]   ;;  %v2913_v3 = vld [vmem:[%s4264_s0 + $0x1c8] ss:$20 sps:$4 sm:$0xff]  }
  0xf9   :  { %1616 = vmatmul.mubr.bf16.gmra.mxu0 %v2882_v4  ;;  %1841 = vmatmul.mubr.bf16.gmra.mxu1 %v2883_v5  ;;  %v2916_v4 = vld [vmem:[%s4264_s0 + $0x37c] ss:$20 sps:$4 sm:$0xff]  }
  0xfa   :  { %1848 = vmatprep.mubr.bf16.mxu1 %v2884_v6  ;;  %2607 = vmatprep.mubr.msk.bf16.mxu0 %vm1302_vm0, %v2886_v7  ;;  %v2917_v5 = vld [vmem:[%s4264_s0 + $0x1f0] ss:$20 sps:$4 sm:$0xff]  }
 0x101   :  { %v3449_v0 = vpop.f32.mrf.mxu0  ;;  %v3451_v12 = vpop.f32.mrf.mxu1  ;;  %1849 = vmatmul.mubr.bf16.gmra.mxu1 %v2887_v8  ;;  %2608 = vmatmul.mubr.msk.bf16.vlgmr.msra.gmra.mxu0 %vm1302_vm0, %v2888_v9 }
 0x102   :  { %1856 = vmatprep.mubr.bf16.mxu1 %v2889_v10  ;;  %2611 = vmatprep.mubr.msk.bf16.mxu0 %vm1302_vm0, %v2891_v11 }
 0x103   :  { %v1435_v13 = vpop.f32.mrf.mxu0  ;;  %v1627_v14 = vpop.f32.mrf.mxu1 }
 0x105   :  { %v3455_v15 = vpop.f32.mrf.mxu0  ;;  %v3457_v16 = vpop.f32.mrf.mxu1 }
 0x106   :  { %4267 = vst [vmem:[#allocation2_spill] sm:$0xff] %v3457_v16 }
 0x107   :  { %v1438_v21 = vpop.f32.mrf.mxu0  ;;  %v1630_v22 = vpop.f32.mrf.mxu1 }
 0x109   :  { %v3471_v23 = vpop.f32.mrf.mxu0  ;;  %v3473_v24 = vpop.f32.mrf.mxu1  ;;  %1857 = vmatmul.mubr.bf16.gmra.mxu1 %v2892_v17  ;;  %2612 = vmatmul.mubr.msk.bf16.gmra.mxu0 %vm1302_vm0, %v2893_v18  ;;  %v2914_v17 = vld [vmem:[%s4264_s0 + $0x378] ss:$20 sps:$4 sm:$0xff]  }
 0x10a   :  { %1864 = vmatprep.mubr.bf16.mxu1 %v2894_v19  ;;  %2615 = vmatprep.mubr.msk.bf16.mxu0 %vm1302_vm0, %v2896_v20  ;;  %v2918_v18 = vld [vmem:[%s4264_s0 + $0x218] ss:$20 sps:$4 sm:$0xff]   ;;  %v2922_v20 = vld [vmem:[%s4264_s0 + $0x240] ss:$20 sps:$4 sm:$0xff]  }
 0x10b   :  { %v1443_v25 = vpop.f32.mrf.mxu0  ;;  %v1635_v26 = vpop.f32.mrf.mxu1  ;;  %v2921_v19 = vld [vmem:[%s4264_s0 + $0x3a4] ss:$20 sps:$4 sm:$0xff]  }
 0x10d   :  { %v3477_v27 = vpop.f32.mrf.mxu0  ;;  %v3479_v28 = vpop.f32.mrf.mxu1 }
 0x10e   :  { %4268 = vst [vmem:[#allocation3_spill] sm:$0xff] %v3479_v28 }
 0x10f   :  { %v1446_v33 = vpop.f32.mrf.mxu0  ;;  %v1638_v34 = vpop.f32.mrf.mxu1 }
 0x110   :  { %v2919_v33 = vld [vmem:[%s4264_s0 + $0x3a0] ss:$20 sps:$4 sm:$0xff]   ;;  %v2923_v34 = vld [vmem:[%s4264_s0 + $0x268] ss:$20 sps:$4 sm:$0xff]  }
 0x111   :  { %v3493_v35 = vpop.f32.mrf.mxu0  ;;  %v3495_v36 = vpop.f32.mrf.mxu1  ;;  %1865 = vmatmul.mubr.bf16.gmra.mxu1 %v2897_v29  ;;  %2616 = vmatmul.mubr.msk.bf16.gmra.mxu0 %vm1302_vm0, %v2898_v30 }
 0x112   :  { %4269 = vst [vmem:[#allocation4_spill] sm:$0xff] %v3495_v36  ;;  %1872 = vmatprep.mubr.bf16.mxu1 %v2899_v31  ;;  %2619 = vmatprep.mubr.msk.bf16.mxu0 %vm1302_vm0, %v2901_v32 }
 0x113   :  { %v1451_v37 = vpop.f32.mrf.mxu0  ;;  %v1643_v38 = vpop.f32.mrf.mxu1 }
 0x114   :  { %v2926_v37 = vld [vmem:[%s4264_s0 + $0x3cc] ss:$20 sps:$4 sm:$0xff]   ;;  %v2927_v38 = vld [vmem:[%s4264_s0 + $0x290] ss:$20 sps:$4 sm:$0xff]  }
 0x115   :  { %v3499_v39 = vpop.f32.mrf.mxu0  ;;  %v3501_v40 = vpop.f32.mrf.mxu1 }
 0x116   :  { %4270 = vst [vmem:[#allocation5_spill] sm:$0xff] %v3501_v40 }
 0x117   :  { %v1454_v45 = vpop.f32.mrf.mxu0  ;;  %v1646_v46 = vpop.f32.mrf.mxu1 }
 0x119   :  { %v3515_v47 = vpop.f32.mrf.mxu0  ;;  %v3517_v48 = vpop.f32.mrf.mxu1  ;;  %1873 = vmatmul.mubr.bf16.gmra.mxu1 %v2902_v41  ;;  %2620 = vmatmul.mubr.msk.bf16.gmra.mxu0 %vm1302_vm0, %v2903_v42 }
 0x11a   :  { %4271 = vst [vmem:[#allocation6_spill] sm:$0xff] %v3517_v48  ;;  %1880 = vmatprep.mubr.bf16.mxu1 %v2906_v43  ;;  %2623 = vmatprep.mubr.msk.bf16.mxu0 %vm1302_vm0, %v2907_v44 }
 0x11b   :  { %v1459_v49 = vpop.f32.mrf.mxu0  ;;  %v1651_v50 = vpop.f32.mrf.mxu1 }
 0x11c   :  { %v3612_v49 = vld [vmem:[%s4265_s2] ss:$0 sm:$0xff] }
 0x11d   :  { %v3521_v51 = vpop.f32.mrf.mxu0  ;;  %v3523_v52 = vpop.f32.mrf.mxu1 }
 0x11e   :  { %4272 = vst [vmem:[#allocation7_spill] sm:$0xff] %v3523_v52 }
 0x11f   :  { %v1462_v57 = vpop.f32.mrf.mxu0  ;;  %v1654_v58 = vpop.f32.mrf.mxu1 }
 0x120   :  { %v2932_v57 = vld [vmem:[%s4264_s0 + $0x2e0] ss:$20 sps:$4 sm:$0xff]  }
 0x121   :  { %v3537_v59 = vpop.f32.mrf.mxu0  ;;  %v3539_v60 = vpop.f32.mrf.mxu1  ;;  %1881 = vmatmul.mubr.bf16.gmra.mxu1 %v2904_v53  ;;  %2624 = vmatmul.mubr.msk.bf16.gmra.mxu0 %vm1302_vm0, %v2908_v54  ;;  %v2924_v54 = vld [vmem:[%s4264_s0 + $0x3c8] ss:$20 sps:$4 sm:$0xff]  }
 0x122   :  { %4273 = vst [vmem:[#allocation8_spill] sm:$0xff] %v3539_v60  ;;  %1888 = vmatprep.mubr.bf16.mxu1 %v2911_v55  ;;  %2627 = vmatprep.mubr.msk.bf16.mxu0 %vm1302_vm0, %v2912_v56  ;;  %v2928_v55 = vld [vmem:[%s4264_s0 + $0x2b8] ss:$20 sps:$4 sm:$0xff]   ;;  %v2931_v56 = vld [vmem:[%s4264_s0 + $0x3f4] ss:$20 sps:$4 sm:$0xff]  }
 0x123   :  { %v1467_v61 = vpop.f32.mrf.mxu0  ;;  %v1659_v62 = vpop.f32.mrf.mxu1 }
 0x124   :  { %v1434_v62 = vadd.f32 %v3612_v49, %v3449_v0  ;;  %v2929_v0 = vld [vmem:[%s4264_s0 + $0x3f0] ss:$20 sps:$4 sm:$0xff]  }
 0x125   :  { %v3543_v63 = vpop.f32.mrf.mxu0  ;;  %v3545_v1 = vpop.f32.mrf.mxu1 }
 0x126   :  { %4274 = vst [vmem:[#allocation9_spill] sm:$0xff] %v3545_v1 }
 0x127   :  { %v1470_v6 = vpop.f32.mrf.mxu0  ;;  %v1662_v7 = vpop.f32.mrf.mxu1 }
 0x128   :  { %v1437_v7 = vadd.f32 %v3612_v49, %v3455_v15  ;;  %v2937_v15 = vld [vmem:[%s4264_s0 + $0x330] ss:$20 sps:$4 sm:$0xff]  }
 0x129   :  { %v3559_v8 = vpop.f32.mrf.mxu0  ;;  %v3561_v9 = vpop.f32.mrf.mxu1  ;;  %1889 = vmatmul.mubr.bf16.gmra.mxu1 %v2909_v2  ;;  %2628 = vmatmul.mubr.msk.bf16.gmra.mxu0 %vm1302_vm0, %v2913_v3 }
 0x12a   :  { %4275 = vst [vmem:[#allocation10_spill] sm:$0xff] %v3561_v9  ;;  %1896 = vmatprep.mubr.bf16.mxu1 %v2916_v4  ;;  %2631 = vmatprep.mubr.msk.bf16.mxu0 %vm1302_vm0, %v2917_v5 }
 0x12b   :  { %v1475_v10 = vpop.f32.mrf.mxu0  ;;  %v1667_v11 = vpop.f32.mrf.mxu1 }
 0x12d   :  { %v3565_v13 = vpop.f32.mrf.mxu0  ;;  %v3567_v14 = vpop.f32.mrf.mxu1 }
 0x12e   :  { %4276 = vst [vmem:[#allocation11_spill] sm:$0xff] %v3567_v14 }
 0x12f   :  { %v1478_v21 = vpop.f32.mrf.mxu0  ;;  %v1670_v22 = vpop.f32.mrf.mxu1 }
 0x130   :  { %v1442_v22 = vadd.f32 %v3612_v49, %v3471_v23  ;;  %v2934_v23 = vld [vmem:[%s4264_s0 + $0x418] ss:$20 sps:$4 sm:$0xff]  }
 0x131   :  { %v3581_v25 = vpop.f32.mrf.mxu0  ;;  %v3583_v26 = vpop.f32.mrf.mxu1  ;;  %1897 = vmatmul.mubr.bf16.gmra.mxu1 %v2914_v17  ;;  %2632 = vmatmul.mubr.msk.bf16.gmra.mxu0 %vm1302_vm0, %v2918_v18  ;;  %v2933_v17 = vld [vmem:[%s4264_s0 + $0x308] ss:$20 sps:$4 sm:$0xff]  }
 0x132   :  { %4277 = vst [vmem:[#allocation12_spill] sm:$0xff] %v3583_v26  ;;  %1904 = vmatprep.mubr.bf16.mxu1 %v2921_v19  ;;  %2635 = vmatprep.mubr.msk.bf16.mxu0 %vm1302_vm0, %v2922_v20  ;;  %v2936_v19 = vld [vmem:[%s4264_s0 + $0x41c] ss:$20 sps:$4 sm:$0xff]  }
 0x133   :  { %v1483_v29 = vpop.f32.mrf.mxu0  ;;  %v1675_v30 = vpop.f32.mrf.mxu1 }
 0x135   :  { %v3587_v31 = vpop.f32.mrf.mxu0  ;;  %v3589_v32 = vpop.f32.mrf.mxu1 }
 0x136   :  { %4278 = vst [vmem:[#allocation13_spill] sm:$0xff] %v3589_v32 }
 0x137   :  { %v1486_v41 = vpop.f32.mrf.mxu0  ;;  %v1678_v42 = vpop.f32.mrf.mxu1 }
 0x139   :  { %v3603_v43 = vpop.f32.mrf.mxu0  ;;  %v3605_v44 = vpop.f32.mrf.mxu1  ;;  %1905 = vmatmul.mubr.bf16.gmra.mxu1 %v2919_v33  ;;  %2636 = vmatmul.mubr.msk.bf16.gmra.mxu0 %vm1302_vm0, %v2923_v34 }
 0x13a   :  { %4279 = vst [vmem:[#allocation14_spill] sm:$0xff] %v3605_v44  ;;  %1912 = vmatprep.mubr.bf16.mxu1 %v2926_v37  ;;  %2639 = vmatprep.mubr.msk.bf16.mxu0 %vm1302_vm0, %v2927_v38  ;;  %v1445_v38 = vadd.f32 %v3612_v49, %v3477_v27  ;;  %v2942_v27 = vld [vmem:[%s4264_s0 + $0x380] ss:$20 sps:$4 sm:$0xff]  }
 0x13b   :  { %v1491_v45 = vpop.f32.mrf.mxu0  ;;  %v1683_v46 = vpop.f32.mrf.mxu1 }
 0x13c   :  { %v2938_v45 = vld [vmem:[%s4264_s0 + $0x358] ss:$20 sps:$4 sm:$0xff]  }
 0x13d   :  { %v3614_v50 = vpop.f32.mrf.mxu0  ;;  %v3616_v53 = vpop.f32.mrf.mxu1 }
 0x13e   :  { %4280 = vst [vmem:[#allocation15_spill] sm:$0xff] %v3616_v53 }
 0x13f   :  { %v1494_v58 = vpop.f32.mrf.mxu0  ;;  %v1686_v61 = vpop.f32.mrf.mxu1 }
 0x141   :  { %v3632_v2 = vpop.f32.mrf.mxu0  ;;  %v1722_v3 = vpop.f32.mrf.mxu1  ;;  %1913 = vmatmul.mubr.bf16.gmra.mxu1 %v2924_v54  ;;  %2640 = vmatmul.mubr.msk.bf16.gmra.mxu0 %vm1302_vm0, %v2928_v55  ;;  %v2941_v54 = vld [vmem:[%s4264_s0 + $0x444] ss:$20 sps:$4 sm:$0xff]  }
 0x142   :  { %v3635_v4 = vadd.f32 %v1722_v3, %v1434_v62  ;;  %1920 = vmatprep.mubr.bf16.mxu1 %v2931_v56  ;;  %2643 = vmatprep.mubr.msk.bf16.mxu0 %vm1302_vm0, %v2932_v57  ;;  %v1450_v57 = vadd.f32 %v3612_v49, %v3493_v35  ;;  %v2939_v35 = vld [vmem:[%s4264_s0 + $0x440] ss:$20 sps:$4 sm:$0xff]  }
 0x143   :  { %v1499_v5 = vpop.f32.mrf.mxu0  ;;  %v1724_v6 = vpop.f32.mrf.mxu1 }
 0x144   :  { %v1453_v6 = vadd.f32 %v3612_v49, %v3499_v39  ;;  %v2947_v39 = vld [vmem:[%s4264_s0 + $0x3d0] ss:$20 sps:$4 sm:$0xff]  }
 0x145   :  { %v3640_v10 = vpop.f32.mrf.mxu0  ;;  %v1725_v11 = vpop.f32.mrf.mxu1 }
 0x146   :  { %v3648_v18 = vadd.f32 %v1725_v11, %v1437_v7 }
 0x147   :  { %v1502_v20 = vpop.f32.mrf.mxu0  ;;  %v1727_v21 = vpop.f32.mrf.mxu1 }
 0x148   :  { %v1458_v21 = vadd.f32 %v3612_v49, %v3515_v47  ;;  %v2944_v47 = vld [vmem:[%s4264_s0 + $0x468] ss:$20 sps:$4 sm:$0xff]  }
 0x149   :  { %v3658_v29 = vpop.f32.mrf.mxu0  ;;  %v1730_v30 = vpop.f32.mrf.mxu1  ;;  %1921 = vmatmul.mubr.bf16.gmra.mxu1 %v2929_v0  ;;  %2644 = vmatmul.mubr.msk.bf16.gmra.mxu0 %vm1302_vm0, %v2933_v17  ;;  %v2943_v0 = vld [vmem:[%s4264_s0 + $0x3a8] ss:$20 sps:$4 sm:$0xff]  }
 0x14a   :  { %v3661_v33 = vadd.f32 %v1730_v30, %v1442_v22  ;;  %1928 = vmatprep.mubr.bf16.mxu1 %v2936_v19  ;;  %2647 = vmatprep.mubr.msk.bf16.mxu0 %vm1302_vm0, %v2937_v15  ;;  %v2946_v19 = vld [vmem:[%s4264_s0 + $0x46c] ss:$20 sps:$4 sm:$0xff]  }
 0x14b   :  { %v1507_v34 = vpop.f32.mrf.mxu0  ;;  %v1732_v37 = vpop.f32.mrf.mxu1 }
 0x14d   :  { %v3666_v41 = vpop.f32.mrf.mxu0  ;;  %v1733_v42 = vpop.f32.mrf.mxu1 }
 0x14e   :  { %v3674_v46 = vadd.f32 %v1733_v42, %v1445_v38  ;;  %v1461_v42 = vadd.f32 %v3612_v49, %v3521_v51  ;;  %v2952_v51 = vld [vmem:[%s4264_s0 + $0x420] ss:$20 sps:$4 sm:$0xff]  }
 0x14f   :  { %v1510_v55 = vpop.f32.mrf.mxu0  ;;  %v1735_v56 = vpop.f32.mrf.mxu1 }
 0x150   :  { %v2951_v55 = vld [vmem:[%s4264_s0 + $0x494] ss:$20 sps:$4 sm:$0xff]  }
 0x151   :  { %v3684_v58 = vpop.f32.mrf.mxu0  ;;  %v1738_v61 = vpop.f32.mrf.mxu1  ;;  %1929 = vmatmul.mubr.bf16.gmra.mxu1 %v2934_v23  ;;  %2648 = vmatmul.mubr.msk.bf16.gmra.mxu0 %vm1302_vm0, %v2938_v45 }
 0x152   :  { %v3687_v62 = vadd.f32 %v1738_v61, %v1450_v57  ;;  %1936 = vmatprep.mubr.bf16.mxu1 %v2941_v54  ;;  %2651 = vmatprep.mubr.msk.bf16.mxu0 %vm1302_vm0, %v2942_v27  ;;  %v2948_v54 = vld [vmem:[%s4264_s0 + $0x3f8] ss:$20 sps:$4 sm:$0xff]   ;;  %v1466_v61 = vadd.f32 %v3612_v49, %v3537_v59  ;;  %v2949_v59 = vld [vmem:[%s4264_s0 + $0x490] ss:$20 sps:$4 sm:$0xff]  }
 0x153   :  { %v1515_v3 = vpop.f32.mrf.mxu0  ;;  %v1740_v5 = vpop.f32.mrf.mxu1 }
 0x155   :  { %v3692_v7 = vpop.f32.mrf.mxu0  ;;  %v1741_v11 = vpop.f32.mrf.mxu1 }
 0x156   :  { %v3700_v17 = vadd.f32 %v1741_v11, %v1453_v6 }
 0x157   :  { %v1518_v15 = vpop.f32.mrf.mxu0  ;;  %v1743_v20 = vpop.f32.mrf.mxu1 }
 0x158   :  { %v2953_v15 = vld [vmem:[%s4264_s0 + $0x448] ss:$20 sps:$4 sm:$0xff]  }
 0x159   :  { %v3710_v22 = vpop.f32.mrf.mxu0  ;;  %v1746_v30 = vpop.f32.mrf.mxu1  ;;  %1937 = vmatmul.mubr.bf16.gmra.mxu1 %v2939_v35  ;;  %2652 = vmatmul.mubr.msk.bf16.gmra.mxu0 %vm1302_vm0, %v2943_v0  ;;  %v1469_v0 = vadd.f32 %v3612_v49, %v3543_v63  ;;  %v2957_v63 = vld [vmem:[%s4264_s0 + $0x470] ss:$20 sps:$4 sm:$0xff]  }
 0x15a   :  { %v3713_v34 = vadd.f32 %v1746_v30, %v1458_v21  ;;  %1944 = vmatprep.mubr.bf16.mxu1 %v2946_v19  ;;  %2655 = vmatprep.mubr.msk.bf16.mxu0 %vm1302_vm0, %v2947_v39  ;;  %v2956_v21 = vld [vmem:[%s4264_s0 + $0x4bc] ss:$20 sps:$4 sm:$0xff]  }
 0x15b   :  { %v1523_v37 = vpop.f32.mrf.mxu0  ;;  %v1748_v38 = vpop.f32.mrf.mxu1 }
 0x15c   :  { %v1474_v38 = vadd.f32 %v3612_v49, %v3559_v8  ;;  %v2954_v8 = vld [vmem:[%s4264_s0 + $0x4b8] ss:$20 sps:$4 sm:$0xff]  }
 0x15d   :  { %v3718_v23 = vpop.f32.mrf.mxu0  ;;  %v1749_v45 = vpop.f32.mrf.mxu1 }
 0x15e   :  { %v3726_v27 = vadd.f32 %v1749_v45, %v1461_v42 }
 0x15f   :  { %v1526_v56 = vpop.f32.mrf.mxu0  ;;  %v1751_v57 = vpop.f32.mrf.mxu1 }
 0x161   :  { %v3736_v3 = vpop.f32.mrf.mxu0  ;;  %v1754_v5 = vpop.f32.mrf.mxu1  ;;  %1945 = vmatmul.mubr.bf16.gmra.mxu1 %v2944_v47  ;;  %2656 = vmatmul.mubr.msk.bf16.gmra.mxu0 %vm1302_vm0, %v2948_v54 }
 0x162   :  { %v3739_v6 = vadd.f32 %v1754_v5, %v1466_v61  ;;  %1952 = vmatprep.mubr.bf16.mxu1 %v2951_v55  ;;  %2659 = vmatprep.mubr.msk.bf16.mxu0 %vm1302_vm0, %v2952_v51  ;;  %v1477_v51 = vadd.f32 %v3612_v49, %v3565_v13  ;;  %v2958_v61 = vld [vmem:[%s4264_s0 + $0x498] ss:$20 sps:$4 sm:$0xff]   ;;  %v2962_v13 = vld [vmem:[%s4264_s0 + $0x4c0] ss:$20 sps:$4 sm:$0xff]  }
 0x163   :  { %v1531_v11 = vpop.f32.mrf.mxu0  ;;  %v1756_v35 = vpop.f32.mrf.mxu1 }
 0x164   :  { %v2961_v11 = vld [vmem:[%s4264_s0 + $0x4e4] ss:$20 sps:$4 sm:$0xff]  }
 0x165   :  { %v3744_v19 = vpop.f32.mrf.mxu0  ;;  %v1757_v39 = vpop.f32.mrf.mxu1 }
 0x166   :  { %v3752_v20 = vadd.f32 %v1757_v39, %v1469_v0  ;;  %v1482_v39 = vadd.f32 %v3612_v49, %v3581_v25  ;;  %v2959_v25 = vld [vmem:[%s4264_s0 + $0x4e0] ss:$20 sps:$4 sm:$0xff]  }
 0x167   :  { %v1534_v30 = vpop.f32.mrf.mxu0  ;;  %v1759_v37 = vpop.f32.mrf.mxu1 }
 0x168   :  { %v1485_v37 = vadd.f32 %v3612_v49, %v3587_v31 }
 0x169   :  { %v3762_v42 = vpop.f32.mrf.mxu0  ;;  %v1762_v45 = vpop.f32.mrf.mxu1  ;;  %1953 = vmatmul.mubr.bf16.gmra.mxu1 %v2949_v59  ;;  %2660 = vmatmul.mubr.msk.bf16.gmra.mxu0 %vm1302_vm0, %v2953_v15 }
 0x16a   :  { %v3765_v47 = vadd.f32 %v1762_v45, %v1474_v38  ;;  %1960 = vmatprep.mubr.bf16.mxu1 %v2956_v21  ;;  %2663 = vmatprep.mubr.msk.bf16.mxu0 %vm1302_vm0, %v2957_v63 }
 0x16b   :  { %v1539_v54 = vpop.f32.mrf.mxu0  ;;  %v1764_v55 = vpop.f32.mrf.mxu1 }
 0x16c   :  { %v2963_v54 = vld [vmem:[%s4264_s0 + $0x4e8] ss:$20 sps:$4 sm:$0xff]  }
 0x16d   :  { %v3770_v56 = vpop.f32.mrf.mxu0  ;;  %v1765_v57 = vpop.f32.mrf.mxu1 }
 0x16e   :  { %v3778_v5 = vadd.f32 %v1765_v57, %v1477_v51 }
 0x16f   :  { %v1542_v35 = vpop.f32.mrf.mxu0  ;;  %v1767_v0 = vpop.f32.mrf.mxu1 }
 0x170   :  { %v1493_v0 = vadd.f32 %v3612_v49, %v3614_v50  ;;  %v1501_v50 = vadd.f32 %v3612_v49, %v3640_v10  ;;  %v1509_v10 = vadd.f32 %v3612_v49, %v3666_v41  ;;  %v1517_v41 = vadd.f32 %v3612_v49, %v3692_v7 }
 0x171   :  { %v3788_v59 = vpop.f32.mrf.mxu0  ;;  %v1770_v15 = vpop.f32.mrf.mxu1  ;;  %1961 = vmatmul.mubr.bf16.gmra.mxu1 %v2954_v8  ;;  %2664 = vmatmul.mubr.msk.bf16.gmra.mxu0 %vm1302_vm0, %v2958_v61  ;;  %v1490_v8 = vadd.f32 %v3612_v49, %v3603_v43  ;;  %v1525_v7 = vadd.f32 %v3612_v49, %v3718_v23  ;;  %v1533_v23 = vadd.f32 %v3612_v49, %v3744_v19 }
 0x172   :  { %v3791_v21 = vadd.f32 %v1770_v15, %v1482_v39  ;;  %1968 = vmatprep.mubr.bf16.mxu1 %v2961_v11  ;;  %2667 = vmatprep.mubr.msk.bf16.mxu0 %vm1302_vm0, %v2962_v13  ;;  %v1541_v19 = vadd.f32 %v3612_v49, %v3770_v56 }
 0x173   :  { %v1547_v63 = vpop.f32.mrf.mxu0  ;;  %v1772_v30 = vpop.f32.mrf.mxu1 }
 0x175   :  { %v3796_v38 = vpop.f32.mrf.mxu0  ;;  %v1773_v45 = vpop.f32.mrf.mxu1 }
 0x176   :  { %v3804_v55 = vadd.f32 %v1773_v45, %v1485_v37  ;;  %v1498_v37 = vadd.f32 %v3612_v49, %v3632_v2  ;;  %v1506_v2 = vadd.f32 %v3612_v49, %v3658_v29  ;;  %v1514_v29 = vadd.f32 %v3612_v49, %v3684_v58 }
 0x177   :  { %v1550_v51 = vpop.f32.mrf.mxu0  ;;  %v1775_v57 = vpop.f32.mrf.mxu1  ;;  %v1522_v58 = vadd.f32 %v3612_v49, %v3710_v22  ;;  %v1530_v22 = vadd.f32 %v3612_v49, %v3736_v3  ;;  %v1538_v3 = vadd.f32 %v3612_v49, %v3762_v42  ;;  %v1546_v42 = vadd.f32 %v3612_v49, %v3788_v59 }
 0x178   :  { %v1549_v56 = vadd.f32 %v3612_v49, %v3796_v38 }
 0x179   :  { %v3808_v61 = vpop.f32.mrf.mxu0  ;;  %v1778_v31 = vpop.f32.mrf.mxu1  ;;  %1969 = vmatmul.mubr.bf16.gmra.mxu1 %v2959_v25  ;;  %2668 = vmatmul.mubr.msk.bf16.gmra.mxu0 %vm1302_vm0, %v2963_v54 }
 0x17a   :  { %v3811_v11 = vadd.f32 %v1778_v31, %v1490_v8 }
 0x17b   :  { %v1555_v13 = vpop.f32.mrf.mxu0  ;;  %v1780_v35 = vpop.f32.mrf.mxu1 }
 0x17d   :  { %v3815_v39 = vpop.f32.mrf.mxu0  ;;  %v1781_v15 = vpop.f32.mrf.mxu1 }
 0x17e   :  { %v3817_v63 = vadd.f32 %v1781_v15, %v1493_v0 }
 0x17f   :  { %v1558_v30 = vpop.f32.mrf.mxu0  ;;  %v1783_v43 = vpop.f32.mrf.mxu1 }
 0x181   :  { %v3821_v45 = vpop.f32.mrf.mxu0  ;;  %v1786_v25 = vpop.f32.mrf.mxu1 }
 0x182   :  { %v3823_v54 = vadd.f32 %v1786_v25, %v1498_v37  ;;  %v1562_v38 = vadd.f32 %v3612_v49, %v3821_v45 }
 0x183   :  { %v1563_v51 = vpop.f32.mrf.mxu0  ;;  %v1788_v57 = vpop.f32.mrf.mxu1 }
 0x185   :  { %v3827_v8 = vpop.f32.mrf.mxu0  ;;  %v1789_v31 = vpop.f32.mrf.mxu1 }
 0x186   :  { %v3829_v13 = vadd.f32 %v1789_v31, %v1501_v50 }
 0x187   :  { %v1566_v35 = vpop.f32.mrf.mxu0  ;;  %v1791_v0 = vpop.f32.mrf.mxu1 }
 0x189   :  { %v3833_v15 = vpop.f32.mrf.mxu0  ;;  %v1794_v30 = vpop.f32.mrf.mxu1 }
 0x18a   :  { %v3835_v43 = vadd.f32 %v1794_v30, %v1506_v2 }
 0x18b   :  { %v1571_v37 = vpop.f32.mrf.mxu0  ;;  %v1796_v25 = vpop.f32.mrf.mxu1 }
 0x18d   :  { %v3839_v51 = vpop.f32.mrf.mxu0  ;;  %v1797_v57 = vpop.f32.mrf.mxu1 }
 0x18e   :  { %v3841_v50 = vadd.f32 %v1797_v57, %v1509_v10 }
 0x18f   :  { %v1574_v31 = vpop.f32.mrf.mxu0  ;;  %v1799_v35 = vpop.f32.mrf.mxu1 }
 0x191   :  { %v3845_v0 = vpop.f32.mrf.mxu0  ;;  %v1802_v53 = vpop.f32.mrf.mxu1 }
 0x192   :  { %v3847_v2 = vadd.f32 %v1802_v53, %v1514_v29 }
 0x193   :  { %v1579_v30 = vpop.f32.mrf.mxu0  ;;  %v1804_v37 = vpop.f32.mrf.mxu1 }
 0x195   :  { %v3851_v25 = vpop.f32.mrf.mxu0  ;;  %v1805_v32 = vpop.f32.mrf.mxu1 }
 0x196   :  { %v3853_v10 = vadd.f32 %v1805_v32, %v1517_v41 }
 0x197   :  { %v1582_v57 = vpop.f32.mrf.mxu0  ;;  %v1807_v31 = vpop.f32.mrf.mxu1 }
 0x199   :  { %v3857_v35 = vpop.f32.mrf.mxu0  ;;  %v1810_v44 = vpop.f32.mrf.mxu1 }
 0x19a   :  { %v3859_v53 = vadd.f32 %v1810_v44, %v1522_v58 }
 0x19b   :  { %v1587_v29 = vpop.f32.mrf.mxu0  ;;  %v1812_v30 = vpop.f32.mrf.mxu1 }
 0x19d   :  { %v3863_v37 = vpop.f32.mrf.mxu0  ;;  %v1813_v26 = vpop.f32.mrf.mxu1 }
 0x19e   :  { %v3865_v32 = vadd.f32 %v1813_v26, %v1525_v7 }
 0x19f   :  { %v1590_v41 = vpop.f32.mrf.mxu0  ;;  %v1815_v57 = vpop.f32.mrf.mxu1 }
 0x1a1   :  { %v3869_v31 = vpop.f32.mrf.mxu0  ;;  %v1818_v1 = vpop.f32.mrf.mxu1 }
 0x1a2   :  { %v3871_v44 = vadd.f32 %v1818_v1, %v1530_v22 }
 0x1a3   :  { %v1595_v58 = vpop.f32.mrf.mxu0  ;;  %v1820_v29 = vpop.f32.mrf.mxu1 }
 0x1a5   :  { %v3875_v30 = vpop.f32.mrf.mxu0  ;;  %v1821_v14 = vpop.f32.mrf.mxu1 }
 0x1a6   :  { %v3877_v26 = vadd.f32 %v1821_v14, %v1533_v23 }
 0x1a7   :  { %v1598_v7 = vpop.f32.mrf.mxu0  ;;  %v1823_v41 = vpop.f32.mrf.mxu1 }
 0x1a9   :  { %v3881_v57 = vpop.f32.mrf.mxu0  ;;  %v1826_v60 = vpop.f32.mrf.mxu1 }
 0x1aa   :  { %v3883_v1 = vadd.f32 %v1826_v60, %v1538_v3 }
 0x1ab   :  { %v1603_v22 = vpop.f32.mrf.mxu0  ;;  %v1828_v58 = vpop.f32.mrf.mxu1 }
 0x1ad   :  { %v3887_v29 = vpop.f32.mrf.mxu0  ;;  %v1829_v9 = vpop.f32.mrf.mxu1 }
 0x1ae   :  { %v3889_v14 = vadd.f32 %v1829_v9, %v1541_v19 }
 0x1af   :  { %v1606_v23 = vpop.f32.mrf.mxu0  ;;  %v1831_v7 = vpop.f32.mrf.mxu1 }
 0x1b1   :  { %v3893_v41 = vpop.f32.mrf.mxu0  ;;  %v1834_v40 = vpop.f32.mrf.mxu1 }
 0x1b2   :  { %v3895_v60 = vadd.f32 %v1834_v40, %v1546_v42 }
 0x1b3   :  { %v1611_v3 = vpop.f32.mrf.mxu0  ;;  %v1836_v22 = vpop.f32.mrf.mxu1 }
 0x1b5   :  { %v3899_v58 = vpop.f32.mrf.mxu0  ;;  %v1837_v52 = vpop.f32.mrf.mxu1 }
 0x1b6   :  { %v3901_v9 = vadd.f32 %v1837_v52, %v1549_v56 }
 0x1b7   :  { %v1614_v19 = vpop.f32.mrf.mxu0  ;;  %v1839_v23 = vpop.f32.mrf.mxu1 }
 0x1b9   :  { %v3903_v7 = vpop.f32.mrf.mxu0  ;;  %v3905_v59 = vpop.f32.mrf.mxu1 }
 0x1bb   :  { %v1619_v36 = vpop.f32.mrf.mxu0  ;;  %v1844_v48 = vpop.f32.mrf.mxu1 }
 0x1bc   :  { %v1565_v36 = vadd.f32 %v3612_v49, %v3827_v8 }
 0x1bd   :  { %v3907_v40 = vpop.f32.mrf.mxu0  ;;  %v3909_v42 = vpop.f32.mrf.mxu1 }
 0x1bf   :  { %v1622_v3 = vpop.f32.mrf.mxu0  ;;  %v1847_v22 = vpop.f32.mrf.mxu1 }
 0x1c1   :  { %v1850_v16 = vpop.f32.mrf.mxu1  ;;  %v2609_v52 = vpop.f32.mrf.mxu0 }
 0x1c2   :  { %v3913_v56 = vadd.f32 %v1850_v16, %v1562_v38  ;;  %v2020_v19 = vadd.f32 %v2609_v52, %v3661_v33 }
 0x1c3   :  { %v1852_v23 = vpop.f32.mrf.mxu1  ;;  %v2011_v28 = vpop.f32.mrf.mxu0 }
 0x1c4   :  { %2268 = vst [vmem:[%s4266_s3 + $0x10] sm:$0xff] %v2020_v19  ;;  %v2012_v48 = vadd.f32 %v2011_v28, %v3635_v4 }
 0x1c5   :  { %v1853_v3 = vpop.f32.mrf.mxu1  ;;  %v2610_v22 = vpop.f32.mrf.mxu0 }
 0x1c6   :  { %2266 = vst [vmem:[%s4266_s3] sm:$0xff] %v2012_v48  ;;  %v3925_v16 = vadd.f32 %v1853_v3, %v1565_v36  ;;  %v2023_v33 = vadd.f32 %v2610_v22, %v3674_v46 }
 0x1c7   :  { %v1855_v45 = vpop.f32.mrf.mxu1  ;;  %v2014_v38 = vpop.f32.mrf.mxu0 }
 0x1c8   :  { %2269 = vst [vmem:[%s4266_s3 + $0x18] sm:$0xff] %v2023_v33  ;;  %v2015_v8 = vadd.f32 %v2014_v38, %v3648_v18 }
 0x1c9   :  { %v3932_v52 = vpop.f32.mrf.mxu1  ;;  %v2613_v28 = vpop.f32.mrf.mxu0 }
 0x1ca   :  { %2267 = vst [vmem:[%s4266_s3 + $0x8] sm:$0xff] %v2015_v8  ;;  %v2036_v4 = vadd.f32 %v2613_v28, %v3713_v34 }
 0x1cb   :  { %v1860_v19 = vpop.f32.mrf.mxu1  ;;  %v2027_v23 = vpop.f32.mrf.mxu0 }
 0x1cc   :  { %2272 = vst [vmem:[%s4266_s3 + $0x30] sm:$0xff] %v2036_v4  ;;  %v2028_v46 = vadd.f32 %v2027_v23, %v3687_v62 }
 0x1cd   :  { %v3942_v36 = vpop.f32.mrf.mxu1  ;;  %v2614_v18 = vpop.f32.mrf.mxu0 }
 0x1ce   :  { %2270 = vst [vmem:[%s4266_s3 + $0x20] sm:$0xff] %v2028_v46  ;;  %v2039_v48 = vadd.f32 %v2614_v18, %v3726_v27 }
 0x1cf   :  { %v1863_v3 = vpop.f32.mrf.mxu1  ;;  %v2030_v22 = vpop.f32.mrf.mxu0 }
 0x1d0   :  { %2273 = vst [vmem:[%s4266_s3 + $0x38] sm:$0xff] %v2039_v48  ;;  %v2031_v34 = vadd.f32 %v2030_v22, %v3700_v17 }
 0x1d1   :  { %v3952_v33 = vpop.f32.mrf.mxu1  ;;  %v2617_v62 = vpop.f32.mrf.mxu0 }
 0x1d2   :  { %2271 = vst [vmem:[%s4266_s3 + $0x28] sm:$0xff] %v2031_v34  ;;  %v2052_v45 = vadd.f32 %v2617_v62, %v3765_v47 }
 0x1d3   :  { %v1868_v38 = vpop.f32.mrf.mxu1  ;;  %v2043_v8 = vpop.f32.mrf.mxu0 }
 0x1d4   :  { %2276 = vst [vmem:[%s4266_s3 + $0x50] sm:$0xff] %v2052_v45  ;;  %v2044_v27 = vadd.f32 %v2043_v8, %v3739_v6 }
 0x1d5   :  { %v3962_v28 = vpop.f32.mrf.mxu1  ;;  %v2618_v17 = vpop.f32.mrf.mxu0 }
 0x1d6   :  { %2274 = vst [vmem:[%s4266_s3 + $0x40] sm:$0xff] %v2044_v27  ;;  %v2055_v4 = vadd.f32 %v2618_v17, %v3778_v5 }
 0x1d7   :  { %v1871_v19 = vpop.f32.mrf.mxu1  ;;  %v2046_v23 = vpop.f32.mrf.mxu0 }
 0x1d8   :  { %2277 = vst [vmem:[%s4266_s3 + $0x58] sm:$0xff] %v2055_v4  ;;  %v2047_v47 = vadd.f32 %v2046_v23, %v3752_v20 }
 0x1d9   :  { %v3972_v46 = vpop.f32.mrf.mxu1  ;;  %v2621_v6 = vpop.f32.mrf.mxu0 }
 0x1da   :  { %2275 = vst [vmem:[%s4266_s3 + $0x48] sm:$0xff] %v2047_v47  ;;  %v2068_v18 = vadd.f32 %v2621_v6, %v3811_v11 }
 0x1db   :  { %v1876_v48 = vpop.f32.mrf.mxu1  ;;  %v2059_v3 = vpop.f32.mrf.mxu0 }
 0x1dc   :  { %2280 = vst [vmem:[%s4266_s3 + $0x70] sm:$0xff] %v2068_v18  ;;  %v2060_v5 = vadd.f32 %v2059_v3, %v3791_v21 }
 0x1dd   :  { %v3982_v22 = vpop.f32.mrf.mxu1  ;;  %v2622_v20 = vpop.f32.mrf.mxu0 }
 0x1de   :  { %2278 = vst [vmem:[%s4266_s3 + $0x60] sm:$0xff] %v2060_v5  ;;  %v2071_v34 = vadd.f32 %v2622_v20, %v3817_v63 }
 0x1df   :  { %v1879_v62 = vpop.f32.mrf.mxu1  ;;  %v2062_v45 = vpop.f32.mrf.mxu0 }
 0x1e0   :  { %2281 = vst [vmem:[%s4266_s3 + $0x78] sm:$0xff] %v2071_v34  ;;  %v2063_v11 = vadd.f32 %v2062_v45, %v3804_v55 }
 0x1e1   :  { %v3992_v38 = vpop.f32.mrf.mxu1  ;;  %v2625_v21 = vpop.f32.mrf.mxu0 }
 0x1e2   :  { %2279 = vst [vmem:[%s4266_s3 + $0x68] sm:$0xff] %v2063_v11  ;;  %v2084_v8 = vadd.f32 %v2625_v21, %v3835_v43 }
 0x1e3   :  { %v1884_v27 = vpop.f32.mrf.mxu1  ;;  %v2075_v17 = vpop.f32.mrf.mxu0 }
 0x1e4   :  { %2284 = vst [vmem:[%s4266_s3 + $0x90] sm:$0xff] %v2084_v8  ;;  %v2076_v63 = vadd.f32 %v2075_v17, %v3823_v54  ;;  %v1554_v17 = vadd.f32 %v3612_v49, %v3808_v61  ;;  %v1557_v61 = vadd.f32 %v3612_v49, %v3815_v39  ;;  %v1570_v39 = vadd.f32 %v3612_v49, %v3833_v15 }
 0x1e5   :  { %v4002_v4 = vpop.f32.mrf.mxu1  ;;  %v2626_v55 = vpop.f32.mrf.mxu0  ;;  %v1573_v15 = vadd.f32 %v3612_v49, %v3839_v51  ;;  %v1586_v51 = vadd.f32 %v3612_v49, %v3857_v35 }
 0x1e6   :  { %2282 = vst [vmem:[%s4266_s3 + $0x80] sm:$0xff] %v2076_v63  ;;  %v2087_v19 = vadd.f32 %v2626_v55, %v3841_v50 }
 0x1e7   :  { %v1887_v23 = vpop.f32.mrf.mxu1  ;;  %v2078_v47 = vpop.f32.mrf.mxu0 }
 0x1e8   :  { %2285 = vst [vmem:[%s4266_s3 + $0x98] sm:$0xff] %v2087_v19  ;;  %v2079_v43 = vadd.f32 %v2078_v47, %v3829_v13  ;;  %v1843_v19 = vadd.f32 %v3905_v59, %v1554_v17  ;;  %v1846_v59 = vadd.f32 %v3909_v42, %v1557_v61  ;;  %v1859_v42 = vadd.f32 %v3932_v52, %v1570_v39 }
 0x1e9   :  { %v4012_v6 = vpop.f32.mrf.mxu1  ;;  %v2629_v54 = vpop.f32.mrf.mxu0  ;;  %v1862_v52 = vadd.f32 %v3942_v36, %v1573_v15  ;;  %v1578_v36 = vadd.f32 %v3612_v49, %v3845_v0  ;;  %v1875_v17 = vadd.f32 %v3972_v46, %v1586_v51  ;;  %v1602_v61 = vadd.f32 %v3612_v49, %v3881_v57 }
 0x1ea   :  { %2283 = vst [vmem:[%s4266_s3 + $0x88] sm:$0xff] %v2079_v43  ;;  %v2100_v18 = vadd.f32 %v2629_v54, %v3859_v53 }
 0x1eb   :  { %v1892_v48 = vpop.f32.mrf.mxu1  ;;  %v2091_v3 = vpop.f32.mrf.mxu0 }
 0x1ec   :  { %2288 = vst [vmem:[%s4266_s3 + $0xb0] sm:$0xff] %v2100_v18  ;;  %v2092_v50 = vadd.f32 %v2091_v3, %v3847_v2 }
 0x1ed   :  { %v4022_v5 = vpop.f32.mrf.mxu1  ;;  %v2630_v13 = vpop.f32.mrf.mxu0 }
 0x1ee   :  { %2286 = vst [vmem:[%s4266_s3 + $0xa0] sm:$0xff] %v2092_v50  ;;  %v2103_v20 = vadd.f32 %v2630_v13, %v3865_v32 }
 0x1ef   :  { %v1895_v34 = vpop.f32.mrf.mxu1  ;;  %v2094_v62 = vpop.f32.mrf.mxu0 }
 0x1f0   :  { %2289 = vst [vmem:[%s4266_s3 + $0xb8] sm:$0xff] %v2103_v20  ;;  %v2095_v53 = vadd.f32 %v2094_v62, %v3853_v10 }
 0x1f1   :  { %v4032_v45 = vpop.f32.mrf.mxu1  ;;  %v2633_v2 = vpop.f32.mrf.mxu0 }
 0x1f2   :  { %2287 = vst [vmem:[%s4266_s3 + $0xa8] sm:$0xff] %v2095_v53  ;;  %v2116_v11 = vadd.f32 %v2633_v2, %v3883_v1 }
 0x1f3   :  { %v1900_v21 = vpop.f32.mrf.mxu1  ;;  %v2107_v8 = vpop.f32.mrf.mxu0 }
 0x1f4   :  { %2292 = vst [vmem:[%s4266_s3 + $0xd0] sm:$0xff] %v2116_v11  ;;  %v2108_v32 = vadd.f32 %v2107_v8, %v3871_v44 }
 0x1f5   :  { %v4042_v27 = vpop.f32.mrf.mxu1  ;;  %v2634_v10 = vpop.f32.mrf.mxu0 }
 0x1f6   :  { %2290 = vst [vmem:[%s4266_s3 + $0xc0] sm:$0xff] %v2108_v32  ;;  %v2119_v1 = vadd.f32 %v2634_v10, %v3889_v14 }
 0x1f7   :  { %v1903_v63 = vpop.f32.mrf.mxu1  ;;  %v2110_v55 = vpop.f32.mrf.mxu0 }
 0x1f8   :  { %2293 = vst [vmem:[%s4266_s3 + $0xd8] sm:$0xff] %v2119_v1  ;;  %v2111_v44 = vadd.f32 %v2110_v55, %v3877_v26  ;;  %v1589_v63 = vadd.f32 %v3612_v49, %v3863_v37  ;;  %v1867_v55 = vadd.f32 %v3952_v33, %v1578_v36 }
 0x1f9   :  { %v4055_v23 = vpop.f32.mrf.mxu1  ;;  %v2637_v47 = vpop.f32.mrf.mxu0 }
 0x1fa   :  { %2291 = vst [vmem:[%s4266_s3 + $0xc8] sm:$0xff] %v2111_v44  ;;  %v2132_v14 = vadd.f32 %v2637_v47, %v1843_v19  ;;  %v1581_v44 = vadd.f32 %v3612_v49, %v3851_v25 }
 0x1fb   :  { %v1908_v43 = vpop.f32.mrf.mxu1  ;;  %v2123_v54 = vpop.f32.mrf.mxu0 }
 0x1fc   :  { %2296 = vst [vmem:[%s4266_s3 + $0xf0] sm:$0xff] %v2132_v14  ;;  %v2124_v26 = vadd.f32 %v2123_v54, %v3895_v60  ;;  %v1870_v14 = vadd.f32 %v3962_v28, %v1581_v44  ;;  %v1594_v54 = vadd.f32 %v3612_v49, %v3869_v31 }
 0x1fd   :  { %v4067_v18 = vpop.f32.mrf.mxu1  ;;  %v2638_v48 = vpop.f32.mrf.mxu0 }
 0x1fe   :  { %2294 = vst [vmem:[%s4266_s3 + $0xe0] sm:$0xff] %v2124_v26  ;;  %v2135_v3 = vadd.f32 %v2638_v48, %v1846_v59  ;;  %v1891_v59 = vadd.f32 %v4012_v6, %v1602_v61  ;;  %v1605_v48 = vadd.f32 %v3612_v49, %v3887_v29  ;;  %v1883_v39 = vadd.f32 %v3992_v38, %v1594_v54 }
 0x1ff   :  { %v1911_v50 = vpop.f32.mrf.mxu1  ;;  %v2126_v13 = vpop.f32.mrf.mxu0 }
 0x200   :  { %2297 = vst [vmem:[%s4266_s3 + $0xf8] sm:$0xff] %v2135_v3  ;;  %v2127_v60 = vadd.f32 %v2126_v13, %v3901_v9  ;;  %v1597_v50 = vadd.f32 %v3612_v49, %v3875_v30  ;;  %v1894_v13 = vadd.f32 %v4022_v5, %v1605_v48 }
 0x201   :  { %v4079_v20 = vpop.f32.mrf.mxu1  ;;  %v2641_v34 = vpop.f32.mrf.mxu0 }
 0x202   :  { %2295 = vst [vmem:[%s4266_s3 + $0xe8] sm:$0xff] %v2127_v60  ;;  %v2148_v62 = vadd.f32 %v2641_v34, %v1859_v42  ;;  %v1618_v60 = vadd.f32 %v3612_v49, %v3903_v7  ;;  %v1886_v34 = vadd.f32 %v4002_v4, %v1597_v50  ;;  %v1621_v4 = vadd.f32 %v3612_v49, %v3907_v40 }
 0x203   :  { %v1916_v53 = vpop.f32.mrf.mxu1  ;;  %v2139_v2 = vpop.f32.mrf.mxu0 }
 0x204   :  { %2300 = vst [vmem:[%s4266_s3 + $0x110] sm:$0xff] %v2148_v62  ;;  %v2140_v9 = vadd.f32 %v2139_v2, %v3913_v56  ;;  %v1610_v62 = vadd.f32 %v3612_v49, %v3893_v41  ;;  %v1907_v53 = vadd.f32 %v4055_v23, %v1618_v60  ;;  %v1613_v23 = vadd.f32 %v3612_v49, %v3899_v58  ;;  %v4286_v60 = vld [vmem:[#allocation5_spill] sm:$0xff] }
 0x205   :  { %v4091_v11 = vpop.f32.mrf.mxu1  ;;  %v2642_v21 = vpop.f32.mrf.mxu0 }
 0x206   :  { %2298 = vst [vmem:[%s4266_s3 + $0x100] sm:$0xff] %v2140_v9  ;;  %v2151_v8 = vadd.f32 %v2642_v21, %v1862_v52  ;;  %v1899_v9 = vadd.f32 %v4032_v45, %v1610_v62  ;;  %v1634_v45 = vadd.f32 %v3612_v49, %v3473_v24  ;;  %v1902_v36 = vadd.f32 %v4042_v27, %v1613_v23  ;;  %v4281_v27 = vld [vmem:[#allocation3_spill] sm:$0xff] }
 0x207   :  { %v1919_v32 = vpop.f32.mrf.mxu1  ;;  %v2142_v10 = vpop.f32.mrf.mxu0 }
 0x208   :  { %2301 = vst [vmem:[%s4266_s3 + $0x118] sm:$0xff] %v2151_v8  ;;  %v2143_v56 = vadd.f32 %v2142_v10, %v3925_v16  ;;  %v1878_v16 = vadd.f32 %v3982_v22, %v1589_v63  ;;  %v1910_v8 = vadd.f32 %v4067_v18, %v1621_v4  ;;  %v1626_v18 = vadd.f32 %v3612_v49, %v3451_v12  ;;  %v4288_v4 = vld [vmem:[#allocation8_spill] sm:$0xff] }
 0x209   :  { %v4105_v1 = vpop.f32.mrf.mxu1  ;;  %v2645_v35 = vpop.f32.mrf.mxu0 }
 0x20a   :  { %2299 = vst [vmem:[%s4266_s3 + $0x108] sm:$0xff] %v2143_v56  ;;  %v2164_v0 = vadd.f32 %v2645_v35, %v1875_v17  ;;  %v1923_v35 = vadd.f32 %v4105_v1, %v1634_v45  ;;  %v4282_v1 = vld [vmem:[#allocation2_spill] sm:$0xff] }
 0x20b   :  { %v1924_v46 = vpop.f32.mrf.mxu1  ;;  %v2155_v19 = vpop.f32.mrf.mxu0 }
 0x20c   :  { %2304 = vst [vmem:[%s4266_s3 + $0x130] sm:$0xff] %v2164_v0  ;;  %v2156_v47 = vadd.f32 %v2155_v19, %v1867_v55  ;;  %v1637_v0 = vadd.f32 %v3612_v49, %v4281_v27  ;;  %v1915_v46 = vadd.f32 %v4079_v20, %v1626_v18  ;;  %v4283_v20 = vld [vmem:[#allocation6_spill] sm:$0xff] }
 0x20d   :  { %v4119_v37 = vpop.f32.mrf.mxu1  ;;  %v2646_v33 = vpop.f32.mrf.mxu0 }
 0x20e   :  { %2302 = vst [vmem:[%s4266_s3 + $0x120] sm:$0xff] %v2156_v47  ;;  %v2167_v25 = vadd.f32 %v2646_v33, %v1878_v16  ;;  %v1629_v16 = vadd.f32 %v3612_v49, %v4282_v1  ;;  %v1926_v47 = vadd.f32 %v4119_v37, %v1637_v0  ;;  %v4284_v37 = vld [vmem:[#allocation4_spill] sm:$0xff] }
 0x20f   :  { %v1927_v43 = vpop.f32.mrf.mxu1  ;;  %v2158_v22 = vpop.f32.mrf.mxu0  ;;  %v4291_v0 = vld [vmem:[#allocation12_spill] sm:$0xff] }
 0x210   :  { %2305 = vst [vmem:[%s4266_s3 + $0x138] sm:$0xff] %v2167_v25  ;;  %v2159_v26 = vadd.f32 %v2158_v22, %v1870_v14  ;;  %v1650_v25 = vadd.f32 %v3612_v49, %v4283_v20  ;;  %v1918_v43 = vadd.f32 %v4091_v11, %v1629_v16  ;;  %v4293_v20 = vld [vmem:[#allocation13_spill] sm:$0xff] }
 0x211   :  { %v4133_v57 = vpop.f32.mrf.mxu1  ;;  %v2649_v28 = vpop.f32.mrf.mxu0 }
 0x212   :  { %2303 = vst [vmem:[%s4266_s3 + $0x128] sm:$0xff] %v2159_v26  ;;  %v2180_v31 = vadd.f32 %v2649_v28, %v1891_v59  ;;  %v1642_v26 = vadd.f32 %v3612_v49, %v4284_v37 }
 0x213   :  { %v1932_v3 = vpop.f32.mrf.mxu1  ;;  %v2171_v6 = vpop.f32.mrf.mxu0 }
 0x214   :  { %2308 = vst [vmem:[%s4266_s3 + $0x150] sm:$0xff] %v2180_v31  ;;  %v2172_v42 = vadd.f32 %v2171_v6, %v1883_v39  ;;  %v4285_v3 = vld [vmem:[#allocation7_spill] sm:$0xff]  ;;  %v1931_v6 = vadd.f32 %v4133_v57, %v1642_v26 }
 0x215   :  { %v4147_v29 = vpop.f32.mrf.mxu1  ;;  %v2650_v38 = vpop.f32.mrf.mxu0  ;;  %v1653_v11 = vadd.f32 %v3612_v49, %v4285_v3 }
 0x216   :  { %2306 = vst [vmem:[%s4266_s3 + $0x140] sm:$0xff] %v2172_v42  ;;  %v2183_v30 = vadd.f32 %v2650_v38, %v1894_v13  ;;  %v2964_v38 = vld [vmem:[%s4265_s2] ss:$0 sm:$0xff] }
 0x217   :  { %v1935_v15 = vpop.f32.mrf.mxu1  ;;  %v2174_v5 = vpop.f32.mrf.mxu0 }
 0x218   :  { %2309 = vst [vmem:[%s4266_s3 + $0x158] sm:$0xff] %v2183_v30  ;;  %v2175_v2 = vadd.f32 %v2174_v5, %v1886_v34  ;;  %v1645_v34 = vadd.f32 %v2964_v38, %v4286_v60  ;;  %v4287_v5 = vld [vmem:[#allocation10_spill] sm:$0xff] }
 0x219   :  { %v1938_v7 = vpop.f32.mrf.mxu1  ;;  %v2653_v52 = vpop.f32.mrf.mxu0  ;;  %v1666_v62 = vadd.f32 %v2964_v38, %v4287_v5 }
 0x21a   :  { %2307 = vst [vmem:[%s4266_s3 + $0x148] sm:$0xff] %v2175_v2  ;;  %v2196_v21 = vadd.f32 %v2653_v52, %v1907_v53  ;;  %v1939_v28 = vadd.f32 %v1938_v7, %v1650_v25  ;;  %v1934_v53 = vadd.f32 %v4147_v29, %v1645_v34  ;;  %v1677_v25 = vadd.f32 %v2964_v38, %v4293_v20 }
 0x21b   :  { %v1940_v41 = vpop.f32.mrf.mxu1  ;;  %v2187_v51 = vpop.f32.mrf.mxu0 }
 0x21c   :  { %2312 = vst [vmem:[%s4266_s3 + $0x170] sm:$0xff] %v2196_v21  ;;  %v2188_v32 = vadd.f32 %v2187_v51, %v1899_v9  ;;  %v1658_v9 = vadd.f32 %v2964_v38, %v4288_v4 }
 0x21d   :  { %v1941_v40 = vpop.f32.mrf.mxu1  ;;  %v2654_v10 = vpop.f32.mrf.mxu0 }
 0x21e   :  { %2310 = vst [vmem:[%s4266_s3 + $0x160] sm:$0xff] %v2188_v32  ;;  %v2199_v17 = vadd.f32 %v2654_v10, %v1910_v8  ;;  %v1942_v30 = vadd.f32 %v1941_v40, %v1653_v11  ;;  %v4289_v8 = vld [vmem:[#allocation11_spill] sm:$0xff] }
 0x21f   :  { %v1943_v58 = vpop.f32.mrf.mxu1  ;;  %v2190_v56 = vpop.f32.mrf.mxu0  ;;  %v1669_v32 = vadd.f32 %v2964_v38, %v4289_v8 }
 0x220   :  { %2313 = vst [vmem:[%s4266_s3 + $0x178] sm:$0xff] %v2199_v17  ;;  %v2191_v63 = vadd.f32 %v2190_v56, %v1902_v36  ;;  %v4290_v36 = vld [vmem:[#allocation9_spill] sm:$0xff] }
 0x221   :  { %v1946_v24 = vpop.f32.mrf.mxu1  ;;  %v2657_v55 = vpop.f32.mrf.mxu0  ;;  %v1661_v17 = vadd.f32 %v2964_v38, %v4290_v36 }
 0x222   :  { %2311 = vst [vmem:[%s4266_s3 + $0x168] sm:$0xff] %v2191_v63  ;;  %v2212_v19 = vadd.f32 %v2657_v55, %v1923_v35  ;;  %v1947_v29 = vadd.f32 %v1946_v24, %v1658_v9 }
 0x223   :  { %v1948_v12 = vpop.f32.mrf.mxu1  ;;  %v2203_v44 = vpop.f32.mrf.mxu0 }
 0x224   :  { %2316 = vst [vmem:[%s4266_s3 + $0x190] sm:$0xff] %v2212_v19  ;;  %v2204_v33 = vadd.f32 %v2203_v44, %v1915_v46  ;;  %v1674_v46 = vadd.f32 %v2964_v38, %v4291_v0  ;;  %v4292_v19 = vld [vmem:[#allocation14_spill] sm:$0xff] }
 0x225   :  { %v1949_v61 = vpop.f32.mrf.mxu1  ;;  %v2658_v14 = vpop.f32.mrf.mxu0  ;;  %v1682_v12 = vadd.f32 %v2964_v38, %v4292_v19 }
 0x226   :  { %2314 = vst [vmem:[%s4266_s3 + $0x180] sm:$0xff] %v2204_v33  ;;  %v2215_v22 = vadd.f32 %v2658_v14, %v1926_v47  ;;  %v1950_v63 = vadd.f32 %v1949_v61, %v1661_v17 }
 0x227   :  { %v1951_v54 = vpop.f32.mrf.mxu1  ;;  %v2206_v59 = vpop.f32.mrf.mxu0 }
 0x228   :  { %2317 = vst [vmem:[%s4266_s3 + $0x198] sm:$0xff] %v2215_v22  ;;  %v2207_v48 = vadd.f32 %v2206_v59, %v1918_v43  ;;  %v4294_v43 = vld [vmem:[#allocation15_spill] sm:$0xff] }
 0x229   :  { %v1954_v39 = vpop.f32.mrf.mxu1  ;;  %v2661_v31 = vpop.f32.mrf.mxu0  ;;  %v1685_v22 = vadd.f32 %v2964_v38, %v4294_v43 }
 0x22a   :  { %2315 = vst [vmem:[%s4266_s3 + $0x188] sm:$0xff] %v2207_v48  ;;  %v2228_v50 = vadd.f32 %v2661_v31, %v1939_v28  ;;  %v1955_v21 = vadd.f32 %v1954_v39, %v1666_v62 }
 0x22b   :  { %v1956_v13 = vpop.f32.mrf.mxu1  ;;  %v2219_v42 = vpop.f32.mrf.mxu0 }
 0x22c   :  { %2320 = vst [vmem:[%s4266_s3 + $0x1b0] sm:$0xff] %v2228_v50  ;;  %v2220_v49 = vadd.f32 %v2219_v42, %v1931_v6 }
 0x22d   :  { %v1957_v57 = vpop.f32.mrf.mxu1  ;;  %v2662_v15 = vpop.f32.mrf.mxu0 }
 0x22e   :  { %2318 = vst [vmem:[%s4266_s3 + $0x1a0] sm:$0xff] %v2220_v49  ;;  %v2231_v2 = vadd.f32 %v2662_v15, %v1942_v30  ;;  %v1958_v58 = vadd.f32 %v1957_v57, %v1669_v32 }
 0x22f   :  { %v1959_v7 = vpop.f32.mrf.mxu1  ;;  %v2222_v52 = vpop.f32.mrf.mxu0 }
 0x230   :  { %2321 = vst [vmem:[%s4266_s3 + $0x1b8] sm:$0xff] %v2231_v2  ;;  %v2223_v41 = vadd.f32 %v2222_v52, %v1934_v53 }
 0x231   :  { %v1962_v51 = vpop.f32.mrf.mxu1  ;;  %v2665_v23 = vpop.f32.mrf.mxu0 }
 0x232   :  { %2319 = vst [vmem:[%s4266_s3 + $0x1a8] sm:$0xff] %v2223_v41  ;;  %v2244_v40 = vadd.f32 %v2665_v23, %v1955_v21  ;;  %v1963_v47 = vadd.f32 %v1962_v51, %v1674_v46 }
 0x233   :  { %v1964_v10 = vpop.f32.mrf.mxu1  ;;  %v2235_v45 = vpop.f32.mrf.mxu0 }
 0x234   :  { %2324 = vst [vmem:[%s4266_s3 + $0x1d0] sm:$0xff] %v2244_v40  ;;  %v2236_v56 = vadd.f32 %v2235_v45, %v1947_v29 }
 0x235   :  { %v1965_v18 = vpop.f32.mrf.mxu1  ;;  %v2666_v35 = vpop.f32.mrf.mxu0 }
 0x236   :  { %2322 = vst [vmem:[%s4266_s3 + $0x1c0] sm:$0xff] %v2236_v56  ;;  %v2247_v24 = vadd.f32 %v2666_v35, %v1958_v58  ;;  %v1966_v28 = vadd.f32 %v1965_v18, %v1677_v25 }
 0x237   :  { %v1967_v55 = vpop.f32.mrf.mxu1  ;;  %v2238_v27 = vpop.f32.mrf.mxu0 }
 0x238   :  { %2325 = vst [vmem:[%s4266_s3 + $0x1d8] sm:$0xff] %v2247_v24  ;;  %v2239_v44 = vadd.f32 %v2238_v27, %v1950_v63 }
 0x239   :  { %v1970_v1 = vpop.f32.mrf.mxu1  ;;  %v2669_v16 = vpop.f32.mrf.mxu0 }
 0x23a   :  { %2323 = vst [vmem:[%s4266_s3 + $0x1c8] sm:$0xff] %v2239_v44  ;;  %v1971_v33 = vadd.f32 %v1970_v1, %v1682_v12 }
 0x23b   :  { %v1972_v61 = vpop.f32.mrf.mxu1  ;;  %v2251_v14 = vpop.f32.mrf.mxu0 }
 0x23c   :  { %v2260_v54 = vadd.f32 %v2669_v16, %v1971_v33  ;;  %v2252_v59 = vadd.f32 %v2251_v14, %v1963_v47 }
 0x23d   :  { %v1973_v37 = vpop.f32.mrf.mxu1  ;;  %v2670_v26 = vpop.f32.mrf.mxu0 }
 0x23e   :  { %2328 = vst [vmem:[%s4266_s3 + $0x1f0] sm:$0xff] %v2260_v54  ;;  %2326 = vst [vmem:[%s4266_s3 + $0x1e0] sm:$0xff] %v2252_v59  ;;  %v1974_v48 = vadd.f32 %v1973_v37, %v1685_v22 }
 0x23f   :  { %v1975_v39 = vpop.f32.mrf.mxu1  ;;  %v2254_v31 = vpop.f32.mrf.mxu0 }
 0x240   :  { %v2263_v3 = vadd.f32 %v2670_v26, %v1974_v48  ;;  %v2255_v11 = vadd.f32 %v2254_v31, %v1966_v28 }
 0x242   :  { %2329 = vst [vmem:[%s4266_s3 + $0x1f8] sm:$0xff] %v2263_v3  ;;  %2327 = vst [vmem:[%s4266_s3 + $0x1e8] sm:$0xff] %v2255_v11 }

// kernel: tile.42
= control target key start
LH: loop header
LB: loop body
LE: loop exit
PB: predicated region body
PF: predicated region fallthrough
CT: control target
= control target key end

     0   :  { %s22_s0 = inlined_call_operand.vmem [shape: f32[16], index: 0, kind: input, shape index: {}]   ;;  %s23_s1 = inlined_call_operand.vmem [shape: f32[4,16], index: 1, kind: output, shape index: {}]  }
   0x1   :  { %v4_v0 = vld [vmem:[%s22_s0] ss:$0 sm:$0xff] }
   0x2   :  { %5 = vst [vmem:[%s23_s1] sm:$0xf] %v4_v0 }

// kernel: tile.43
= control target key start
LH: loop header
LB: loop body
LE: loop exit
PB: predicated region body
PF: predicated region fallthrough
CT: control target
= control target key end

     0   :  { %vm8_vm0 = vcmask 130048   ;;  %s40_s8 = smov 16   ;;  %s41_s9 = smov 32   ;;  %vm14_vm1 = vcmask 523648   ;;  %vm20_vm2 = vcmask 392448   ;;  %vm26_vm3 = vcmask 261248   ;;  %s58_s0 = inlined_call_operand.vmem [shape: f32[4,16], index: 0, kind: input, shape index: {}]   ;;  %s59_s1 = inlined_call_operand.vmem [shape: f32[1,64], index: 1, kind: output, shape index: {}]  }
   0x1   :  { %v5_v0 = vld [vmem:[%s58_s0] sm:$0xf]  ;;  %s39_s0 = smov 48  }
   0x2   :  { %6 = vst [vmem:[#allocation1] sm:$0xf] %v5_v0 }
   0x9   :  { %v11_v1 = vld [vmem:[#allocation1 + $0x3] sm:$0x1]   ;;  %v23_v2 = vld [vmem:[#allocation1 + $0x1] sm:$0x1]   ;;  %v7_v3 = vld [vmem:[#allocation1] sm:$0x1]  }
   0xa   :  { %12 = vrot.lane.b32.xlu0 %v11_v1, %s39_s0  ;;  %24 = vrot.lane.b32.xlu1 %v23_v2, %s40_s8  ;;  %v17_v4 = vld [vmem:[#allocation1 + $0x2] sm:$0x1]   ;;  %9 = vst.msk [vmem:[#allocation0] sm:$0x1] %vm8_vm0, %v7_v3  }
   0xe   :  { %18 = vrot.lane.b32.xlu0 %v17_v4, %s41_s9 }
  0x7c   :  { %v13_v5 = vpop.permute.xlu0 %12   ;;  %v25_v6 = vpop.permute.xlu1 %24  }
  0x7d   :  { %15 = vst.msk [vmem:[#allocation0] sm:$0x1] %vm14_vm1, %v13_v5  }
  0x80   :  { %v19_v7 = vpop.permute.xlu0 %18  }
  0x81   :  { %21 = vst.msk [vmem:[#allocation0] sm:$0x1] %vm20_vm2, %v19_v7  }
  0x82   :  { %27 = vst.msk [vmem:[#allocation0] sm:$0x1] %vm26_vm3, %v25_v6  }
  0x89   :  { %v32_v8 = vld [vmem:[#allocation0] sm:$0x1] }
  0x8a   :  { %35 = vst [vmem:[%s59_s1] sm:$0x1] %v32_v8 }

// kernel: vqvae_forward.16
= control target key start
LH: loop header
LB: loop body
LE: loop exit
PB: predicated region body
PF: predicated region fallthrough
CT: control target
= control target key end

     0   :  { %s2210_s12 = smov 0   ;;  %s2760_s0 = inlined_call_operand.vmem [shape: bf16[2048,288], index: 0, kind: input, shape index: {}]   ;;  %s2761_s1 = inlined_call_operand.vmem [shape: bf16[288,64], index: 1, kind: input, shape index: {}]   ;;  %s2762_s2 = inlined_call_operand.vmem [shape: f32[1,64], index: 2, kind: input, shape index: {}]   ;;  %s2763_s3 = inlined_call_operand.vmem [shape: f32[2048,64], index: 3, kind: output, shape index: {}]  }
   0x1 LB: > { %s1733_s13 = sadd.s32 4294967295, %s2187_s12   ;;  %p1737_p0 = scmp.ge.s32.totalorder %s2187_s12, 1  ;;  %s2187_s12 = sphi %s2210_s12, %s13_s12  }
   0x2   : > { %p139_p1 = scmp.lt.s32.totalorder %s2187_s12, 5 }
   0x4   : > { %p140_p2 = pnand %p1737_p0, %p139_p1 }
   0x5   : > { %s1738_s16 = sshll.u32 (!%p140_p2), %s1733_s13, 6 }
   0x6   : > { %143 = sbr.rel (%p140_p2) target bundleno = 462 (0x1ce), region = 32  ;;  %p165_p3 = scmp.lt.s32.totalorder (!%p140_p2), %s1738_s16, 255 }
   0xb   : > { %v2035_v0 = vld [vmem:[%s2761_s1 + $0x38] sm:$0xff]   ;;  %v2189_v1 = vmov 0   ;;  %v2036_v2 = vld [vmem:[%s2761_s1 + $0x30] sm:$0xff]   ;;  %v2037_v3 = vld [vmem:[%s2761_s1 + $0x28] sm:$0xff]   ;;  %s2765_s16 = smov (!%p165_p3, %s1738_s16), 255  ;;  %vm937_vm0 = vcmask 261120  }
   0xc   : > { %1034 = vmatprep.subr.bf16.mxu0 %v2189_v1  ;;  %1993 = vmatprep.subr.bf16.mxu1 %v2189_v1  ;;  %v2038_v4 = vld [vmem:[%s2761_s1 + $0x20] sm:$0xff]   ;;  %s2025_s23 = smul.u32 12, %s2765_s16  ;;  %v2039_v5 = vld [vmem:[%s2761_s1 + $0x18] sm:$0xff]   ;;  %v2040_v7 = vld [vmem:[%s2761_s1 + $0x10] sm:$0xff]   ;;  %vm1612_vm1 = vcmask 523264  }
   0xd   : > { %1035 = vmatpush1.bf16.msra.mxu0 %v2035_v0  ;;  %2009 = vmatpush1.bf16.msra.mxu1 %v2035_v0  ;;  %v2041_v9 = vld [vmem:[%s2761_s1 + $0x8] sm:$0xff]   ;;  %v2042_v10 = vld [vmem:[%s2761_s1] sm:$0xff]   ;;  %v2043_v11 = vld [vmem:[%s2761_s1 + $0x78] sm:$0xff]  }
   0xe   : > { %1036 = vmatprep.subr.bf16.mxu0 %v2189_v1  ;;  %1994 = vmatprep.subr.bf16.mxu1 %v2189_v1  ;;  %s2247_s28 = scalar_lea.vmem %s2760_s0, %s2025_s23  ;;  %v2044_v12 = vld [vmem:[%s2761_s1 + $0x70] sm:$0xff]   ;;  %v2045_v13 = vld [vmem:[%s2761_s1 + $0x68] sm:$0xff]   ;;  %v2046_v14 = vld [vmem:[%s2761_s1 + $0x60] sm:$0xff]  }
   0xf   : > { %v2053_v6 = vld [vmem:[%s2247_s28 + $0x4] ss:$12 sps:$4 sm:$0xff]   ;;  %v2047_v15 = vld [vmem:[%s2761_s1 + $0x58] sm:$0xff]   ;;  %v2049_v17 = vld [vmem:[%s2761_s1 + $0x48] sm:$0xff]  }
  0x10   : > { %v2056_v8 = vld [vmem:[%s2247_s28 + $0x244] ss:$12 sps:$4 sm:$0xff]   ;;  %1066 = vmatprep.mubr.bf16.mxu0 %v2053_v6  ;;  %v2057_v19 = vld [vmem:[%s2761_s1 + $0x88] sm:$0xff]   ;;  %v2064_v27 = vld [vmem:[%s2247_s28 + $0x34] ss:$12 sps:$4 sm:$0xff]  }
  0x11   : > { %1037 = vmatpush1.bf16.msra.mxu0 %v2036_v2  ;;  %2010 = vmatpush1.bf16.msra.mxu1 %v2036_v2  ;;  %v2048_v16 = vld [vmem:[%s2761_s1 + $0x50] sm:$0xff]   ;;  %v2050_v18 = vld [vmem:[%s2761_s1 + $0x40] sm:$0xff]   ;;  %v2058_v22 = vld [vmem:[%s2247_s28 + $0x1c] ss:$12 sps:$4 sm:$0xff]  }
  0x12   : > { %1038 = vmatprep.subr.bf16.mxu0 %v2189_v1  ;;  %1995 = vmatprep.subr.bf16.mxu1 %v2189_v1  ;;  %v2051_v20 = vld [vmem:[%s2247_s28] ss:$12 sps:$4 sm:$0xff]   ;;  %v2060_v23 = vld [vmem:[%s2247_s28 + $0x25c] ss:$12 sps:$4 sm:$0xff]   ;;  %v2062_v25 = vld [vmem:[%s2247_s28 + $0x18] ss:$12 sps:$4 sm:$0xff]  }
  0x13   : > { %1258 = vmatprep.mubr.bf16.mxu1 %v2056_v8  ;;  %v2054_v21 = vld [vmem:[%s2247_s28 + $0x240] ss:$12 sps:$4 sm:$0xff]   ;;  %v2063_v26 = vld [vmem:[%s2247_s28 + $0x258] ss:$12 sps:$4 sm:$0xff]   ;;  %v2068_v29 = vld [vmem:[%s2247_s28 + $0x30] ss:$12 sps:$4 sm:$0xff]  }
  0x14   : > { %v2082_v24 = vld [vmem:[%s2761_s1 + $0x80] sm:$0xff]   ;;  %v2069_v30 = vld [vmem:[%s2247_s28 + $0x270] ss:$12 sps:$4 sm:$0xff]   ;;  %v2070_v31 = vld [vmem:[%s2247_s28 + $0x4c] ss:$12 sps:$4 sm:$0xff]  }
  0x15   : > { %1039 = vmatpush1.bf16.msra.mxu0 %v2037_v3  ;;  %2011 = vmatpush1.bf16.msra.mxu1 %v2037_v3  ;;  %v2066_v28 = vld [vmem:[%s2247_s28 + $0x274] ss:$12 sps:$4 sm:$0xff]   ;;  %v2072_v32 = vld [vmem:[%s2247_s28 + $0x28c] ss:$12 sps:$4 sm:$0xff]   ;;  %v2076_v35 = vld [vmem:[%s2247_s28 + $0x64] ss:$12 sps:$4 sm:$0xff]  }
  0x16   : > { %1040 = vmatprep.subr.bf16.mxu0 %v2189_v1  ;;  %1996 = vmatprep.subr.bf16.mxu1 %v2189_v1  ;;  %v2074_v33 = vld [vmem:[%s2247_s28 + $0x48] ss:$12 sps:$4 sm:$0xff]   ;;  %v2078_v36 = vld [vmem:[%s2247_s28 + $0x2a4] ss:$12 sps:$4 sm:$0xff]   ;;  %v2080_v37 = vld [vmem:[%s2247_s28 + $0x60] ss:$12 sps:$4 sm:$0xff]  }
  0x17   : > { %v2075_v34 = vld [vmem:[%s2247_s28 + $0x288] ss:$12 sps:$4 sm:$0xff]   ;;  %v2081_v38 = vld [vmem:[%s2247_s28 + $0x2a0] ss:$12 sps:$4 sm:$0xff]   ;;  %v2087_v41 = vld [vmem:[%s2247_s28 + $0x78] ss:$12 sps:$4 sm:$0xff]  }
  0x18   : > { %v2083_v39 = vld [vmem:[%s2247_s28 + $0x7c] ss:$12 sps:$4 sm:$0xff]   ;;  %v2088_v42 = vld [vmem:[%s2247_s28 + $0x2b8] ss:$12 sps:$4 sm:$0xff]   ;;  %v2089_v43 = vld [vmem:[%s2247_s28 + $0x94] ss:$12 sps:$4 sm:$0xff]  }
  0x19   : > { %1041 = vmatpush1.bf16.msra.mxu0 %v2038_v4  ;;  %2012 = vmatpush1.bf16.msra.mxu1 %v2038_v4  ;;  %v2085_v40 = vld [vmem:[%s2247_s28 + $0x2bc] ss:$12 sps:$4 sm:$0xff]   ;;  %v2091_v44 = vld [vmem:[%s2247_s28 + $0x2d4] ss:$12 sps:$4 sm:$0xff]   ;;  %v2095_v47 = vld [vmem:[%s2247_s28 + $0xac] ss:$12 sps:$4 sm:$0xff]  }
  0x1a   : > { %1042 = vmatprep.subr.bf16.mxu0 %v2189_v1  ;;  %1997 = vmatprep.subr.bf16.mxu1 %v2189_v1  ;;  %v2093_v45 = vld [vmem:[%s2247_s28 + $0x90] ss:$12 sps:$4 sm:$0xff]   ;;  %v2097_v48 = vld [vmem:[%s2247_s28 + $0x2ec] ss:$12 sps:$4 sm:$0xff]   ;;  %v2099_v49 = vld [vmem:[%s2247_s28 + $0xa8] ss:$12 sps:$4 sm:$0xff]  }
  0x1b   : > { %v2094_v46 = vld [vmem:[%s2247_s28 + $0x2d0] ss:$12 sps:$4 sm:$0xff]   ;;  %v2100_v50 = vld [vmem:[%s2247_s28 + $0x2e8] ss:$12 sps:$4 sm:$0xff]   ;;  %v2104_v53 = vld [vmem:[%s2247_s28 + $0xc0] ss:$12 sps:$4 sm:$0xff]  }
  0x1c   : > { %v2101_v51 = vld [vmem:[%s2247_s28 + $0xc4] ss:$12 sps:$4 sm:$0xff]   ;;  %v2103_v52 = vld [vmem:[%s2247_s28 + $0x8] ss:$12 sps:$4 sm:$0xff]   ;;  %v2105_v54 = vld [vmem:[%s2247_s28 + $0x20] ss:$12 sps:$4 sm:$0xff]  }
  0x1d   : > { %1043 = vmatpush1.bf16.msra.mxu0 %v2039_v5  ;;  %2013 = vmatpush1.bf16.msra.mxu1 %v2039_v5  ;;  %v2106_v55 = vld [vmem:[%s2247_s28 + $0xdc] ss:$12 sps:$4 sm:$0xff]   ;;  %v2108_v56 = vld [vmem:[%s2247_s28 + $0x38] ss:$12 sps:$4 sm:$0xff]   ;;  %v2111_v59 = vld [vmem:[%s2247_s28 + $0xf4] ss:$12 sps:$4 sm:$0xff]  }
  0x1e   : > { %1044 = vmatprep.subr.bf16.mxu0 %v2189_v1  ;;  %1998 = vmatprep.subr.bf16.mxu1 %v2189_v1  ;;  %v2109_v57 = vld [vmem:[%s2247_s28 + $0xd8] ss:$12 sps:$4 sm:$0xff]   ;;  %v2110_v58 = vld [vmem:[%s2247_s28 + $0x50] ss:$12 sps:$4 sm:$0xff]   ;;  %v2113_v60 = vld [vmem:[%s2247_s28 + $0x68] ss:$12 sps:$4 sm:$0xff]  }
  0x1f   : > { %v2114_v61 = vld [vmem:[%s2247_s28 + $0xf0] ss:$12 sps:$4 sm:$0xff]   ;;  %v2115_v62 = vld [vmem:[%s2247_s28 + $0x80] ss:$12 sps:$4 sm:$0xff]   ;;  %v2118_v0 = vld [vmem:[%s2247_s28 + $0x98] ss:$12 sps:$4 sm:$0xff]  }
  0x20   : > { %v2116_v63 = vld [vmem:[%s2247_s28 + $0x10c] ss:$12 sps:$4 sm:$0xff]   ;;  %v2120_v2 = vld [vmem:[%s2247_s28 + $0xb0] ss:$12 sps:$4 sm:$0xff]   ;;  %v2123_v4 = vld [vmem:[%s2247_s28 + $0xc8] ss:$12 sps:$4 sm:$0xff]  }
  0x21   : > { %1045 = vmatpush1.bf16.msra.mxu0 %v2040_v7  ;;  %2014 = vmatpush1.bf16.msra.mxu1 %v2040_v7  ;;  %v2121_v3 = vld [vmem:[%s2247_s28 + $0x124] ss:$12 sps:$4 sm:$0xff]   ;;  %v2124_v5 = vld [vmem:[%s2247_s28 + $0x120] ss:$12 sps:$4 sm:$0xff]   ;;  %v2126_v7 = vld [vmem:[%s2247_s28 + $0x13c] ss:$12 sps:$4 sm:$0xff]  }
  0x22   : > { %1046 = vmatprep.subr.bf16.mxu0 %v2189_v1  ;;  %1999 = vmatprep.subr.bf16.mxu1 %v2189_v1  ;;  %v2125_v6 = vld [vmem:[%s2247_s28 + $0xe0] ss:$12 sps:$4 sm:$0xff]   ;;  %v2128_v8 = vld [vmem:[%s2247_s28 + $0xf8] ss:$12 sps:$4 sm:$0xff]  }
  0x25   : > { %1047 = vmatpush1.bf16.msra.mxu0 %v2041_v9  ;;  %2015 = vmatpush1.bf16.msra.mxu1 %v2041_v9  ;;  %v2129_v9 = vld [vmem:[%s2247_s28 + $0x138] ss:$12 sps:$4 sm:$0xff]  }
  0x26   : > { %1048 = vmatprep.subr.bf16.mxu0 %v2189_v1  ;;  %2000 = vmatprep.subr.bf16.mxu1 %v2189_v1 }
  0x29   : > { %1049 = vmatpush1.bf16.msra.mxu0 %v2042_v10  ;;  %2016 = vmatpush1.bf16.msra.mxu1 %v2042_v10  ;;  %v2130_v10 = vld [vmem:[%s2247_s28 + $0x110] ss:$12 sps:$4 sm:$0xff]  }
  0x2a   : > { %1050 = vmatprep.subr.bf16.mxu0 %v2189_v1  ;;  %2001 = vmatprep.subr.bf16.mxu1 %v2189_v1 }
  0x2d   : > { %1051 = vmatpush2.bf16.msra.mxu0 %v2043_v11  ;;  %2017 = vmatpush2.bf16.msra.mxu1 %v2043_v11  ;;  %v2131_v11 = vld [vmem:[%s2247_s28 + $0x154] ss:$12 sps:$4 sm:$0xff]  }
  0x2e   : > { %1052 = vmatprep.subr.bf16.mxu0 %v2189_v1  ;;  %2002 = vmatprep.subr.bf16.mxu1 %v2189_v1 }
  0x31   : > { %1053 = vmatpush2.bf16.msra.mxu0 %v2044_v12  ;;  %2018 = vmatpush2.bf16.msra.mxu1 %v2044_v12  ;;  %v2133_v12 = vld [vmem:[%s2247_s28 + $0x128] ss:$12 sps:$4 sm:$0xff]  }
  0x32   : > { %1054 = vmatprep.subr.bf16.mxu0 %v2189_v1  ;;  %2003 = vmatprep.subr.bf16.mxu1 %v2189_v1 }
  0x35   : > { %1055 = vmatpush2.bf16.msra.mxu0 %v2045_v13  ;;  %2019 = vmatpush2.bf16.msra.mxu1 %v2045_v13  ;;  %v2134_v13 = vld [vmem:[%s2247_s28 + $0x150] ss:$12 sps:$4 sm:$0xff]  }
  0x36   : > { %1056 = vmatprep.subr.bf16.mxu0 %v2189_v1  ;;  %2004 = vmatprep.subr.bf16.mxu1 %v2189_v1 }
  0x39   : > { %1057 = vmatpush2.bf16.msra.mxu0 %v2046_v14  ;;  %2020 = vmatpush2.bf16.msra.mxu1 %v2046_v14  ;;  %v2135_v14 = vld [vmem:[%s2247_s28 + $0x140] ss:$12 sps:$4 sm:$0xff]  }
  0x3a   : > { %1058 = vmatprep.subr.bf16.mxu0 %v2189_v1  ;;  %2005 = vmatprep.subr.bf16.mxu1 %v2189_v1 }
  0x3d   : > { %1059 = vmatpush2.bf16.msra.mxu0 %v2047_v15  ;;  %2021 = vmatpush2.bf16.msra.mxu1 %v2047_v15  ;;  %v2136_v15 = vld [vmem:[%s2247_s28 + $0x16c] ss:$12 sps:$4 sm:$0xff]  }
  0x3e   : > { %1060 = vmatprep.subr.bf16.mxu0 %v2189_v1  ;;  %2006 = vmatprep.subr.bf16.mxu1 %v2189_v1 }
  0x41   : > { %1061 = vmatpush2.bf16.msra.mxu0 %v2048_v16  ;;  %2022 = vmatpush2.bf16.msra.mxu1 %v2048_v16  ;;  %v2138_v16 = vld [vmem:[%s2247_s28 + $0x158] ss:$12 sps:$4 sm:$0xff]  }
  0x42   : > { %1062 = vmatprep.subr.bf16.mxu0 %v2189_v1  ;;  %2007 = vmatprep.subr.bf16.mxu1 %v2189_v1 }
  0x45   : > { %1063 = vmatpush2.bf16.msra.mxu0 %v2049_v17  ;;  %2023 = vmatpush2.bf16.msra.mxu1 %v2049_v17  ;;  %v2139_v17 = vld [vmem:[%s2247_s28 + $0x168] ss:$12 sps:$4 sm:$0xff]  }
  0x46   : > { %1064 = vmatprep.subr.bf16.mxu0 %v2189_v1  ;;  %2008 = vmatprep.subr.bf16.mxu1 %v2189_v1  ;;  %v2119_v1 = vld [vmem:[%s2247_s28 + $0x108] ss:$12 sps:$4 sm:$0xff]  }
  0x49   : > { %1065 = vmatpush2.bf16.msra.mxu0 %v2050_v18  ;;  %2024 = vmatpush2.bf16.msra.mxu1 %v2050_v18  ;;  %v2140_v18 = vld [vmem:[%s2247_s28 + $0x170] ss:$12 sps:$4 sm:$0xff]  }
  0x4a   : > { %1925 = vmatprep.subr.bf16.mxu1 %v2057_v19 }
  0x4c   : > { %1067 = vmatmul.mubr.bf16.vlgmr.msra.gmra.mxu0 %v2051_v20  ;;  %1259 = vmatmul.mubr.bf16.vlgmr.msra.gmra.mxu1 %v2054_v21  ;;  %v2143_v20 = vld [vmem:[%s2247_s28 + $0x188] ss:$12 sps:$4 sm:$0xff]   ;;  %v2144_v21 = vld [vmem:[%s2247_s28 + $0x180] ss:$12 sps:$4 sm:$0xff]  }
  0x4d   : > { %1926 = vmatpush3.bf16.msra.mxu1 %v2057_v19  ;;  %1074 = vmatprep.mubr.bf16.mxu0 %v2058_v22  ;;  %v2141_v19 = vld [vmem:[%s2247_s28 + $0x184] ss:$12 sps:$4 sm:$0xff]   ;;  %v2145_v22 = vld [vmem:[%s2247_s28 + $0x1a0] ss:$12 sps:$4 sm:$0xff]  }
  0x4e   : > { %1266 = vmatprep.mubr.bf16.mxu1 %v2060_v23  ;;  %1927 = vmatprep.subr.bf16.mxu1 %v2082_v24  ;;  %v2146_v23 = vld [vmem:[%s2247_s28 + $0x19c] ss:$12 sps:$4 sm:$0xff]  }
  0x51   : > { %1928 = vmatpush3.bf16.msra.mxu1 %v2082_v24  ;;  %v2148_v24 = vld [vmem:[%s2247_s28 + $0x1b8] ss:$12 sps:$4 sm:$0xff]  }
  0x54   : > { %1075 = vmatmul.mubr.bf16.gmra.mxu0 %v2062_v25  ;;  %1267 = vmatmul.mubr.bf16.gmra.mxu1 %v2063_v26  ;;  %v2149_v25 = vld [vmem:[%s2247_s28 + $0x198] ss:$12 sps:$4 sm:$0xff]   ;;  %v2150_v26 = vld [vmem:[%s2247_s28 + $0x1d0] ss:$12 sps:$4 sm:$0xff]  }
  0x55   : > { %1082 = vmatprep.mubr.bf16.mxu0 %v2064_v27  ;;  %1274 = vmatprep.mubr.bf16.mxu1 %v2066_v28  ;;  %v2151_v27 = vld [vmem:[%s2247_s28 + $0x1b4] ss:$12 sps:$4 sm:$0xff]  }
  0x56   : > { %v2153_v28 = vld [vmem:[%s2247_s28 + $0x1e8] ss:$12 sps:$4 sm:$0xff]  }
  0x5c   : > { %1083 = vmatmul.mubr.bf16.gmra.mxu0 %v2068_v29  ;;  %1275 = vmatmul.mubr.bf16.gmra.mxu1 %v2069_v30  ;;  %v2154_v29 = vld [vmem:[%s2247_s28 + $0x1b0] ss:$12 sps:$4 sm:$0xff]   ;;  %v2155_v30 = vld [vmem:[%s2247_s28 + $0x200] ss:$12 sps:$4 sm:$0xff]  }
  0x5d   : > { %1090 = vmatprep.mubr.bf16.mxu0 %v2070_v31  ;;  %1282 = vmatprep.mubr.bf16.mxu1 %v2072_v32  ;;  %v2156_v31 = vld [vmem:[%s2247_s28 + $0x1cc] ss:$12 sps:$4 sm:$0xff]  }
  0x5e   : > { %v2158_v32 = vld [vmem:[%s2247_s28 + $0x218] ss:$12 sps:$4 sm:$0xff]  }
  0x64   : > { %1091 = vmatmul.mubr.bf16.gmra.mxu0 %v2074_v33  ;;  %1283 = vmatmul.mubr.bf16.gmra.mxu1 %v2075_v34  ;;  %v2159_v33 = vld [vmem:[%s2247_s28 + $0x1c8] ss:$12 sps:$4 sm:$0xff]   ;;  %v2160_v34 = vld [vmem:[%s2247_s28 + $0x230] ss:$12 sps:$4 sm:$0xff]  }
  0x65   : > { %1098 = vmatprep.mubr.bf16.mxu0 %v2076_v35  ;;  %1290 = vmatprep.mubr.bf16.mxu1 %v2078_v36  ;;  %v2161_v35 = vld [vmem:[%s2247_s28 + $0x1e4] ss:$12 sps:$4 sm:$0xff]   ;;  %v2163_v36 = vld [vmem:[%s2247_s28 + $0x248] ss:$12 sps:$4 sm:$0xff]  }
  0x6c   : > { %1099 = vmatmul.mubr.bf16.gmra.mxu0 %v2080_v37  ;;  %1291 = vmatmul.mubr.bf16.gmra.mxu1 %v2081_v38  ;;  %v2164_v37 = vld [vmem:[%s2247_s28 + $0x1e0] ss:$12 sps:$4 sm:$0xff]  }
  0x6d   : > { %1106 = vmatprep.mubr.bf16.mxu0 %v2083_v39  ;;  %1298 = vmatprep.mubr.bf16.mxu1 %v2085_v40  ;;  %v2165_v38 = vld [vmem:[%s2247_s28 + $0x260] ss:$12 sps:$4 sm:$0xff]   ;;  %v2166_v39 = vld [vmem:[%s2247_s28 + $0x1fc] ss:$12 sps:$4 sm:$0xff]   ;;  %v2168_v40 = vld [vmem:[%s2247_s28 + $0x278] ss:$12 sps:$4 sm:$0xff]  }
  0x74   : > { %1107 = vmatmul.mubr.bf16.gmra.mxu0 %v2087_v41  ;;  %1299 = vmatmul.mubr.bf16.gmra.mxu1 %v2088_v42  ;;  %v2169_v41 = vld [vmem:[%s2247_s28 + $0x1f8] ss:$12 sps:$4 sm:$0xff]   ;;  %v2170_v42 = vld [vmem:[%s2247_s28 + $0x290] ss:$12 sps:$4 sm:$0xff]  }
  0x75   : > { %1114 = vmatprep.mubr.bf16.mxu0 %v2089_v43  ;;  %1306 = vmatprep.mubr.bf16.mxu1 %v2091_v44  ;;  %v2171_v43 = vld [vmem:[%s2247_s28 + $0x214] ss:$12 sps:$4 sm:$0xff]  }
  0x76   : > { %v2173_v44 = vld [vmem:[%s2247_s28 + $0x2a8] ss:$12 sps:$4 sm:$0xff]  }
  0x7c   : > { %1115 = vmatmul.mubr.bf16.gmra.mxu0 %v2093_v45  ;;  %1307 = vmatmul.mubr.bf16.gmra.mxu1 %v2094_v46  ;;  %v2174_v45 = vld [vmem:[%s2247_s28 + $0x210] ss:$12 sps:$4 sm:$0xff]   ;;  %v2175_v46 = vld [vmem:[%s2247_s28 + $0x2c0] ss:$12 sps:$4 sm:$0xff]  }
  0x7d   : > { %1122 = vmatprep.mubr.bf16.mxu0 %v2095_v47  ;;  %1314 = vmatprep.mubr.bf16.mxu1 %v2097_v48  ;;  %v2176_v47 = vld [vmem:[%s2247_s28 + $0x22c] ss:$12 sps:$4 sm:$0xff]  }
  0x7e   : > { %v2178_v48 = vld [vmem:[%s2247_s28 + $0x2d8] ss:$12 sps:$4 sm:$0xff]  }
  0x84   : > { %1123 = vmatmul.mubr.bf16.gmra.mxu0 %v2099_v49  ;;  %1315 = vmatmul.mubr.bf16.gmra.mxu1 %v2100_v50  ;;  %v2179_v49 = vld [vmem:[%s2247_s28 + $0x228] ss:$12 sps:$4 sm:$0xff]   ;;  %v2180_v50 = vld [vmem:[%s2247_s28 + $0x2f0] ss:$12 sps:$4 sm:$0xff]   ;;  %s1741_s28 = sshll.u32 %s2765_s16, 3 }
  0x85   : > { %1130 = vmatprep.mubr.bf16.mxu0 %v2101_v51  ;;  %1929 = vmatprep.mubr.msk.bf16.mxu1 %vm937_vm0, %v2103_v52  ;;  %s2512_s8 = scalar_lea.vmem %s2763_s3, %s1741_s28 }
  0x8c   : > { %1131 = vmatmul.mubr.bf16.gmra.mxu0 %v2104_v53  ;;  %1930 = vmatmul.mubr.msk.bf16.vlgmr.msra.gmra.mxu1 %vm937_vm0, %v2105_v54 }
  0x8d   : > { %1138 = vmatprep.mubr.bf16.mxu0 %v2106_v55  ;;  %1933 = vmatprep.mubr.msk.bf16.mxu1 %vm937_vm0, %v2108_v56 }
  0x94   : > { %1139 = vmatmul.mubr.bf16.gmra.mxu0 %v2109_v57  ;;  %1934 = vmatmul.mubr.msk.bf16.gmra.mxu1 %vm937_vm0, %v2110_v58 }
  0x95   : > { %1146 = vmatprep.mubr.bf16.mxu0 %v2111_v59  ;;  %1937 = vmatprep.mubr.msk.bf16.mxu1 %vm937_vm0, %v2113_v60 }
  0x9c   : > { %1147 = vmatmul.mubr.bf16.gmra.mxu0 %v2114_v61  ;;  %1938 = vmatmul.mubr.msk.bf16.gmra.mxu1 %vm937_vm0, %v2115_v62 }
  0x9d   : > { %1154 = vmatprep.mubr.bf16.mxu0 %v2116_v63  ;;  %1941 = vmatprep.mubr.msk.bf16.mxu1 %vm937_vm0, %v2118_v0 }
  0xa4   : > { %1155 = vmatmul.mubr.bf16.gmra.mxu0 %v2119_v1  ;;  %1942 = vmatmul.mubr.msk.bf16.gmra.mxu1 %vm937_vm0, %v2120_v2 }
  0xa5   : > { %1162 = vmatprep.mubr.bf16.mxu0 %v2121_v3  ;;  %1945 = vmatprep.mubr.msk.bf16.mxu1 %vm937_vm0, %v2123_v4 }
  0xac   : > { %1163 = vmatmul.mubr.bf16.gmra.mxu0 %v2124_v5  ;;  %1946 = vmatmul.mubr.msk.bf16.gmra.mxu1 %vm937_vm0, %v2125_v6 }
  0xad   : > { %1170 = vmatprep.mubr.bf16.mxu0 %v2126_v7  ;;  %1949 = vmatprep.mubr.msk.bf16.mxu1 %vm937_vm0, %v2128_v8 }
  0xb4   : > { %1171 = vmatmul.mubr.bf16.gmra.mxu0 %v2129_v9  ;;  %1950 = vmatmul.mubr.msk.bf16.gmra.mxu1 %vm937_vm0, %v2130_v10 }
  0xb5   : > { %1178 = vmatprep.mubr.bf16.mxu0 %v2131_v11  ;;  %1953 = vmatprep.mubr.msk.bf16.mxu1 %vm937_vm0, %v2133_v12 }
  0xbc   : > { %1179 = vmatmul.mubr.bf16.gmra.mxu0 %v2134_v13  ;;  %1954 = vmatmul.mubr.msk.bf16.gmra.mxu1 %vm937_vm0, %v2135_v14 }
  0xbd   : > { %1186 = vmatprep.mubr.bf16.mxu0 %v2136_v15  ;;  %1957 = vmatprep.mubr.msk.bf16.mxu1 %vm937_vm0, %v2138_v16 }
  0xc4   : > { %1187 = vmatmul.mubr.bf16.gmra.mxu0 %v2139_v17  ;;  %1958 = vmatmul.mubr.msk.bf16.gmra.mxu1 %vm937_vm0, %v2140_v18 }
  0xc5   : > { %1194 = vmatprep.mubr.bf16.mxu0 %v2141_v19  ;;  %1961 = vmatprep.mubr.msk.bf16.mxu1 %vm937_vm0, %v2143_v20 }
  0xcc   : > { %1195 = vmatmul.mubr.bf16.gmra.mxu0 %v2144_v21  ;;  %1962 = vmatmul.mubr.msk.bf16.gmra.mxu1 %vm937_vm0, %v2145_v22 }
  0xcd   : > { %1202 = vmatprep.mubr.bf16.mxu0 %v2146_v23  ;;  %1965 = vmatprep.mubr.msk.bf16.mxu1 %vm937_vm0, %v2148_v24 }
  0xd4   : > { %1203 = vmatmul.mubr.bf16.gmra.mxu0 %v2149_v25  ;;  %1966 = vmatmul.mubr.msk.bf16.gmra.mxu1 %vm937_vm0, %v2150_v26 }
  0xd5   : > { %1210 = vmatprep.mubr.bf16.mxu0 %v2151_v27  ;;  %1969 = vmatprep.mubr.msk.bf16.mxu1 %vm937_vm0, %v2153_v28 }
  0xdc   : > { %1211 = vmatmul.mubr.bf16.gmra.mxu0 %v2154_v29  ;;  %1970 = vmatmul.mubr.msk.bf16.gmra.mxu1 %vm937_vm0, %v2155_v30 }
  0xdd   : > { %1218 = vmatprep.mubr.bf16.mxu0 %v2156_v31  ;;  %1973 = vmatprep.mubr.msk.bf16.mxu1 %vm937_vm0, %v2158_v32 }
  0xe4   : > { %1219 = vmatmul.mubr.bf16.gmra.mxu0 %v2159_v33  ;;  %1974 = vmatmul.mubr.msk.bf16.gmra.mxu1 %vm937_vm0, %v2160_v34 }
  0xe5   : > { %1226 = vmatprep.mubr.bf16.mxu0 %v2161_v35  ;;  %1977 = vmatprep.mubr.msk.bf16.mxu1 %vm937_vm0, %v2163_v36 }
  0xec   : > { %1227 = vmatmul.mubr.bf16.gmra.mxu0 %v2164_v37  ;;  %1978 = vmatmul.mubr.msk.bf16.gmra.mxu1 %vm937_vm0, %v2165_v38 }
  0xed   : > { %1234 = vmatprep.mubr.bf16.mxu0 %v2166_v39  ;;  %1981 = vmatprep.mubr.msk.bf16.mxu1 %vm937_vm0, %v2168_v40 }
  0xf4   : > { %1235 = vmatmul.mubr.bf16.gmra.mxu0 %v2169_v41  ;;  %1982 = vmatmul.mubr.msk.bf16.gmra.mxu1 %vm937_vm0, %v2170_v42 }
  0xf5   : > { %1242 = vmatprep.mubr.bf16.mxu0 %v2171_v43  ;;  %1985 = vmatprep.mubr.msk.bf16.mxu1 %vm937_vm0, %v2173_v44 }
  0xfc   : > { %1243 = vmatmul.mubr.bf16.gmra.mxu0 %v2174_v45  ;;  %1986 = vmatmul.mubr.msk.bf16.gmra.mxu1 %vm937_vm0, %v2175_v46 }
  0xfd   : > { %1250 = vmatprep.mubr.bf16.mxu0 %v2176_v47  ;;  %1989 = vmatprep.mubr.msk.bf16.mxu1 %vm937_vm0, %v2178_v48 }
 0x104   : > { %1251 = vmatmul.mubr.bf16.gmra.mxu0 %v2179_v49  ;;  %1990 = vmatmul.mubr.msk.bf16.gmra.mxu1 %vm937_vm0, %v2180_v50  ;;  %v2504_v49 = vld [vmem:[%s2762_s2] ss:$0 sm:$0xff] }
 0x10c   : > { %v2440_v51 = vpop.f32.mrf.mxu0  ;;  %v2442_v52 = vpop.f32.mrf.mxu1 }
 0x10e   : > { %v1070_v53 = vpop.f32.mrf.mxu0  ;;  %v1262_v54 = vpop.f32.mrf.mxu1 }
 0x110   : > { %v2444_v55 = vpop.f32.mrf.mxu0  ;;  %v2446_v56 = vpop.f32.mrf.mxu1 }
 0x112   : > { %v1073_v57 = vpop.f32.mrf.mxu0  ;;  %v1265_v58 = vpop.f32.mrf.mxu1 }
 0x114   : > { %v1076_v59 = vpop.f32.mrf.mxu0  ;;  %v2448_v60 = vpop.f32.mrf.mxu1 }
 0x115   : > { %v1077_v54 = vadd.f32 %v2504_v49, %v1076_v59 }
 0x116   : > { %v1078_v61 = vpop.f32.mrf.mxu0  ;;  %v1270_v62 = vpop.f32.mrf.mxu1 }
 0x117   : > { %v1069_v61 = vadd.f32 %v2504_v49, %v2440_v51 }
 0x118   : > { %v2450_v63 = vpop.f32.mrf.mxu0  ;;  %v2452_v0 = vpop.f32.mrf.mxu1 }
 0x119   : > { %v1080_v59 = vadd.f32 %v2504_v49, %v2450_v63 }
 0x11a   : > { %v1081_v1 = vpop.f32.mrf.mxu0  ;;  %v1273_v2 = vpop.f32.mrf.mxu1 }
 0x11c   : > { %v2454_v3 = vpop.f32.mrf.mxu0  ;;  %v2456_v4 = vpop.f32.mrf.mxu1 }
 0x11e   : > { %v1086_v5 = vpop.f32.mrf.mxu0  ;;  %v1278_v6 = vpop.f32.mrf.mxu1 }
 0x120   : > { %v2458_v7 = vpop.f32.mrf.mxu0  ;;  %v2460_v8 = vpop.f32.mrf.mxu1 }
 0x122   : > { %v1089_v9 = vpop.f32.mrf.mxu0  ;;  %v1281_v10 = vpop.f32.mrf.mxu1 }
 0x123   : > { %v1072_v10 = vadd.f32 %v2504_v49, %v2444_v55 }
 0x124   : > { %v1092_v11 = vpop.f32.mrf.mxu0  ;;  %v2462_v12 = vpop.f32.mrf.mxu1 }
 0x126   : > { %v1094_v13 = vpop.f32.mrf.mxu0  ;;  %v1286_v14 = vpop.f32.mrf.mxu1 }
 0x128   : > { %v2464_v15 = vpop.f32.mrf.mxu0  ;;  %v2466_v16 = vpop.f32.mrf.mxu1 }
 0x12a   : > { %v1097_v17 = vpop.f32.mrf.mxu0  ;;  %v1289_v18 = vpop.f32.mrf.mxu1 }
 0x12b   : > { %v1093_v17 = vadd.f32 %v2504_v49, %v1092_v11 }
 0x12c   : > { %v2468_v19 = vpop.f32.mrf.mxu0  ;;  %v2470_v20 = vpop.f32.mrf.mxu1 }
 0x12e   : > { %v1102_v21 = vpop.f32.mrf.mxu0  ;;  %v1294_v22 = vpop.f32.mrf.mxu1 }
 0x12f   : > { %v1085_v22 = vadd.f32 %v2504_v49, %v2454_v3 }
 0x130   : > { %v2472_v23 = vpop.f32.mrf.mxu0  ;;  %v2474_v24 = vpop.f32.mrf.mxu1 }
 0x132   : > { %v1105_v25 = vpop.f32.mrf.mxu0  ;;  %v1297_v26 = vpop.f32.mrf.mxu1 }
 0x134   : > { %v2476_v27 = vpop.f32.mrf.mxu0  ;;  %v2478_v28 = vpop.f32.mrf.mxu1 }
 0x136   : > { %v1110_v29 = vpop.f32.mrf.mxu0  ;;  %v1302_v30 = vpop.f32.mrf.mxu1 }
 0x137   : > { %v1096_v29 = vadd.f32 %v2504_v49, %v2464_v15 }
 0x138   : > { %v2480_v31 = vpop.f32.mrf.mxu0  ;;  %v2482_v32 = vpop.f32.mrf.mxu1 }
 0x13a   : > { %v1113_v33 = vpop.f32.mrf.mxu0  ;;  %v1305_v34 = vpop.f32.mrf.mxu1 }
 0x13b   : > { %v1088_v34 = vadd.f32 %v2504_v49, %v2458_v7 }
 0x13c   : > { %v2484_v35 = vpop.f32.mrf.mxu0  ;;  %v2486_v36 = vpop.f32.mrf.mxu1 }
 0x13e   : > { %v1118_v37 = vpop.f32.mrf.mxu0  ;;  %v1310_v38 = vpop.f32.mrf.mxu1 }
 0x140   : > { %v2488_v39 = vpop.f32.mrf.mxu0  ;;  %v2490_v40 = vpop.f32.mrf.mxu1 }
 0x142   : > { %v1121_v41 = vpop.f32.mrf.mxu0  ;;  %v1313_v42 = vpop.f32.mrf.mxu1 }
 0x143   : > { %v1109_v41 = vadd.f32 %v2504_v49, %v2476_v27 }
 0x144   : > { %v2492_v43 = vpop.f32.mrf.mxu0  ;;  %v2494_v44 = vpop.f32.mrf.mxu1 }
 0x146   : > { %v1126_v45 = vpop.f32.mrf.mxu0  ;;  %v1318_v46 = vpop.f32.mrf.mxu1 }
 0x147   : > { %v1101_v46 = vadd.f32 %v2504_v49, %v2468_v19 }
 0x148   : > { %v2496_v47 = vpop.f32.mrf.mxu0  ;;  %v2498_v48 = vpop.f32.mrf.mxu1 }
 0x14a   : > { %v1129_v50 = vpop.f32.mrf.mxu0  ;;  %v1321_v53 = vpop.f32.mrf.mxu1 }
 0x14c   : > { %v2507_v57 = vpop.f32.mrf.mxu0  ;;  %v1931_v58 = vpop.f32.mrf.mxu1 }
 0x14d   : > { %v1366_v62 = vadd.f32 %v1931_v58, %v1077_v54  ;;  %v1112_v54 = vadd.f32 %v2504_v49, %v2480_v31 }
 0x14e   : > { %v1134_v1 = vpop.f32.mrf.mxu0  ;;  %v1357_v2 = vpop.f32.mrf.mxu1 }
 0x14f   : > { %1615 = vst.msk [vmem:[%s2512_s8 + $0x10] sm:$0xff] %vm1612_vm1, %v1366_v62  ;;  %v1358_v5 = vadd.f32 %v1357_v2, %v1069_v61  ;;  %v1104_v62 = vadd.f32 %v2504_v49, %v2472_v23 }
 0x150   : > { %v2520_v6 = vpop.f32.mrf.mxu0  ;;  %v1932_v9 = vpop.f32.mrf.mxu1 }
 0x151   : > { %1613 = vst.msk [vmem:[%s2512_s8] sm:$0xff] %vm1612_vm1, %v1358_v5  ;;  %v1369_v51 = vadd.f32 %v1932_v9, %v1080_v59  ;;  %v1125_v59 = vadd.f32 %v2504_v49, %v2492_v43 }
 0x152   : > { %v1137_v13 = vpop.f32.mrf.mxu0  ;;  %v1360_v14 = vpop.f32.mrf.mxu1 }
 0x153   : > { %1616 = vst.msk [vmem:[%s2512_s8 + $0x18] sm:$0xff] %vm1612_vm1, %v1369_v51  ;;  %v1361_v63 = vadd.f32 %v1360_v14, %v1072_v10  ;;  %v1117_v10 = vadd.f32 %v2504_v49, %v2484_v35  ;;  %v1128_v14 = vadd.f32 %v2504_v49, %v2496_v47 }
 0x154   : > { %v1140_v18 = vpop.f32.mrf.mxu0  ;;  %v1935_v21 = vpop.f32.mrf.mxu1 }
 0x155   : > { %1614 = vst.msk [vmem:[%s2512_s8 + $0x8] sm:$0xff] %vm1612_vm1, %v1361_v63  ;;  %v1382_v55 = vadd.f32 %v1935_v21, %v1093_v17  ;;  %v1120_v21 = vadd.f32 %v2504_v49, %v2488_v39 }
 0x156   : > { %v1142_v25 = vpop.f32.mrf.mxu0  ;;  %v1373_v26 = vpop.f32.mrf.mxu1 }
 0x157   : > { %1619 = vst.msk [vmem:[%s2512_s8 + $0x30] sm:$0xff] %vm1612_vm1, %v1382_v55  ;;  %v1374_v11 = vadd.f32 %v1373_v26, %v1085_v22  ;;  %v1141_v25 = vadd.f32 %v2504_v49, %v1140_v18 }
 0x158   : > { %v1143_v30 = vpop.f32.mrf.mxu0  ;;  %v1936_v33 = vpop.f32.mrf.mxu1 }
 0x159   : > { %1617 = vst.msk [vmem:[%s2512_s8 + $0x20] sm:$0xff] %vm1612_vm1, %v1374_v11  ;;  %v1385_v3 = vadd.f32 %v1936_v33, %v1096_v29  ;;  %v1133_v11 = vadd.f32 %v2504_v49, %v2507_v57 }
 0x15a   : > { %v1145_v37 = vpop.f32.mrf.mxu0  ;;  %v1376_v38 = vpop.f32.mrf.mxu1 }
 0x15b   : > { %1620 = vst.msk [vmem:[%s2512_s8 + $0x38] sm:$0xff] %vm1612_vm1, %v1385_v3  ;;  %v1377_v15 = vadd.f32 %v1376_v38, %v1088_v34  ;;  %v1144_v3 = vadd.f32 %v2504_v49, %v1143_v30 }
 0x15c   : > { %v1148_v42 = vpop.f32.mrf.mxu0  ;;  %v1939_v45 = vpop.f32.mrf.mxu1 }
 0x15d   : > { %1618 = vst.msk [vmem:[%s2512_s8 + $0x28] sm:$0xff] %vm1612_vm1, %v1377_v15  ;;  %v1398_v7 = vadd.f32 %v1939_v45, %v1109_v41  ;;  %v1136_v41 = vadd.f32 %v2504_v49, %v2520_v6 }
 0x15e   : > { %v1150_v50 = vpop.f32.mrf.mxu0  ;;  %v1389_v53 = vpop.f32.mrf.mxu1 }
 0x15f   : > { %1623 = vst.msk [vmem:[%s2512_s8 + $0x50] sm:$0xff] %vm1612_vm1, %v1398_v7  ;;  %v1390_v27 = vadd.f32 %v1389_v53, %v1101_v46  ;;  %v1149_v53 = vadd.f32 %v2504_v49, %v1148_v42 }
 0x160   : > { %v1151_v58 = vpop.f32.mrf.mxu0  ;;  %v1940_v61 = vpop.f32.mrf.mxu1 }
 0x161   : > { %1621 = vst.msk [vmem:[%s2512_s8 + $0x40] sm:$0xff] %vm1612_vm1, %v1390_v27  ;;  %v1401_v19 = vadd.f32 %v1940_v61, %v1112_v54 }
 0x162   : > { %v1153_v1 = vpop.f32.mrf.mxu0  ;;  %v1392_v2 = vpop.f32.mrf.mxu1 }
 0x163   : > { %1624 = vst.msk [vmem:[%s2512_s8 + $0x58] sm:$0xff] %vm1612_vm1, %v1401_v19  ;;  %v1393_v31 = vadd.f32 %v1392_v2, %v1104_v62  ;;  %v1152_v2 = vadd.f32 %v2504_v49, %v1151_v58 }
 0x164   : > { %v1156_v5 = vpop.f32.mrf.mxu0  ;;  %v1943_v9 = vpop.f32.mrf.mxu1 }
 0x165   : > { %1622 = vst.msk [vmem:[%s2512_s8 + $0x48] sm:$0xff] %vm1612_vm1, %v1393_v31  ;;  %v1414_v23 = vadd.f32 %v1943_v9, %v1125_v59  ;;  %v1157_v46 = vadd.f32 %v2504_v49, %v1156_v5 }
 0x166   : > { %v1158_v51 = vpop.f32.mrf.mxu0  ;;  %v1405_v13 = vpop.f32.mrf.mxu1 }
 0x167   : > { %1627 = vst.msk [vmem:[%s2512_s8 + $0x70] sm:$0xff] %vm1612_vm1, %v1414_v23  ;;  %v1406_v43 = vadd.f32 %v1405_v13, %v1117_v10 }
 0x168   : > { %v1159_v17 = vpop.f32.mrf.mxu0  ;;  %v1944_v63 = vpop.f32.mrf.mxu1 }
 0x169   : > { %1625 = vst.msk [vmem:[%s2512_s8 + $0x60] sm:$0xff] %vm1612_vm1, %v1406_v43  ;;  %v1417_v35 = vadd.f32 %v1944_v63, %v1128_v14  ;;  %v1160_v61 = vadd.f32 %v2504_v49, %v1159_v17 }
 0x16a   : > { %v1161_v22 = vpop.f32.mrf.mxu0  ;;  %v1408_v55 = vpop.f32.mrf.mxu1 }
 0x16b   : > { %1628 = vst.msk [vmem:[%s2512_s8 + $0x78] sm:$0xff] %vm1612_vm1, %v1417_v35  ;;  %v1409_v47 = vadd.f32 %v1408_v55, %v1120_v21 }
 0x16c   : > { %v1164_v26 = vpop.f32.mrf.mxu0  ;;  %v1947_v29 = vpop.f32.mrf.mxu1 }
 0x16d   : > { %1626 = vst.msk [vmem:[%s2512_s8 + $0x68] sm:$0xff] %vm1612_vm1, %v1409_v47  ;;  %v1430_v39 = vadd.f32 %v1947_v29, %v1141_v25  ;;  %v1165_v51 = vadd.f32 %v2504_v49, %v1164_v26 }
 0x16e   : > { %v1166_v33 = vpop.f32.mrf.mxu0  ;;  %v1421_v34 = vpop.f32.mrf.mxu1 }
 0x16f   : > { %1631 = vst.msk [vmem:[%s2512_s8 + $0x90] sm:$0xff] %vm1612_vm1, %v1430_v39  ;;  %v1422_v18 = vadd.f32 %v1421_v34, %v1133_v11 }
 0x170   : > { %v1167_v37 = vpop.f32.mrf.mxu0  ;;  %v1948_v38 = vpop.f32.mrf.mxu1 }
 0x171   : > { %1629 = vst.msk [vmem:[%s2512_s8 + $0x80] sm:$0xff] %vm1612_vm1, %v1422_v18  ;;  %v1433_v57 = vadd.f32 %v1948_v38, %v1144_v3  ;;  %v1168_v35 = vadd.f32 %v2504_v49, %v1167_v37 }
 0x172   : > { %v1169_v15 = vpop.f32.mrf.mxu0  ;;  %v1424_v45 = vpop.f32.mrf.mxu1 }
 0x173   : > { %1632 = vst.msk [vmem:[%s2512_s8 + $0x98] sm:$0xff] %vm1612_vm1, %v1433_v57  ;;  %v1425_v30 = vadd.f32 %v1424_v45, %v1136_v41 }
 0x174   : > { %v1172_v7 = vpop.f32.mrf.mxu0  ;;  %v1951_v50 = vpop.f32.mrf.mxu1 }
 0x175   : > { %1630 = vst.msk [vmem:[%s2512_s8 + $0x88] sm:$0xff] %vm1612_vm1, %v1425_v30  ;;  %v1446_v6 = vadd.f32 %v1951_v50, %v1157_v46  ;;  %v1173_v5 = vadd.f32 %v2504_v49, %v1172_v7 }
 0x176   : > { %v1174_v54 = vpop.f32.mrf.mxu0  ;;  %v1437_v27 = vpop.f32.mrf.mxu1 }
 0x177   : > { %1635 = vst.msk [vmem:[%s2512_s8 + $0xb0] sm:$0xff] %vm1612_vm1, %v1446_v6  ;;  %v1438_v62 = vadd.f32 %v1437_v27, %v1149_v53 }
 0x178   : > { %v1175_v19 = vpop.f32.mrf.mxu0  ;;  %v1952_v1 = vpop.f32.mrf.mxu1 }
 0x179   : > { %1633 = vst.msk [vmem:[%s2512_s8 + $0xa0] sm:$0xff] %vm1612_vm1, %v1438_v62  ;;  %v1449_v42 = vadd.f32 %v1952_v1, %v1160_v61  ;;  %v1176_v43 = vadd.f32 %v2504_v49, %v1175_v19 }
 0x17a   : > { %v1177_v59 = vpop.f32.mrf.mxu0  ;;  %v1440_v31 = vpop.f32.mrf.mxu1 }
 0x17b   : > { %1636 = vst.msk [vmem:[%s2512_s8 + $0xb8] sm:$0xff] %vm1612_vm1, %v1449_v42  ;;  %v1441_v9 = vadd.f32 %v1440_v31, %v1152_v2 }
 0x17c   : > { %v1180_v10 = vpop.f32.mrf.mxu0  ;;  %v1955_v23 = vpop.f32.mrf.mxu1 }
 0x17d   : > { %1634 = vst.msk [vmem:[%s2512_s8 + $0xa8] sm:$0xff] %vm1612_vm1, %v1441_v9  ;;  %v1462_v58 = vadd.f32 %v1955_v23, %v1173_v5  ;;  %v1181_v11 = vadd.f32 %v2504_v49, %v1180_v10 }
 0x17e   : > { %v1182_v13 = vpop.f32.mrf.mxu0  ;;  %v1453_v14 = vpop.f32.mrf.mxu1 }
 0x17f   : > { %1639 = vst.msk [vmem:[%s2512_s8 + $0xd0] sm:$0xff] %vm1612_vm1, %v1462_v58  ;;  %v1454_v17 = vadd.f32 %v1453_v14, %v1165_v51 }
 0x180   : > { %v1183_v63 = vpop.f32.mrf.mxu0  ;;  %v1956_v21 = vpop.f32.mrf.mxu1 }
 0x181   : > { %1637 = vst.msk [vmem:[%s2512_s8 + $0xc0] sm:$0xff] %vm1612_vm1, %v1454_v17  ;;  %v1465_v22 = vadd.f32 %v1956_v21, %v1176_v43  ;;  %v1184_v41 = vadd.f32 %v2504_v49, %v1183_v63 }
 0x182   : > { %v1185_v55 = vpop.f32.mrf.mxu0  ;;  %v1456_v25 = vpop.f32.mrf.mxu1 }
 0x183   : > { %1640 = vst.msk [vmem:[%s2512_s8 + $0xd8] sm:$0xff] %vm1612_vm1, %v1465_v22  ;;  %v1457_v47 = vadd.f32 %v1456_v25, %v1168_v35 }
 0x184   : > { %v1188_v26 = vpop.f32.mrf.mxu0  ;;  %v1959_v29 = vpop.f32.mrf.mxu1 }
 0x185   : > { %1638 = vst.msk [vmem:[%s2512_s8 + $0xc8] sm:$0xff] %vm1612_vm1, %v1457_v47  ;;  %v1189_v39 = vadd.f32 %v2504_v49, %v1188_v26 }
 0x186   : > { %v1190_v33 = vpop.f32.mrf.mxu0  ;;  %v1469_v34 = vpop.f32.mrf.mxu1 }
 0x187   : > { %v1478_v3 = vadd.f32 %v1959_v29, %v1189_v39  ;;  %v1470_v18 = vadd.f32 %v1469_v34, %v1181_v11 }
 0x188   : > { %v1191_v37 = vpop.f32.mrf.mxu0  ;;  %v1960_v38 = vpop.f32.mrf.mxu1 }
 0x189   : > { %1643 = vst.msk [vmem:[%s2512_s8 + $0xf0] sm:$0xff] %vm1612_vm1, %v1478_v3  ;;  %1641 = vst.msk [vmem:[%s2512_s8 + $0xe0] sm:$0xff] %vm1612_vm1, %v1470_v18  ;;  %v1192_v57 = vadd.f32 %v2504_v49, %v1191_v37 }
 0x18a   : > { %v1193_v15 = vpop.f32.mrf.mxu0  ;;  %v1472_v45 = vpop.f32.mrf.mxu1 }
 0x18b   : > { %v1481_v46 = vadd.f32 %v1960_v38, %v1192_v57  ;;  %v1473_v30 = vadd.f32 %v1472_v45, %v1184_v41 }
 0x18c   : > { %v1196_v7 = vpop.f32.mrf.mxu0  ;;  %v1963_v50 = vpop.f32.mrf.mxu1 }
 0x18d   : > { %1644 = vst.msk [vmem:[%s2512_s8 + $0xf8] sm:$0xff] %vm1612_vm1, %v1481_v46  ;;  %1642 = vst.msk [vmem:[%s2512_s8 + $0xe8] sm:$0xff] %vm1612_vm1, %v1473_v30  ;;  %v1197_v53 = vadd.f32 %v2504_v49, %v1196_v7  ;;  %v1269_v7 = vadd.f32 %v2504_v49, %v2448_v60 }
 0x18e   : > { %v1198_v6 = vpop.f32.mrf.mxu0  ;;  %v1485_v54 = vpop.f32.mrf.mxu1 }
 0x18f   : > { %v1486_v27 = vadd.f32 %v1485_v54, %v1197_v53  ;;  %v1261_v54 = vadd.f32 %v2504_v49, %v2442_v52  ;;  %v1264_v52 = vadd.f32 %v2504_v49, %v2446_v56 }
 0x190   : > { %v1199_v61 = vpop.f32.mrf.mxu0  ;;  %v1964_v62 = vpop.f32.mrf.mxu1 }
 0x191   : > { %1645 = vst.msk [vmem:[%s2512_s8 + $0x100] sm:$0xff] %vm1612_vm1, %v1486_v27  ;;  %v1200_v19 = vadd.f32 %v2504_v49, %v1199_v61 }
 0x192   : > { %v1201_v1 = vpop.f32.mrf.mxu0  ;;  %v1488_v2 = vpop.f32.mrf.mxu1 }
 0x193   : > { %v1489_v42 = vadd.f32 %v1488_v2, %v1200_v19  ;;  %v1272_v1 = vadd.f32 %v2504_v49, %v2452_v0 }
 0x194   : > { %v1204_v59 = vpop.f32.mrf.mxu0  ;;  %v1967_v31 = vpop.f32.mrf.mxu1 }
 0x195   : > { %1646 = vst.msk [vmem:[%s2512_s8 + $0x108] sm:$0xff] %vm1612_vm1, %v1489_v42  ;;  %v1205_v5 = vadd.f32 %v2504_v49, %v1204_v59 }
 0x196   : > { %v1206_v9 = vpop.f32.mrf.mxu0  ;;  %v1501_v10 = vpop.f32.mrf.mxu1 }
 0x197   : > { %v1494_v23 = vadd.f32 %v1963_v50, %v1205_v5 }
 0x198   : > { %v1207_v51 = vpop.f32.mrf.mxu0  ;;  %v1968_v58 = vpop.f32.mrf.mxu1 }
 0x199   : > { %1647 = vst.msk [vmem:[%s2512_s8 + $0x110] sm:$0xff] %vm1612_vm1, %v1494_v23  ;;  %v1208_v13 = vadd.f32 %v2504_v49, %v1207_v51 }
 0x19a   : > { %v1209_v14 = vpop.f32.mrf.mxu0  ;;  %v1504_v43 = vpop.f32.mrf.mxu1 }
 0x19b   : > { %v1497_v17 = vadd.f32 %v1964_v62, %v1208_v13  ;;  %v1277_v13 = vadd.f32 %v2504_v49, %v2456_v4 }
 0x19c   : > { %v1212_v63 = vpop.f32.mrf.mxu0  ;;  %v2637_v21 = vpop.f32.mrf.mxu1 }
 0x19d   : > { %1648 = vst.msk [vmem:[%s2512_s8 + $0x118] sm:$0xff] %vm1612_vm1, %v1497_v17  ;;  %v1213_v35 = vadd.f32 %v2504_v49, %v1212_v63  ;;  %v1288_v63 = vadd.f32 %v2504_v49, %v2466_v16 }
 0x19e   : > { %v1214_v22 = vpop.f32.mrf.mxu0  ;;  %v1517_v55 = vpop.f32.mrf.mxu1 }
 0x19f   : > { %v1502_v25 = vadd.f32 %v1501_v10, %v1213_v35  ;;  %v1285_v10 = vadd.f32 %v2504_v49, %v2462_v12 }
 0x1a0   : > { %v1215_v47 = vpop.f32.mrf.mxu0  ;;  %v2642_v26 = vpop.f32.mrf.mxu1 }
 0x1a1   : > { %1649 = vst.msk [vmem:[%s2512_s8 + $0x120] sm:$0xff] %vm1612_vm1, %v1502_v25  ;;  %v1216_v29 = vadd.f32 %v2504_v49, %v1215_v47  ;;  %v1280_v25 = vadd.f32 %v2504_v49, %v2460_v8 }
 0x1a2   : > { %v1217_v11 = vpop.f32.mrf.mxu0  ;;  %v1520_v39 = vpop.f32.mrf.mxu1 }
 0x1a3   : > { %v1505_v33 = vadd.f32 %v1504_v43, %v1216_v29 }
 0x1a4   : > { %v1220_v34 = vpop.f32.mrf.mxu0  ;;  %v2647_v3 = vpop.f32.mrf.mxu1 }
 0x1a5   : > { %1650 = vst.msk [vmem:[%s2512_s8 + $0x128] sm:$0xff] %vm1612_vm1, %v1505_v33  ;;  %v1221_v18 = vadd.f32 %v2504_v49, %v1220_v34 }
 0x1a6   : > { %v1222_v37 = vpop.f32.mrf.mxu0  ;;  %v2652_v38 = vpop.f32.mrf.mxu1 }
 0x1a7   : > { %v1510_v41 = vadd.f32 %v1967_v31, %v1221_v18  ;;  %v1293_v18 = vadd.f32 %v2504_v49, %v2470_v20 }
 0x1a8   : > { %v1223_v57 = vpop.f32.mrf.mxu0  ;;  %v2654_v15 = vpop.f32.mrf.mxu1 }
 0x1a9   : > { %1651 = vst.msk [vmem:[%s2512_s8 + $0x130] sm:$0xff] %vm1612_vm1, %v1510_v41  ;;  %v1224_v45 = vadd.f32 %v2504_v49, %v1223_v57 }
 0x1aa   : > { %v1225_v46 = vpop.f32.mrf.mxu0  ;;  %v2659_v30 = vpop.f32.mrf.mxu1 }
 0x1ab   : > { %v1513_v50 = vadd.f32 %v1968_v58, %v1224_v45 }
 0x1ac   : > { %v1228_v53 = vpop.f32.mrf.mxu0  ;;  %v1979_v6 = vpop.f32.mrf.mxu1 }
 0x1ad   : > { %1652 = vst.msk [vmem:[%s2512_s8 + $0x138] sm:$0xff] %vm1612_vm1, %v1513_v50  ;;  %v1229_v27 = vadd.f32 %v2504_v49, %v1228_v53  ;;  %v1558_v61 = vadd.f32 %v1979_v6, %v1269_v7  ;;  %v1296_v50 = vadd.f32 %v2504_v49, %v2474_v24 }
 0x1ae   : > { %v1230_v62 = vpop.f32.mrf.mxu0  ;;  %v1549_v19 = vpop.f32.mrf.mxu1 }
 0x1af   : > { %v1518_v60 = vadd.f32 %v1517_v55, %v1229_v27  ;;  %1663 = vst.msk [vmem:[%s2512_s8 + $0x190] sm:$0xff] %vm1612_vm1, %v1558_v61  ;;  %v1550_v2 = vadd.f32 %v1549_v19, %v1261_v54  ;;  %v1309_v19 = vadd.f32 %v2504_v49, %v2486_v36 }
 0x1b0   : > { %v1231_v42 = vpop.f32.mrf.mxu0  ;;  %v1980_v59 = vpop.f32.mrf.mxu1 }
 0x1b1   : > { %1653 = vst.msk [vmem:[%s2512_s8 + $0x140] sm:$0xff] %vm1612_vm1, %v1518_v60  ;;  %1661 = vst.msk [vmem:[%s2512_s8 + $0x180] sm:$0xff] %vm1612_vm1, %v1550_v2  ;;  %v1232_v31 = vadd.f32 %v2504_v49, %v1231_v42  ;;  %v1561_v5 = vadd.f32 %v1980_v59, %v1272_v1  ;;  %v1320_v2 = vadd.f32 %v2504_v49, %v2498_v48 }
 0x1b2   : > { %v1233_v9 = vpop.f32.mrf.mxu0  ;;  %v1552_v0 = vpop.f32.mrf.mxu1 }
 0x1b3   : > { %v1521_v23 = vadd.f32 %v1520_v39, %v1232_v31  ;;  %1664 = vst.msk [vmem:[%s2512_s8 + $0x198] sm:$0xff] %vm1612_vm1, %v1561_v5  ;;  %v1553_v51 = vadd.f32 %v1552_v0, %v1264_v52  ;;  %v1312_v31 = vadd.f32 %v2504_v49, %v2490_v40 }
 0x1b4   : > { %v1236_v58 = vpop.f32.mrf.mxu0  ;;  %v1983_v56 = vpop.f32.mrf.mxu1 }
 0x1b5   : > { %1654 = vst.msk [vmem:[%s2512_s8 + $0x148] sm:$0xff] %vm1612_vm1, %v1521_v23  ;;  %1662 = vst.msk [vmem:[%s2512_s8 + $0x188] sm:$0xff] %vm1612_vm1, %v1553_v51  ;;  %v1237_v14 = vadd.f32 %v2504_v49, %v1236_v58  ;;  %v1574_v43 = vadd.f32 %v1983_v56, %v1285_v10 }
 0x1b6   : > { %v1238_v17 = vpop.f32.mrf.mxu0  ;;  %v1565_v12 = vpop.f32.mrf.mxu1 }
 0x1b7   : > { %v1526_v35 = vadd.f32 %v2637_v21, %v1237_v14  ;;  %1667 = vst.msk [vmem:[%s2512_s8 + $0x1b0] sm:$0xff] %vm1612_vm1, %v1574_v43  ;;  %v1566_v22 = vadd.f32 %v1565_v12, %v1277_v13  ;;  %v1301_v21 = vadd.f32 %v2504_v49, %v2478_v28 }
 0x1b8   : > { %v1239_v55 = vpop.f32.mrf.mxu0  ;;  %v1984_v4 = vpop.f32.mrf.mxu1 }
 0x1b9   : > { %1655 = vst.msk [vmem:[%s2512_s8 + $0x150] sm:$0xff] %vm1612_vm1, %v1526_v35  ;;  %1665 = vst.msk [vmem:[%s2512_s8 + $0x1a0] sm:$0xff] %vm1612_vm1, %v1566_v22  ;;  %v1240_v47 = vadd.f32 %v2504_v49, %v1239_v55  ;;  %v1577_v29 = vadd.f32 %v1984_v4, %v1288_v63 }
 0x1ba   : > { %v1241_v16 = vpop.f32.mrf.mxu0  ;;  %v1568_v11 = vpop.f32.mrf.mxu1 }
 0x1bb   : > { %v1529_v39 = vadd.f32 %v2642_v26, %v1240_v47  ;;  %1668 = vst.msk [vmem:[%s2512_s8 + $0x1b8] sm:$0xff] %vm1612_vm1, %v1577_v29  ;;  %v1569_v33 = vadd.f32 %v1568_v11, %v1280_v25  ;;  %v1304_v26 = vadd.f32 %v2504_v49, %v2482_v32 }
 0x1bc   : > { %v1244_v34 = vpop.f32.mrf.mxu0  ;;  %v1987_v8 = vpop.f32.mrf.mxu1 }
 0x1bd   : > { %1656 = vst.msk [vmem:[%s2512_s8 + $0x158] sm:$0xff] %vm1612_vm1, %v1529_v39  ;;  %1666 = vst.msk [vmem:[%s2512_s8 + $0x1a8] sm:$0xff] %vm1612_vm1, %v1569_v33  ;;  %v1245_v37 = vadd.f32 %v2504_v49, %v1244_v34  ;;  %v1590_v41 = vadd.f32 %v1987_v8, %v1301_v21 }
 0x1be   : > { %v1246_v28 = vpop.f32.mrf.mxu0  ;;  %v1581_v57 = vpop.f32.mrf.mxu1 }
 0x1bf   : > { %v1534_v45 = vadd.f32 %v2652_v38, %v1245_v37  ;;  %1671 = vst.msk [vmem:[%s2512_s8 + $0x1d0] sm:$0xff] %vm1612_vm1, %v1590_v41  ;;  %v1582_v46 = vadd.f32 %v1581_v57, %v1293_v18  ;;  %v1317_v38 = vadd.f32 %v2504_v49, %v2494_v44 }
 0x1c0   : > { %v1247_v7 = vpop.f32.mrf.mxu0  ;;  %v1988_v20 = vpop.f32.mrf.mxu1 }
 0x1c1   : > { %1657 = vst.msk [vmem:[%s2512_s8 + $0x160] sm:$0xff] %vm1612_vm1, %v1534_v45  ;;  %1669 = vst.msk [vmem:[%s2512_s8 + $0x1c0] sm:$0xff] %vm1612_vm1, %v1582_v46  ;;  %v1248_v53 = vadd.f32 %v2504_v49, %v1247_v7  ;;  %v1593_v6 = vadd.f32 %v1988_v20, %v1304_v26 }
 0x1c2   : > { %v1249_v32 = vpop.f32.mrf.mxu0  ;;  %v1584_v54 = vpop.f32.mrf.mxu1 }
 0x1c3   : > { %v1537_v27 = vadd.f32 %v2659_v30, %v1248_v53  ;;  %1672 = vst.msk [vmem:[%s2512_s8 + $0x1d8] sm:$0xff] %vm1612_vm1, %v1593_v6  ;;  %v1585_v61 = vadd.f32 %v1584_v54, %v1296_v50 }
 0x1c4   : > { %v1252_v62 = vpop.f32.mrf.mxu0  ;;  %v1991_v24 = vpop.f32.mrf.mxu1 }
 0x1c5   : > { %1658 = vst.msk [vmem:[%s2512_s8 + $0x168] sm:$0xff] %vm1612_vm1, %v1537_v27  ;;  %1670 = vst.msk [vmem:[%s2512_s8 + $0x1c8] sm:$0xff] %vm1612_vm1, %v1585_v61  ;;  %v1253_v1 = vadd.f32 %v2504_v49, %v1252_v62  ;;  %v1606_v60 = vadd.f32 %v1991_v24, %v1317_v38 }
 0x1c6   : > { %v1254_v44 = vpop.f32.mrf.mxu0  ;;  %v1597_v30 = vpop.f32.mrf.mxu1 }
 0x1c7   : > { %v1542_v42 = vadd.f32 %v2647_v3, %v1253_v1  ;;  %1675 = vst.msk [vmem:[%s2512_s8 + $0x1f0] sm:$0xff] %vm1612_vm1, %v1606_v60  ;;  %v1598_v36 = vadd.f32 %v1597_v30, %v1309_v19 }
 0x1c8   : > { %v1255_v59 = vpop.f32.mrf.mxu0  ;;  %v1992_v52 = vpop.f32.mrf.mxu1 }
 0x1c9   : > { %1659 = vst.msk [vmem:[%s2512_s8 + $0x170] sm:$0xff] %vm1612_vm1, %v1542_v42  ;;  %1673 = vst.msk [vmem:[%s2512_s8 + $0x1e0] sm:$0xff] %vm1612_vm1, %v1598_v36  ;;  %v1256_v5 = vadd.f32 %v2504_v49, %v1255_v59  ;;  %v1609_v9 = vadd.f32 %v1992_v52, %v1320_v2 }
 0x1ca   : > { %v1257_v48 = vpop.f32.mrf.mxu0  ;;  %v1600_v0 = vpop.f32.mrf.mxu1 }
 0x1cb   : > { %v1545_v3 = vadd.f32 %v2654_v15, %v1256_v5  ;;  %1676 = vst.msk [vmem:[%s2512_s8 + $0x1f8] sm:$0xff] %vm1612_vm1, %v1609_v9  ;;  %v1601_v10 = vadd.f32 %v1600_v0, %v1312_v31 }
 0x1cd   : > { %1660 = vst.msk [vmem:[%s2512_s8 + $0x178] sm:$0xff] %vm1612_vm1, %v1545_v3  ;;  %1674 = vst.msk [vmem:[%s2512_s8 + $0x1e8] sm:$0xff] %vm1612_vm1, %v1601_v10 }
 0x1ce PF: > { %s13_s12 = sadd.s32 1, %s2187_s12  }
 0x1cf   : > { %p10_p4 = scmp.ge.s32.totalorder %s13_s12, 6  }
 0x1d1   :  { %12 = sbr.rel (!%p10_p4) target bundleno = 1 (0x1), region = 62 }

// kernel: squeeze.2
= control target key start
LH: loop header
LB: loop body
LE: loop exit
PB: predicated region body
PF: predicated region fallthrough
CT: control target
= control target key end

     0   :  { %s139_s0 = inlined_call_operand.vmem [shape: s32[32], index: 0, kind: input, shape index: {}]   ;;  %s140_s1 = inlined_call_operand.hbm [shape: s32[2,4,4], index: 1, kind: output, shape index: {}]  }
   0x1   :  { %v6_v0 = vld [vmem:[%s139_s0] sm:$0x1] }
   0x2   :  { %7 = vst [vmem:[#allocation3] sm:$0x1] %v6_v0 }
   0x3   :  { %2 = vsyncpa [#allocation1], 0  ;;  %s107_s0 = smov 124   ;;  %s108_s8 = smov 116   ;;  %vm9_vm0 = vcmask 31744  }
   0x4   :  { %s109_s9 = smov 120   ;;  %s110_s10 = smov 112  }
   0x5   :  { %s111_s11 = smov 108   ;;  %s112_s12 = smov 104  }
   0x6   :  { %s113_s13 = smov 100   ;;  %s114_s14 = smov [#allocation0]  }
   0x7   :  { %s71_s15 = sshll.u32 %s114_s14, 4  ;;  %s72_s15 = int_to_ptr.vmem [resolvable:$true] %s71_s15 }
   0x8   :  { %s85_s16 = scalar_lea.vmem %s72_s15, 128  ;;  %p90_p1 = scmp.lt.s32.totalorder %s72_s15, %s72_s15 }
   0x9   :  { %v11_v1 = vld [vmem:[#allocation3] sm:$0x1]   ;;  %p86_p0 = scmp.ne.s32.totalorder %s72_s15, %s85_s16  ;;  %p91_p2 = scmp.lt.s32.totalorder %s85_s16, %s85_s16 }
   0xa   :  { %v23_v2 = vld [vmem:[#allocation3] sm:$0x1]   ;;  %12 = vrot.lane.b32.xlu0 %v11_v1, %s107_s0 }
   0xb   :  { %24 = vrot.lane.b32.xlu1 %v23_v2, %s108_s8  ;;  %v17_v3 = vld [vmem:[#allocation3] sm:$0x1]   ;;  %p92_p3 = por %p91_p2, %p90_p1 }
   0xc   :  { %v29_v4 = vld [vmem:[#allocation3] sm:$0x1]  }
   0xd   :  { %v8_v5 = vld [vmem:[#allocation3] sm:$0x1]   ;;  %p93_p4 = pnand %p92_p3, %p86_p0 }
   0xe   :  { %10 = vst.msk [vmem:[#allocation2] sm:$0x1] %vm9_vm0, %v8_v5   ;;  %18 = vrot.lane.b32.xlu0 %v17_v3, %s109_s9  ;;  %v35_v6 = vld [vmem:[#allocation3] sm:$0x1]  }
   0xf   :  { %30 = vrot.lane.b32.xlu1 %v29_v4, %s110_s10  ;;  %v41_v7 = vld [vmem:[#allocation3] sm:$0x1]  }
  0x10   :  { %v47_v8 = vld [vmem:[#allocation3] sm:$0x1]  }
  0x12   :  { %36 = vrot.lane.b32.xlu0 %v35_v6, %s111_s11 }
  0x13   :  { %42 = vrot.lane.b32.xlu1 %v41_v7, %s112_s12 }
  0x16   :  { %48 = vrot.lane.b32.xlu0 %v47_v8, %s113_s13 }
  0x7c   :  { %v13_v9 = vpop.permute.xlu0 %12  }
  0x7d   :  { %v25_v10 = vpop.permute.xlu1 %24   ;;  %16 = vst.msk [vmem:[#allocation2 + $0x1] sm:$0x1] %vm9_vm0, %v13_v9  }
  0x7e   :  { %28 = vst.msk [vmem:[#allocation2 + $0x3] sm:$0x1] %vm9_vm0, %v25_v10  }
  0x80   :  { %v19_v11 = vpop.permute.xlu0 %18  }
  0x81   :  { %v31_v12 = vpop.permute.xlu1 %30   ;;  %22 = vst.msk [vmem:[#allocation2 + $0x2] sm:$0x1] %vm9_vm0, %v19_v11  }
  0x82   :  { %34 = vst.msk [vmem:[#allocation2 + $0x8] sm:$0x1] %vm9_vm0, %v31_v12  }
  0x84   :  { %v37_v13 = vpop.permute.xlu0 %36  }
  0x85   :  { %v43_v14 = vpop.permute.xlu1 %42   ;;  %40 = vst.msk [vmem:[#allocation2 + $0x9] sm:$0x1] %vm9_vm0, %v37_v13  }
  0x86   :  { %46 = vst.msk [vmem:[#allocation2 + $0xa] sm:$0x1] %vm9_vm0, %v43_v14  }
  0x88   :  { %v49_v15 = vpop.permute.xlu0 %48   ;;  %v57_v16 = vld [vmem:[#allocation2] sm:$0xf] }
  0x89   :  { %52 = vst.msk [vmem:[#allocation2 + $0xb] sm:$0x1] %vm9_vm0, %v49_v15   ;;  %60 = vst [vmem:[#allocation0] sm:$0xf] %v57_v16 }
  0x90   :  { %v62_v17 = vld [vmem:[#allocation2 + $0x8] sm:$0xf] }
  0x91   :  { %66 = vst [vmem:[#allocation0 + $0x4] sm:$0xf] %v62_v17 }
  0x92   :  { %96 = shalt.err (!%p93_p4)
}
  0x93   :  { %74 = dma.vmem_to_hbm [thread:$0]  %s72_s15, 128, %s140_s1, [#allocation1]  }
  0x94   :  { %105 = dma.done.wait [#allocation1], 128  }
  0x95   :  { %106 = vsyncadd [#allocation1], 4294967168 }
  0x96   :  { %76 = vsyncpa [#allocation1], 1 }

// kernel: vqvae_forward.17
= control target key start
LH: loop header
LB: loop body
LE: loop exit
PB: predicated region body
PF: predicated region fallthrough
CT: control target
= control target key end

     0   :  { %s3674_s18 = smov 0   ;;  %s5610_s0 = inlined_call_operand.vmem [shape: f32[2,64,1024], index: 0, kind: input, shape index: {}]   ;;  %s5611_s1 = inlined_call_operand.vmem [shape: f32[3,1024,64], index: 1, kind: input, shape index: {}]   ;;  %s5612_s2 = inlined_call_operand.vmem [shape: f32[3,28,64], index: 2, kind: input, shape index: {}]   ;;  %s5613_s3 = inlined_call_operand.vmem [shape: f32[64,28], index: 3, kind: input, shape index: {}]   ;;  %s5614_s4 = inlined_call_operand.vmem [shape: f32[1,28], index: 4, kind: input, shape index: {}]   ;;  %s5615_s5 = inlined_call_operand.vmem [shape: f32[2,28,28], index: 5, kind: output, shape index: {}]  }
   0x1 LB: > { %s2442_s19 = sadd.s32 4294967295, %s3642_s18   ;;  %p2446_p0 = scmp.ge.s32.totalorder %s3642_s18, 1  ;;  %s3642_s18 = sphi %s3674_s18, %s15_s18  }
   0x2   : > { %p187_p1 = scmp.lt.s32.totalorder %s3642_s18, 3 }
   0x4   : > { %p188_p2 = pnand %p2446_p0, %p187_p1 }
   0x6   : > { %191 = sbr.rel (%p188_p2) target bundleno = 1176 (0x498), region = 40 }
   0xb   : > { %v320_v0 = vld [vmem:[%s5611_s1 + $0xf8] sm:$0xff]  ;;  %v319_v4 = vld [vmem:[%s5611_s1 + $0xf0] sm:$0xff]  ;;  %v318_v8 = vld [vmem:[%s5611_s1 + $0xe8] sm:$0xff]  ;;  %p3792_p3 = scmp.lt.s32.totalorder %s2442_s19, 1  ;;  %vm1395_vm0 = vcmask 523264   ;;  %vm2381_vm1 = vcmask 228352  }
   0xc   : > { %v352_v1 = vld [vmem:[%s5611_s1 + $0x1f8] sm:$0xff]  ;;  %2740 = vmatprep.subr.mxu0 %v320_v0  ;;  %v351_v5 = vld [vmem:[%s5611_s1 + $0x1f0] sm:$0xff]  ;;  %v350_v9 = vld [vmem:[%s5611_s1 + $0x1e8] sm:$0xff]  ;;  %vm2385_vm2 = vcmask 224256  }
   0xd   : > { %v304_v2 = vld [vmem:[%s5611_s1 + $0x78] sm:$0xff]  ;;  %2796 = vmatprep.subr.mxu1 %v352_v1  ;;  %v303_v6 = vld [vmem:[%s5611_s1 + $0x70] sm:$0xff]  ;;  %v302_v10 = vld [vmem:[%s5611_s1 + $0x68] sm:$0xff]  ;;  %s5688_s19 = smov (!%p3792_p3, %s2442_s19), 1 }
   0xe   : > { %v336_v3 = vld [vmem:[%s5611_s1 + $0x178] sm:$0xff]  ;;  %2741 = vmatpush3.msra.mxu0 %v304_v2  ;;  %v335_v7 = vld [vmem:[%s5611_s1 + $0x170] sm:$0xff]  ;;  %v334_v11 = vld [vmem:[%s5611_s1 + $0x168] sm:$0xff]  ;;  %s2738_s8 = sshll.u32 %s5688_s19, 9  ;;  %s2739_s11 = sshll.u32 %s5688_s19, 5 }
   0xf   : > { %2797 = vmatpush3.msra.mxu1 %v336_v3  ;;  %2742 = vmatprep.subr.mxu0 %v319_v4  ;;  %v317_v12 = vld [vmem:[%s5611_s1 + $0xe0] sm:$0xff]  ;;  %v316_v16 = vld [vmem:[%s5611_s1 + $0xd8] sm:$0xff]  ;;  %v315_v20 = vld [vmem:[%s5611_s1 + $0xd0] sm:$0xff]  ;;  %s3872_s25 = scalar_lea.vmem %s5610_s0, %s2738_s8  ;;  %s224_s14 = scalar_lea.vmem %s5615_s5, %s2739_s11 }
  0x10   : > { %2798 = vmatprep.subr.mxu1 %v351_v5  ;;  %2743 = vmatpush3.msra.mxu0 %v303_v6  ;;  %v349_v13 = vld [vmem:[%s5611_s1 + $0x1e0] sm:$0xff]  ;;  %v348_v17 = vld [vmem:[%s5611_s1 + $0x1d8] sm:$0xff]  ;;  %v347_v21 = vld [vmem:[%s5611_s1 + $0x1d0] sm:$0xff] }
  0x11   : > { %2799 = vmatpush3.msra.mxu1 %v335_v7  ;;  %2744 = vmatprep.subr.mxu0 %v318_v8  ;;  %v301_v14 = vld [vmem:[%s5611_s1 + $0x60] sm:$0xff]  ;;  %v300_v18 = vld [vmem:[%s5611_s1 + $0x58] sm:$0xff]  ;;  %v299_v22 = vld [vmem:[%s5611_s1 + $0x50] sm:$0xff] }
  0x12   : > { %2800 = vmatprep.subr.mxu1 %v350_v9  ;;  %v333_v15 = vld [vmem:[%s5611_s1 + $0x160] sm:$0xff]  ;;  %2745 = vmatpush3.msra.mxu0 %v302_v10  ;;  %v332_v19 = vld [vmem:[%s5611_s1 + $0x158] sm:$0xff]  ;;  %v331_v23 = vld [vmem:[%s5611_s1 + $0x150] sm:$0xff] }
  0x13   : > { %2801 = vmatpush3.msra.mxu1 %v334_v11  ;;  %2746 = vmatprep.subr.mxu0 %v317_v12  ;;  %v314_v24 = vld [vmem:[%s5611_s1 + $0xc8] sm:$0xff]  ;;  %v313_v28 = vld [vmem:[%s5611_s1 + $0xc0] sm:$0xff]  ;;  %v312_v32 = vld [vmem:[%s5611_s1 + $0xb8] sm:$0xff] }
  0x14   : > { %2802 = vmatprep.subr.mxu1 %v349_v13  ;;  %2747 = vmatpush3.msra.mxu0 %v301_v14  ;;  %v346_v25 = vld [vmem:[%s5611_s1 + $0x1c8] sm:$0xff]  ;;  %v345_v29 = vld [vmem:[%s5611_s1 + $0x1c0] sm:$0xff]  ;;  %v344_v33 = vld [vmem:[%s5611_s1 + $0x1b8] sm:$0xff] }
  0x15   : > { %2803 = vmatpush3.msra.mxu1 %v333_v15  ;;  %2748 = vmatprep.subr.mxu0 %v316_v16  ;;  %v298_v26 = vld [vmem:[%s5611_s1 + $0x48] sm:$0xff]  ;;  %v297_v30 = vld [vmem:[%s5611_s1 + $0x40] sm:$0xff]  ;;  %v296_v34 = vld [vmem:[%s5611_s1 + $0x38] sm:$0xff] }
  0x16   : > { %2804 = vmatprep.subr.mxu1 %v348_v17  ;;  %2749 = vmatpush3.msra.mxu0 %v300_v18  ;;  %v330_v27 = vld [vmem:[%s5611_s1 + $0x148] sm:$0xff]  ;;  %v329_v31 = vld [vmem:[%s5611_s1 + $0x140] sm:$0xff]  ;;  %v328_v35 = vld [vmem:[%s5611_s1 + $0x138] sm:$0xff] }
  0x17   : > { %2805 = vmatpush3.msra.mxu1 %v332_v19  ;;  %2750 = vmatprep.subr.mxu0 %v315_v20  ;;  %v311_v36 = vld [vmem:[%s5611_s1 + $0xb0] sm:$0xff]  ;;  %v310_v40 = vld [vmem:[%s5611_s1 + $0xa8] sm:$0xff]  ;;  %v309_v44 = vld [vmem:[%s5611_s1 + $0xa0] sm:$0xff] }
  0x18   : > { %2806 = vmatprep.subr.mxu1 %v347_v21  ;;  %2751 = vmatpush3.msra.mxu0 %v299_v22  ;;  %v343_v37 = vld [vmem:[%s5611_s1 + $0x1b0] sm:$0xff]  ;;  %v342_v41 = vld [vmem:[%s5611_s1 + $0x1a8] sm:$0xff]  ;;  %v341_v45 = vld [vmem:[%s5611_s1 + $0x1a0] sm:$0xff] }
  0x19   : > { %2807 = vmatpush3.msra.mxu1 %v331_v23  ;;  %2752 = vmatprep.subr.mxu0 %v314_v24  ;;  %v295_v38 = vld [vmem:[%s5611_s1 + $0x30] sm:$0xff]  ;;  %v294_v42 = vld [vmem:[%s5611_s1 + $0x28] sm:$0xff]  ;;  %v293_v46 = vld [vmem:[%s5611_s1 + $0x20] sm:$0xff] }
  0x1a   : > { %2808 = vmatprep.subr.mxu1 %v346_v25  ;;  %2753 = vmatpush3.msra.mxu0 %v298_v26  ;;  %v327_v39 = vld [vmem:[%s5611_s1 + $0x130] sm:$0xff]  ;;  %v326_v43 = vld [vmem:[%s5611_s1 + $0x128] sm:$0xff]  ;;  %v325_v47 = vld [vmem:[%s5611_s1 + $0x120] sm:$0xff] }
  0x1b   : > { %2809 = vmatpush3.msra.mxu1 %v330_v27  ;;  %2754 = vmatprep.subr.mxu0 %v313_v28  ;;  %v308_v48 = vld [vmem:[%s5611_s1 + $0x98] sm:$0xff]  ;;  %v307_v52 = vld [vmem:[%s5611_s1 + $0x90] sm:$0xff]  ;;  %v306_v56 = vld [vmem:[%s5611_s1 + $0x88] sm:$0xff] }
  0x1c   : > { %2810 = vmatprep.subr.mxu1 %v345_v29  ;;  %2755 = vmatpush3.msra.mxu0 %v297_v30  ;;  %v340_v49 = vld [vmem:[%s5611_s1 + $0x198] sm:$0xff]  ;;  %v339_v53 = vld [vmem:[%s5611_s1 + $0x190] sm:$0xff]  ;;  %v338_v57 = vld [vmem:[%s5611_s1 + $0x188] sm:$0xff] }
  0x1d   : > { %2811 = vmatpush3.msra.mxu1 %v329_v31  ;;  %2756 = vmatprep.subr.mxu0 %v312_v32  ;;  %v292_v50 = vld [vmem:[%s5611_s1 + $0x18] sm:$0xff]  ;;  %v291_v54 = vld [vmem:[%s5611_s1 + $0x10] sm:$0xff]  ;;  %v290_v58 = vld [vmem:[%s5611_s1 + $0x8] sm:$0xff] }
  0x1e   : > { %2812 = vmatprep.subr.mxu1 %v344_v33  ;;  %2757 = vmatpush3.msra.mxu0 %v296_v34  ;;  %v324_v51 = vld [vmem:[%s5611_s1 + $0x118] sm:$0xff]  ;;  %v323_v55 = vld [vmem:[%s5611_s1 + $0x110] sm:$0xff]  ;;  %v322_v59 = vld [vmem:[%s5611_s1 + $0x108] sm:$0xff] }
  0x1f   : > { %2813 = vmatpush3.msra.mxu1 %v328_v35  ;;  %2758 = vmatprep.subr.mxu0 %v311_v36  ;;  %v305_v60 = vld [vmem:[%s5611_s1 + $0x80] sm:$0xff]  ;;  %v3890_v63 = vld [vmem:[%s3872_s25 + $0x8] sm:$0xff]  ;;  %v3896_v1 = vld [vmem:[%s3872_s25 + $0x18] sm:$0xff] }
  0x20   : > { %2814 = vmatprep.subr.mxu1 %v343_v37  ;;  %2759 = vmatpush3.msra.mxu0 %v295_v38  ;;  %v337_v61 = vld [vmem:[%s5611_s1 + $0x180] sm:$0xff]  ;;  %v3902_v3 = vld [vmem:[%s3872_s25 + $0x10] sm:$0xff]  ;;  %v384_v4 = vld [vmem:[%s5611_s1 + $0x2f8] sm:$0xff] }
  0x21   : > { %2815 = vmatpush3.msra.mxu1 %v327_v39  ;;  %2760 = vmatprep.subr.mxu0 %v310_v40  ;;  %v289_v62 = vld [vmem:[%s5611_s1] sm:$0xff]  ;;  %v416_v5 = vld [vmem:[%s5611_s1 + $0x3f8] sm:$0xff]  ;;  %v383_v8 = vld [vmem:[%s5611_s1 + $0x2f0] sm:$0xff] }
  0x22   : > { %2816 = vmatprep.subr.mxu1 %v342_v41  ;;  %2761 = vmatpush3.msra.mxu0 %v294_v42  ;;  %v321_v0 = vld [vmem:[%s5611_s1 + $0x100] sm:$0xff]  ;;  %v368_v6 = vld [vmem:[%s5611_s1 + $0x278] sm:$0xff]  ;;  %v415_v9 = vld [vmem:[%s5611_s1 + $0x3f0] sm:$0xff] }
  0x23   : > { %2817 = vmatpush3.msra.mxu1 %v326_v43  ;;  %2762 = vmatprep.subr.mxu0 %v309_v44  ;;  %v3899_v2 = vld [vmem:[%s3872_s25] sm:$0xff]  ;;  %v400_v7 = vld [vmem:[%s5611_s1 + $0x378] sm:$0xff]  ;;  %v3927_v10 = vld [vmem:[%s3872_s25 + $0x48] sm:$0xff] }
  0x24   : > { %2818 = vmatprep.subr.mxu1 %v341_v45  ;;  %2763 = vmatpush3.msra.mxu0 %v293_v46  ;;  %v3930_v11 = vld [vmem:[%s3872_s25 + $0x58] sm:$0xff]  ;;  %v367_v12 = vld [vmem:[%s5611_s1 + $0x270] sm:$0xff]  ;;  %v3939_v14 = vld [vmem:[%s3872_s25 + $0x40] sm:$0xff] }
  0x25   : > { %2819 = vmatpush3.msra.mxu1 %v325_v47  ;;  %2764 = vmatprep.subr.mxu0 %v308_v48  ;;  %v399_v13 = vld [vmem:[%s5611_s1 + $0x370] sm:$0xff]  ;;  %v382_v16 = vld [vmem:[%s5611_s1 + $0x2e8] sm:$0xff]  ;;  %v381_v20 = vld [vmem:[%s5611_s1 + $0x2e0] sm:$0xff] }
  0x26   : > { %2820 = vmatprep.subr.mxu1 %v340_v49  ;;  %2765 = vmatpush3.msra.mxu0 %v292_v50  ;;  %v3942_v15 = vld [vmem:[%s3872_s25 + $0x50] sm:$0xff]  ;;  %v414_v17 = vld [vmem:[%s5611_s1 + $0x3e8] sm:$0xff]  ;;  %v413_v21 = vld [vmem:[%s5611_s1 + $0x3e0] sm:$0xff] }
  0x27   : > { %2821 = vmatpush3.msra.mxu1 %v324_v51  ;;  %2766 = vmatprep.subr.mxu0 %v307_v52  ;;  %v366_v18 = vld [vmem:[%s5611_s1 + $0x268] sm:$0xff]  ;;  %v3970_v23 = vld [vmem:[%s3872_s25 + $0x98] sm:$0xff]  ;;  %v365_v24 = vld [vmem:[%s5611_s1 + $0x260] sm:$0xff] }
  0x28   : > { %2822 = vmatprep.subr.mxu1 %v339_v53  ;;  %2767 = vmatpush3.msra.mxu0 %v291_v54  ;;  %v398_v19 = vld [vmem:[%s5611_s1 + $0x368] sm:$0xff]  ;;  %v397_v25 = vld [vmem:[%s5611_s1 + $0x360] sm:$0xff]  ;;  %v3982_v27 = vld [vmem:[%s3872_s25 + $0x90] sm:$0xff] }
  0x29   : > { %2823 = vmatpush3.msra.mxu1 %v323_v55  ;;  %2768 = vmatprep.subr.mxu0 %v306_v56  ;;  %v3967_v22 = vld [vmem:[%s3872_s25 + $0x88] sm:$0xff]  ;;  %v3979_v26 = vld [vmem:[%s3872_s25 + $0x80] sm:$0xff]  ;;  %v380_v28 = vld [vmem:[%s5611_s1 + $0x2d8] sm:$0xff] }
  0x2a   : > { %2824 = vmatprep.subr.mxu1 %v338_v57  ;;  %2769 = vmatpush3.msra.mxu0 %v290_v58  ;;  %v412_v29 = vld [vmem:[%s5611_s1 + $0x3d8] sm:$0xff]  ;;  %v379_v32 = vld [vmem:[%s5611_s1 + $0x2d0] sm:$0xff]  ;;  %v4007_v34 = vld [vmem:[%s3872_s25 + $0xc8] sm:$0xff] }
  0x2b   : > { %2825 = vmatpush3.msra.mxu1 %v322_v59  ;;  %2770 = vmatprep.subr.mxu0 %v305_v60  ;;  %v364_v30 = vld [vmem:[%s5611_s1 + $0x258] sm:$0xff]  ;;  %v411_v33 = vld [vmem:[%s5611_s1 + $0x3d0] sm:$0xff]  ;;  %v4019_v38 = vld [vmem:[%s3872_s25 + $0xc0] sm:$0xff] }
  0x2c   : > { %2826 = vmatprep.subr.mxu1 %v337_v61  ;;  %2771 = vmatpush3.msra.mxu0 %v289_v62  ;;  %v396_v31 = vld [vmem:[%s5611_s1 + $0x358] sm:$0xff]  ;;  %v363_v36 = vld [vmem:[%s5611_s1 + $0x250] sm:$0xff]  ;;  %v378_v40 = vld [vmem:[%s5611_s1 + $0x2c8] sm:$0xff] }
  0x2d   : > { %481 = vmatprep.mubr.f32.mxu0 %v3890_v63  ;;  %2827 = vmatpush3.msra.mxu1 %v321_v0  ;;  %v4010_v35 = vld [vmem:[%s3872_s25 + $0xd8] sm:$0xff]  ;;  %v395_v37 = vld [vmem:[%s5611_s1 + $0x350] sm:$0xff]  ;;  %v410_v41 = vld [vmem:[%s5611_s1 + $0x3c8] sm:$0xff] }
  0x2e   : > { %586 = vmatprep.mubr.f32.mxu1 %v3896_v1  ;;  %482 = vmatmul.mubr.f32.vlgmr.msra.gmra.mxu0 %v3899_v2  ;;  %v4022_v39 = vld [vmem:[%s3872_s25 + $0xd0] sm:$0xff]  ;;  %v362_v42 = vld [vmem:[%s5611_s1 + $0x248] sm:$0xff]  ;;  %v377_v44 = vld [vmem:[%s5611_s1 + $0x2c0] sm:$0xff] }
  0x2f   : > { %587 = vmatmul.mubr.f32.vlgmr.msra.gmra.mxu1 %v3902_v3  ;;  %2852 = vmatprep.subr.mxu0 %v384_v4  ;;  %v394_v43 = vld [vmem:[%s5611_s1 + $0x348] sm:$0xff]  ;;  %v409_v45 = vld [vmem:[%s5611_s1 + $0x3c0] sm:$0xff]  ;;  %v4050_v47 = vld [vmem:[%s3872_s25 + $0x118] sm:$0xff] }
  0x30   : > { %2908 = vmatprep.subr.mxu1 %v416_v5  ;;  %2853 = vmatpush3.msra.mxu0 %v368_v6  ;;  %v4047_v46 = vld [vmem:[%s3872_s25 + $0x108] sm:$0xff]  ;;  %v361_v48 = vld [vmem:[%s5611_s1 + $0x240] sm:$0xff]  ;;  %v4062_v51 = vld [vmem:[%s3872_s25 + $0x110] sm:$0xff] }
  0x31   : > { %2909 = vmatpush3.msra.mxu1 %v400_v7  ;;  %2854 = vmatprep.subr.mxu0 %v383_v8  ;;  %v393_v49 = vld [vmem:[%s5611_s1 + $0x340] sm:$0xff]  ;;  %v376_v52 = vld [vmem:[%s5611_s1 + $0x2b8] sm:$0xff]  ;;  %v375_v56 = vld [vmem:[%s5611_s1 + $0x2b0] sm:$0xff] }
  0x32   : > { %2910 = vmatprep.subr.mxu1 %v415_v9  ;;  %486 = vmatprep.mubr.f32.mxu0 %v3927_v10  ;;  %v4059_v50 = vld [vmem:[%s3872_s25 + $0x100] sm:$0xff]  ;;  %v408_v53 = vld [vmem:[%s5611_s1 + $0x3b8] sm:$0xff]  ;;  %v407_v57 = vld [vmem:[%s5611_s1 + $0x3b0] sm:$0xff] }
  0x33   : > { %591 = vmatprep.mubr.f32.mxu1 %v3930_v11  ;;  %2855 = vmatpush3.msra.mxu0 %v367_v12  ;;  %v360_v54 = vld [vmem:[%s5611_s1 + $0x238] sm:$0xff]  ;;  %v4087_v58 = vld [vmem:[%s3872_s25 + $0x148] sm:$0xff]  ;;  %v359_v60 = vld [vmem:[%s5611_s1 + $0x230] sm:$0xff] }
  0x34   : > { %2911 = vmatpush3.msra.mxu1 %v399_v13  ;;  %487 = vmatmul.mubr.f32.gmra.mxu0 %v3939_v14  ;;  %v392_v55 = vld [vmem:[%s5611_s1 + $0x338] sm:$0xff]  ;;  %v391_v61 = vld [vmem:[%s5611_s1 + $0x330] sm:$0xff]  ;;  %v4099_v62 = vld [vmem:[%s3872_s25 + $0x140] sm:$0xff] }
  0x35   : > { %592 = vmatmul.mubr.f32.gmra.mxu1 %v3942_v15  ;;  %2856 = vmatprep.subr.mxu0 %v382_v16  ;;  %v4090_v59 = vld [vmem:[%s3872_s25 + $0x158] sm:$0xff]  ;;  %v4102_v0 = vld [vmem:[%s3872_s25 + $0x150] sm:$0xff]  ;;  %v374_v4 = vld [vmem:[%s5611_s1 + $0x2a8] sm:$0xff] }
  0x36   : > { %2912 = vmatprep.subr.mxu1 %v414_v17  ;;  %2857 = vmatpush3.msra.mxu0 %v366_v18  ;;  %v406_v5 = vld [vmem:[%s5611_s1 + $0x3a8] sm:$0xff]  ;;  %v373_v8 = vld [vmem:[%s5611_s1 + $0x2a0] sm:$0xff]  ;;  %v4130_v13 = vld [vmem:[%s3872_s25 + $0x198] sm:$0xff] }
  0x37   : > { %2913 = vmatpush3.msra.mxu1 %v398_v19  ;;  %2858 = vmatprep.subr.mxu0 %v381_v20  ;;  %v358_v6 = vld [vmem:[%s5611_s1 + $0x228] sm:$0xff]  ;;  %v405_v9 = vld [vmem:[%s5611_s1 + $0x3a0] sm:$0xff]  ;;  %v4142_v19 = vld [vmem:[%s3872_s25 + $0x190] sm:$0xff] }
  0x38   : > { %2914 = vmatprep.subr.mxu1 %v413_v21  ;;  %491 = vmatprep.mubr.f32.mxu0 %v3967_v22  ;;  %v390_v7 = vld [vmem:[%s5611_s1 + $0x328] sm:$0xff]  ;;  %v357_v16 = vld [vmem:[%s5611_s1 + $0x220] sm:$0xff]  ;;  %v372_v20 = vld [vmem:[%s5611_s1 + $0x298] sm:$0xff] }
  0x39   : > { %596 = vmatprep.mubr.f32.mxu1 %v3970_v23  ;;  %2859 = vmatpush3.msra.mxu0 %v365_v24  ;;  %v4127_v12 = vld [vmem:[%s3872_s25 + $0x188] sm:$0xff]  ;;  %v389_v17 = vld [vmem:[%s5611_s1 + $0x320] sm:$0xff]  ;;  %v404_v21 = vld [vmem:[%s5611_s1 + $0x398] sm:$0xff] }
  0x3a   : > { %2915 = vmatpush3.msra.mxu1 %v397_v25  ;;  %492 = vmatmul.mubr.f32.gmra.mxu0 %v3979_v26  ;;  %v4139_v18 = vld [vmem:[%s3872_s25 + $0x180] sm:$0xff]  ;;  %v356_v24 = vld [vmem:[%s5611_s1 + $0x218] sm:$0xff] }
  0x3b   : > { %597 = vmatmul.mubr.f32.gmra.mxu1 %v3982_v27  ;;  %2860 = vmatprep.subr.mxu0 %v380_v28  ;;  %v388_v25 = vld [vmem:[%s5611_s1 + $0x318] sm:$0xff]  ;;  %v371_v28 = vld [vmem:[%s5611_s1 + $0x290] sm:$0xff] }
  0x3c   : > { %2916 = vmatprep.subr.mxu1 %v412_v29  ;;  %2861 = vmatpush3.msra.mxu0 %v364_v30  ;;  %v403_v29 = vld [vmem:[%s5611_s1 + $0x390] sm:$0xff]  ;;  %v4167_v30 = vld [vmem:[%s3872_s25 + $0x1c8] sm:$0xff] }
  0x3d   : > { %2917 = vmatpush3.msra.mxu1 %v396_v31  ;;  %2862 = vmatprep.subr.mxu0 %v379_v32  ;;  %v4170_v31 = vld [vmem:[%s3872_s25 + $0x1d8] sm:$0xff]  ;;  %v355_v32 = vld [vmem:[%s5611_s1 + $0x210] sm:$0xff] }
  0x3e   : > { %2918 = vmatprep.subr.mxu1 %v411_v33  ;;  %496 = vmatprep.mubr.f32.mxu0 %v4007_v34  ;;  %v387_v33 = vld [vmem:[%s5611_s1 + $0x310] sm:$0xff] }
  0x3f   : > { %601 = vmatprep.mubr.f32.mxu1 %v4010_v35  ;;  %2863 = vmatpush3.msra.mxu0 %v363_v36  ;;  %v4179_v36 = vld [vmem:[%s3872_s25 + $0x1c0] sm:$0xff] }
  0x40   : > { %2919 = vmatpush3.msra.mxu1 %v395_v37  ;;  %497 = vmatmul.mubr.f32.gmra.mxu0 %v4019_v38  ;;  %v4182_v37 = vld [vmem:[%s3872_s25 + $0x1d0] sm:$0xff] }
  0x41   : > { %602 = vmatmul.mubr.f32.gmra.mxu1 %v4022_v39  ;;  %2864 = vmatprep.subr.mxu0 %v378_v40  ;;  %v370_v40 = vld [vmem:[%s5611_s1 + $0x288] sm:$0xff] }
  0x42   : > { %2920 = vmatprep.subr.mxu1 %v410_v41  ;;  %2865 = vmatpush3.msra.mxu0 %v362_v42  ;;  %v402_v41 = vld [vmem:[%s5611_s1 + $0x388] sm:$0xff] }
  0x43   : > { %2921 = vmatpush3.msra.mxu1 %v394_v43  ;;  %2866 = vmatprep.subr.mxu0 %v377_v44  ;;  %v354_v42 = vld [vmem:[%s5611_s1 + $0x208] sm:$0xff]  ;;  %v369_v44 = vld [vmem:[%s5611_s1 + $0x280] sm:$0xff] }
  0x44   : > { %2922 = vmatprep.subr.mxu1 %v409_v45  ;;  %501 = vmatprep.mubr.f32.mxu0 %v4047_v46  ;;  %v386_v43 = vld [vmem:[%s5611_s1 + $0x308] sm:$0xff]  ;;  %v401_v45 = vld [vmem:[%s5611_s1 + $0x380] sm:$0xff] }
  0x45   : > { %606 = vmatprep.mubr.f32.mxu1 %v4050_v47  ;;  %2867 = vmatpush3.msra.mxu0 %v361_v48  ;;  %v353_v48 = vld [vmem:[%s5611_s1 + $0x200] sm:$0xff] }
  0x46   : > { %2923 = vmatpush3.msra.mxu1 %v393_v49  ;;  %502 = vmatmul.mubr.f32.gmra.mxu0 %v4059_v50  ;;  %v4210_v49 = vld [vmem:[%s3872_s25 + $0x28] sm:$0xff] }
  0x47   : > { %607 = vmatmul.mubr.f32.gmra.mxu1 %v4062_v51  ;;  %2868 = vmatprep.subr.mxu0 %v376_v52  ;;  %v385_v52 = vld [vmem:[%s5611_s1 + $0x300] sm:$0xff] }
  0x48   : > { %2924 = vmatprep.subr.mxu1 %v408_v53  ;;  %2869 = vmatpush3.msra.mxu0 %v360_v54  ;;  %v4216_v53 = vld [vmem:[%s3872_s25 + $0x38] sm:$0xff]  ;;  %v4219_v54 = vld [vmem:[%s3872_s25 + $0x20] sm:$0xff] }
  0x49   : > { %2925 = vmatpush3.msra.mxu1 %v392_v55  ;;  %2870 = vmatprep.subr.mxu0 %v375_v56  ;;  %v4222_v55 = vld [vmem:[%s3872_s25 + $0x30] sm:$0xff]  ;;  %v2482_v56 = vld [vmem:[%s5611_s1 + $0x4f8] sm:$0xff] }
  0x4a   : > { %2926 = vmatprep.subr.mxu1 %v407_v57  ;;  %506 = vmatprep.mubr.f32.mxu0 %v4087_v58  ;;  %v2514_v57 = vld [vmem:[%s5611_s1 + $0x5f8] sm:$0xff] }
  0x4b   : > { %611 = vmatprep.mubr.f32.mxu1 %v4090_v59  ;;  %2871 = vmatpush3.msra.mxu0 %v359_v60  ;;  %v2466_v60 = vld [vmem:[%s5611_s1 + $0x478] sm:$0xff] }
  0x4c   : > { %2927 = vmatpush3.msra.mxu1 %v391_v61  ;;  %507 = vmatmul.mubr.f32.gmra.mxu0 %v4099_v62  ;;  %v2498_v61 = vld [vmem:[%s5611_s1 + $0x578] sm:$0xff] }
  0x4d   : > { %612 = vmatmul.mubr.f32.gmra.mxu1 %v4102_v0  ;;  %2872 = vmatprep.subr.mxu0 %v374_v4  ;;  %v2481_v4 = vld [vmem:[%s5611_s1 + $0x4f0] sm:$0xff] }
  0x4e   : > { %2928 = vmatprep.subr.mxu1 %v406_v5  ;;  %2873 = vmatpush3.msra.mxu0 %v358_v6  ;;  %v2513_v5 = vld [vmem:[%s5611_s1 + $0x5f0] sm:$0xff]  ;;  %v4247_v6 = vld [vmem:[%s3872_s25 + $0x68] sm:$0xff] }
  0x4f   : > { %2929 = vmatpush3.msra.mxu1 %v390_v7  ;;  %2874 = vmatprep.subr.mxu0 %v373_v8  ;;  %v4250_v7 = vld [vmem:[%s3872_s25 + $0x78] sm:$0xff]  ;;  %v2465_v8 = vld [vmem:[%s5611_s1 + $0x470] sm:$0xff] }
  0x50   : > { %2930 = vmatprep.subr.mxu1 %v405_v9  ;;  %511 = vmatprep.mubr.f32.mxu0 %v4127_v12  ;;  %v2497_v9 = vld [vmem:[%s5611_s1 + $0x570] sm:$0xff] }
  0x51   : > { %616 = vmatprep.mubr.f32.mxu1 %v4130_v13  ;;  %2875 = vmatpush3.msra.mxu0 %v357_v16  ;;  %v4259_v16 = vld [vmem:[%s3872_s25 + $0x60] sm:$0xff] }
  0x52   : > { %2931 = vmatpush3.msra.mxu1 %v389_v17  ;;  %512 = vmatmul.mubr.f32.gmra.mxu0 %v4139_v18  ;;  %v4262_v17 = vld [vmem:[%s3872_s25 + $0x70] sm:$0xff] }
  0x53   : > { %617 = vmatmul.mubr.f32.gmra.mxu1 %v4142_v19  ;;  %2876 = vmatprep.subr.mxu0 %v372_v20  ;;  %v2480_v20 = vld [vmem:[%s5611_s1 + $0x4e8] sm:$0xff] }
  0x54   : > { %2932 = vmatprep.subr.mxu1 %v404_v21  ;;  %2877 = vmatpush3.msra.mxu0 %v356_v24  ;;  %v2512_v21 = vld [vmem:[%s5611_s1 + $0x5e8] sm:$0xff] }
  0x55   : > { %2933 = vmatpush3.msra.mxu1 %v388_v25  ;;  %2878 = vmatprep.subr.mxu0 %v371_v28  ;;  %v2464_v24 = vld [vmem:[%s5611_s1 + $0x468] sm:$0xff]  ;;  %v2479_v28 = vld [vmem:[%s5611_s1 + $0x4e0] sm:$0xff] }
  0x56   : > { %2934 = vmatprep.subr.mxu1 %v403_v29  ;;  %516 = vmatprep.mubr.f32.mxu0 %v4167_v30  ;;  %v2496_v25 = vld [vmem:[%s5611_s1 + $0x568] sm:$0xff]  ;;  %v2511_v29 = vld [vmem:[%s5611_s1 + $0x5e0] sm:$0xff] }
  0x57   : > { %621 = vmatprep.mubr.f32.mxu1 %v4170_v31  ;;  %2879 = vmatpush3.msra.mxu0 %v355_v32  ;;  %v4287_v32 = vld [vmem:[%s3872_s25 + $0xa8] sm:$0xff] }
  0x58   : > { %2935 = vmatpush3.msra.mxu1 %v387_v33  ;;  %517 = vmatmul.mubr.f32.gmra.mxu0 %v4179_v36  ;;  %v4290_v33 = vld [vmem:[%s3872_s25 + $0xb8] sm:$0xff] }
  0x59   : > { %622 = vmatmul.mubr.f32.gmra.mxu1 %v4182_v37  ;;  %2880 = vmatprep.subr.mxu0 %v370_v40  ;;  %v2463_v40 = vld [vmem:[%s5611_s1 + $0x460] sm:$0xff] }
  0x5a   : > { %2936 = vmatprep.subr.mxu1 %v402_v41  ;;  %2881 = vmatpush3.msra.mxu0 %v354_v42  ;;  %v2495_v41 = vld [vmem:[%s5611_s1 + $0x560] sm:$0xff] }
  0x5b   : > { %2937 = vmatpush3.msra.mxu1 %v386_v43  ;;  %2882 = vmatprep.subr.mxu0 %v369_v44  ;;  %v4299_v42 = vld [vmem:[%s3872_s25 + $0xa0] sm:$0xff]  ;;  %v4302_v43 = vld [vmem:[%s3872_s25 + $0xb0] sm:$0xff]  ;;  %v2478_v44 = vld [vmem:[%s5611_s1 + $0x4d8] sm:$0xff] }
  0x5c   : > { %2938 = vmatprep.subr.mxu1 %v401_v45  ;;  %2883 = vmatpush3.msra.mxu0 %v353_v48  ;;  %v2510_v45 = vld [vmem:[%s5611_s1 + $0x5d8] sm:$0xff] }
  0x5d   : > { %691 = vmatprep.mubr.f32.mxu0 %v4210_v49  ;;  %2939 = vmatpush3.msra.mxu1 %v385_v52  ;;  %v2462_v48 = vld [vmem:[%s5611_s1 + $0x458] sm:$0xff] }
  0x5e   : > { %796 = vmatprep.mubr.f32.mxu1 %v4216_v53  ;;  %692 = vmatmul.mubr.f32.vlgmr.msra.gmra.mxu0 %v4219_v54  ;;  %v2494_v52 = vld [vmem:[%s5611_s1 + $0x558] sm:$0xff] }
  0x5f   : > { %797 = vmatmul.mubr.f32.vlgmr.msra.gmra.mxu1 %v4222_v55  ;;  %2964 = vmatprep.subr.mxu0 %v2482_v56  ;;  %v2477_v56 = vld [vmem:[%s5611_s1 + $0x4d0] sm:$0xff] }
  0x60   : > { %3020 = vmatprep.subr.mxu1 %v2514_v57  ;;  %2965 = vmatpush3.msra.mxu0 %v2466_v60  ;;  %v2509_v57 = vld [vmem:[%s5611_s1 + $0x5d0] sm:$0xff]  ;;  %v4327_v60 = vld [vmem:[%s3872_s25 + $0xe8] sm:$0xff] }
  0x61   : > { %3021 = vmatpush3.msra.mxu1 %v2498_v61  ;;  %2966 = vmatprep.subr.mxu0 %v2481_v4  ;;  %v4330_v61 = vld [vmem:[%s3872_s25 + $0xf8] sm:$0xff]  ;;  %v2461_v4 = vld [vmem:[%s5611_s1 + $0x450] sm:$0xff] }
  0x62   : > { %3022 = vmatprep.subr.mxu1 %v2513_v5  ;;  %696 = vmatprep.mubr.f32.mxu0 %v4247_v6  ;;  %v2493_v5 = vld [vmem:[%s5611_s1 + $0x550] sm:$0xff] }
  0x63   : > { %801 = vmatprep.mubr.f32.mxu1 %v4250_v7  ;;  %2967 = vmatpush3.msra.mxu0 %v2465_v8  ;;  %v4339_v8 = vld [vmem:[%s3872_s25 + $0xe0] sm:$0xff] }
  0x64   : > { %3023 = vmatpush3.msra.mxu1 %v2497_v9  ;;  %697 = vmatmul.mubr.f32.gmra.mxu0 %v4259_v16  ;;  %v4342_v9 = vld [vmem:[%s3872_s25 + $0xf0] sm:$0xff] }
  0x65   : > { %802 = vmatmul.mubr.f32.gmra.mxu1 %v4262_v17  ;;  %2968 = vmatprep.subr.mxu0 %v2480_v20  ;;  %v2476_v20 = vld [vmem:[%s5611_s1 + $0x4c8] sm:$0xff] }
  0x66   : > { %3024 = vmatprep.subr.mxu1 %v2512_v21  ;;  %2969 = vmatpush3.msra.mxu0 %v2464_v24  ;;  %v2508_v21 = vld [vmem:[%s5611_s1 + $0x5c8] sm:$0xff] }
  0x67   : > { %3025 = vmatpush3.msra.mxu1 %v2496_v25  ;;  %2970 = vmatprep.subr.mxu0 %v2479_v28  ;;  %v2460_v24 = vld [vmem:[%s5611_s1 + $0x448] sm:$0xff]  ;;  %v2475_v28 = vld [vmem:[%s5611_s1 + $0x4c0] sm:$0xff] }
  0x68   : > { %3026 = vmatprep.subr.mxu1 %v2511_v29  ;;  %701 = vmatprep.mubr.f32.mxu0 %v4287_v32  ;;  %v2492_v25 = vld [vmem:[%s5611_s1 + $0x548] sm:$0xff]  ;;  %v2507_v29 = vld [vmem:[%s5611_s1 + $0x5c0] sm:$0xff] }
  0x69   : > { %806 = vmatprep.mubr.f32.mxu1 %v4290_v33  ;;  %2971 = vmatpush3.msra.mxu0 %v2463_v40  ;;  %v4367_v40 = vld [vmem:[%s3872_s25 + $0x128] sm:$0xff] }
  0x6a   : > { %3027 = vmatpush3.msra.mxu1 %v2495_v41  ;;  %702 = vmatmul.mubr.f32.gmra.mxu0 %v4299_v42  ;;  %v4370_v41 = vld [vmem:[%s3872_s25 + $0x138] sm:$0xff] }
  0x6b   : > { %807 = vmatmul.mubr.f32.gmra.mxu1 %v4302_v43  ;;  %2972 = vmatprep.subr.mxu0 %v2478_v44  ;;  %v2459_v44 = vld [vmem:[%s5611_s1 + $0x440] sm:$0xff] }
  0x6c   : > { %3028 = vmatprep.subr.mxu1 %v2510_v45  ;;  %2973 = vmatpush3.msra.mxu0 %v2462_v48  ;;  %v2491_v45 = vld [vmem:[%s5611_s1 + $0x540] sm:$0xff] }
  0x6d   : > { %3029 = vmatpush3.msra.mxu1 %v2494_v52  ;;  %2974 = vmatprep.subr.mxu0 %v2477_v56  ;;  %v4379_v48 = vld [vmem:[%s3872_s25 + $0x120] sm:$0xff]  ;;  %v4382_v52 = vld [vmem:[%s3872_s25 + $0x130] sm:$0xff]  ;;  %v2474_v56 = vld [vmem:[%s5611_s1 + $0x4b8] sm:$0xff] }
  0x6e   : > { %3030 = vmatprep.subr.mxu1 %v2509_v57  ;;  %706 = vmatprep.mubr.f32.mxu0 %v4327_v60  ;;  %v2506_v57 = vld [vmem:[%s5611_s1 + $0x5b8] sm:$0xff] }
  0x6f   : > { %811 = vmatprep.mubr.f32.mxu1 %v4330_v61  ;;  %2975 = vmatpush3.msra.mxu0 %v2461_v4  ;;  %v2458_v4 = vld [vmem:[%s5611_s1 + $0x438] sm:$0xff] }
  0x70   : > { %3031 = vmatpush3.msra.mxu1 %v2493_v5  ;;  %707 = vmatmul.mubr.f32.gmra.mxu0 %v4339_v8  ;;  %v2490_v5 = vld [vmem:[%s5611_s1 + $0x538] sm:$0xff] }
  0x71   : > { %812 = vmatmul.mubr.f32.gmra.mxu1 %v4342_v9  ;;  %2976 = vmatprep.subr.mxu0 %v2476_v20  ;;  %v2473_v20 = vld [vmem:[%s5611_s1 + $0x4b0] sm:$0xff] }
  0x72   : > { %3032 = vmatprep.subr.mxu1 %v2508_v21  ;;  %2977 = vmatpush3.msra.mxu0 %v2460_v24  ;;  %v2505_v21 = vld [vmem:[%s5611_s1 + $0x5b0] sm:$0xff]  ;;  %v4407_v24 = vld [vmem:[%s3872_s25 + $0x168] sm:$0xff] }
  0x73   : > { %3033 = vmatpush3.msra.mxu1 %v2492_v25  ;;  %2978 = vmatprep.subr.mxu0 %v2475_v28  ;;  %v4410_v25 = vld [vmem:[%s3872_s25 + $0x178] sm:$0xff]  ;;  %v2457_v28 = vld [vmem:[%s5611_s1 + $0x430] sm:$0xff] }
  0x74   : > { %3034 = vmatprep.subr.mxu1 %v2507_v29  ;;  %711 = vmatprep.mubr.f32.mxu0 %v4367_v40  ;;  %5625 = vst [vmem:[#allocation2_spill] sm:$0xff] %v4410_v25  ;;  %v2489_v29 = vld [vmem:[%s5611_s1 + $0x530] sm:$0xff] }
  0x75   : > { %816 = vmatprep.mubr.f32.mxu1 %v4370_v41  ;;  %2979 = vmatpush3.msra.mxu0 %v2459_v44  ;;  %v4419_v44 = vld [vmem:[%s3872_s25 + $0x160] sm:$0xff] }
  0x76   : > { %3035 = vmatpush3.msra.mxu1 %v2491_v45  ;;  %712 = vmatmul.mubr.f32.gmra.mxu0 %v4379_v48  ;;  %5626 = vst [vmem:[#allocation3_spill] sm:$0xff] %v4419_v44  ;;  %v4422_v45 = vld [vmem:[%s3872_s25 + $0x170] sm:$0xff] }
  0x77   : > { %817 = vmatmul.mubr.f32.gmra.mxu1 %v4382_v52  ;;  %2980 = vmatprep.subr.mxu0 %v2474_v56  ;;  %5627 = vst [vmem:[#allocation4_spill] sm:$0xff] %v4422_v45  ;;  %v2472_v56 = vld [vmem:[%s5611_s1 + $0x4a8] sm:$0xff] }
  0x78   : > { %3036 = vmatprep.subr.mxu1 %v2506_v57  ;;  %2981 = vmatpush3.msra.mxu0 %v2458_v4  ;;  %v2504_v57 = vld [vmem:[%s5611_s1 + $0x5a8] sm:$0xff] }
  0x79   : > { %3037 = vmatpush3.msra.mxu1 %v2490_v5  ;;  %2982 = vmatprep.subr.mxu0 %v2473_v20  ;;  %v2456_v4 = vld [vmem:[%s5611_s1 + $0x428] sm:$0xff]  ;;  %v2471_v20 = vld [vmem:[%s5611_s1 + $0x4a0] sm:$0xff] }
  0x7a   : > { %3038 = vmatprep.subr.mxu1 %v2505_v21  ;;  %716 = vmatprep.mubr.f32.mxu0 %v4407_v24  ;;  %v2488_v5 = vld [vmem:[%s5611_s1 + $0x528] sm:$0xff]  ;;  %v2503_v21 = vld [vmem:[%s5611_s1 + $0x5a0] sm:$0xff] }
  0x7b   : > { %821 = vmatprep.mubr.f32.mxu1 %v4410_v25  ;;  %2983 = vmatpush3.msra.mxu0 %v2457_v28  ;;  %v4447_v28 = vld [vmem:[%s3872_s25 + $0x1a8] sm:$0xff]  ;;  %v4459_v25 = vld [vmem:[%s3872_s25 + $0x1a0] sm:$0xff] }
  0x7c   : > { %3039 = vmatpush3.msra.mxu1 %v2489_v29  ;;  %717 = vmatmul.mubr.f32.gmra.mxu0 %v4419_v44  ;;  %5628 = vst [vmem:[#allocation5_spill] sm:$0xff] %v4447_v28  ;;  %v4450_v29 = vld [vmem:[%s3872_s25 + $0x1b8] sm:$0xff]  ;;  %v2487_v44 = vld [vmem:[%s5611_s1 + $0x520] sm:$0xff]  ;;  %5630 = vst [vmem:[#allocation7_spill] sm:$0xff] %v4459_v25 }
  0x7d   : > { %822 = vmatmul.mubr.f32.gmra.mxu1 %v4422_v45  ;;  %2984 = vmatprep.subr.mxu0 %v2472_v56  ;;  %5629 = vst [vmem:[#allocation6_spill] sm:$0xff] %v4450_v29  ;;  %v2455_v45 = vld [vmem:[%s5611_s1 + $0x420] sm:$0xff]  ;;  %v4462_v56 = vld [vmem:[%s3872_s25 + $0x1b0] sm:$0xff] }
  0x7e   : > { %3040 = vmatprep.subr.mxu1 %v2504_v57  ;;  %2985 = vmatpush3.msra.mxu0 %v2456_v4  ;;  %5631 = vst [vmem:[#allocation8_spill] sm:$0xff] %v4462_v56  ;;  %v2470_v57 = vld [vmem:[%s5611_s1 + $0x498] sm:$0xff] }
  0x7f   : > { %3041 = vmatpush3.msra.mxu1 %v2488_v5  ;;  %2986 = vmatprep.subr.mxu0 %v2471_v20  ;;  %v2502_v4 = vld [vmem:[%s5611_s1 + $0x598] sm:$0xff] }
  0x80   : > { %3042 = vmatprep.subr.mxu1 %v2503_v21  ;;  %721 = vmatprep.mubr.f32.mxu0 %v4447_v28  ;;  %v2454_v5 = vld [vmem:[%s5611_s1 + $0x418] sm:$0xff]  ;;  %v2469_v21 = vld [vmem:[%s5611_s1 + $0x490] sm:$0xff]  ;;  %v4499_v28 = vld [vmem:[%s3872_s25 + $0x1e0] sm:$0xff] }
  0x81   : > { %826 = vmatprep.mubr.f32.mxu1 %v4450_v29  ;;  %2987 = vmatpush3.msra.mxu0 %v2455_v45  ;;  %v2486_v20 = vld [vmem:[%s5611_s1 + $0x518] sm:$0xff]  ;;  %v4487_v45 = vld [vmem:[%s3872_s25 + $0x1e8] sm:$0xff] }
  0x82   : > { %3043 = vmatpush3.msra.mxu1 %v2487_v44  ;;  %722 = vmatmul.mubr.f32.gmra.mxu0 %v4459_v25  ;;  %v2501_v44 = vld [vmem:[%s5611_s1 + $0x590] sm:$0xff]  ;;  %v4490_v29 = vld [vmem:[%s3872_s25 + $0x1f8] sm:$0xff] }
  0x83   : > { %827 = vmatmul.mubr.f32.gmra.mxu1 %v4462_v56  ;;  %2988 = vmatprep.subr.mxu0 %v2470_v57  ;;  %v2453_v56 = vld [vmem:[%s5611_s1 + $0x410] sm:$0xff] }
  0x84   : > { %3044 = vmatprep.subr.mxu1 %v2502_v4  ;;  %2989 = vmatpush3.msra.mxu0 %v2454_v5  ;;  %v2485_v25 = vld [vmem:[%s5611_s1 + $0x510] sm:$0xff]  ;;  %v2468_v4 = vld [vmem:[%s5611_s1 + $0x488] sm:$0xff] }
  0x85   : > { %3045 = vmatpush3.msra.mxu1 %v2486_v20  ;;  %2990 = vmatprep.subr.mxu0 %v2469_v21  ;;  %v4502_v57 = vld [vmem:[%s3872_s25 + $0x1f0] sm:$0xff]  ;;  %v2500_v5 = vld [vmem:[%s5611_s1 + $0x588] sm:$0xff] }
  0x86   : > { %3046 = vmatprep.subr.mxu1 %v2501_v44  ;;  %5632 = vst [vmem:[#allocation9_spill] sm:$0xff] %v4502_v57  ;;  %726 = vmatprep.mubr.f32.mxu0 %v4487_v45  ;;  %v2452_v20 = vld [vmem:[%s5611_s1 + $0x408] sm:$0xff]  ;;  %v2467_v44 = vld [vmem:[%s5611_s1 + $0x480] sm:$0xff] }
  0x87   : > { %831 = vmatprep.mubr.f32.mxu1 %v4490_v29  ;;  %2991 = vmatpush3.msra.mxu0 %v2453_v56  ;;  %v2484_v21 = vld [vmem:[%s5611_s1 + $0x508] sm:$0xff]  ;;  %v2451_v56 = vld [vmem:[%s5611_s1 + $0x400] sm:$0xff] }
  0x88   : > { %3047 = vmatpush3.msra.mxu1 %v2485_v25  ;;  %727 = vmatmul.mubr.f32.gmra.mxu0 %v4499_v28  ;;  %v2499_v25 = vld [vmem:[%s5611_s1 + $0x580] sm:$0xff] }
  0x89   : > { %832 = vmatmul.mubr.f32.gmra.mxu1 %v4502_v57  ;;  %2992 = vmatprep.subr.mxu0 %v2468_v4  ;;  %v2483_v57 = vld [vmem:[%s5611_s1 + $0x500] sm:$0xff]  ;;  %v2546_v4 = vld [vmem:[%s5611_s1 + $0x6f8] sm:$0xff] }
  0x8a   : > { %3048 = vmatprep.subr.mxu1 %v2500_v5  ;;  %2993 = vmatpush3.msra.mxu0 %v2452_v20  ;;  %v2578_v5 = vld [vmem:[%s5611_s1 + $0x7f8] sm:$0xff] }
  0x8b   : > { %3049 = vmatpush3.msra.mxu1 %v2484_v21  ;;  %2994 = vmatprep.subr.mxu0 %v2467_v44  ;;  %v2530_v20 = vld [vmem:[%s5611_s1 + $0x678] sm:$0xff]  ;;  %v2576_v44 = vld [vmem:[%s5611_s1 + $0x7e8] sm:$0xff] }
  0x8c   : > { %3050 = vmatprep.subr.mxu1 %v2499_v25  ;;  %2995 = vmatpush3.msra.mxu0 %v2451_v56  ;;  %v2562_v21 = vld [vmem:[%s5611_s1 + $0x778] sm:$0xff]  ;;  %v2528_v25 = vld [vmem:[%s5611_s1 + $0x668] sm:$0xff]  ;;  %v2575_v56 = vld [vmem:[%s5611_s1 + $0x7e0] sm:$0xff] }
  0x8d   : > { %1034 = vmatprep.mubr.f32.mxu0 %v3890_v63  ;;  %3051 = vmatpush3.msra.mxu1 %v2483_v57  ;;  %v2545_v63 = vld [vmem:[%s5611_s1 + $0x6f0] sm:$0xff] }
  0x8e   : > { %1139 = vmatprep.mubr.f32.mxu1 %v3896_v1  ;;  %1035 = vmatmul.mubr.f32.vlgmr.msra.gmra.mxu0 %v3899_v2  ;;  %v2577_v1 = vld [vmem:[%s5611_s1 + $0x7f0] sm:$0xff] }
  0x8f   : > { %1140 = vmatmul.mubr.f32.vlgmr.msra.gmra.mxu1 %v3902_v3  ;;  %3076 = vmatprep.subr.mxu0 %v2546_v4  ;;  %v2529_v57 = vld [vmem:[%s5611_s1 + $0x670] sm:$0xff]  ;;  %v2544_v3 = vld [vmem:[%s5611_s1 + $0x6e8] sm:$0xff]  ;;  %v2527_v4 = vld [vmem:[%s5611_s1 + $0x660] sm:$0xff] }
  0x90   : > { %3132 = vmatprep.subr.mxu1 %v2578_v5  ;;  %3077 = vmatpush3.msra.mxu0 %v2530_v20  ;;  %v2561_v2 = vld [vmem:[%s5611_s1 + $0x770] sm:$0xff]  ;;  %v2574_v5 = vld [vmem:[%s5611_s1 + $0x7d8] sm:$0xff] }
  0x91   : > { %3133 = vmatpush3.msra.mxu1 %v2562_v21  ;;  %3078 = vmatprep.subr.mxu0 %v2545_v63  ;;  %v2526_v20 = vld [vmem:[%s5611_s1 + $0x658] sm:$0xff]  ;;  %v2573_v21 = vld [vmem:[%s5611_s1 + $0x7d0] sm:$0xff] }
  0x92   : > { %3134 = vmatprep.subr.mxu1 %v2577_v1  ;;  %1039 = vmatprep.mubr.f32.mxu0 %v3927_v10  ;;  %v2560_v10 = vld [vmem:[%s5611_s1 + $0x768] sm:$0xff]  ;;  %v2525_v63 = vld [vmem:[%s5611_s1 + $0x650] sm:$0xff] }
  0x93   : > { %1144 = vmatprep.mubr.f32.mxu1 %v3930_v11  ;;  %3079 = vmatpush3.msra.mxu0 %v2529_v57  ;;  %v2543_v11 = vld [vmem:[%s5611_s1 + $0x6e0] sm:$0xff]  ;;  %v2572_v1 = vld [vmem:[%s5611_s1 + $0x7c8] sm:$0xff] }
  0x94   : > { %3135 = vmatpush3.msra.mxu1 %v2561_v2  ;;  %1040 = vmatmul.mubr.f32.gmra.mxu0 %v3939_v14  ;;  %v2559_v14 = vld [vmem:[%s5611_s1 + $0x760] sm:$0xff]  ;;  %v2524_v57 = vld [vmem:[%s5611_s1 + $0x648] sm:$0xff] }
  0x95   : > { %1145 = vmatmul.mubr.f32.gmra.mxu1 %v3942_v15  ;;  %3080 = vmatprep.subr.mxu0 %v2544_v3  ;;  %v2542_v15 = vld [vmem:[%s5611_s1 + $0x6d8] sm:$0xff]  ;;  %v2571_v2 = vld [vmem:[%s5611_s1 + $0x7c0] sm:$0xff] }
  0x96   : > { %3136 = vmatprep.subr.mxu1 %v2576_v44  ;;  %3081 = vmatpush3.msra.mxu0 %v2528_v25  ;;  %v2523_v3 = vld [vmem:[%s5611_s1 + $0x640] sm:$0xff]  ;;  %v2570_v44 = vld [vmem:[%s5611_s1 + $0x7b8] sm:$0xff] }
  0x97   : > { %3137 = vmatpush3.msra.mxu1 %v2560_v10  ;;  %3082 = vmatprep.subr.mxu0 %v2543_v11  ;;  %v2522_v25 = vld [vmem:[%s5611_s1 + $0x638] sm:$0xff]  ;;  %v2569_v10 = vld [vmem:[%s5611_s1 + $0x7b0] sm:$0xff] }
  0x98   : > { %3138 = vmatprep.subr.mxu1 %v2575_v56  ;;  %1044 = vmatprep.mubr.f32.mxu0 %v3967_v22  ;;  %v2558_v22 = vld [vmem:[%s5611_s1 + $0x758] sm:$0xff]  ;;  %v2521_v11 = vld [vmem:[%s5611_s1 + $0x630] sm:$0xff]  ;;  %v2568_v56 = vld [vmem:[%s5611_s1 + $0x7a8] sm:$0xff] }
  0x99   : > { %1149 = vmatprep.mubr.f32.mxu1 %v3970_v23  ;;  %3083 = vmatpush3.msra.mxu0 %v2527_v4  ;;  %v2541_v23 = vld [vmem:[%s5611_s1 + $0x6d0] sm:$0xff]  ;;  %v2520_v4 = vld [vmem:[%s5611_s1 + $0x628] sm:$0xff] }
  0x9a   : > { %3139 = vmatpush3.msra.mxu1 %v2559_v14  ;;  %1045 = vmatmul.mubr.f32.gmra.mxu0 %v3979_v26  ;;  %v2557_v26 = vld [vmem:[%s5611_s1 + $0x750] sm:$0xff]  ;;  %v2567_v14 = vld [vmem:[%s5611_s1 + $0x7a0] sm:$0xff] }
  0x9b   : > { %1150 = vmatmul.mubr.f32.gmra.mxu1 %v3982_v27  ;;  %3084 = vmatprep.subr.mxu0 %v2542_v15  ;;  %v2540_v27 = vld [vmem:[%s5611_s1 + $0x6c8] sm:$0xff]  ;;  %v2519_v15 = vld [vmem:[%s5611_s1 + $0x620] sm:$0xff] }
  0x9c   : > { %3140 = vmatprep.subr.mxu1 %v2574_v5  ;;  %3085 = vmatpush3.msra.mxu0 %v2526_v20  ;;  %v2566_v5 = vld [vmem:[%s5611_s1 + $0x798] sm:$0xff] }
  0x9d   : > { %3141 = vmatpush3.msra.mxu1 %v2558_v22  ;;  %3086 = vmatprep.subr.mxu0 %v2541_v23  ;;  %v2518_v20 = vld [vmem:[%s5611_s1 + $0x618] sm:$0xff]  ;;  %v2565_v22 = vld [vmem:[%s5611_s1 + $0x790] sm:$0xff] }
  0x9e   : > { %3142 = vmatprep.subr.mxu1 %v2573_v21  ;;  %1049 = vmatprep.mubr.f32.mxu0 %v4007_v34  ;;  %v2556_v34 = vld [vmem:[%s5611_s1 + $0x748] sm:$0xff]  ;;  %v2517_v23 = vld [vmem:[%s5611_s1 + $0x610] sm:$0xff] }
  0x9f   : > { %1154 = vmatprep.mubr.f32.mxu1 %v4010_v35  ;;  %3087 = vmatpush3.msra.mxu0 %v2525_v63  ;;  %v2539_v35 = vld [vmem:[%s5611_s1 + $0x6c0] sm:$0xff]  ;;  %v2564_v21 = vld [vmem:[%s5611_s1 + $0x788] sm:$0xff] }
  0xa0   : > { %3143 = vmatpush3.msra.mxu1 %v2557_v26  ;;  %1050 = vmatmul.mubr.f32.gmra.mxu0 %v4019_v38  ;;  %v2555_v38 = vld [vmem:[%s5611_s1 + $0x740] sm:$0xff]  ;;  %v2516_v63 = vld [vmem:[%s5611_s1 + $0x608] sm:$0xff] }
  0xa1   : > { %1155 = vmatmul.mubr.f32.gmra.mxu1 %v4022_v39  ;;  %3088 = vmatprep.subr.mxu0 %v2540_v27  ;;  %v2538_v39 = vld [vmem:[%s5611_s1 + $0x6b8] sm:$0xff]  ;;  %v2563_v26 = vld [vmem:[%s5611_s1 + $0x780] sm:$0xff] }
  0xa2   : > { %3144 = vmatprep.subr.mxu1 %v2572_v1  ;;  %3089 = vmatpush3.msra.mxu0 %v2524_v57  ;;  %v2515_v27 = vld [vmem:[%s5611_s1 + $0x600] sm:$0xff] }
  0xa3   : > { %3145 = vmatpush3.msra.mxu1 %v2556_v34  ;;  %3090 = vmatprep.subr.mxu0 %v2539_v35 }
  0xa4   : > { %3146 = vmatprep.subr.mxu1 %v2571_v2  ;;  %1054 = vmatprep.mubr.f32.mxu0 %v4047_v46  ;;  %v2554_v46 = vld [vmem:[%s5611_s1 + $0x738] sm:$0xff] }
  0xa5   : > { %1159 = vmatprep.mubr.f32.mxu1 %v4050_v47  ;;  %3091 = vmatpush3.msra.mxu0 %v2523_v3  ;;  %v2537_v47 = vld [vmem:[%s5611_s1 + $0x6b0] sm:$0xff] }
  0xa6   : > { %3147 = vmatpush3.msra.mxu1 %v2555_v38  ;;  %1055 = vmatmul.mubr.f32.gmra.mxu0 %v4059_v50  ;;  %v2553_v50 = vld [vmem:[%s5611_s1 + $0x730] sm:$0xff] }
  0xa7   : > { %1160 = vmatmul.mubr.f32.gmra.mxu1 %v4062_v51  ;;  %3092 = vmatprep.subr.mxu0 %v2538_v39  ;;  %v2536_v51 = vld [vmem:[%s5611_s1 + $0x6a8] sm:$0xff] }
  0xa8   : > { %3148 = vmatprep.subr.mxu1 %v2570_v44  ;;  %3093 = vmatpush3.msra.mxu0 %v2522_v25 }
  0xa9   : > { %3149 = vmatpush3.msra.mxu1 %v2554_v46  ;;  %3094 = vmatprep.subr.mxu0 %v2537_v47 }
  0xaa   : > { %3150 = vmatprep.subr.mxu1 %v2569_v10  ;;  %1059 = vmatprep.mubr.f32.mxu0 %v4087_v58  ;;  %v2552_v58 = vld [vmem:[%s5611_s1 + $0x728] sm:$0xff] }
  0xab   : > { %1164 = vmatprep.mubr.f32.mxu1 %v4090_v59  ;;  %3095 = vmatpush3.msra.mxu0 %v2521_v11  ;;  %v2535_v59 = vld [vmem:[%s5611_s1 + $0x6a0] sm:$0xff] }
  0xac   : > { %3151 = vmatpush3.msra.mxu1 %v2553_v50  ;;  %1060 = vmatmul.mubr.f32.gmra.mxu0 %v4099_v62  ;;  %v2551_v62 = vld [vmem:[%s5611_s1 + $0x720] sm:$0xff] }
  0xad   : > { %1165 = vmatmul.mubr.f32.gmra.mxu1 %v4102_v0  ;;  %3096 = vmatprep.subr.mxu0 %v2536_v51  ;;  %v2534_v0 = vld [vmem:[%s5611_s1 + $0x698] sm:$0xff] }
  0xae   : > { %3152 = vmatprep.subr.mxu1 %v2568_v56  ;;  %3097 = vmatpush3.msra.mxu0 %v2520_v4 }
  0xaf   : > { %3153 = vmatpush3.msra.mxu1 %v2552_v58  ;;  %3098 = vmatprep.subr.mxu0 %v2535_v59 }
  0xb0   : > { %3154 = vmatprep.subr.mxu1 %v2567_v14  ;;  %1064 = vmatprep.mubr.f32.mxu0 %v4127_v12  ;;  %v2550_v12 = vld [vmem:[%s5611_s1 + $0x718] sm:$0xff] }
  0xb1   : > { %1169 = vmatprep.mubr.f32.mxu1 %v4130_v13  ;;  %3099 = vmatpush3.msra.mxu0 %v2519_v15  ;;  %v2533_v13 = vld [vmem:[%s5611_s1 + $0x690] sm:$0xff] }
  0xb2   : > { %3155 = vmatpush3.msra.mxu1 %v2551_v62  ;;  %1065 = vmatmul.mubr.f32.gmra.mxu0 %v4139_v18  ;;  %v2549_v18 = vld [vmem:[%s5611_s1 + $0x710] sm:$0xff] }
  0xb3   : > { %1170 = vmatmul.mubr.f32.gmra.mxu1 %v4142_v19  ;;  %3100 = vmatprep.subr.mxu0 %v2534_v0  ;;  %v2532_v19 = vld [vmem:[%s5611_s1 + $0x688] sm:$0xff] }
  0xb4   : > { %3156 = vmatprep.subr.mxu1 %v2566_v5  ;;  %3101 = vmatpush3.msra.mxu0 %v2518_v20 }
  0xb5   : > { %3157 = vmatpush3.msra.mxu1 %v2550_v12  ;;  %3102 = vmatprep.subr.mxu0 %v2533_v13 }
  0xb6   : > { %3158 = vmatprep.subr.mxu1 %v2565_v22  ;;  %1069 = vmatprep.mubr.f32.mxu0 %v4167_v30  ;;  %v2548_v30 = vld [vmem:[%s5611_s1 + $0x708] sm:$0xff] }
  0xb7   : > { %1174 = vmatprep.mubr.f32.mxu1 %v4170_v31  ;;  %3103 = vmatpush3.msra.mxu0 %v2517_v23  ;;  %v2531_v31 = vld [vmem:[%s5611_s1 + $0x680] sm:$0xff] }
  0xb8   : > { %3159 = vmatpush3.msra.mxu1 %v2549_v18  ;;  %1070 = vmatmul.mubr.f32.gmra.mxu0 %v4179_v36  ;;  %v2547_v36 = vld [vmem:[%s5611_s1 + $0x700] sm:$0xff] }
  0xb9   : > { %1175 = vmatmul.mubr.f32.gmra.mxu1 %v4182_v37  ;;  %3104 = vmatprep.subr.mxu0 %v2532_v19  ;;  %v5633_v37 = vld [vmem:[#allocation2_spill] sm:$0xff] }
  0xba   : > { %3160 = vmatprep.subr.mxu1 %v2564_v21  ;;  %3105 = vmatpush3.msra.mxu0 %v2516_v63 }
  0xbb   : > { %3161 = vmatpush3.msra.mxu1 %v2548_v30  ;;  %3106 = vmatprep.subr.mxu0 %v2531_v31  ;;  %v2579_v31 = vld [vmem:[%s5612_s2 + $0x20] sm:$0xff] }
  0xbc   : > { %3162 = vmatprep.subr.mxu1 %v2563_v26  ;;  %3107 = vmatpush3.msra.mxu0 %v2515_v27  ;;  %v837_v26 = vld [vmem:[%s5612_s2] sm:$0xff] }
  0xbd   : > { %1244 = vmatprep.mubr.f32.mxu0 %v4210_v49  ;;  %3163 = vmatpush3.msra.mxu1 %v2547_v36  ;;  %v5634_v49 = vld [vmem:[#allocation3_spill] sm:$0xff] }
  0xbe   : > { %1349 = vmatprep.mubr.f32.mxu1 %v4216_v53  ;;  %1245 = vmatmul.mubr.f32.vlgmr.msra.gmra.mxu0 %v4219_v54  ;;  %v5635_v53 = vld [vmem:[#allocation4_spill] sm:$0xff]  ;;  %v5636_v54 = vld [vmem:[#allocation5_spill] sm:$0xff] }
  0xbf   : > { %1350 = vmatmul.mubr.f32.vlgmr.msra.gmra.mxu1 %v4222_v55  ;;  %1249 = vmatprep.mubr.f32.mxu0 %v4247_v6  ;;  %v5637_v55 = vld [vmem:[#allocation6_spill] sm:$0xff]  ;;  %v5638_v6 = vld [vmem:[#allocation7_spill] sm:$0xff] }
  0xc0   : > { %1354 = vmatprep.mubr.f32.mxu1 %v4250_v7  ;;  %v5639_v7 = vld [vmem:[#allocation8_spill] sm:$0xff] }
  0xc2   : > { %1250 = vmatmul.mubr.f32.gmra.mxu0 %v4259_v16  ;;  %v5640_v16 = vld [vmem:[#allocation9_spill] sm:$0xff] }
  0xc3   : > { %1355 = vmatmul.mubr.f32.gmra.mxu1 %v4262_v17  ;;  %1254 = vmatprep.mubr.f32.mxu0 %v4287_v32 }
  0xc4   : > { %1359 = vmatprep.mubr.f32.mxu1 %v4290_v33 }
  0xc6   : > { %1255 = vmatmul.mubr.f32.gmra.mxu0 %v4299_v42 }
  0xc7   : > { %1360 = vmatmul.mubr.f32.gmra.mxu1 %v4302_v43  ;;  %1259 = vmatprep.mubr.f32.mxu0 %v4327_v60 }
  0xc8   : > { %1364 = vmatprep.mubr.f32.mxu1 %v4330_v61 }
  0xca   : > { %1260 = vmatmul.mubr.f32.gmra.mxu0 %v4339_v8 }
  0xcb   : > { %1365 = vmatmul.mubr.f32.gmra.mxu1 %v4342_v9  ;;  %1264 = vmatprep.mubr.f32.mxu0 %v4367_v40 }
  0xcc   : > { %1369 = vmatprep.mubr.f32.mxu1 %v4370_v41 }
  0xce   : > { %1265 = vmatmul.mubr.f32.gmra.mxu0 %v4379_v48 }
  0xcf   : > { %1370 = vmatmul.mubr.f32.gmra.mxu1 %v4382_v52  ;;  %1269 = vmatprep.mubr.f32.mxu0 %v4407_v24 }
  0xd0   : > { %1374 = vmatprep.mubr.f32.mxu1 %v5633_v37 }
  0xd2   : > { %1270 = vmatmul.mubr.f32.gmra.mxu0 %v5634_v49 }
  0xd3   : > { %1375 = vmatmul.mubr.f32.gmra.mxu1 %v5635_v53  ;;  %1274 = vmatprep.mubr.f32.mxu0 %v5636_v54 }
  0xd4   : > { %1379 = vmatprep.mubr.f32.mxu1 %v5637_v55 }
  0xd6   : > { %1275 = vmatmul.mubr.f32.gmra.mxu0 %v5638_v6 }
  0xd7   : > { %1380 = vmatmul.mubr.f32.gmra.mxu1 %v5639_v7  ;;  %1279 = vmatprep.mubr.f32.mxu0 %v4487_v45 }
  0xd8   : > { %1384 = vmatprep.mubr.f32.mxu1 %v4490_v29 }
  0xda   : > { %1280 = vmatmul.mubr.f32.gmra.mxu0 %v4499_v28 }
  0xdb   : > { %1385 = vmatmul.mubr.f32.gmra.mxu1 %v5640_v16  ;;  %3476 = vmatprep.mubr.msk.f32.mxu0 %vm1395_vm0, %v2579_v31 }
  0xdc   : > { %3498 = vmatprep.mubr.msk.f32.mxu1 %vm1395_vm0, %v837_v26 }
  0xee   : > { %v2772_v17 = vpop.f32.mrf.mxu0 }
  0xef   : > { %v2828_v32 = vpop.f32.mrf.mxu1 }
  0xf0   : > { %v2773_v33 = vpop.f32.mrf.mxu0 }
  0xf1   : > { %v2829_v42 = vpop.f32.mrf.mxu1  ;;  %v2774_v43 = vadd.f32 %v2773_v33, %v2772_v17 }
  0xf2   : > { %v2830_v60 = vadd.f32 %v2829_v42, %v2828_v32 }
  0xf4   : > { %v4788_v61 = vadd.f32 %v2830_v60, %v2774_v43  ;;  %v2775_v8 = vpop.f32.mrf.mxu0 }
  0xf5   : > { %v2831_v9 = vpop.f32.mrf.mxu1 }
  0xf6   : > { %5641 = vst [vmem:[#allocation2_spill] sm:$0xff] %v4788_v61  ;;  %v2776_v40 = vpop.f32.mrf.mxu0 }
  0xf7   : > { %v2832_v41 = vpop.f32.mrf.mxu1  ;;  %v2777_v48 = vadd.f32 %v2776_v40, %v2775_v8 }
  0xf8   : > { %v2833_v52 = vadd.f32 %v2832_v41, %v2831_v9 }
  0xfa   : > { %v4790_v24 = vadd.f32 %v2833_v52, %v2777_v48  ;;  %v4792_v29 = vpop.f32.mrf.mxu0 }
  0xfb   : > { %v4794_v28 = vpop.f32.mrf.mxu1 }
  0xfc   : > { %5642 = vst [vmem:[#allocation3_spill] sm:$0xff] %v4790_v24  ;;  %v4796_v45 = vpop.f32.mrf.mxu0 }
  0xfd   : > { %v4798_v1 = vpop.f32.mrf.mxu1 }
 0x100   : > { %v4800_v57 = vpop.f32.mrf.mxu0 }
 0x101   : > { %v4802_v34 = vpop.f32.mrf.mxu1 }
 0x102   : > { %v4804_v35 = vpop.f32.mrf.mxu0 }
 0x103   : > { %v4806_v2 = vpop.f32.mrf.mxu1  ;;  %v2783_v24 = vadd.f32 %v4804_v35, %v4800_v57 }
 0x106   : > { %v2784_v3 = vpop.f32.mrf.mxu0 }
 0x107   : > { %v2840_v38 = vpop.f32.mrf.mxu1 }
 0x108   : > { %v2785_v39 = vpop.f32.mrf.mxu0 }
 0x109   : > { %v2841_v44 = vpop.f32.mrf.mxu1  ;;  %v2786_v26 = vadd.f32 %v2785_v39, %v2784_v3  ;;  %v2780_v3 = vadd.f32 %v4796_v45, %v4792_v29 }
 0x10c   : > { %v2787_v25 = vpop.f32.mrf.mxu0 }
 0x10d   : > { %v2843_v46 = vpop.f32.mrf.mxu1 }
 0x10e   : > { %v2788_v47 = vpop.f32.mrf.mxu0 }
 0x10f   : > { %v2844_v10 = vpop.f32.mrf.mxu1  ;;  %v2789_v48 = vadd.f32 %v2788_v47, %v2787_v25 }
 0x110   : > { %v2845_v52 = vadd.f32 %v2844_v10, %v2843_v46 }
 0x112   : > { %v2790_v11 = vpop.f32.mrf.mxu0 }
 0x113   : > { %v2846_v50 = vpop.f32.mrf.mxu1 }
 0x114   : > { %v2791_v51 = vpop.f32.mrf.mxu0 }
 0x115   : > { %v2847_v56 = vpop.f32.mrf.mxu1  ;;  %v2792_v43 = vadd.f32 %v2791_v51, %v2790_v11  ;;  %v2839_v11 = vadd.f32 %v4806_v2, %v4802_v34  ;;  %v614_v51 = vadd.f32 %v2845_v52, %v2789_v48 }
 0x116   : > { %v2848_v60 = vadd.f32 %v2847_v56, %v2846_v50 }
 0x118   : > { %v2793_v4 = vpop.f32.mrf.mxu0 }
 0x119   : > { %v2849_v58 = vpop.f32.mrf.mxu1 }
 0x11a   : > { %v2794_v59 = vpop.f32.mrf.mxu0 }
 0x11b   : > { %v2850_v14 = vpop.f32.mrf.mxu1  ;;  %v2795_v8 = vadd.f32 %v2794_v59, %v2793_v4 }
 0x11c   : > { %v2851_v9 = vadd.f32 %v2850_v14, %v2849_v58  ;;  %v604_v58 = vadd.f32 %v2839_v11, %v2783_v24  ;;  %v2638_v11 = vld [vmem:[%s5611_s1 + $0x978] sm:$0xff] }
 0x11e   : > { %v4808_v15 = vpop.f32.mrf.mxu0  ;;  %v624_v61 = vadd.f32 %v2851_v9, %v2795_v8 }
 0x11f   : > { %v4810_v62 = vpop.f32.mrf.mxu1 }
 0x120   : > { %5643 = vst [vmem:[#allocation4_spill] sm:$0xff] %v4810_v62  ;;  %v4812_v0 = vpop.f32.mrf.mxu0 }
 0x121   : > { %v4814_v5 = vpop.f32.mrf.mxu1 }
 0x122   : > { %5644 = vst [vmem:[#allocation5_spill] sm:$0xff] %v4814_v5  ;;  %v2842_v5 = vadd.f32 %v2841_v44, %v2840_v38  ;;  %v2836_v38 = vadd.f32 %v4798_v1, %v4794_v28 }
 0x124   : > { %v4816_v20 = vpop.f32.mrf.mxu0  ;;  %v609_v39 = vadd.f32 %v2842_v5, %v2786_v26  ;;  %v599_v29 = vadd.f32 %v2836_v38, %v2780_v3  ;;  %v2654_v26 = vld [vmem:[%s5611_s1 + $0x9f8] sm:$0xff] }
 0x125   : > { %v4818_v12 = vpop.f32.mrf.mxu1 }
 0x126   : > { %5645 = vst [vmem:[#allocation6_spill] sm:$0xff] %v4818_v12  ;;  %v4820_v13 = vpop.f32.mrf.mxu0  ;;  %v619_v12 = vadd.f32 %v2848_v60, %v2792_v43 }
 0x127   : > { %v4822_v22 = vpop.f32.mrf.mxu1  ;;  %v2889_v28 = vadd.f32 %v4820_v13, %v4816_v20  ;;  %v5649_v20 = vld [vmem:[#allocation3_spill] sm:$0xff]  ;;  %v5655_v60 = vld [vmem:[#allocation4_spill] sm:$0xff] }
 0x128   : > { %5646 = vst [vmem:[#allocation7_spill] sm:$0xff] %v4822_v22 }
 0x129   : > { %v699_v13 = vadd.f32 %v2889_v28, %v5649_v20  ;;  %v5656_v8 = vld [vmem:[#allocation5_spill] sm:$0xff] }
 0x12a   : > { %v2890_v23 = vpop.f32.mrf.mxu0  ;;  %v2942_v9 = vadd.f32 %v5656_v8, %v5655_v60  ;;  %v2624_v60 = vld [vmem:[%s5611_s1 + $0x908] sm:$0xff]  ;;  %v2639_v8 = vld [vmem:[%s5611_s1 + $0x980] sm:$0xff] }
 0x12b   : > { %v4824_v18 = vpop.f32.mrf.mxu1 }
 0x12c   : > { %5647 = vst [vmem:[#allocation8_spill] sm:$0xff] %v4824_v18  ;;  %v2891_v19 = vpop.f32.mrf.mxu0 }
 0x12d   : > { %v4826_v21 = vpop.f32.mrf.mxu1  ;;  %v2892_v34 = vadd.f32 %v2891_v19, %v2890_v23  ;;  %v2886_v19 = vadd.f32 %v4812_v0, %v4808_v15  ;;  %v5652_v15 = vld [vmem:[#allocation2_spill] sm:$0xff] }
 0x12e   : > { %5648 = vst [vmem:[#allocation9_spill] sm:$0xff] %v4826_v21 }
 0x12f   : > { %v694_v0 = vadd.f32 %v2886_v19, %v5652_v15  ;;  %v2630_v19 = vld [vmem:[%s5611_s1 + $0x938] sm:$0xff] }
 0x130   : > { %v2893_v63 = vpop.f32.mrf.mxu0 }
 0x131   : > { %v4828_v30 = vpop.f32.mrf.mxu1  ;;  %v799_v52 = vadd.f32 %v2942_v9, %v694_v0  ;;  %v2641_v0 = vld [vmem:[%s5611_s1 + $0x990] sm:$0xff]  ;;  %v2623_v9 = vld [vmem:[%s5611_s1 + $0x900] sm:$0xff] }
 0x132   : > { %v2894_v27 = vpop.f32.mrf.mxu0 }
 0x133   : > { %v4836_v36 = vpop.f32.mrf.mxu1  ;;  %v2895_v10 = vadd.f32 %v2894_v27, %v2893_v63 }
 0x134   : > { %v2951_v63 = vadd.f32 %v4836_v36, %v4828_v30 }
 0x135   : > { %v709_v45 = vadd.f32 %v2895_v10, %v604_v58  ;;  %v2651_v10 = vld [vmem:[%s5611_s1 + $0x9e0] sm:$0xff]  ;;  %v2650_v58 = vld [vmem:[%s5611_s1 + $0x9d8] sm:$0xff] }
 0x136   : > { %v2896_v37 = vpop.f32.mrf.mxu0 }
 0x137   : > { %v2952_v49 = vpop.f32.mrf.mxu1 }
 0x138   : > { %v2897_v53 = vpop.f32.mrf.mxu0 }
 0x139   : > { %v2953_v54 = vpop.f32.mrf.mxu1  ;;  %v2898_v50 = vadd.f32 %v2897_v53, %v2896_v37  ;;  %v5650_v53 = vld [vmem:[#allocation8_spill] sm:$0xff] }
 0x13a   : > { %v2954_v1 = vadd.f32 %v2953_v54, %v2952_v49  ;;  %v5651_v54 = vld [vmem:[#allocation9_spill] sm:$0xff] }
 0x13b   : > { %v714_v2 = vadd.f32 %v2898_v50, %v609_v39  ;;  %v839_v50 = vld [vmem:[%s5612_s2 + $0x10] sm:$0xff]  ;;  %v2652_v39 = vld [vmem:[%s5611_s1 + $0x9e8] sm:$0xff] }
 0x13c   : > { %v2899_v55 = vpop.f32.mrf.mxu0 }
 0x13d   : > { %v2955_v6 = vpop.f32.mrf.mxu1  ;;  %v819_v27 = vadd.f32 %v2954_v1, %v714_v2  ;;  %v2634_v2 = vld [vmem:[%s5611_s1 + $0x958] sm:$0xff]  ;;  %v2631_v1 = vld [vmem:[%s5611_s1 + $0x940] sm:$0xff] }
 0x13e   : > { %v2900_v7 = vpop.f32.mrf.mxu0 }
 0x13f   : > { %v2956_v16 = vpop.f32.mrf.mxu1  ;;  %v2901_v21 = vadd.f32 %v2900_v7, %v2899_v55  ;;  %v2948_v55 = vadd.f32 %v5651_v54, %v5650_v53  ;;  %v2643_v54 = vld [vmem:[%s5611_s1 + $0x9a0] sm:$0xff] }
 0x141   : > { %v719_v4 = vadd.f32 %v2901_v21, %v614_v51  ;;  %v704_v21 = vadd.f32 %v2892_v34, %v599_v29  ;;  %v3572_v34 = vld [vmem:[%s3872_s25 + $0x18] sm:$0xff] }
 0x142   : > { %v2902_v17 = vpop.f32.mrf.mxu0 }
 0x143   : > { %v2958_v32 = vpop.f32.mrf.mxu1  ;;  %v809_v36 = vadd.f32 %v2948_v55, %v704_v21  ;;  %v2645_v21 = vld [vmem:[%s5611_s1 + $0x9b0] sm:$0xff]  ;;  %v2627_v55 = vld [vmem:[%s5611_s1 + $0x920] sm:$0xff] }
 0x144   : > { %v2903_v33 = vpop.f32.mrf.mxu0 }
 0x145   : > { %v2959_v42 = vpop.f32.mrf.mxu1  ;;  %v2904_v31 = vadd.f32 %v2903_v33, %v2902_v17  ;;  %v5653_v17 = vld [vmem:[#allocation6_spill] sm:$0xff] }
 0x146   : > { %v2960_v57 = vadd.f32 %v2959_v42, %v2958_v32  ;;  %v5654_v32 = vld [vmem:[#allocation7_spill] sm:$0xff] }
 0x147   : > { %v724_v56 = vadd.f32 %v2904_v31, %v619_v12  ;;  %v2945_v30 = vadd.f32 %v5654_v32, %v5653_v17  ;;  %v838_v31 = vld [vmem:[%s5612_s2 + $0x8] sm:$0xff]  ;;  %v2625_v17 = vld [vmem:[%s5611_s1 + $0x910] sm:$0xff] }
 0x148   : > { %v2905_v40 = vpop.f32.mrf.mxu0 }
 0x149   : > { %v2961_v41 = vpop.f32.mrf.mxu1 }
 0x14a   : > { %v2906_v62 = vpop.f32.mrf.mxu0 }
 0x14b   : > { %v2962_v22 = vpop.f32.mrf.mxu1  ;;  %v2907_v18 = vadd.f32 %v2906_v62, %v2905_v40  ;;  %v829_v62 = vadd.f32 %v2960_v57, %v724_v56  ;;  %v804_v40 = vadd.f32 %v2945_v30, %v699_v13  ;;  %v2644_v13 = vld [vmem:[%s5611_s1 + $0x9a8] sm:$0xff] }
 0x14c   : > { %v2963_v46 = vadd.f32 %v2962_v22, %v2961_v41 }
 0x14d   : > { %v729_v25 = vadd.f32 %v2907_v18, %v624_v61  ;;  %v2957_v61 = vadd.f32 %v2956_v16, %v2955_v6  ;;  %v814_v6 = vadd.f32 %v2951_v63, %v709_v45  ;;  %v2647_v45 = vld [vmem:[%s5611_s1 + $0x9c0] sm:$0xff]  ;;  %v2629_v63 = vld [vmem:[%s5611_s1 + $0x930] sm:$0xff] }
 0x14e   : > { %v2996_v44 = vpop.f32.mrf.mxu0 }
 0x14f   : > { %v3052_v47 = vpop.f32.mrf.mxu1  ;;  %v834_v35 = vadd.f32 %v2963_v46, %v729_v25  ;;  %v824_v5 = vadd.f32 %v2957_v61, %v719_v4  ;;  %v2653_v25 = vld [vmem:[%s5611_s1 + $0x9f0] sm:$0xff]  ;;  %v2635_v4 = vld [vmem:[%s5611_s1 + $0x960] sm:$0xff] }
 0x150   : > { %v2997_v59 = vpop.f32.mrf.mxu0  ;;  %v2637_v46 = vld [vmem:[%s5611_s1 + $0x970] sm:$0xff] }
 0x151   : > { %v3053_v14 = vpop.f32.mrf.mxu1  ;;  %v2998_v12 = vadd.f32 %v2997_v59, %v2996_v44  ;;  %3482 = vmatprep.subr.mxu1 %v834_v35  ;;  %v840_v44 = vld [vmem:[%s5612_s2 + $0x18] sm:$0xf]  ;;  %v2649_v61 = vld [vmem:[%s5611_s1 + $0x9d0] sm:$0xff] }
 0x152   : > { %v3054_v22 = vadd.f32 %v3053_v14, %v3052_v47  ;;  %3483 = vmatpush3.msra.mxu1 %v834_v35  ;;  %v2636_v47 = vld [vmem:[%s5611_s1 + $0x968] sm:$0xff] }
 0x153   : > { %3484 = vmatprep.subr.mxu1 %v829_v62 }
 0x154   : > { %v4850_v18 = vadd.f32 %v3054_v22, %v2998_v12  ;;  %v2999_v24 = vpop.f32.mrf.mxu0  ;;  %3485 = vmatpush3.msra.mxu1 %v829_v62  ;;  %v2633_v62 = vld [vmem:[%s5611_s1 + $0x950] sm:$0xff]  ;;  %v2648_v12 = vld [vmem:[%s5611_s1 + $0x9c8] sm:$0xff] }
 0x155   : > { %v3055_v23 = vpop.f32.mrf.mxu1  ;;  %3486 = vmatprep.subr.mxu1 %v824_v5  ;;  %v2632_v22 = vld [vmem:[%s5611_s1 + $0x948] sm:$0xff] }
 0x156   : > { %v3000_v37 = vpop.f32.mrf.mxu0  ;;  %3487 = vmatpush3.msra.mxu1 %v824_v5 }
 0x157   : > { %v3056_v49 = vpop.f32.mrf.mxu1  ;;  %v3001_v7 = vadd.f32 %v3000_v37, %v2999_v24  ;;  %3488 = vmatprep.subr.mxu1 %v819_v27  ;;  %v2628_v37 = vld [vmem:[%s5611_s1 + $0x928] sm:$0xff] }
 0x158   : > { %v3057_v16 = vadd.f32 %v3056_v49, %v3055_v23  ;;  %3489 = vmatpush3.msra.mxu1 %v819_v27  ;;  %v2646_v23 = vld [vmem:[%s5611_s1 + $0x9b8] sm:$0xff] }
 0x159   : > { %3490 = vmatprep.subr.mxu1 %v814_v6 }
 0x15a   : > { %v4862_v33 = vadd.f32 %v3057_v16, %v3001_v7  ;;  %v4864_v42 = vpop.f32.mrf.mxu0  ;;  %3491 = vmatpush3.msra.mxu1 %v814_v6  ;;  %v2642_v6 = vld [vmem:[%s5611_s1 + $0x998] sm:$0xff] }
 0x15b   : > { %v4866_v43 = vpop.f32.mrf.mxu1  ;;  %3492 = vmatprep.subr.mxu1 %v809_v36  ;;  %v2626_v7 = vld [vmem:[%s5611_s1 + $0x918] sm:$0xff] }
 0x15c   : > { %v4870_v41 = vpop.f32.mrf.mxu0  ;;  %3493 = vmatpush3.msra.mxu1 %v809_v36  ;;  %v2640_v36 = vld [vmem:[%s5611_s1 + $0x988] sm:$0xff] }
 0x15d   : > { %v4872_v48 = vpop.f32.mrf.mxu1  ;;  %3494 = vmatprep.subr.mxu1 %v804_v40 }
 0x15e   : > { %3495 = vmatpush3.msra.mxu1 %v804_v40 }
 0x15f   : > { %3496 = vmatprep.subr.mxu1 %v799_v52 }
 0x160   : > { %v4886_v51 = vpop.f32.mrf.mxu0  ;;  %3497 = vmatpush3.msra.mxu1 %v799_v52 }
 0x161   : > { %v4888_v56 = vpop.f32.mrf.mxu1  ;;  %3499 = vmatmul.mubr.msk.f32.vlgmr.msra.gmra.mxu1 %vm1395_vm0, %v838_v31  ;;  %3268 = vmatprep.subr.mxu1 %v2654_v26  ;;  %v2718_v31 = vld [vmem:[%s5611_s1 + $0xbf8] sm:$0xff] }
 0x162   : > { %v4897_v3 = vpop.f32.mrf.mxu0  ;;  %3269 = vmatpush3.msra.mxu1 %v2638_v11  ;;  %3501 = vmatprep.mubr.msk.f32.mxu1 %vm1395_vm0, %v839_v50  ;;  %v2702_v26 = vld [vmem:[%s5611_s1 + $0xb78] sm:$0xff] }
 0x163   : > { %v4899_v38 = vpop.f32.mrf.mxu1  ;;  %3270 = vmatprep.subr.mxu1 %v2653_v25  ;;  %v2717_v25 = vld [vmem:[%s5611_s1 + $0xbf0] sm:$0xff] }
 0x164   : > { %3271 = vmatpush3.msra.mxu1 %v2637_v46  ;;  %v3573_v46 = vld [vmem:[%s3872_s25 + $0x10] sm:$0xff] }
 0x165   : > { %3272 = vmatprep.subr.mxu1 %v2652_v39  ;;  %3502 = vmatmul.mubr.msk.f32.gmra.mxu1 %vm1395_vm0, %v840_v44  ;;  %v2701_v39 = vld [vmem:[%s5611_s1 + $0xb70] sm:$0xff] }
 0x166   : > { %v4918_v57 = vpop.f32.mrf.mxu0  ;;  %3273 = vmatpush3.msra.mxu1 %v2636_v47  ;;  %1888 = vmatprep.mubr.f32.mxu1 %v3572_v34 }
 0x167   : > { %v4920_v35 = vpop.f32.mrf.mxu1  ;;  %3274 = vmatprep.subr.mxu1 %v2651_v10  ;;  %v3574_v10 = vld [vmem:[%s3872_s25 + $0x58] sm:$0xff] }
 0x168   : > { %v4929_v59 = vpop.f32.mrf.mxu0  ;;  %3275 = vmatpush3.msra.mxu1 %v2635_v4  ;;  %v2716_v4 = vld [vmem:[%s5611_s1 + $0xbe8] sm:$0xff] }
 0x169   : > { %v4931_v14 = vpop.f32.mrf.mxu1  ;;  %3276 = vmatprep.subr.mxu1 %v2650_v58  ;;  %v2700_v58 = vld [vmem:[%s5611_s1 + $0xb68] sm:$0xff] }
 0x16a   : > { %3277 = vmatpush3.msra.mxu1 %v2634_v2 }
 0x16b   : > { %3278 = vmatprep.subr.mxu1 %v2649_v61  ;;  %v2715_v61 = vld [vmem:[%s5611_s1 + $0xbe0] sm:$0xff] }
 0x16c   : > { %v4945_v29 = vpop.f32.mrf.mxu0  ;;  %3279 = vmatpush3.msra.mxu1 %v2633_v62  ;;  %v3575_v62 = vld [vmem:[%s3872_s25 + $0x50] sm:$0xff] }
 0x16d   : > { %v4947_v28 = vpop.f32.mrf.mxu1  ;;  %3280 = vmatprep.subr.mxu1 %v2648_v12  ;;  %v2699_v12 = vld [vmem:[%s5611_s1 + $0xb60] sm:$0xff] }
 0x16e   : > { %v4955_v5 = vpop.f32.mrf.mxu0  ;;  %3281 = vmatpush3.msra.mxu1 %v2632_v22 }
 0x16f   : > { %v4957_v24 = vpop.f32.mrf.mxu1  ;;  %3282 = vmatprep.subr.mxu1 %v2647_v45 }
 0x170   : > { %3283 = vmatpush3.msra.mxu1 %v2631_v1  ;;  %v3576_v1 = vld [vmem:[%s3872_s25 + $0x98] sm:$0xff] }
 0x171   : > { %3284 = vmatprep.subr.mxu1 %v2646_v23  ;;  %v2714_v23 = vld [vmem:[%s5611_s1 + $0xbd8] sm:$0xff] }
 0x172   : > { %v4971_v27 = vpop.f32.mrf.mxu0  ;;  %3285 = vmatpush3.msra.mxu1 %v2630_v19  ;;  %v2698_v19 = vld [vmem:[%s5611_s1 + $0xb58] sm:$0xff] }
 0x173   : > { %v4973_v20 = vpop.f32.mrf.mxu1  ;;  %3286 = vmatprep.subr.mxu1 %v2645_v21 }
 0x174   : > { %v4981_v49 = vpop.f32.mrf.mxu0  ;;  %3287 = vmatpush3.msra.mxu1 %v2629_v63 }
 0x175   : > { %v4983_v53 = vpop.f32.mrf.mxu1  ;;  %3288 = vmatprep.subr.mxu1 %v2644_v13  ;;  %v2713_v13 = vld [vmem:[%s5611_s1 + $0xbd0] sm:$0xff] }
 0x176   : > { %3289 = vmatpush3.msra.mxu1 %v2628_v37  ;;  %v3577_v37 = vld [vmem:[%s3872_s25 + $0x90] sm:$0xff] }
 0x177   : > { %3290 = vmatprep.subr.mxu1 %v2643_v54  ;;  %v2697_v54 = vld [vmem:[%s5611_s1 + $0xb50] sm:$0xff] }
 0x178   : > { %v4997_v16 = vpop.f32.mrf.mxu0  ;;  %3291 = vmatpush3.msra.mxu1 %v2627_v55 }
 0x179   : > { %v4999_v15 = vpop.f32.mrf.mxu1  ;;  %3292 = vmatprep.subr.mxu1 %v2642_v6 }
 0x17a   : > { %v5007_v32 = vpop.f32.mrf.mxu0  ;;  %3293 = vmatpush3.msra.mxu1 %v2626_v7  ;;  %v3578_v7 = vld [vmem:[%s3872_s25 + $0xd8] sm:$0xff] }
 0x17b   : > { %v5009_v30 = vpop.f32.mrf.mxu1  ;;  %3294 = vmatprep.subr.mxu1 %v2641_v0  ;;  %v2712_v0 = vld [vmem:[%s5611_s1 + $0xbc8] sm:$0xff] }
 0x17c   : > { %3295 = vmatpush3.msra.mxu1 %v2625_v17  ;;  %v2696_v17 = vld [vmem:[%s5611_s1 + $0xb48] sm:$0xff] }
 0x17d   : > { %3296 = vmatprep.subr.mxu1 %v2640_v36 }
 0x17e   : > { %v5023_v40 = vpop.f32.mrf.mxu0  ;;  %3297 = vmatpush3.msra.mxu1 %v2624_v60 }
 0x17f   : > { %v5025_v52 = vpop.f32.mrf.mxu1  ;;  %3298 = vmatprep.subr.mxu1 %v2639_v8  ;;  %v2711_v8 = vld [vmem:[%s5611_s1 + $0xbc0] sm:$0xff] }
 0x180   : > { %v5033_v11 = vpop.f32.mrf.mxu0  ;;  %3299 = vmatpush3.msra.mxu1 %v2623_v9  ;;  %v3579_v9 = vld [vmem:[%s3872_s25 + $0xd0] sm:$0xff] }
 0x181   : > { %v5035_v50 = vpop.f32.mrf.mxu1  ;;  %1889 = vmatmul.mubr.f32.vlgmr.msra.gmra.mxu1 %v3573_v46  ;;  %3380 = vmatprep.subr.mxu1 %v2718_v31  ;;  %v2695_v31 = vld [vmem:[%s5611_s1 + $0xb40] sm:$0xff]  ;;  %v3580_v46 = vld [vmem:[%s3872_s25 + $0x118] sm:$0xff] }
 0x182   : > { %v5044_v44 = vpop.f32.mrf.mxu0  ;;  %3381 = vmatpush3.msra.mxu1 %v2702_v26  ;;  %1893 = vmatprep.mubr.f32.mxu1 %v3574_v10  ;;  %v2694_v10 = vld [vmem:[%s5611_s1 + $0xb38] sm:$0xff] }
 0x183   : > { %v5046_v47 = vpop.f32.mrf.mxu1  ;;  %3382 = vmatprep.subr.mxu1 %v2717_v25 }
 0x184   : > { %v5055_v34 = vpop.f32.mrf.mxu0  ;;  %3383 = vmatpush3.msra.mxu1 %v2701_v39  ;;  %v2710_v39 = vld [vmem:[%s5611_s1 + $0xbb8] sm:$0xff] }
 0x185   : > { %v5057_v2 = vpop.f32.mrf.mxu1  ;;  %1894 = vmatmul.mubr.f32.gmra.mxu1 %v3575_v62  ;;  %3384 = vmatprep.subr.mxu1 %v2716_v4  ;;  %v3581_v62 = vld [vmem:[%s3872_s25 + $0x110] sm:$0xff] }
 0x186   : > { %v5066_v22 = vpop.f32.mrf.mxu0  ;;  %3385 = vmatpush3.msra.mxu1 %v2700_v58  ;;  %1898 = vmatprep.mubr.f32.mxu1 %v3576_v1 }
 0x187   : > { %v5068_v45 = vpop.f32.mrf.mxu1  ;;  %3386 = vmatprep.subr.mxu1 %v2715_v61  ;;  %v2709_v61 = vld [vmem:[%s5611_s1 + $0xbb0] sm:$0xff] }
 0x188   : > { %v5077_v21 = vpop.f32.mrf.mxu0  ;;  %3387 = vmatpush3.msra.mxu1 %v2699_v12  ;;  %v2693_v12 = vld [vmem:[%s5611_s1 + $0xb30] sm:$0xff] }
 0x189   : > { %v5079_v63 = vpop.f32.mrf.mxu1  ;;  %1899 = vmatmul.mubr.f32.gmra.mxu1 %v3577_v37  ;;  %3388 = vmatprep.subr.mxu1 %v2714_v23  ;;  %v2692_v37 = vld [vmem:[%s5611_s1 + $0xb28] sm:$0xff] }
 0x18a   : > { %v5088_v55 = vpop.f32.mrf.mxu0  ;;  %3389 = vmatpush3.msra.mxu1 %v2698_v19  ;;  %1903 = vmatprep.mubr.f32.mxu1 %v3578_v7  ;;  %v3582_v19 = vld [vmem:[%s3872_s25 + $0x158] sm:$0xff] }
 0x18b   : > { %v5090_v6 = vpop.f32.mrf.mxu1  ;;  %3390 = vmatprep.subr.mxu1 %v2713_v13  ;;  %v2708_v13 = vld [vmem:[%s5611_s1 + $0xba8] sm:$0xff] }
 0x18c   : > { %v5099_v36 = vpop.f32.mrf.mxu0  ;;  %3391 = vmatpush3.msra.mxu1 %v2697_v54 }
 0x18d   : > { %v5101_v60 = vpop.f32.mrf.mxu1  ;;  %1904 = vmatmul.mubr.f32.gmra.mxu1 %v3579_v9  ;;  %3392 = vmatprep.subr.mxu1 %v2712_v0  ;;  %v2707_v0 = vld [vmem:[%s5611_s1 + $0xba0] sm:$0xff] }
 0x18e   : > { %v5110_v26 = vpop.f32.mrf.mxu0  ;;  %3393 = vmatpush3.msra.mxu1 %v2696_v17  ;;  %1908 = vmatprep.mubr.f32.mxu1 %v3580_v46  ;;  %v3583_v17 = vld [vmem:[%s3872_s25 + $0x150] sm:$0xff]  ;;  %v3584_v46 = vld [vmem:[%s3872_s25 + $0x198] sm:$0xff] }
 0x18f   : > { %v5112_v25 = vpop.f32.mrf.mxu1  ;;  %3394 = vmatprep.subr.mxu1 %v2711_v8  ;;  %v2691_v8 = vld [vmem:[%s5611_s1 + $0xb20] sm:$0xff] }
 0x190   : > { %v5121_v4 = vpop.f32.mrf.mxu0  ;;  %3395 = vmatpush3.msra.mxu1 %v2695_v31 }
 0x191   : > { %v5123_v58 = vpop.f32.mrf.mxu1  ;;  %1909 = vmatmul.mubr.f32.gmra.mxu1 %v3581_v62  ;;  %3396 = vmatprep.subr.mxu1 %v2710_v39  ;;  %v2706_v39 = vld [vmem:[%s5611_s1 + $0xb98] sm:$0xff]  ;;  %v3072_v62 = vadd.f32 %v4983_v53, %v4973_v20  ;;  %v3013_v20 = vadd.f32 %v4955_v5, %v4945_v29  ;;  %v3010_v29 = vadd.f32 %v4929_v59, %v4918_v57  ;;  %v2687_v57 = vld [vmem:[%s5611_s1 + $0xb00] sm:$0xff] }
 0x192   : > { %v3123_v1 = vpop.f32.mrf.mxu0  ;;  %3397 = vmatpush3.msra.mxu1 %v2694_v10  ;;  %1913 = vmatprep.mubr.f32.mxu1 %v3582_v19  ;;  %v2690_v10 = vld [vmem:[%s5611_s1 + $0xb18] sm:$0xff]  ;;  %v3063_v59 = vadd.f32 %v4899_v38, %v4888_v56 }
 0x193   : > { %v5132_v23 = vpop.f32.mrf.mxu1  ;;  %3398 = vmatprep.subr.mxu1 %v2709_v61  ;;  %v3016_v61 = vadd.f32 %v4981_v49, %v4971_v27  ;;  %v2689_v27 = vld [vmem:[%s5611_s1 + $0xb10] sm:$0xff]  ;;  %v3069_v49 = vadd.f32 %v4957_v24, %v4947_v28  ;;  %v3066_v28 = vadd.f32 %v4931_v14, %v4920_v35  ;;  %v3007_v35 = vadd.f32 %v4897_v3, %v4886_v51 }
 0x194   : > { %v3124_v54 = vpop.f32.mrf.mxu0  ;;  %3399 = vmatpush3.msra.mxu1 %v2693_v12  ;;  %v3060_v51 = vadd.f32 %v4872_v48, %v4866_v43  ;;  %v3119_v3 = vadd.f32 %v5099_v36, %v5088_v55  ;;  %v3113_v36 = vadd.f32 %v5055_v34, %v5044_v44  ;;  %v3175_v44 = vadd.f32 %v5101_v60, %v5090_v6 }
 0x195   : > { %v5141_v7 = vpop.f32.mrf.mxu1  ;;  %1914 = vmatmul.mubr.f32.gmra.mxu1 %v3583_v17  ;;  %3400 = vmatprep.subr.mxu1 %v2708_v13  ;;  %v2705_v13 = vld [vmem:[%s5611_s1 + $0xb90] sm:$0xff]  ;;  %v1172_v5 = vadd.f32 %v3072_v62, %v3016_v61  ;;  %v1167_v14 = vadd.f32 %v3069_v49, %v3013_v20  ;;  %v3588_v61 = vld [vmem:[%s3872_s25 + $0x38] sm:$0xff]  ;;  %v1162_v56 = vadd.f32 %v3066_v28, %v3010_v29  ;;  %v2620_v28 = vld [vmem:[%s5611_s1 + $0x8e8] sm:$0xff] }
 0x196   : > { %v3126_v9 = vpop.f32.mrf.mxu0  ;;  %3401 = vmatpush3.msra.mxu1 %v2692_v37  ;;  %1918 = vmatprep.mubr.f32.mxu1 %v3584_v46  ;;  %v3019_v37 = vadd.f32 %v5007_v32, %v4997_v16  ;;  %v3585_v17 = vld [vmem:[%s3872_s25 + $0x190] sm:$0xff]  ;;  %v3586_v16 = vld [vmem:[%s3872_s25 + $0x1d8] sm:$0xff]  ;;  %v3181_v43 = vadd.f32 %v5141_v7, %v5132_v23  ;;  %v3169_v6 = vadd.f32 %v5057_v2, %v5046_v47 }
 0x197   : > { %v3182_v31 = vpop.f32.mrf.mxu1  ;;  %3402 = vmatprep.subr.mxu1 %v2707_v0  ;;  %v3075_v0 = vadd.f32 %v5009_v30, %v4999_v15  ;;  %v2704_v15 = vld [vmem:[%s5611_s1 + $0xb88] sm:$0xff]  ;;  %v3590_v20 = vld [vmem:[%s3872_s25 + $0x78] sm:$0xff]  ;;  %v2581_v47 = vld [vmem:[%s5612_s2 + $0x30] sm:$0xff] }
 0x198   : > { %v3127_v12 = vpop.f32.mrf.mxu0  ;;  %3403 = vmatpush3.msra.mxu1 %v2691_v8  ;;  %v2688_v30 = vld [vmem:[%s5611_s1 + $0xb08] sm:$0xff]  ;;  %v3597_v2 = vld [vmem:[%s3872_s25 + $0x130] sm:$0xff] }
 0x199   : > { %v3183_v19 = vpop.f32.mrf.mxu1  ;;  %1919 = vmatmul.mubr.f32.gmra.mxu1 %v3585_v17  ;;  %3404 = vmatprep.subr.mxu1 %v2706_v39  ;;  %v3128_v32 = vadd.f32 %v3127_v12, %v3126_v9  ;;  %v2703_v9 = vld [vmem:[%s5611_s1 + $0xb80] sm:$0xff]  ;;  %v1177_v39 = vadd.f32 %v3075_v0, %v3019_v37  ;;  %v3004_v0 = vadd.f32 %v4870_v41, %v4864_v42  ;;  %v2605_v29 = vld [vmem:[%s5611_s1 + $0x870] sm:$0xff] }
 0x19a   : > { %v3129_v53 = vpop.f32.mrf.mxu0  ;;  %3405 = vmatpush3.msra.mxu1 %v2690_v10  ;;  %1923 = vmatprep.mubr.f32.mxu1 %v3586_v16  ;;  %v3125_v10 = vadd.f32 %v3124_v54, %v3123_v1  ;;  %v3122_v1 = vadd.f32 %v5121_v4, %v5110_v26  ;;  %v3184_v17 = vadd.f32 %v3183_v19, %v3182_v31  ;;  %v3589_v26 = vld [vmem:[%s3872_s25 + $0x30] sm:$0xff]  ;;  %v3596_v16 = vld [vmem:[%s3872_s25 + $0x138] sm:$0xff] }
 0x19b   : > { %v3185_v8 = vpop.f32.mrf.mxu1  ;;  %3406 = vmatprep.subr.mxu1 %v2705_v13  ;;  %v3587_v13 = vld [vmem:[%s3872_s25 + $0x1d0] sm:$0xff]  ;;  %v1277_v54 = vadd.f32 %v3128_v32, %v1172_v5  ;;  %v1157_v4 = vadd.f32 %v3063_v59, %v3007_v35  ;;  %v3116_v42 = vadd.f32 %v5077_v21, %v5066_v22  ;;  %v1152_v55 = vadd.f32 %v3060_v51, %v3004_v0  ;;  %v3592_v22 = vld [vmem:[%s3872_s25 + $0xb8] sm:$0xff]  ;;  %v2599_v0 = vld [vmem:[%s5611_s1 + $0x840] sm:$0xff] }
 0x19c   : > { %v3130_v24 = vpop.f32.mrf.mxu0  ;;  %3407 = vmatpush3.msra.mxu1 %v2689_v27  ;;  %v1272_v38 = vadd.f32 %v3125_v10, %v1167_v14  ;;  %v1267_v41 = vadd.f32 %v3122_v1, %v1162_v56  ;;  %v3178_v19 = vadd.f32 %v5123_v58, %v5112_v25  ;;  %v3110_v21 = vadd.f32 %v5033_v11, %v5023_v40  ;;  %v3594_v40 = vld [vmem:[%s3872_s25 + $0xf8] sm:$0xff]  ;;  %v2621_v32 = vld [vmem:[%s5611_s1 + $0x8f0] sm:$0xff]  ;;  %v2603_v10 = vld [vmem:[%s5611_s1 + $0x860] sm:$0xff] }
 0x19d   : > { %v3186_v46 = vpop.f32.mrf.mxu1  ;;  %v3131_v12 = vadd.f32 %v3130_v24, %v3129_v53  ;;  %1924 = vmatmul.mubr.f32.gmra.mxu1 %v3587_v13  ;;  %3408 = vmatprep.subr.mxu1 %v2704_v15  ;;  %v1382_v48 = vadd.f32 %v3184_v17, %v1277_v54  ;;  %v1262_v31 = vadd.f32 %v3119_v3, %v1157_v4  ;;  %v3591_v53 = vld [vmem:[%s3872_s25 + $0x70] sm:$0xff]  ;;  %v2582_v5 = vld [vmem:[%s5612_s2 + $0x38] sm:$0xf]  ;;  %v2604_v24 = vld [vmem:[%s5611_s1 + $0x868] sm:$0xff] }
 0x19e   : > { %3409 = vmatpush3.msra.mxu1 %v2688_v30  ;;  %2098 = vmatprep.mubr.f32.mxu1 %v3588_v61  ;;  %v3187_v37 = vadd.f32 %v3186_v46, %v3185_v8  ;;  %v1377_v49 = vadd.f32 %v3181_v43, %v1272_v38  ;;  %v1257_v23 = vadd.f32 %v3116_v42, %v1152_v55  ;;  %v3593_v8 = vld [vmem:[%s3872_s25 + $0xb0] sm:$0xff]  ;;  %v3598_v30 = vld [vmem:[%s3872_s25 + $0x178] sm:$0xff]  ;;  %v3601_v13 = vld [vmem:[%s3872_s25 + $0x8] sm:$0xff] }
 0x19f   : > { %v1282_v62 = vadd.f32 %v3131_v12, %v1177_v39  ;;  %3410 = vmatprep.subr.mxu1 %v2703_v9  ;;  %v1372_v34 = vadd.f32 %v3178_v19, %v1267_v41  ;;  %v1252_v25 = vadd.f32 %v3113_v36, %v4862_v33  ;;  %v3172_v58 = vadd.f32 %v5079_v63, %v5068_v45  ;;  %v3595_v63 = vld [vmem:[%s3872_s25 + $0xf0] sm:$0xff]  ;;  %v2619_v9 = vld [vmem:[%s5611_s1 + $0x8e0] sm:$0xff]  ;;  %v3600_v39 = vld [vmem:[%s3872_s25 + $0x1b8] sm:$0xff] }
 0x1a0   : > { %3411 = vmatpush3.msra.mxu1 %v2687_v57  ;;  %v1367_v7 = vadd.f32 %v3175_v44, %v1262_v31  ;;  %v1247_v11 = vadd.f32 %v3110_v21, %v4850_v18  ;;  %v3166_v33 = vadd.f32 %v5035_v50, %v5025_v52  ;;  %v2580_v18 = vld [vmem:[%s5612_s2 + $0x28] sm:$0xff]  ;;  %v2622_v52 = vld [vmem:[%s5611_s1 + $0x8f8] sm:$0xff]  ;;  %v3599_v46 = vld [vmem:[%s3872_s25 + $0x170] sm:$0xff] }
 0x1a1   : > { %v1387_v27 = vadd.f32 %v3187_v37, %v1282_v62  ;;  %2099 = vmatmul.mubr.f32.vlgmr.msra.gmra.mxu1 %v3589_v26  ;;  %v1362_v60 = vadd.f32 %v3172_v58, %v1257_v23  ;;  %v1357_v45 = vadd.f32 %v3169_v6, %v1252_v25  ;;  %v2606_v50 = vld [vmem:[%s5611_s1 + $0x878] sm:$0xff]  ;;  %v3602_v35 = vld [vmem:[%s3872_s25 + $0x1b0] sm:$0xff]  ;;  %v2616_v1 = vld [vmem:[%s5611_s1 + $0x8c8] sm:$0xff] }
 0x1a2   : > { %2103 = vmatprep.mubr.f32.mxu1 %v3590_v20  ;;  %v1352_v15 = vadd.f32 %v3166_v33, %v1247_v11  ;;  %v2618_v12 = vld [vmem:[%s5611_s1 + $0x8d8] sm:$0xff]  ;;  %v2617_v59 = vld [vmem:[%s5611_s1 + $0x8d0] sm:$0xff]  ;;  %v2600_v54 = vld [vmem:[%s5611_s1 + $0x848] sm:$0xff] }
 0x1a3   : > { %3460 = vmatprep.subr.mxu0 %v1387_v27  ;;  %v2602_v57 = vld [vmem:[%s5611_s1 + $0x858] sm:$0xff]  ;;  %v2601_v61 = vld [vmem:[%s5611_s1 + $0x850] sm:$0xff]  ;;  %v2615_v37 = vld [vmem:[%s5611_s1 + $0x8c0] sm:$0xff] }
 0x1a4   : > { %3461 = vmatpush3.msra.mxu0 %v1387_v27  ;;  %v3603_v14 = vld [vmem:[%s3872_s25 + $0x1f8] sm:$0xff]  ;;  %v3604_v62 = vld [vmem:[%s3872_s25 + $0x1f0] sm:$0xff]  ;;  %v2612_v17 = vld [vmem:[%s5611_s1 + $0x8a8] sm:$0xff] }
 0x1a5   : > { %3462 = vmatprep.subr.mxu0 %v1382_v48  ;;  %2104 = vmatmul.mubr.f32.gmra.mxu1 %v3591_v53  ;;  %v2614_v51 = vld [vmem:[%s5611_s1 + $0x8b8] sm:$0xff]  ;;  %v2613_v3 = vld [vmem:[%s5611_s1 + $0x8b0] sm:$0xff]  ;;  %v2596_v27 = vld [vmem:[%s5611_s1 + $0x828] sm:$0xff] }
 0x1a6   : > { %3463 = vmatpush3.msra.mxu0 %v1382_v48  ;;  %2108 = vmatprep.mubr.f32.mxu1 %v3592_v22  ;;  %v2598_v56 = vld [vmem:[%s5611_s1 + $0x838] sm:$0xff]  ;;  %v2597_v38 = vld [vmem:[%s5611_s1 + $0x830] sm:$0xff]  ;;  %v2611_v26 = vld [vmem:[%s5611_s1 + $0x8a0] sm:$0xff] }
 0x1a7   : > { %3464 = vmatprep.subr.mxu0 %v1377_v49  ;;  %v2595_v4 = vld [vmem:[%s5611_s1 + $0x820] sm:$0xff]  ;;  %v2610_v20 = vld [vmem:[%s5611_s1 + $0x898] sm:$0xff]  ;;  %v2609_v41 = vld [vmem:[%s5611_s1 + $0x890] sm:$0xff] }
 0x1a8   : > { %3465 = vmatpush3.msra.mxu0 %v1377_v49  ;;  %v2594_v42 = vld [vmem:[%s5611_s1 + $0x818] sm:$0xff]  ;;  %v2593_v43 = vld [vmem:[%s5611_s1 + $0x810] sm:$0xff]  ;;  %v2608_v48 = vld [vmem:[%s5611_s1 + $0x888] sm:$0xff] }
 0x1a9   : > { %3466 = vmatprep.subr.mxu0 %v1372_v34  ;;  %2109 = vmatmul.mubr.f32.gmra.mxu1 %v3593_v8  ;;  %v2592_v55 = vld [vmem:[%s5611_s1 + $0x808] sm:$0xff]  ;;  %v2607_v36 = vld [vmem:[%s5611_s1 + $0x880] sm:$0xff]  ;;  %v2686_v19 = vld [vmem:[%s5611_s1 + $0xaf8] sm:$0xff] }
 0x1aa   : > { %3467 = vmatpush3.msra.mxu0 %v1372_v34  ;;  %2113 = vmatprep.mubr.f32.mxu1 %v3594_v40  ;;  %v2591_v31 = vld [vmem:[%s5611_s1 + $0x800] sm:$0xff]  ;;  %v2670_v49 = vld [vmem:[%s5611_s1 + $0xa78] sm:$0xff]  ;;  %v2685_v53 = vld [vmem:[%s5611_s1 + $0xaf0] sm:$0xff] }
 0x1ab   : > { %3468 = vmatprep.subr.mxu0 %v1367_v7  ;;  %v3605_v22 = vld [vmem:[%s3872_s25] sm:$0xff]  ;;  %v2669_v21 = vld [vmem:[%s5611_s1 + $0xa70] sm:$0xff]  ;;  %v3606_v23 = vld [vmem:[%s3872_s25 + $0x48] sm:$0xff] }
 0x1ac   : > { %3469 = vmatpush3.msra.mxu0 %v1367_v7  ;;  %v2684_v44 = vld [vmem:[%s5611_s1 + $0xae8] sm:$0xff]  ;;  %v2683_v25 = vld [vmem:[%s5611_s1 + $0xae0] sm:$0xff]  ;;  %v2682_v40 = vld [vmem:[%s5611_s1 + $0xad8] sm:$0xff] }
 0x1ad   : > { %3470 = vmatprep.subr.mxu0 %v1362_v60  ;;  %2114 = vmatmul.mubr.f32.gmra.mxu1 %v3595_v63  ;;  %v2668_v34 = vld [vmem:[%s5611_s1 + $0xa68] sm:$0xff]  ;;  %v3607_v58 = vld [vmem:[%s3872_s25 + $0x40] sm:$0xff]  ;;  %v2666_v11 = vld [vmem:[%s5611_s1 + $0xa58] sm:$0xff] }
 0x1ae   : > { %3471 = vmatpush3.msra.mxu0 %v1362_v60  ;;  %2118 = vmatprep.mubr.f32.mxu1 %v3596_v16  ;;  %v2667_v7 = vld [vmem:[%s5611_s1 + $0xa60] sm:$0xff]  ;;  %v3608_v8 = vld [vmem:[%s3872_s25 + $0x88] sm:$0xff]  ;;  %v2681_v6 = vld [vmem:[%s5611_s1 + $0xad0] sm:$0xff] }
 0x1af   : > { %3472 = vmatprep.subr.mxu0 %v1357_v45  ;;  %v3609_v60 = vld [vmem:[%s3872_s25 + $0x80] sm:$0xff]  ;;  %v2665_v33 = vld [vmem:[%s5611_s1 + $0xa50] sm:$0xff]  ;;  %v2680_v63 = vld [vmem:[%s5611_s1 + $0xac8] sm:$0xff] }
 0x1b0   : > { %3473 = vmatpush3.msra.mxu0 %v1357_v45  ;;  %v3610_v45 = vld [vmem:[%s3872_s25 + $0xc8] sm:$0xff] }
 0x1b1   : > { %3474 = vmatprep.subr.mxu0 %v1352_v15  ;;  %2119 = vmatmul.mubr.f32.gmra.mxu1 %v3597_v2  ;;  %v2664_v16 = vld [vmem:[%s5611_s1 + $0xa48] sm:$0xff]  ;;  %v2662_v2 = vld [vmem:[%s5611_s1 + $0xa38] sm:$0xff] }
 0x1b2   : > { %3475 = vmatpush3.msra.mxu0 %v1352_v15  ;;  %2123 = vmatprep.mubr.f32.mxu1 %v3598_v30  ;;  %v2679_v15 = vld [vmem:[%s5611_s1 + $0xac0] sm:$0xff] }
 0x1b3   : > { %3477 = vmatmul.mubr.msk.f32.vlgmr.msra.gmra.mxu0 %vm1395_vm0, %v2580_v18  ;;  %3212 = vmatprep.subr.mxu0 %v2622_v52  ;;  %v3611_v18 = vld [vmem:[%s3872_s25 + $0xc0] sm:$0xff] }
 0x1b4   : > { %3213 = vmatpush3.msra.mxu0 %v2606_v50  ;;  %3479 = vmatprep.mubr.msk.f32.mxu0 %vm1395_vm0, %v2581_v47  ;;  %v2663_v52 = vld [vmem:[%s5611_s1 + $0xa40] sm:$0xff]  ;;  %v3612_v50 = vld [vmem:[%s3872_s25 + $0x108] sm:$0xff]  ;;  %v2678_v47 = vld [vmem:[%s5611_s1 + $0xab8] sm:$0xff] }
 0x1b5   : > { %3214 = vmatprep.subr.mxu0 %v2621_v32  ;;  %2124 = vmatmul.mubr.f32.gmra.mxu1 %v3599_v46  ;;  %v2677_v32 = vld [vmem:[%s5611_s1 + $0xab0] sm:$0xff]  ;;  %v3613_v30 = vld [vmem:[%s3872_s25 + $0x100] sm:$0xff] }
 0x1b6   : > { %3215 = vmatpush3.msra.mxu0 %v2605_v29  ;;  %2128 = vmatprep.mubr.f32.mxu1 %v3600_v39  ;;  %v2661_v29 = vld [vmem:[%s5611_s1 + $0xa30] sm:$0xff]  ;;  %v2675_v46 = vld [vmem:[%s5611_s1 + $0xaa0] sm:$0xff] }
 0x1b7   : > { %3216 = vmatprep.subr.mxu0 %v2620_v28  ;;  %3480 = vmatmul.mubr.msk.f32.gmra.mxu0 %vm1395_vm0, %v2582_v5  ;;  %v3614_v28 = vld [vmem:[%s3872_s25 + $0x148] sm:$0xff]  ;;  %v2659_v39 = vld [vmem:[%s5611_s1 + $0xa20] sm:$0xff] }
 0x1b8   : > { %3217 = vmatpush3.msra.mxu0 %v2604_v24  ;;  %1783 = vmatprep.mubr.f32.mxu0 %v3601_v13  ;;  %v2676_v5 = vld [vmem:[%s5611_s1 + $0xaa8] sm:$0xff]  ;;  %v2658_v13 = vld [vmem:[%s5611_s1 + $0xa18] sm:$0xff] }
 0x1b9   : > { %3218 = vmatprep.subr.mxu0 %v2619_v9  ;;  %2129 = vmatmul.mubr.f32.gmra.mxu1 %v3602_v35  ;;  %v2660_v24 = vld [vmem:[%s5611_s1 + $0xa28] sm:$0xff]  ;;  %v3615_v9 = vld [vmem:[%s3872_s25 + $0x140] sm:$0xff] }
 0x1ba   : > { %3219 = vmatpush3.msra.mxu0 %v2603_v10  ;;  %2133 = vmatprep.mubr.f32.mxu1 %v3603_v14  ;;  %v3616_v10 = vld [vmem:[%s3872_s25 + $0x188] sm:$0xff]  ;;  %v3617_v35 = vld [vmem:[%s3872_s25 + $0x180] sm:$0xff] }
 0x1bb   : > { %3220 = vmatprep.subr.mxu0 %v2618_v12  ;;  %v2674_v12 = vld [vmem:[%s5611_s1 + $0xa98] sm:$0xff]  ;;  %v3618_v14 = vld [vmem:[%s3872_s25 + $0x1c8] sm:$0xff] }
 0x1bc   : > { %3221 = vmatpush3.msra.mxu0 %v2602_v57  ;;  %v2673_v57 = vld [vmem:[%s5611_s1 + $0xa90] sm:$0xff] }
 0x1bd   : > { %3222 = vmatprep.subr.mxu0 %v2617_v59  ;;  %2134 = vmatmul.mubr.f32.gmra.mxu1 %v3604_v62  ;;  %v2657_v59 = vld [vmem:[%s5611_s1 + $0xa10] sm:$0xff]  ;;  %v3619_v62 = vld [vmem:[%s3872_s25 + $0x1c0] sm:$0xff] }
 0x1be   : > { %3223 = vmatpush3.msra.mxu0 %v2601_v61  ;;  %v2672_v61 = vld [vmem:[%s5611_s1 + $0xa88] sm:$0xff] }
 0x1bf   : > { %3224 = vmatprep.subr.mxu0 %v2616_v1  ;;  %v2656_v1 = vld [vmem:[%s5611_s1 + $0xa08] sm:$0xff] }
 0x1c0   : > { %3225 = vmatpush3.msra.mxu0 %v2600_v54  ;;  %v2671_v54 = vld [vmem:[%s5611_s1 + $0xa80] sm:$0xff] }
 0x1c1   : > { %3226 = vmatprep.subr.mxu0 %v2615_v37  ;;  %v2655_v37 = vld [vmem:[%s5611_s1 + $0xa00] sm:$0xff] }
 0x1c2   : > { %3227 = vmatpush3.msra.mxu0 %v2599_v0  ;;  %v3620_v0 = vld [vmem:[%s3872_s25 + $0x28] sm:$0xff] }
 0x1c3   : > { %3228 = vmatprep.subr.mxu0 %v2614_v51  ;;  %v3621_v51 = vld [vmem:[%s3872_s25 + $0x20] sm:$0xff] }
 0x1c4   : > { %3229 = vmatpush3.msra.mxu0 %v2598_v56  ;;  %v3622_v56 = vld [vmem:[%s3872_s25 + $0x68] sm:$0xff] }
 0x1c5   : > { %3230 = vmatprep.subr.mxu0 %v2613_v3  ;;  %v3623_v3 = vld [vmem:[%s3872_s25 + $0x60] sm:$0xff] }
 0x1c6   : > { %3231 = vmatpush3.msra.mxu0 %v2597_v38  ;;  %v3624_v38 = vld [vmem:[%s3872_s25 + $0xa8] sm:$0xff] }
 0x1c7   : > { %3232 = vmatprep.subr.mxu0 %v2612_v17  ;;  %v3625_v17 = vld [vmem:[%s3872_s25 + $0xa0] sm:$0xff] }
 0x1c8   : > { %3233 = vmatpush3.msra.mxu0 %v2596_v27  ;;  %v3626_v27 = vld [vmem:[%s3872_s25 + $0xe8] sm:$0xff] }
 0x1c9   : > { %3234 = vmatprep.subr.mxu0 %v2611_v26  ;;  %v3627_v26 = vld [vmem:[%s3872_s25 + $0xe0] sm:$0xff] }
 0x1ca   : > { %3235 = vmatpush3.msra.mxu0 %v2595_v4  ;;  %v3628_v4 = vld [vmem:[%s3872_s25 + $0x128] sm:$0xff] }
 0x1cb   : > { %3236 = vmatprep.subr.mxu0 %v2610_v20  ;;  %v3629_v20 = vld [vmem:[%s3872_s25 + $0x120] sm:$0xff] }
 0x1cc   : > { %3237 = vmatpush3.msra.mxu0 %v2594_v42  ;;  %v3630_v42 = vld [vmem:[%s3872_s25 + $0x168] sm:$0xff] }
 0x1cd   : > { %3238 = vmatprep.subr.mxu0 %v2609_v41  ;;  %v3631_v41 = vld [vmem:[%s3872_s25 + $0x160] sm:$0xff] }
 0x1ce   : > { %3239 = vmatpush3.msra.mxu0 %v2593_v43  ;;  %v3632_v43 = vld [vmem:[%s3872_s25 + $0x1a8] sm:$0xff] }
 0x1cf   : > { %3240 = vmatprep.subr.mxu0 %v2608_v48  ;;  %v3633_v48 = vld [vmem:[%s3872_s25 + $0x1a0] sm:$0xff] }
 0x1d0   : > { %3241 = vmatpush3.msra.mxu0 %v2592_v55  ;;  %v3634_v55 = vld [vmem:[%s3872_s25 + $0x1e8] sm:$0xff] }
 0x1d1   : > { %3242 = vmatprep.subr.mxu0 %v2607_v36  ;;  %v3635_v36 = vld [vmem:[%s3872_s25 + $0x1e0] sm:$0xff] }
 0x1d2   : > { %3243 = vmatpush3.msra.mxu0 %v2591_v31 }
 0x1d3   : > { %1784 = vmatmul.mubr.f32.vlgmr.msra.gmra.mxu0 %v3605_v22  ;;  %3324 = vmatprep.subr.mxu0 %v2686_v19 }
 0x1d4   : > { %3325 = vmatpush3.msra.mxu0 %v2670_v49  ;;  %1788 = vmatprep.mubr.f32.mxu0 %v3606_v23 }
 0x1d5   : > { %3326 = vmatprep.subr.mxu0 %v2685_v53 }
 0x1d6   : > { %3327 = vmatpush3.msra.mxu0 %v2669_v21 }
 0x1d7   : > { %1789 = vmatmul.mubr.f32.gmra.mxu0 %v3607_v58  ;;  %3328 = vmatprep.subr.mxu0 %v2684_v44 }
 0x1d8   : > { %3329 = vmatpush3.msra.mxu0 %v2668_v34  ;;  %1793 = vmatprep.mubr.f32.mxu0 %v3608_v8 }
 0x1d9   : > { %3330 = vmatprep.subr.mxu0 %v2683_v25 }
 0x1da   : > { %3331 = vmatpush3.msra.mxu0 %v2667_v7  ;;  %v2719_v7 = vld [vmem:[%s5612_s2 + $0x40] sm:$0xff] }
 0x1db   : > { %1794 = vmatmul.mubr.f32.gmra.mxu0 %v3609_v60  ;;  %3332 = vmatprep.subr.mxu0 %v2682_v40  ;;  %v2250_v60 = vld [vmem:[%s5613_s3 + $0x28] sm:$0xff] }
 0x1dc   : > { %3333 = vmatpush3.msra.mxu0 %v2666_v11  ;;  %1798 = vmatprep.mubr.f32.mxu0 %v3610_v45  ;;  %v2252_v11 = vld [vmem:[%s5613_s3 + $0x38] sm:$0xff]  ;;  %v2249_v45 = vld [vmem:[%s5613_s3 + $0x20] sm:$0xff] }
 0x1dd   : > { %3334 = vmatprep.subr.mxu0 %v2681_v6  ;;  %v2251_v6 = vld [vmem:[%s5613_s3 + $0x30] sm:$0xff]  ;;  %3526 = vmatprep.subr.mxu1 %v2252_v11 }
 0x1de   : > { %3335 = vmatpush3.msra.mxu0 %v2665_v33  ;;  %3527 = vmatpush3.msra.mxu1 %v2252_v11 }
 0x1df   : > { %1799 = vmatmul.mubr.f32.gmra.mxu0 %v3611_v18  ;;  %3336 = vmatprep.subr.mxu0 %v2680_v63  ;;  %v2248_v63 = vld [vmem:[%s5613_s3 + $0x18] sm:$0xff] }
 0x1e0   : > { %3337 = vmatpush3.msra.mxu0 %v2664_v16  ;;  %1803 = vmatprep.mubr.f32.mxu0 %v3612_v50 }
 0x1e1   : > { %3338 = vmatprep.subr.mxu0 %v2679_v15  ;;  %3528 = vmatprep.subr.mxu1 %v2251_v6 }
 0x1e2   : > { %3339 = vmatpush3.msra.mxu0 %v2663_v52  ;;  %3529 = vmatpush3.msra.mxu1 %v2251_v6 }
 0x1e3   : > { %1804 = vmatmul.mubr.f32.gmra.mxu0 %v3613_v30  ;;  %3340 = vmatprep.subr.mxu0 %v2678_v47 }
 0x1e4   : > { %3341 = vmatpush3.msra.mxu0 %v2662_v2  ;;  %1808 = vmatprep.mubr.f32.mxu0 %v3614_v28 }
 0x1e5   : > { %3342 = vmatprep.subr.mxu0 %v2677_v32  ;;  %3530 = vmatprep.subr.mxu1 %v2250_v60 }
 0x1e6   : > { %3343 = vmatpush3.msra.mxu0 %v2661_v29  ;;  %3531 = vmatpush3.msra.mxu1 %v2250_v60 }
 0x1e7   : > { %1809 = vmatmul.mubr.f32.gmra.mxu0 %v3615_v9  ;;  %3344 = vmatprep.subr.mxu0 %v2676_v5 }
 0x1e8   : > { %3345 = vmatpush3.msra.mxu0 %v2660_v24  ;;  %1813 = vmatprep.mubr.f32.mxu0 %v3616_v10 }
 0x1e9   : > { %3346 = vmatprep.subr.mxu0 %v2675_v46  ;;  %3532 = vmatprep.subr.mxu1 %v2249_v45 }
 0x1ea   : > { %3347 = vmatpush3.msra.mxu0 %v2659_v39  ;;  %3533 = vmatpush3.msra.mxu1 %v2249_v45 }
 0x1eb   : > { %1814 = vmatmul.mubr.f32.gmra.mxu0 %v3617_v35  ;;  %3348 = vmatprep.subr.mxu0 %v2674_v12 }
 0x1ec   : > { %3349 = vmatpush3.msra.mxu0 %v2658_v13  ;;  %1818 = vmatprep.mubr.f32.mxu0 %v3618_v14 }
 0x1ed   : > { %3350 = vmatprep.subr.mxu0 %v2673_v57  ;;  %3534 = vmatprep.subr.mxu1 %v2248_v63 }
 0x1ee   : > { %3351 = vmatpush3.msra.mxu0 %v2657_v59  ;;  %3535 = vmatpush3.msra.mxu1 %v2248_v63 }
 0x1ef   : > { %1819 = vmatmul.mubr.f32.gmra.mxu0 %v3619_v62  ;;  %3352 = vmatprep.subr.mxu0 %v2672_v61 }
 0x1f0   : > { %3353 = vmatpush3.msra.mxu0 %v2656_v1  ;;  %1993 = vmatprep.mubr.f32.mxu0 %v3620_v0 }
 0x1f1   : > { %3354 = vmatprep.subr.mxu0 %v2671_v54 }
 0x1f2   : > { %3355 = vmatpush3.msra.mxu0 %v2655_v37 }
 0x1f3   : > { %1994 = vmatmul.mubr.f32.vlgmr.msra.gmra.mxu0 %v3621_v51 }
 0x1f4   : > { %1998 = vmatprep.mubr.f32.mxu0 %v3622_v56 }
 0x1f7   : > { %1999 = vmatmul.mubr.f32.gmra.mxu0 %v3623_v3 }
 0x1f8   : > { %2003 = vmatprep.mubr.f32.mxu0 %v3624_v38 }
 0x1fb   : > { %2004 = vmatmul.mubr.f32.gmra.mxu0 %v3625_v17 }
 0x1fc   : > { %2008 = vmatprep.mubr.f32.mxu0 %v3626_v27 }
 0x1ff   : > { %2009 = vmatmul.mubr.f32.gmra.mxu0 %v3627_v26 }
 0x200   : > { %2013 = vmatprep.mubr.f32.mxu0 %v3628_v4 }
 0x203   : > { %2014 = vmatmul.mubr.f32.gmra.mxu0 %v3629_v20 }
 0x204   : > { %2018 = vmatprep.mubr.f32.mxu0 %v3630_v42 }
 0x207   : > { %2019 = vmatmul.mubr.f32.gmra.mxu0 %v3631_v41 }
 0x208   : > { %2023 = vmatprep.mubr.f32.mxu0 %v3632_v43 }
 0x20b   : > { %2024 = vmatmul.mubr.f32.gmra.mxu0 %v3633_v48 }
 0x20c   : > { %2028 = vmatprep.mubr.f32.mxu0 %v3634_v55 }
 0x20f   : > { %2029 = vmatmul.mubr.f32.gmra.mxu0 %v3635_v36 }
 0x210   : > { %3520 = vmatprep.mubr.msk.f32.mxu0 %vm1395_vm0, %v2719_v7 }
 0x221   : > { %v5478_v31 = vpop.f32.mrf.mxu1 }
 0x222   : > { %5657 = vst [vmem:[#allocation3_spill] sm:$0xff] %v5478_v31 }
 0x223   : > { %v5480_v19 = vpop.f32.mrf.mxu1 }
 0x224   : > { %5658 = vst [vmem:[#allocation8_spill] sm:$0xff] %v5480_v19 }
 0x225   : > { %v5482_v49 = vpop.f32.mrf.mxu1 }
 0x226   : > { %5659 = vst [vmem:[#allocation9_spill] sm:$0xff] %v5482_v49 }
 0x227   : > { %v1581_v53 = vpop.f32.mrf.mxu1 }
 0x241   : > { %v3300_v22 = vpop.f32.mrf.mxu1 }
 0x243   : > { %v3301_v21 = vpop.f32.mrf.mxu1 }
 0x244   : > { %v3302_v23 = vadd.f32 %v3301_v21, %v3300_v22 }
 0x245   : > { %v3303_v44 = vpop.f32.mrf.mxu1 }
 0x247   : > { %v3304_v34 = vpop.f32.mrf.mxu1 }
 0x248   : > { %v3305_v25 = vadd.f32 %v3304_v34, %v3303_v44 }
 0x249   : > { %v5484_v58 = vpop.f32.mrf.mxu1 }
 0x24b   : > { %v5490_v8 = vpop.f32.mrf.mxu1 }
 0x24d   : > { %v5492_v40 = vpop.f32.mrf.mxu1 }
 0x24f   : > { %v5503_v33 = vpop.f32.mrf.mxu1 }
 0x251   : > { %v5513_v15 = vpop.f32.mrf.mxu1 }
 0x253   : > { %v5519_v50 = vpop.f32.mrf.mxu1 }
 0x255   : > { %v3315_v32 = vpop.f32.mrf.mxu1 }
 0x257   : > { %v3316_v30 = vpop.f32.mrf.mxu1 }
 0x259   : > { %v3318_v29 = vpop.f32.mrf.mxu1 }
 0x25b   : > { %v3319_v28 = vpop.f32.mrf.mxu1 }
 0x25d   : > { %v3321_v5 = vpop.f32.mrf.mxu1 }
 0x25f   : > { %v3322_v24 = vpop.f32.mrf.mxu1 }
 0x260   : > { %v3323_v49 = vadd.f32 %v3322_v24, %v3321_v5 }
 0x261   : > { %v5523_v9 = vpop.f32.mrf.mxu1 }
 0x262   : > { %5664 = vst [vmem:[#allocation5_spill] sm:$0xff] %v5523_v9  ;;  %v3314_v9 = vadd.f32 %v5519_v50, %v5513_v15 }
 0x263   : > { %v5527_v57 = vpop.f32.mrf.mxu1 }
 0x264   : > { %5666 = vst [vmem:[#allocation11_spill] sm:$0xff] %v5527_v57 }
 0x265   : > { %v5533_v1 = vpop.f32.mrf.mxu1 }
 0x266   : > { %5668 = vst [vmem:[#allocation13_spill] sm:$0xff] %v5533_v1 }
 0x267   : > { %v5535_v37 = vpop.f32.mrf.mxu1 }
 0x268   : > { %5669 = vst [vmem:[#allocation14_spill] sm:$0xff] %v5535_v37 }
 0x269   : > { %v5537_v56 = vpop.f32.mrf.mxu1 }
 0x26a   : > { %5670 = vst [vmem:[#allocation15_spill] sm:$0xff] %v5537_v56 }
 0x26b   : > { %v5539_v17 = vpop.f32.mrf.mxu1 }
 0x26c   : > { %5671 = vst [vmem:[#allocation16_spill] sm:$0xff] %v5539_v17 }
 0x26d   : > { %v5541_v4 = vpop.f32.mrf.mxu1 }
 0x26f   : > { %v5543_v41 = vpop.f32.mrf.mxu1 }
 0x271   : > { %v3424_v55 = vpop.f32.mrf.mxu1 }
 0x273   : > { %v5511_v16 = vpop.f32.mrf.mxu0  ;;  %v3425_v22 = vpop.f32.mrf.mxu1 }
 0x274   : > { %5660 = vst [vmem:[#allocation2_spill] sm:$0xff] %v5511_v16  ;;  %v3317_v16 = vadd.f32 %v3316_v30, %v3315_v32 }
 0x275   : > { %v5515_v18 = vpop.f32.mrf.mxu0  ;;  %v3427_v44 = vpop.f32.mrf.mxu1 }
 0x276   : > { %5661 = vst [vmem:[#allocation6_spill] sm:$0xff] %v5515_v18 }
 0x277   : > { %v5517_v52 = vpop.f32.mrf.mxu0  ;;  %v3428_v7 = vpop.f32.mrf.mxu1 }
 0x278   : > { %5662 = vst [vmem:[#allocation7_spill] sm:$0xff] %v5517_v52 }
 0x279   : > { %v1484_v47 = vpop.f32.mrf.mxu0  ;;  %v3430_v60 = vpop.f32.mrf.mxu1 }
 0x27a   : > { %v5521_v2 = vadd.f32 %v1581_v53, %v1484_v47 }
 0x27b   : > { %v3431_v47 = vpop.f32.mrf.mxu1 }
 0x27c   : > { %5663 = vst [vmem:[#allocation4_spill] sm:$0xff] %v5521_v2  ;;  %v3432_v15 = vadd.f32 %v3431_v47, %v3430_v60  ;;  %v5682_v60 = vld [vmem:[#allocation2_spill] sm:$0xff] }
 0x293   : > { %v3244_v46 = vpop.f32.mrf.mxu0 }
 0x295   : > { %v3245_v39 = vpop.f32.mrf.mxu0 }
 0x296   : > { %v3246_v10 = vadd.f32 %v3245_v39, %v3244_v46 }
 0x297   : > { %v3247_v12 = vpop.f32.mrf.mxu0 }
 0x298   : > { %v5525_v13 = vadd.f32 %v3302_v23, %v3246_v10  ;;  %v3433_v10 = vpop.f32.mrf.mxu1 }
 0x299   : > { %v3248_v35 = vpop.f32.mrf.mxu0 }
 0x29a   : > { %5665 = vst [vmem:[#allocation10_spill] sm:$0xff] %v5525_v13  ;;  %v3249_v59 = vadd.f32 %v3248_v35, %v3247_v12  ;;  %v3434_v18 = vpop.f32.mrf.mxu1 }
 0x29b   : > { %v5529_v14 = vpop.f32.mrf.mxu0 }
 0x29c   : > { %v5531_v61 = vadd.f32 %v3305_v25, %v3249_v59  ;;  %v3320_v59 = vadd.f32 %v3319_v28, %v3318_v29  ;;  %v3311_v29 = vadd.f32 %v5503_v33, %v5492_v40  ;;  %v3435_v28 = vadd.f32 %v3434_v18, %v3433_v10 }
 0x29d   : > { %v3251_v54 = vpop.f32.mrf.mxu0 }
 0x29e   : > { %5667 = vst [vmem:[#allocation12_spill] sm:$0xff] %v5531_v61  ;;  %v3252_v30 = vadd.f32 %v3251_v54, %v5529_v14 }
 0x29f   : > { %v3253_v62 = vpop.f32.mrf.mxu0 }
 0x2a1   : > { %v3254_v0 = vpop.f32.mrf.mxu0 }
 0x2a2   : > { %v3255_v61 = vadd.f32 %v3254_v0, %v3253_v62 }
 0x2a3   : > { %v3256_v51 = vpop.f32.mrf.mxu0 }
 0x2a4   : > { %v1906_v62 = vadd.f32 %v3311_v29, %v3255_v61  ;;  %v5673_v61 = vld [vmem:[#allocation15_spill] sm:$0xff] }
 0x2a5   : > { %v3257_v3 = vpop.f32.mrf.mxu0 }
 0x2a6   : > { %v3258_v57 = vadd.f32 %v3257_v3, %v3256_v51  ;;  %v3308_v51 = vadd.f32 %v5490_v8, %v5484_v58 }
 0x2a7   : > { %v3259_v38 = vpop.f32.mrf.mxu0 }
 0x2a8   : > { %v1911_v50 = vadd.f32 %v3314_v9, %v3258_v57  ;;  %v3423_v9 = vadd.f32 %v5543_v41, %v5541_v4  ;;  %v5672_v57 = vld [vmem:[#allocation12_spill] sm:$0xff]  ;;  %v5678_v4 = vld [vmem:[#allocation5_spill] sm:$0xff]  ;;  %v5679_v41 = vld [vmem:[#allocation11_spill] sm:$0xff] }
 0x2a9   : > { %v3260_v27 = vpop.f32.mrf.mxu0 }
 0x2aa   : > { %v3261_v31 = vadd.f32 %v3260_v27, %v3259_v38 }
 0x2ab   : > { %v3262_v26 = vpop.f32.mrf.mxu0 }
 0x2ac   : > { %v1916_v5 = vadd.f32 %v3317_v16, %v3261_v31  ;;  %v3426_v31 = vadd.f32 %v3425_v22, %v3424_v55  ;;  %v2721_v22 = vld [vmem:[%s5612_s2 + $0x50] sm:$0xff] }
 0x2ad   : > { %v3263_v20 = vpop.f32.mrf.mxu0 }
 0x2ae   : > { %v3264_v35 = vadd.f32 %v3263_v20, %v3262_v26  ;;  %v5676_v26 = vld [vmem:[#allocation13_spill] sm:$0xff]  ;;  %v5677_v20 = vld [vmem:[#allocation14_spill] sm:$0xff] }
 0x2af   : > { %v3265_v42 = vpop.f32.mrf.mxu0 }
 0x2b0   : > { %v1921_v1 = vadd.f32 %v3320_v59, %v3264_v35  ;;  %v5685_v35 = vld [vmem:[#allocation9_spill] sm:$0xff] }
 0x2b1   : > { %v3266_v43 = vpop.f32.mrf.mxu0 }
 0x2b2   : > { %v3267_v2 = vadd.f32 %v3266_v43, %v3265_v42  ;;  %v3417_v42 = vadd.f32 %v5677_v20, %v5676_v26 }
 0x2b3   : > { %v5545_v48 = vpop.f32.mrf.mxu0 }
 0x2b4   : > { %v1926_v13 = vadd.f32 %v3323_v49, %v3267_v2 }
 0x2b5   : > { %v5547_v36 = vpop.f32.mrf.mxu0 }
 0x2b6   : > { %v3358_v58 = vadd.f32 %v5547_v36, %v5545_v48  ;;  %v3414_v48 = vadd.f32 %v5679_v41, %v5678_v4 }
 0x2b7   : > { %v3359_v53 = vpop.f32.mrf.mxu0 }
 0x2b9   : > { %v3360_v21 = vpop.f32.mrf.mxu0 }
 0x2ba   : > { %v3361_v33 = vadd.f32 %v3360_v21, %v3359_v53  ;;  %v2720_v53 = vld [vmem:[%s5612_s2 + $0x48] sm:$0xff]  ;;  %v2722_v21 = vld [vmem:[%s5612_s2 + $0x58] sm:$0xf] }
 0x2bb   : > { %v3362_v23 = vpop.f32.mrf.mxu0 }
 0x2bc   : > { %v2001_v14 = vadd.f32 %v3361_v33, %v5672_v57 }
 0x2bd   : > { %v3363_v34 = vpop.f32.mrf.mxu0 }
 0x2be   : > { %v2106_v55 = vadd.f32 %v3417_v42, %v2001_v14 }
 0x2bf   : > { %v3365_v25 = vpop.f32.mrf.mxu0 }
 0x2c1   : > { %v3366_v11 = vpop.f32.mrf.mxu0 }
 0x2c2   : > { %v3367_v3 = vadd.f32 %v3366_v11, %v3365_v25  ;;  %v5681_v11 = vld [vmem:[#allocation8_spill] sm:$0xff] }
 0x2c3   : > { %v3368_v6 = vpop.f32.mrf.mxu0 }
 0x2c4   : > { %v2011_v16 = vadd.f32 %v3367_v3, %v1906_v62 }
 0x2c5   : > { %v3369_v45 = vpop.f32.mrf.mxu0 }
 0x2c6   : > { %v3370_v24 = vadd.f32 %v3369_v45, %v3368_v6  ;;  %v5683_v45 = vld [vmem:[#allocation3_spill] sm:$0xff] }
 0x2c7   : > { %v3371_v63 = vpop.f32.mrf.mxu0 }
 0x2c8   : > { %v2016_v0 = vadd.f32 %v3370_v24, %v1911_v50 }
 0x2c9   : > { %v3372_v46 = vpop.f32.mrf.mxu0 }
 0x2ca   : > { %v3373_v17 = vadd.f32 %v3372_v46, %v3371_v63  ;;  %v1577_v63 = vadd.f32 %v5683_v45, %v5682_v60 }
 0x2cb   : > { %v3374_v39 = vpop.f32.mrf.mxu0 }
 0x2cc   : > { %v2021_v49 = vadd.f32 %v3373_v17, %v1916_v5  ;;  %v5675_v17 = vld [vmem:[#allocation10_spill] sm:$0xff] }
 0x2cd   : > { %v3375_v12 = vpop.f32.mrf.mxu0  ;;  %v1996_v27 = vadd.f32 %v3358_v58, %v5675_v17 }
 0x2ce   : > { %v3376_v19 = vadd.f32 %v3375_v12, %v3374_v39  ;;  %v5684_v12 = vld [vmem:[#allocation7_spill] sm:$0xff] }
 0x2cf   : > { %v3377_v52 = vpop.f32.mrf.mxu0  ;;  %v2101_v36 = vadd.f32 %v3414_v48, %v1996_v27  ;;  %v1587_v59 = vadd.f32 %v5685_v35, %v5684_v12 }
 0x2d0   : > { %v2026_v38 = vadd.f32 %v3376_v19, %v1921_v1  ;;  %v1901_v19 = vadd.f32 %v3308_v51, %v3252_v30  ;;  %v5674_v1 = vld [vmem:[#allocation16_spill] sm:$0xff] }
 0x2d1   : > { %v3378_v37 = vpop.f32.mrf.mxu0  ;;  %v3420_v54 = vadd.f32 %v5674_v1, %v5673_v61 }
 0x2d2   : > { %v3379_v56 = vadd.f32 %v3378_v37, %v3377_v52  ;;  %v3429_v52 = vadd.f32 %v3428_v7, %v3427_v44  ;;  %v3364_v37 = vadd.f32 %v3363_v34, %v3362_v23  ;;  %v2131_v40 = vadd.f32 %v3432_v15, %v2026_v38  ;;  %v2247_v23 = vld [vmem:[%s5613_s3 + $0x10] sm:$0xff]  ;;  %v2246_v44 = vld [vmem:[%s5613_s3 + $0x8] sm:$0xff]  ;;  %v2245_v34 = vld [vmem:[%s5613_s3] sm:$0xff] }
 0x2d3   : > { %3536 = vmatprep.subr.mxu1 %v2247_v23  ;;  %v5680_v7 = vld [vmem:[#allocation6_spill] sm:$0xff] }
 0x2d4   : > { %v2031_v32 = vadd.f32 %v3379_v56, %v1926_v13  ;;  %v2126_v18 = vadd.f32 %v3429_v52, %v2021_v49  ;;  %v2006_v8 = vadd.f32 %v3364_v37, %v1901_v19  ;;  %v2121_v13 = vadd.f32 %v3426_v31, %v2016_v0  ;;  %3537 = vmatpush3.msra.mxu1 %v2247_v23  ;;  %v2727_v38 = vld [vmem:[%s5614_s4] ss:$0 sm:$0xff] }
 0x2d5   : > { %v2116_v56 = vadd.f32 %v3423_v9, %v2011_v16  ;;  %3538 = vmatprep.subr.mxu1 %v2246_v44  ;;  %v1572_v6 = vadd.f32 %v5681_v11, %v5680_v7 }
 0x2d6   : > { %v2136_v2 = vadd.f32 %v3435_v28, %v2031_v32  ;;  %v2111_v43 = vadd.f32 %v3420_v54, %v2006_v8  ;;  %3539 = vmatpush3.msra.mxu1 %v2246_v44  ;;  %v5686_v28 = vld [vmem:[#allocation4_spill] sm:$0xff] }
 0x2d7   : > { %3540 = vmatprep.subr.mxu1 %v2245_v34 }
 0x2d8   : > { %3504 = vmatprep.subr.mxu0 %v2136_v2  ;;  %3541 = vmatpush3.msra.mxu1 %v2245_v34 }
 0x2d9   : > { %3505 = vmatpush3.msra.mxu0 %v2136_v2 }
 0x2da   : > { %3506 = vmatprep.subr.mxu0 %v2131_v40 }
 0x2db   : > { %3507 = vmatpush3.msra.mxu0 %v2131_v40 }
 0x2dc   : > { %3508 = vmatprep.subr.mxu0 %v2126_v18 }
 0x2dd   : > { %3509 = vmatpush3.msra.mxu0 %v2126_v18 }
 0x2de   : > { %3510 = vmatprep.subr.mxu0 %v2121_v13 }
 0x2df   : > { %3511 = vmatpush3.msra.mxu0 %v2121_v13 }
 0x2e0   : > { %3512 = vmatprep.subr.mxu0 %v2116_v56 }
 0x2e1   : > { %3513 = vmatpush3.msra.mxu0 %v2116_v56 }
 0x2e2   : > { %3514 = vmatprep.subr.mxu0 %v2111_v43 }
 0x2e3   : > { %3515 = vmatpush3.msra.mxu0 %v2111_v43 }
 0x2e4   : > { %3516 = vmatprep.subr.mxu0 %v2106_v55 }
 0x2e5   : > { %3517 = vmatpush3.msra.mxu0 %v2106_v55 }
 0x2e6   : > { %3518 = vmatprep.subr.mxu0 %v2101_v36 }
 0x2e7   : > { %3519 = vmatpush3.msra.mxu0 %v2101_v36 }
 0x2e8   : > { %3521 = vmatmul.mubr.msk.f32.vlgmr.msra.gmra.mxu0 %vm1395_vm0, %v2720_v53 }
 0x2e9   : > { %3523 = vmatprep.mubr.msk.f32.mxu0 %vm1395_vm0, %v2721_v22 }
 0x2ec   : > { %3524 = vmatmul.mubr.msk.f32.gmra.mxu0 %vm1395_vm0, %v2722_v21 }
 0x3a8   : > { %v3522_v25 = vpop.f32.mrf.mxu0 }
 0x3a9   : > { %v2242_v39 = vadd.f32 %v3522_v25, %v1577_v63 }
 0x3aa   : > { %v2222_v47 = vpop.f32.mrf.mxu0 }
 0x3ab   : > { %v2241_v46 = vadd.f32 %v2222_v47, %v1572_v6 }
 0x3ac   : > { %v3525_v10 = vpop.f32.mrf.mxu0 }
 0x3ad   : > { %3542 = vmatprep.mubr.msk.f32.mxu1 %vm1395_vm0, %v2241_v46  ;;  %v2244_v24 = vadd.f32 %v3525_v10, %v1587_v59 }
 0x3ae   : > { %v2232_v29 = vpop.f32.mrf.mxu0  ;;  %3543 = vmatmul.mubr.msk.f32.vlgmr.msra.gmra.mxu1 %vm1395_vm0, %v2242_v39 }
 0x3af   : > { %v2243_v5 = vadd.f32 %v2232_v29, %v5686_v28 }
 0x3b1   : > { %3545 = vmatprep.mubr.msk.f32.mxu1 %vm1395_vm0, %v2243_v5 }
 0x3b2   : > { %3546 = vmatmul.mubr.msk.f32.gmra.mxu1 %vm1395_vm0, %v2244_v24 }
 0x46e   : > { %v3544_v32 = vpop.f32.mrf.mxu1 }
 0x46f   : > { %v2344_v30 = vadd.f32 %v3544_v32, %v2727_v38 }
 0x470   : > { %v2338_v51 = vpop.f32.mrf.mxu1 }
 0x471   : > { %v2733_v15 = vmul.f32 -1.442695, %v2344_v30  ;;  %v2339_v50 = vadd.f32 %v2727_v38, %v2338_v51 }
 0x472   : > { %v3547_v3 = vpop.f32.mrf.mxu1 }
 0x473   : > { %3556 = vpow2.f32 %v2733_v15  ;;  %v2732_v49 = vmul.f32 -1.442695, %v2339_v50  ;;  %v2354_v2 = vadd.f32 %v3547_v3, %v2727_v38 }
 0x474   : > { %v2348_v52 = vpop.f32.mrf.mxu1 }
 0x475   : > { %3558 = vpow2.f32 %v2732_v49  ;;  %v2735_v62 = vmul.f32 -1.442695, %v2354_v2  ;;  %v2349_v37 = vadd.f32 %v2727_v38, %v2348_v52 }
 0x477   : > { %3560 = vpow2.f32 %v2735_v62  ;;  %v2734_v0 = vmul.f32 -1.442695, %v2349_v37 }
 0x479   : > { %3562 = vpow2.f32 %v2734_v0 }
 0x480   : > { %v3557_v40 = vpop.eup %3556 }
 0x481   : > { %v2370_v31 = vadd.f32 1.0, %v3557_v40 }
 0x482   : > { %v3559_v19 = vpop.eup %3558 }
 0x483   : > { %3564 = vrcp.f32 %v2370_v31  ;;  %v2369_v33 = vadd.f32 1.0, %v3559_v19 }
 0x484   : > { %v3561_v16 = vpop.eup %3560 }
 0x485   : > { %3566 = vrcp.f32 %v2369_v33  ;;  %v2372_v18 = vadd.f32 1.0, %v3561_v16 }
 0x486   : > { %v3563_v58 = vpop.eup %3562 }
 0x487   : > { %3568 = vrcp.f32 %v2372_v18  ;;  %v2371_v8 = vadd.f32 1.0, %v3563_v58 }
 0x489   : > { %3570 = vrcp.f32 %v2371_v8 }
 0x490   : > { %v3565_v9 = vpop.eup %3564 }
 0x491   : > { %2383 = vst.msk [vmem:[%s224_s14 + $0x8] sm:$0xff] %vm2381_vm1, %v3565_v9 }
 0x492   : > { %v3567_v13 = vpop.eup %3566 }
 0x493   : > { %2382 = vst.msk [vmem:[%s224_s14] sm:$0xff] %vm2381_vm1, %v3567_v13 }
 0x494   : > { %v3569_v57 = vpop.eup %3568 }
 0x495   : > { %2386 = vst.msk [vmem:[%s224_s14 + $0x18] sm:$0xf] %vm2385_vm2, %v3569_v57 }
 0x496   : > { %v3571_v14 = vpop.eup %3570 }
 0x497   : > { %2384 = vst.msk [vmem:[%s224_s14 + $0x10] sm:$0xff] %vm2381_vm1, %v3571_v14 }
 0x498 PF: > { %s15_s18 = sadd.s32 1, %s3642_s18  }
 0x499   : > { %p12_p4 = scmp.ge.s32.totalorder %s15_s18, 4  }
 0x49b   :  { %14 = sbr.rel (!%p12_p4) target bundleno = 1 (0x1), region = 74 }

</bundles_post_ra>
